<compile_context>
chip_gen: v7x
topology: tpu7x:2x2x1
jax: 0.10.0
libtpu: 0.0.40
codegen_flags: <defaults>
</compile_context>

<pallas_src>
import functools

import jax
import jax.numpy as jnp
from jax.experimental import pallas as pl
from jax.experimental.pallas import tpu as pltpu

LN_EPS = 1e-5                    # torch.nn.LayerNorm default
NEG_INF = -1e30                  # finite mask fill: avoids NaN for fully masked rows


def _vmem_limit_bytes():
    """Chip-aware scoped-VMEM limit with a conservative fallback."""
    try:
        cap = pltpu.get_tpu_info().vmem_capacity_bytes
        return int(min(cap * 0.85, 112 * 1024 * 1024))   # ~54 MiB v7x, ~108 MiB v5e/v6e
    except Exception:
        return 48 * 1024 * 1024                          # fits every generation


def _auto_tile(n, c, vmem_budget):
    """Largest row-tile (divisor of n) whose working set fits the VMEM budget."""
    per_row = (4 * n * c * 4      # pair in+out blocks, double-buffered, fp32
               + 4 * n * n * 4    # fp32 score/exp/prob softmax intermediates (+slack)
               + 12 * n * c)      # qkv + attention scratch (bf16/fp32 mix)
    t = max(1, min(n, int((vmem_budget // 2) // per_row)))
    while n % t:
        t -= 1
    return t


# ----------------------------- in-kernel helpers -----------------------------

def _layernorm(x, gamma, beta, eps=LN_EPS):
    mean = jnp.mean(x, axis=-1, keepdims=True)
    xc = x - mean
    var = jnp.mean(xc * xc, axis=-1, keepdims=True)
    return xc * jax.lax.rsqrt(var + eps) * gamma + beta


def _mha_rows(x, bias, wqkv, bqkv, wout, bout, att_scratch, num_heads):
    """Row-wise multi-head attention on a tile of rows.

    x:    (T, n, c) fp32 rows of the pair representation.
    bias: (n, n)    additive score bias (distance term + mask fill), precomputed
                    in the wrapper and shared by all rows/heads.

    1/sqrt(d) is already folded into the Q columns of Wqkv (wrapper side).
    Weights arrive pre-cast to bf16; accumulation is fp32.  Per-head attended
    values are written into lane-slices of `att_scratch` (a (T*n, c) bf16 VMEM
    scratch), then a single K=c matmul applies the full W_out.
    """
    t, n, c = x.shape
    d = c // num_heads

    qkv = jnp.dot(x.reshape(t * n, c).astype(jnp.bfloat16), wqkv,
                  preferred_element_type=jnp.float32) + bqkv
    qkv = qkv.reshape(t, n, 3 * c).astype(jnp.bfloat16)

    bias3 = bias[None, :, :]
    for h in range(num_heads):                   # static unroll over heads
        qh = qkv[:, :, h * d:(h + 1) * d]
        kh = qkv[:, :, c + h * d:c + (h + 1) * d]
        vh = qkv[:, :, 2 * c + h * d:2 * c + (h + 1) * d]
        # scores[t, j, k] = <q[t, j], k[t, k]>   (1/sqrt(d) folded into q)
        s = jnp.einsum('tjd,tkd->tjk', qh, kh,
                       preferred_element_type=jnp.float32) + bias3
        m = jnp.max(s, axis=-1, keepdims=True)
        e = jnp.exp(s - m)
        p = e * pl.reciprocal(jnp.sum(e, axis=-1, keepdims=True), approx=True)
        ah = jnp.einsum('tjk,tkd->tjd', p.astype(jnp.bfloat16), vh,
                        preferred_element_type=jnp.float32)
        # stash head h in its lane slice; output projection is fused below
        att_scratch[:, h * d:(h + 1) * d] = ah.reshape(t * n, d).astype(jnp.bfloat16)

    out = jnp.dot(att_scratch[...], wout,
                  preferred_element_type=jnp.float32) + bout
    return out.reshape(t, n, c)


# ------------------------------- Pallas kernels -------------------------------

def _row_stage_kernel(pair_ref, single_ref, bias_ref, wqkv_ref, bqkv_ref,
                      wout_ref, bout_ref, g_ref, b_ref,
                      out_ref, colred_ref, att_scratch, *, num_heads):
    """Per row-tile: LN_row(pair + tri_update_out) -> LN_row(. + row attn),
    plus accumulation of the incoming-update column reduction."""
    pair = pair_ref[...]                       # (T, n, c) fp32 tile of rows
    single = single_ref[...]                   # (n, c)
    g, b = g_ref[...], b_ref[...]
    t, n, _ = pair.shape

    i0 = pl.program_id(0) * t
    row_g = i0 + jax.lax.broadcasted_iota(jnp.int32, (t, n), 0)   # global row index
    col = jax.lax.broadcasted_iota(jnp.int32, (t, n), 1)          # column index

    # outgoing triangle update: tu[i, j] = single[j] + sum_{k < i} pair[i, k]
    w_out = (col < row_g).astype(pair.dtype)
    red = jnp.sum(pair * w_out[:, :, None], axis=1)               # (T, c)
    tu = single[None, :, :] + red[:, None, :]
    x = _layernorm(pair + tu, g, b)

    att = _mha_rows(x, bias_ref[...], wqkv_ref[...], bqkv_ref[...],
                    wout_ref[...], bout_ref[...], att_scratch, num_heads)
    y = _layernorm(x + att, g, b)
    out_ref[...] = y

    # resident accumulator: colred[j] = sum_{k < j} y_full[k, j]
    @pl.when(pl.program_id(0) == 0)
    def _():
        colred_ref[...] = jnp.zeros_like(colred_ref)
    w_in = (row_g < col).astype(y.dtype)
    colred_ref[...] += jnp.sum(y * w_in[:, :, None], axis=0)      # (n, c)


def _single_mlp_kernel(single_ref, w1_ref, b1_ref, w2_ref, b2_ref,
                       gs_ref, bs_ref, out_ref):
    """single -> LN(single + relu(W2 relu(W1 single + b1) + b2))."""
    s = single_ref[...]
    h = jnp.dot(s.astype(jnp.bfloat16), w1_ref[...],
                preferred_element_type=jnp.float32) + b1_ref[...]
    h = jnp.maximum(h, 0.0).astype(jnp.bfloat16)
    o = jnp.dot(h, w2_ref[...], preferred_element_type=jnp.float32) + b2_ref[...]
    o = jnp.maximum(o, 0.0)
    out_ref[...] = _layernorm(s + o, gs_ref[...], bs_ref[...])


def _col_stage_kernel(pair_ref, colred_ref, single_ref, bias_ref,
                      wqkv_ref, bqkv_ref, wout_ref, bout_ref, g_ref, b_ref,
                      out_ref, att_scratch, *, num_heads):
    """Per row-tile: LN_col(pair + tri_update_in) -> LN_col(. + col attn)."""
    pair = pair_ref[...]                       # (T, n, c)
    g, b = g_ref[...], b_ref[...]
    # incoming triangle update: tu[i, j] = single[i] + sum_{k < j} pair_full[k, j]
    tu = single_ref[...][:, None, :] + colred_ref[...][None, :, :]
    x = _layernorm(pair + tu, g, b)

    att = _mha_rows(x, bias_ref[...], wqkv_ref[...], bqkv_ref[...],
                    wout_ref[...], bout_ref[...], att_scratch, num_heads)
    out_ref[...] = _layernorm(x + att, g, b)


# --------------------------------- wrappers -----------------------------------

def _full_spec(shape):
    nd = len(shape)
    return pl.BlockSpec(shape, lambda i, _nd=nd: (0,) * _nd)


def _prep_attn_params(attn, c, num_heads):
    """Fold 1/sqrt(d) into the Q columns of Wqkv/bqkv; pre-cast weights to bf16."""
    scale, wqkv, bqkv, wout, bout = attn
    d = c // num_heads
    inv = 1.0 / (d ** 0.5)
    col_scale = jnp.concatenate([jnp.full((c,), inv, jnp.float32),
                                 jnp.ones((2 * c,), jnp.float32)])
    wqkv_s = (wqkv * col_scale[None, :]).astype(jnp.bfloat16)
    bqkv_s = bqkv * col_scale[None, :]
    return scale, wqkv_s, bqkv_s, wout.astype(jnp.bfloat16), bout


def _make_bias(scale, dist, mask_f):
    # single resident (n, n) fp32 bias array (replaces mask + dist + scalar)
    return scale[0, 0] * dist + jnp.where(mask_f > 0.5, NEG_INF, 0.0)


def _row_stage(pair, single, bias, wqkv, bqkv, wout, bout, gamma, beta,
               num_heads, tile_i, vmem_limit):
    n, _, c = pair.shape
    assert n % tile_i == 0, "tile_i must divide n"
    pair_spec = pl.BlockSpec((tile_i, n, c), lambda i: (i, 0, 0))
    return pl.pallas_call(
        functools.partial(_row_stage_kernel, num_heads=num_heads),
        out_shape=(jax.ShapeDtypeStruct(pair.shape, pair.dtype),   # updated pair
                   jax.ShapeDtypeStruct((n, c), pair.dtype)),      # column reduction
        grid=(n // tile_i,),
        in_specs=[
            pair_spec, _full_spec(single.shape), _full_spec(bias.shape),
            _full_spec(wqkv.shape), _full_spec(bqkv.shape),
            _full_spec(wout.shape), _full_spec(bout.shape),
            _full_spec(gamma.shape), _full_spec(beta.shape),
        ],
        out_specs=(pair_spec, pl.BlockSpec((n, c), lambda i: (0, 0))),
        scratch_shapes=[pltpu.VMEM((tile_i * n, c), jnp.bfloat16)],
        input_output_aliases={0: 0},        # pair in -> pair out (no extra HBM copy)
        compiler_params=pltpu.CompilerParams(
            dimension_semantics=("arbitrary",),   # colred output revisits block 0
            vmem_limit_bytes=vmem_limit),
    )(pair, single, bias, wqkv, bqkv, wout, bout, gamma, beta)


def _single_mlp(single, w1, b1, w2, b2, g_s, b_s, vmem_limit):
    n, c = single.shape
    return pl.pallas_call(
        _single_mlp_kernel,
        out_shape=jax.ShapeDtypeStruct((n, c), single.dtype),
        grid=(1,),
        in_specs=[_full_spec(single.shape),
                  _full_spec(w1.shape), _full_spec(b1.shape),
                  _full_spec(w2.shape), _full_spec(b2.shape),
                  _full_spec(g_s.shape), _full_spec(b_s.shape)],
        out_specs=_full_spec((n, c)),
        compiler_params=pltpu.CompilerParams(
            dimension_semantics=("arbitrary",),
            vmem_limit_bytes=vmem_limit),
    )(single, w1, b1, w2, b2, g_s, b_s)


def _col_stage(pair, colred, single, bias, wqkv, bqkv, wout, bout, gamma, beta,
               num_heads, tile_i, vmem_limit):
    n, _, c = pair.shape
    assert n % tile_i == 0, "tile_i must divide n"
    pair_spec = pl.BlockSpec((tile_i, n, c), lambda i: (i, 0, 0))
    single_spec = pl.BlockSpec((tile_i, c), lambda i: (i, 0))
    return pl.pallas_call(
        functools.partial(_col_stage_kernel, num_heads=num_heads),
        out_shape=jax.ShapeDtypeStruct(pair.shape, pair.dtype),
        grid=(n // tile_i,),
        in_specs=[
            pair_spec, _full_spec(colred.shape), single_spec,
            _full_spec(bias.shape),
            _full_spec(wqkv.shape), _full_spec(bqkv.shape),
            _full_spec(wout.shape), _full_spec(bout.shape),
            _full_spec(gamma.shape), _full_spec(beta.shape),
        ],
        out_specs=pair_spec,
        scratch_shapes=[pltpu.VMEM((tile_i * n, c), jnp.bfloat16)],
        input_output_aliases={0: 0},
        compiler_params=pltpu.CompilerParams(
            dimension_semantics=("parallel",),    # shard row tiles on v7x's 2 TCs
            vmem_limit_bytes=vmem_limit),
    )(pair, colred, single, bias, wqkv, bqkv, wout, bout, gamma, beta)


def pairformer_block(pair, single, mask_f, dist, params, num_heads=4, tile_i=None):
    """Matches SimplifiedPairformerBlock.forward (pair_rep, single_rep update)."""
    n, _, c = pair.shape
    vmem_limit = _vmem_limit_bytes()
    if tile_i is None:
        tile_i = _auto_tile(n, c, vmem_limit)
    assert n % tile_i == 0, "tile_i must divide n"

    # wrapper-side prep: bf16 weights, 1/sqrt(d) folded into Q, fused bias arrays
    scale_r, wqkv_r, bqkv_r, wout_r, bout_r = _prep_attn_params(
        params['attn_row'], c, num_heads)
    scale_c, wqkv_c, bqkv_c, wout_c, bout_c = _prep_attn_params(
        params['attn_col'], c, num_heads)
    bias_row = _make_bias(scale_r, dist, mask_f)
    # NOTE: column attention uses mask.T but the untransposed distance matrix,
    # matching the PyTorch module.
    bias_col = _make_bias(scale_c, dist, mask_f.T)
    w1, b1, w2, b2 = params['mlp']

    # row direction: outgoing triangle update + LN + row attention + LN, plus the
    # strict-lower column reduction for the incoming update (resident accumulator)
    p, colred = _row_stage(pair, single, bias_row, wqkv_r, bqkv_r, wout_r, bout_r,
                           params['ln_row_g'], params['ln_row_b'],
                           num_heads, tile_i, vmem_limit)

    # single-path MLP + LN (independent of the pair pipeline)
    single_out = _single_mlp(single, w1.astype(jnp.bfloat16), b1,
                             w2.astype(jnp.bfloat16), b2,
                             params['ln_single_g'], params['ln_single_b'],
                             vmem_limit)

    # col direction: incoming triangle update + LN + col attention (mask.T) + LN
    p = _col_stage(p, colred, single, bias_col, wqkv_c, bqkv_c, wout_c, bout_c,
                   params['ln_col_g'], params['ln_col_b'],
                   num_heads, tile_i, vmem_limit)
    return p, single_out


# ---------------------------- pure-JAX reference ------------------------------

def _ref_ln(x, g, b, eps=LN_EPS):
    mean = jnp.mean(x, -1, keepdims=True)
    var = jnp.mean((x - mean) ** 2, -1, keepdims=True)
    return (x - mean) / jnp.sqrt(var + eps) * g + b


def _ref_tri_update(pair, single, outgoing):
    n = pair.shape[0]
    row = jnp.arange(n)[:, None]
    col = jnp.arange(n)[None, :]
    if outgoing:
        w = (col < row).astype(pair.dtype)
        red = jnp.einsum('ik,ikc->ic', w, pair, precision='highest')
        return single[None, :, :] + red[:, None, :]
    w = (row < col).astype(pair.dtype)
    red = jnp.einsum('kj,kjc->jc', w, pair, precision='highest')
    return single[:, None, :] + red[None, :, :]


def _ref_attn(pair, mask_f, dist, ap, num_heads):
    scale, wqkv, bqkv, wout, bout = ap
    n, _, c = pair.shape
    d = c // num_heads
    qkv = pair.reshape(n * n, c) @ wqkv + bqkv
    qkv = qkv.reshape(n, n, 3 * c)
    q = qkv[..., :c].reshape(n, n, num_heads, d).transpose(2, 0, 1, 3)
    k = qkv[..., c:2 * c].reshape(n, n, num_heads, d).transpose(2, 0, 1, 3)
    v = qkv[..., 2 * c:].reshape(n, n, num_heads, d).transpose(2, 0, 1, 3)
    s = jnp.einsum('hijd,hikd->hijk', q, k, precision='highest') / (d ** 0.5)
    s = s + (scale[0, 0] * dist)[None, None]
    s = jnp.where(mask_f[None, None] > 0.5, -jnp.inf, s)
    p = jax.nn.softmax(s, axis=-1)
    a = jnp.einsum('hijk,hikd->hijd', p, v, precision='highest')
    a = a.transpose(1, 2, 0, 3).reshape(n, n, c)
    return (a.reshape(n * n, c) @ wout + bout).reshape(n, n, c)


def ref_block(pair, single, mask_f, dist, params, num_heads=4):
    g, b = params['ln_row_g'], params['ln_row_b']
    p = _ref_ln(pair + _ref_tri_update(pair, single, True), g, b)
    p = _ref_ln(p + _ref_attn(p, mask_f, dist, params['attn_row'], num_heads), g, b)
    g, b = params['ln_col_g'], params['ln_col_b']
    p = _ref_ln(p + _ref_tri_update(p, single, False), g, b)
    p = _ref_ln(p + _ref_attn(p, mask_f.T, dist, params['attn_col'], num_heads), g, b)
    w1, b1, w2, b2 = params['mlp']
    h = jnp.maximum(single @ w1 + b1, 0.0)
    o = jnp.maximum(h @ w2 + b2, 0.0)
    s = _ref_ln(single + o, params['ln_single_g'], params['ln_single_b'])
    return p, s


# ------------------------------- parameter init -------------------------------

def init_params(key, c):
    ks = jax.random.split(key, 18)

    def w(k, shape, s):
        return (jax.random.normal(k, shape) * s).astype(jnp.float32)

    def attn(k0, k1, k2, k3):
        # (distance_scale, Wqkv (c,3c), bqkv, Wout (c,c), bout); weights stored
        # transposed relative to nn.Linear (synthetic init, shapes consistent).
        return (jnp.ones((1, 1), jnp.float32),
                w(k0, (c, 3 * c), 0.05), w(k1, (1, 3 * c), 0.02),
                w(k2, (c, c), 0.05), w(k3, (1, c), 0.02))

    return {
        'attn_row': attn(ks[0], ks[1], ks[2], ks[3]),
        'attn_col': attn(ks[4], ks[5], ks[6], ks[7]),
        'mlp': (w(ks[8], (c, 2 * c), 0.05), w(ks[9], (1, 2 * c), 0.02),
                w(ks[10], (2 * c, c), 0.05), w(ks[11], (1, c), 0.02)),
        'ln_row_g': 1.0 + w(ks[12], (1, c), 0.05),
        'ln_row_b': w(ks[13], (1, c), 0.05),
        'ln_col_g': 1.0 + w(ks[14], (1, c), 0.05),
        'ln_col_b': w(ks[15], (1, c), 0.05),
        'ln_single_g': 1.0 + w(ks[16], (1, c), 0.05),
        'ln_single_b': w(ks[17], (1, c), 0.05),
    }


# ------------------------------------ main -------------------------------------

if __name__ == "__main__":
    n, c, num_heads = 16, 128, 4
    tile = 8                                   # grid = (2,) exercises the tiling
    key = jax.random.PRNGKey(0)
    k1, k2, k3, k4, kp = jax.random.split(key, 5)

    pair = (jax.random.normal(k1, (n, n, c)) * 0.5).astype(jnp.float32)
    single = (jax.random.normal(k2, (n, c)) * 0.5).astype(jnp.float32)
    dist = (jax.random.normal(k3, (n, n)) * 0.1).astype(jnp.float32)
    mask_bool = (jax.random.uniform(k4, (n, n)) < 0.2) & (~jnp.eye(n, dtype=bool))
    mask_f = mask_bool.astype(jnp.float32)     # 1.0 == masked (float for TPU kernel)

    params = init_params(kp, c)

    fn = jax.jit(functools.partial(pairformer_block, num_heads=num_heads,
                                   tile_i=tile))
    pair_out, single_out = fn(pair, single, mask_f, dist, params)
    jax.block_until_ready((pair_out, single_out))

    pair_ref, single_ref = ref_block(pair, single, mask_f, dist, params, num_heads)
    assert pair_out.shape == (n, n, c) and single_out.shape == (n, c)
    assert jnp.allclose(pair_out, pair_ref, atol=5e-2, rtol=5e-2), "pair mismatch"
    assert jnp.allclose(single_out, single_ref, atol=5e-2, rtol=5e-2), "single mismatch"

    print("KERNEL_OK")
</pallas_src>

<mosaic_0001>
module attributes {stable_mosaic.version = 11 : i64} {
  func.func @_single_mlp_kernel(%arg0: i32, %arg1: memref<16x128xf32, #tpu.memory_space<vmem>>, %arg2: memref<128x256xbf16, #tpu.memory_space<vmem>>, %arg3: memref<1x256xf32, #tpu.memory_space<vmem>>, %arg4: memref<256x128xbf16, #tpu.memory_space<vmem>>, %arg5: memref<1x128xf32, #tpu.memory_space<vmem>>, %arg6: memref<1x128xf32, #tpu.memory_space<vmem>>, %arg7: memref<1x128xf32, #tpu.memory_space<vmem>>, %arg8: memref<16x128xf32, #tpu.memory_space<vmem>>) attributes {dimension_semantics = [#tpu.dimension_semantics<arbitrary>], iteration_bounds = array<i64: 1>, scalar_prefetch = 0 : i64, scratch_operands = 0 : i64, tpu.core_type = #tpu.core_type<tc>, window_params = [{pipeline_mode = #tpu.pipeline_mode<synchronous>, transform_indices = @transform_0, window_bounds = array<i64: 16, 128>}, {pipeline_mode = #tpu.pipeline_mode<synchronous>, transform_indices = @transform_1, window_bounds = array<i64: 128, 256>}, {pipeline_mode = #tpu.pipeline_mode<synchronous>, transform_indices = @transform_2, window_bounds = array<i64: 1, 256>}, {pipeline_mode = #tpu.pipeline_mode<synchronous>, transform_indices = @transform_3, window_bounds = array<i64: 256, 128>}, {pipeline_mode = #tpu.pipeline_mode<synchronous>, transform_indices = @transform_4, window_bounds = array<i64: 1, 128>}, {pipeline_mode = #tpu.pipeline_mode<synchronous>, transform_indices = @transform_5, window_bounds = array<i64: 1, 128>}, {pipeline_mode = #tpu.pipeline_mode<synchronous>, transform_indices = @transform_6, window_bounds = array<i64: 1, 128>}, {pipeline_mode = #tpu.pipeline_mode<synchronous>, transform_indices = @transform_7, window_bounds = array<i64: 16, 128>}]} {
    %c0 = arith.constant 0 : index
    %c0_0 = arith.constant 0 : index
    %0 = vector.load %arg1[%c0, %c0_0] : memref<16x128xf32, #tpu.memory_space<vmem>>, vector<16x128xf32>
    %1 = arith.truncf %0 : vector<16x128xf32> to vector<16x128xbf16>
    %c0_1 = arith.constant 0 : index
    %c0_2 = arith.constant 0 : index
    %2 = vector.load %arg2[%c0_1, %c0_2] : memref<128x256xbf16, #tpu.memory_space<vmem>>, vector<128x256xbf16>
    %cst = arith.constant dense<0.000000e+00> : vector<16x256xf32>
    %3 = tpu.matmul %1, %2, %cst {dimension_numbers = #tpu.dot_dimension_numbers<[1], [0], [0], [1], [0, 0, 1, 1], [], []>} : vector<16x128xbf16>, vector<128x256xbf16>, vector<16x256xf32> -> vector<16x256xf32>
    %c0_3 = arith.constant 0 : index
    %c0_4 = arith.constant 0 : index
    %4 = vector.load %arg3[%c0_3, %c0_4] : memref<1x256xf32, #tpu.memory_space<vmem>>, vector<1x256xf32>
    %5 = vector.broadcast %4 : vector<1x256xf32> to vector<16x256xf32>
    %6 = arith.addf %3, %5 : vector<16x256xf32>
    %cst_5 = arith.constant 0.000000e+00 : f32
    %7 = vector.broadcast %cst_5 : f32 to vector<16x256xf32>
    %8 = arith.maximumf %6, %7 : vector<16x256xf32>
    %9 = arith.truncf %8 : vector<16x256xf32> to vector<16x256xbf16>
    %c0_6 = arith.constant 0 : index
    %c0_7 = arith.constant 0 : index
    %10 = vector.load %arg4[%c0_6, %c0_7] : memref<256x128xbf16, #tpu.memory_space<vmem>>, vector<256x128xbf16>
    %cst_8 = arith.constant dense<0.000000e+00> : vector<16x128xf32>
    %11 = tpu.matmul %9, %10, %cst_8 {dimension_numbers = #tpu.dot_dimension_numbers<[1], [0], [0], [1], [0, 0, 1, 1], [], []>} : vector<16x256xbf16>, vector<256x128xbf16>, vector<16x128xf32> -> vector<16x128xf32>
    %c0_9 = arith.constant 0 : index
    %c0_10 = arith.constant 0 : index
    %12 = vector.load %arg5[%c0_9, %c0_10] : memref<1x128xf32, #tpu.memory_space<vmem>>, vector<1x128xf32>
    %13 = vector.broadcast %12 : vector<1x128xf32> to vector<16x128xf32>
    %14 = arith.addf %11, %13 : vector<16x128xf32>
    %cst_11 = arith.constant 0.000000e+00 : f32
    %15 = vector.broadcast %cst_11 : f32 to vector<16x128xf32>
    %16 = arith.maximumf %14, %15 : vector<16x128xf32>
    %17 = arith.addf %0, %16 : vector<16x128xf32>
    %c0_12 = arith.constant 0 : index
    %c0_13 = arith.constant 0 : index
    %18 = vector.load %arg6[%c0_12, %c0_13] : memref<1x128xf32, #tpu.memory_space<vmem>>, vector<1x128xf32>
    %c0_14 = arith.constant 0 : index
    %c0_15 = arith.constant 0 : index
    %19 = vector.load %arg7[%c0_14, %c0_15] : memref<1x128xf32, #tpu.memory_space<vmem>>, vector<1x128xf32>
    %cst_16 = arith.constant dense<0.000000e+00> : vector<16xf32>
    %20 = vector.multi_reduction <add>, %17, %cst_16 [1] : vector<16x128xf32> to vector<16xf32>
    %21 = vector.shape_cast %20 : vector<16xf32> to vector<16x1xf32>
    %cst_17 = arith.constant 1.280000e+02 : f32
    %22 = vector.broadcast %cst_17 : f32 to vector<16x1xf32>
    %23 = arith.divf %21, %22 : vector<16x1xf32>
    %24 = vector.broadcast %23 : vector<16x1xf32> to vector<16x128xf32>
    %25 = arith.subf %17, %24 : vector<16x128xf32>
    %26 = arith.mulf %25, %25 : vector<16x128xf32>
    %cst_18 = arith.constant dense<0.000000e+00> : vector<16xf32>
    %27 = vector.multi_reduction <add>, %26, %cst_18 [1] : vector<16x128xf32> to vector<16xf32>
    %28 = vector.shape_cast %27 : vector<16xf32> to vector<16x1xf32>
    %cst_19 = arith.constant 1.280000e+02 : f32
    %29 = vector.broadcast %cst_19 : f32 to vector<16x1xf32>
    %30 = arith.divf %28, %29 : vector<16x1xf32>
    %cst_20 = arith.constant 9.99999974E-6 : f32
    %31 = vector.broadcast %cst_20 : f32 to vector<16x1xf32>
    %32 = arith.addf %30, %31 : vector<16x1xf32>
    %33 = math.rsqrt %32 : vector<16x1xf32>
    %34 = vector.broadcast %33 : vector<16x1xf32> to vector<16x128xf32>
    %35 = arith.mulf %25, %34 : vector<16x128xf32>
    %36 = vector.broadcast %18 : vector<1x128xf32> to vector<16x128xf32>
    %37 = arith.mulf %35, %36 : vector<16x128xf32>
    %38 = vector.broadcast %19 : vector<1x128xf32> to vector<16x128xf32>
    %39 = arith.addf %37, %38 : vector<16x128xf32>
    %c0_21 = arith.constant 0 : index
    %c0_22 = arith.constant 0 : index
    %40 = vector.load %arg8[%c0_21, %c0_22] : memref<16x128xf32, #tpu.memory_space<vmem>>, vector<16x128xf32>
    tpu.vector_store %arg8[%c0_21, %c0_22], %39 {strides = array<i32>} : memref<16x128xf32, #tpu.memory_space<vmem>>, vector<16x128xf32>,
    return
  }
  func.func @transform_0(%arg0: i32) -> (i32, i32) {
    %c0_i32 = arith.constant 0 : i32
    %c0_i32_0 = arith.constant 0 : i32
    %c0_i32_1 = arith.constant 0 : i32
    return %c0_i32, %c0_i32_0 : i32, i32
  }
  func.func @transform_1(%arg0: i32) -> (i32, i32) {
    %c0_i32 = arith.constant 0 : i32
    %c0_i32_0 = arith.constant 0 : i32
    %c0_i32_1 = arith.constant 0 : i32
    return %c0_i32, %c0_i32_0 : i32, i32
  }
  func.func @transform_2(%arg0: i32) -> (i32, i32) {
    %c0_i32 = arith.constant 0 : i32
    %c0_i32_0 = arith.constant 0 : i32
    %c0_i32_1 = arith.constant 0 : i32
    return %c0_i32, %c0_i32_0 : i32, i32
  }
  func.func @transform_3(%arg0: i32) -> (i32, i32) {
    %c0_i32 = arith.constant 0 : i32
    %c0_i32_0 = arith.constant 0 : i32
    %c0_i32_1 = arith.constant 0 : i32
    return %c0_i32, %c0_i32_0 : i32, i32
  }
  func.func @transform_4(%arg0: i32) -> (i32, i32) {
    %c0_i32 = arith.constant 0 : i32
    %c0_i32_0 = arith.constant 0 : i32
    %c0_i32_1 = arith.constant 0 : i32
    return %c0_i32, %c0_i32_0 : i32, i32
  }
  func.func @transform_5(%arg0: i32) -> (i32, i32) {
    %c0_i32 = arith.constant 0 : i32
    %c0_i32_0 = arith.constant 0 : i32
    %c0_i32_1 = arith.constant 0 : i32
    return %c0_i32, %c0_i32_0 : i32, i32
  }
  func.func @transform_6(%arg0: i32) -> (i32, i32) {
    %c0_i32 = arith.constant 0 : i32
    %c0_i32_0 = arith.constant 0 : i32
    %c0_i32_1 = arith.constant 0 : i32
    return %c0_i32, %c0_i32_0 : i32, i32
  }
  func.func @transform_7(%arg0: i32) -> (i32, i32) {
    %c0_i32 = arith.constant 0 : i32
    %c0_i32_0 = arith.constant 0 : i32
    %c0_i32_1 = arith.constant 0 : i32
    return %c0_i32, %c0_i32_0 : i32, i32
  }
}

module attributes {stable_mosaic.version = 11 : i64} {
  func.func @_col_stage_kernel(%arg0: i32, %arg1: memref<8x16x128xf32, #tpu.memory_space<vmem>>, %arg2: memref<16x128xf32, #tpu.memory_space<vmem>>, %arg3: memref<8x128xf32, #tpu.memory_space<vmem>>, %arg4: memref<16x16xf32, #tpu.memory_space<vmem>>, %arg5: memref<128x384xbf16, #tpu.memory_space<vmem>>, %arg6: memref<1x384xf32, #tpu.memory_space<vmem>>, %arg7: memref<128x128xbf16, #tpu.memory_space<vmem>>, %arg8: memref<1x128xf32, #tpu.memory_space<vmem>>, %arg9: memref<1x128xf32, #tpu.memory_space<vmem>>, %arg10: memref<1x128xf32, #tpu.memory_space<vmem>>, %arg11: memref<8x16x128xf32, #tpu.memory_space<vmem>>, %arg12: memref<128x128xbf16, #tpu.memory_space<vmem>>) attributes {dimension_semantics = [#tpu.dimension_semantics<parallel>], iteration_bounds = array<i64: 2>, scalar_prefetch = 0 : i64, scratch_operands = 1 : i64, tpu.core_type = #tpu.core_type<tc>, window_params = [{transform_indices = @transform_0, window_bounds = array<i64: 8, 16, 128>}, {pipeline_mode = #tpu.pipeline_mode<synchronous>, transform_indices = @transform_1, window_bounds = array<i64: 16, 128>}, {transform_indices = @transform_2, window_bounds = array<i64: 8, 128>}, {pipeline_mode = #tpu.pipeline_mode<synchronous>, transform_indices = @transform_3, window_bounds = array<i64: 16, 16>}, {pipeline_mode = #tpu.pipeline_mode<synchronous>, transform_indices = @transform_4, window_bounds = array<i64: 128, 384>}, {pipeline_mode = #tpu.pipeline_mode<synchronous>, transform_indices = @transform_5, window_bounds = array<i64: 1, 384>}, {pipeline_mode = #tpu.pipeline_mode<synchronous>, transform_indices = @transform_6, window_bounds = array<i64: 128, 128>}, {pipeline_mode = #tpu.pipeline_mode<synchronous>, transform_indices = @transform_7, window_bounds = array<i64: 1, 128>}, {pipeline_mode = #tpu.pipeline_mode<synchronous>, transform_indices = @transform_8, window_bounds = array<i64: 1, 128>}, {pipeline_mode = #tpu.pipeline_mode<synchronous>, transform_indices = @transform_9, window_bounds = array<i64: 1, 128>}, {transform_indices = @transform_10, window_bounds = array<i64: 8, 16, 128>}]} {
    %c0 = arith.constant 0 : index
    %c0_0 = arith.constant 0 : index
    %c0_1 = arith.constant 0 : index
    %0 = vector.load %arg1[%c0, %c0_0, %c0_1] : memref<8x16x128xf32, #tpu.memory_space<vmem>>, vector<8x16x128xf32>
    %c0_2 = arith.constant 0 : index
    %c0_3 = arith.constant 0 : index
    %1 = vector.load %arg9[%c0_2, %c0_3] : memref<1x128xf32, #tpu.memory_space<vmem>>, vector<1x128xf32>
    %c0_4 = arith.constant 0 : index
    %c0_5 = arith.constant 0 : index
    %2 = vector.load %arg10[%c0_4, %c0_5] : memref<1x128xf32, #tpu.memory_space<vmem>>, vector<1x128xf32>
    %c0_6 = arith.constant 0 : index
    %c0_7 = arith.constant 0 : index
    %3 = vector.load %arg3[%c0_6, %c0_7] : memref<8x128xf32, #tpu.memory_space<vmem>>, vector<8x128xf32>
    %4 = vector.shape_cast %3 : vector<8x128xf32> to vector<8x1x128xf32>
    %c0_8 = arith.constant 0 : index
    %c0_9 = arith.constant 0 : index
    %5 = vector.load %arg2[%c0_8, %c0_9] : memref<16x128xf32, #tpu.memory_space<vmem>>, vector<16x128xf32>
    %6 = vector.shape_cast %5 : vector<16x128xf32> to vector<1x16x128xf32>
    %7 = vector.broadcast %4 : vector<8x1x128xf32> to vector<8x16x128xf32>
    %8 = vector.broadcast %6 : vector<1x16x128xf32> to vector<8x16x128xf32>
    %9 = arith.addf %7, %8 : vector<8x16x128xf32>
    %10 = arith.addf %0, %9 : vector<8x16x128xf32>
    %cst = arith.constant dense<0.000000e+00> : vector<8x16xf32>
    %11 = vector.multi_reduction <add>, %10, %cst [2] : vector<8x16x128xf32> to vector<8x16xf32>
    %12 = vector.shape_cast %11 : vector<8x16xf32> to vector<8x16x1xf32>
    %cst_10 = arith.constant 1.280000e+02 : f32
    %13 = vector.broadcast %cst_10 : f32 to vector<8x16x1xf32>
    %14 = arith.divf %12, %13 : vector<8x16x1xf32>
    %15 = vector.broadcast %14 : vector<8x16x1xf32> to vector<8x16x128xf32>
    %16 = arith.subf %10, %15 : vector<8x16x128xf32>
    %17 = arith.mulf %16, %16 : vector<8x16x128xf32>
    %cst_11 = arith.constant dense<0.000000e+00> : vector<8x16xf32>
    %18 = vector.multi_reduction <add>, %17, %cst_11 [2] : vector<8x16x128xf32> to vector<8x16xf32>
    %19 = vector.shape_cast %18 : vector<8x16xf32> to vector<8x16x1xf32>
    %cst_12 = arith.constant 1.280000e+02 : f32
    %20 = vector.broadcast %cst_12 : f32 to vector<8x16x1xf32>
    %21 = arith.divf %19, %20 : vector<8x16x1xf32>
    %cst_13 = arith.constant 9.99999974E-6 : f32
    %22 = vector.broadcast %cst_13 : f32 to vector<8x16x1xf32>
    %23 = arith.addf %21, %22 : vector<8x16x1xf32>
    %24 = math.rsqrt %23 : vector<8x16x1xf32>
    %25 = vector.broadcast %24 : vector<8x16x1xf32> to vector<8x16x128xf32>
    %26 = arith.mulf %16, %25 : vector<8x16x128xf32>
    %27 = vector.shape_cast %1 : vector<1x128xf32> to vector<1x1x128xf32>
    %28 = vector.broadcast %27 : vector<1x1x128xf32> to vector<8x16x128xf32>
    %29 = arith.mulf %26, %28 : vector<8x16x128xf32>
    %30 = vector.shape_cast %2 : vector<1x128xf32> to vector<1x1x128xf32>
    %31 = vector.broadcast %30 : vector<1x1x128xf32> to vector<8x16x128xf32>
    %32 = arith.addf %29, %31 : vector<8x16x128xf32>
    %c0_14 = arith.constant 0 : index
    %c0_15 = arith.constant 0 : index
    %33 = vector.load %arg4[%c0_14, %c0_15] : memref<16x16xf32, #tpu.memory_space<vmem>>, vector<16x16xf32>
    %c0_16 = arith.constant 0 : index
    %c0_17 = arith.constant 0 : index
    %34 = vector.load %arg5[%c0_16, %c0_17] : memref<128x384xbf16, #tpu.memory_space<vmem>>, vector<128x384xbf16>
    %c0_18 = arith.constant 0 : index
    %c0_19 = arith.constant 0 : index
    %35 = vector.load %arg6[%c0_18, %c0_19] : memref<1x384xf32, #tpu.memory_space<vmem>>, vector<1x384xf32>
    %c0_20 = arith.constant 0 : index
    %c0_21 = arith.constant 0 : index
    %36 = vector.load %arg7[%c0_20, %c0_21] : memref<128x128xbf16, #tpu.memory_space<vmem>>, vector<128x128xbf16>
    %c0_22 = arith.constant 0 : index
    %c0_23 = arith.constant 0 : index
    %37 = vector.load %arg8[%c0_22, %c0_23] : memref<1x128xf32, #tpu.memory_space<vmem>>, vector<1x128xf32>
    %38 = vector.shape_cast %32 : vector<8x16x128xf32> to vector<128x128xf32>
    %39 = arith.truncf %38 : vector<128x128xf32> to vector<128x128xbf16>
    %cst_24 = arith.constant dense<0.000000e+00> : vector<128x384xf32>
    %40 = tpu.matmul %39, %34, %cst_24 {dimension_numbers = #tpu.dot_dimension_numbers<[1], [0], [0], [1], [0, 0, 1, 1], [], []>} : vector<128x128xbf16>, vector<128x384xbf16>, vector<128x384xf32> -> vector<128x384xf32>
    %41 = vector.broadcast %35 : vector<1x384xf32> to vector<128x384xf32>
    %42 = arith.addf %40, %41 : vector<128x384xf32>
    %43 = vector.shape_cast %42 : vector<128x384xf32> to vector<8x16x384xf32>
    %44 = arith.truncf %43 : vector<8x16x384xf32> to vector<8x16x384xbf16>
    %45 = vector.shape_cast %33 : vector<16x16xf32> to vector<1x16x16xf32>
    %46 = vector.extract_strided_slice %44 {offsets = [0, 0, 0], sizes = [8, 16, 32], strides = [1, 1, 1]} : vector<8x16x384xbf16> to vector<8x16x32xbf16>
    %47 = vector.extract_strided_slice %44 {offsets = [0, 0, 128], sizes = [8, 16, 32], strides = [1, 1, 1]} : vector<8x16x384xbf16> to vector<8x16x32xbf16>
    %48 = vector.extract_strided_slice %44 {offsets = [0, 0, 256], sizes = [8, 16, 32], strides = [1, 1, 1]} : vector<8x16x384xbf16> to vector<8x16x32xbf16>
    "tpu.trace_start"() <{level = 10 : i32, message = "tjd,tkd->tjk"}> : () -> ()
    %cst_25 = arith.constant dense<0.000000e+00> : vector<8x16x16xf32>
    %49 = tpu.matmul %46, %47, %cst_25 {dimension_numbers = #tpu.dot_dimension_numbers<[2], [2], [1], [1], [0, 0, 0, 1, 1, 1], [0], [0]>} : vector<8x16x32xbf16>, vector<8x16x32xbf16>, vector<8x16x16xf32> -> vector<8x16x16xf32>
    "tpu.trace_stop"() : () -> ()
    %50 = vector.broadcast %45 : vector<1x16x16xf32> to vector<8x16x16xf32>
    %51 = arith.addf %49, %50 : vector<8x16x16xf32>
    %cst_26 = arith.constant dense<0xFF800000> : vector<8x16xf32>
    %52 = vector.multi_reduction <maximumf>, %51, %cst_26 [2] : vector<8x16x16xf32> to vector<8x16xf32>
    %53 = vector.shape_cast %52 : vector<8x16xf32> to vector<8x16x1xf32>
    %54 = vector.broadcast %53 : vector<8x16x1xf32> to vector<8x16x16xf32>
    %55 = arith.subf %51, %54 : vector<8x16x16xf32>
    %56 = math.exp %55 : vector<8x16x16xf32>
    %cst_27 = arith.constant dense<0.000000e+00> : vector<8x16xf32>
    %57 = vector.multi_reduction <add>, %56, %cst_27 [2] : vector<8x16x16xf32> to vector<8x16xf32>
    %58 = vector.shape_cast %57 : vector<8x16xf32> to vector<8x16x1xf32>
    %59 = tpu.reciprocal %58 {approx = true} : vector<8x16x1xf32> -> vector<8x16x1xf32>
    %60 = vector.broadcast %59 : vector<8x16x1xf32> to vector<8x16x16xf32>
    %61 = arith.mulf %56, %60 : vector<8x16x16xf32>
    %62 = arith.truncf %61 : vector<8x16x16xf32> to vector<8x16x16xbf16>
    "tpu.trace_start"() <{level = 10 : i32, message = "tjk,tkd->tjd"}> : () -> ()
    %cst_28 = arith.constant dense<0.000000e+00> : vector<8x16x32xf32>
    %63 = tpu.matmul %62, %48, %cst_28 {dimension_numbers = #tpu.dot_dimension_numbers<[2], [1], [1], [2], [0, 0, 0, 1, 1, 2], [0], [0]>} : vector<8x16x16xbf16>, vector<8x16x32xbf16>, vector<8x16x32xf32> -> vector<8x16x32xf32>
    "tpu.trace_stop"() : () -> ()
    %64 = vector.shape_cast %63 : vector<8x16x32xf32> to vector<128x32xf32>
    %65 = arith.truncf %64 : vector<128x32xf32> to vector<128x32xbf16>
    %c0_29 = arith.constant 0 : index
    %c0_30 = arith.constant 0 : index
    %66 = vector.load %arg12[%c0_29, %c0_30] : memref<128x128xbf16, #tpu.memory_space<vmem>>, vector<128x32xbf16>
    tpu.vector_store %arg12[%c0_29, %c0_30], %65 {strides = array<i32>} : memref<128x128xbf16, #tpu.memory_space<vmem>>, vector<128x32xbf16>,
    %67 = vector.extract_strided_slice %44 {offsets = [0, 0, 32], sizes = [8, 16, 32], strides = [1, 1, 1]} : vector<8x16x384xbf16> to vector<8x16x32xbf16>
    %68 = vector.extract_strided_slice %44 {offsets = [0, 0, 160], sizes = [8, 16, 32], strides = [1, 1, 1]} : vector<8x16x384xbf16> to vector<8x16x32xbf16>
    %69 = vector.extract_strided_slice %44 {offsets = [0, 0, 288], sizes = [8, 16, 32], strides = [1, 1, 1]} : vector<8x16x384xbf16> to vector<8x16x32xbf16>
    "tpu.trace_start"() <{level = 10 : i32, message = "tjd,tkd->tjk"}> : () -> ()
    %cst_31 = arith.constant dense<0.000000e+00> : vector<8x16x16xf32>
    %70 = tpu.matmul %67, %68, %cst_31 {dimension_numbers = #tpu.dot_dimension_numbers<[2], [2], [1], [1], [0, 0, 0, 1, 1, 1], [0], [0]>} : vector<8x16x32xbf16>, vector<8x16x32xbf16>, vector<8x16x16xf32> -> vector<8x16x16xf32>
    "tpu.trace_stop"() : () -> ()
    %71 = vector.broadcast %45 : vector<1x16x16xf32> to vector<8x16x16xf32>
    %72 = arith.addf %70, %71 : vector<8x16x16xf32>
    %cst_32 = arith.constant dense<0xFF800000> : vector<8x16xf32>
    %73 = vector.multi_reduction <maximumf>, %72, %cst_32 [2] : vector<8x16x16xf32> to vector<8x16xf32>
    %74 = vector.shape_cast %73 : vector<8x16xf32> to vector<8x16x1xf32>
    %75 = vector.broadcast %74 : vector<8x16x1xf32> to vector<8x16x16xf32>
    %76 = arith.subf %72, %75 : vector<8x16x16xf32>
    %77 = math.exp %76 : vector<8x16x16xf32>
    %cst_33 = arith.constant dense<0.000000e+00> : vector<8x16xf32>
    %78 = vector.multi_reduction <add>, %77, %cst_33 [2] : vector<8x16x16xf32> to vector<8x16xf32>
    %79 = vector.shape_cast %78 : vector<8x16xf32> to vector<8x16x1xf32>
    %80 = tpu.reciprocal %79 {approx = true} : vector<8x16x1xf32> -> vector<8x16x1xf32>
    %81 = vector.broadcast %80 : vector<8x16x1xf32> to vector<8x16x16xf32>
    %82 = arith.mulf %77, %81 : vector<8x16x16xf32>
    %83 = arith.truncf %82 : vector<8x16x16xf32> to vector<8x16x16xbf16>
    "tpu.trace_start"() <{level = 10 : i32, message = "tjk,tkd->tjd"}> : () -> ()
    %cst_34 = arith.constant dense<0.000000e+00> : vector<8x16x32xf32>
    %84 = tpu.matmul %83, %69, %cst_34 {dimension_numbers = #tpu.dot_dimension_numbers<[2], [1], [1], [2], [0, 0, 0, 1, 1, 2], [0], [0]>} : vector<8x16x16xbf16>, vector<8x16x32xbf16>, vector<8x16x32xf32> -> vector<8x16x32xf32>
    "tpu.trace_stop"() : () -> ()
    %85 = vector.shape_cast %84 : vector<8x16x32xf32> to vector<128x32xf32>
    %86 = arith.truncf %85 : vector<128x32xf32> to vector<128x32xbf16>
    %c0_35 = arith.constant 0 : index
    %c32 = arith.constant 32 : index
    %87 = vector.load %arg12[%c0_35, %c32] : memref<128x128xbf16, #tpu.memory_space<vmem>>, vector<128x32xbf16>
    tpu.vector_store %arg12[%c0_35, %c32], %86 {strides = array<i32>} : memref<128x128xbf16, #tpu.memory_space<vmem>>, vector<128x32xbf16>,
    %88 = vector.extract_strided_slice %44 {offsets = [0, 0, 64], sizes = [8, 16, 32], strides = [1, 1, 1]} : vector<8x16x384xbf16> to vector<8x16x32xbf16>
    %89 = vector.extract_strided_slice %44 {offsets = [0, 0, 192], sizes = [8, 16, 32], strides = [1, 1, 1]} : vector<8x16x384xbf16> to vector<8x16x32xbf16>
    %90 = vector.extract_strided_slice %44 {offsets = [0, 0, 320], sizes = [8, 16, 32], strides = [1, 1, 1]} : vector<8x16x384xbf16> to vector<8x16x32xbf16>
    "tpu.trace_start"() <{level = 10 : i32, message = "tjd,tkd->tjk"}> : () -> ()
    %cst_36 = arith.constant dense<0.000000e+00> : vector<8x16x16xf32>
    %91 = tpu.matmul %88, %89, %cst_36 {dimension_numbers = #tpu.dot_dimension_numbers<[2], [2], [1], [1], [0, 0, 0, 1, 1, 1], [0], [0]>} : vector<8x16x32xbf16>, vector<8x16x32xbf16>, vector<8x16x16xf32> -> vector<8x16x16xf32>
    "tpu.trace_stop"() : () -> ()
    %92 = vector.broadcast %45 : vector<1x16x16xf32> to vector<8x16x16xf32>
    %93 = arith.addf %91, %92 : vector<8x16x16xf32>
    %cst_37 = arith.constant dense<0xFF800000> : vector<8x16xf32>
    %94 = vector.multi_reduction <maximumf>, %93, %cst_37 [2] : vector<8x16x16xf32> to vector<8x16xf32>
    %95 = vector.shape_cast %94 : vector<8x16xf32> to vector<8x16x1xf32>
    %96 = vector.broadcast %95 : vector<8x16x1xf32> to vector<8x16x16xf32>
    %97 = arith.subf %93, %96 : vector<8x16x16xf32>
    %98 = math.exp %97 : vector<8x16x16xf32>
    %cst_38 = arith.constant dense<0.000000e+00> : vector<8x16xf32>
    %99 = vector.multi_reduction <add>, %98, %cst_38 [2] : vector<8x16x16xf32> to vector<8x16xf32>
    %100 = vector.shape_cast %99 : vector<8x16xf32> to vector<8x16x1xf32>
    %101 = tpu.reciprocal %100 {approx = true} : vector<8x16x1xf32> -> vector<8x16x1xf32>
    %102 = vector.broadcast %101 : vector<8x16x1xf32> to vector<8x16x16xf32>
    %103 = arith.mulf %98, %102 : vector<8x16x16xf32>
    %104 = arith.truncf %103 : vector<8x16x16xf32> to vector<8x16x16xbf16>
    "tpu.trace_start"() <{level = 10 : i32, message = "tjk,tkd->tjd"}> : () -> ()
    %cst_39 = arith.constant dense<0.000000e+00> : vector<8x16x32xf32>
    %105 = tpu.matmul %104, %90, %cst_39 {dimension_numbers = #tpu.dot_dimension_numbers<[2], [1], [1], [2], [0, 0, 0, 1, 1, 2], [0], [0]>} : vector<8x16x16xbf16>, vector<8x16x32xbf16>, vector<8x16x32xf32> -> vector<8x16x32xf32>
    "tpu.trace_stop"() : () -> ()
    %106 = vector.shape_cast %105 : vector<8x16x32xf32> to vector<128x32xf32>
    %107 = arith.truncf %106 : vector<128x32xf32> to vector<128x32xbf16>
    %c0_40 = arith.constant 0 : index
    %c64 = arith.constant 64 : index
    %108 = vector.load %arg12[%c0_40, %c64] : memref<128x128xbf16, #tpu.memory_space<vmem>>, vector<128x32xbf16>
    tpu.vector_store %arg12[%c0_40, %c64], %107 {strides = array<i32>} : memref<128x128xbf16, #tpu.memory_space<vmem>>, vector<128x32xbf16>,
    %109 = vector.extract_strided_slice %44 {offsets = [0, 0, 96], sizes = [8, 16, 32], strides = [1, 1, 1]} : vector<8x16x384xbf16> to vector<8x16x32xbf16>
    %110 = vector.extract_strided_slice %44 {offsets = [0, 0, 224], sizes = [8, 16, 32], strides = [1, 1, 1]} : vector<8x16x384xbf16> to vector<8x16x32xbf16>
    %111 = vector.extract_strided_slice %44 {offsets = [0, 0, 352], sizes = [8, 16, 32], strides = [1, 1, 1]} : vector<8x16x384xbf16> to vector<8x16x32xbf16>
    "tpu.trace_start"() <{level = 10 : i32, message = "tjd,tkd->tjk"}> : () -> ()
    %cst_41 = arith.constant dense<0.000000e+00> : vector<8x16x16xf32>
    %112 = tpu.matmul %109, %110, %cst_41 {dimension_numbers = #tpu.dot_dimension_numbers<[2], [2], [1], [1], [0, 0, 0, 1, 1, 1], [0], [0]>} : vector<8x16x32xbf16>, vector<8x16x32xbf16>, vector<8x16x16xf32> -> vector<8x16x16xf32>
    "tpu.trace_stop"() : () -> ()
    %113 = vector.broadcast %45 : vector<1x16x16xf32> to vector<8x16x16xf32>
    %114 = arith.addf %112, %113 : vector<8x16x16xf32>
    %cst_42 = arith.constant dense<0xFF800000> : vector<8x16xf32>
    %115 = vector.multi_reduction <maximumf>, %114, %cst_42 [2] : vector<8x16x16xf32> to vector<8x16xf32>
    %116 = vector.shape_cast %115 : vector<8x16xf32> to vector<8x16x1xf32>
    %117 = vector.broadcast %116 : vector<8x16x1xf32> to vector<8x16x16xf32>
    %118 = arith.subf %114, %117 : vector<8x16x16xf32>
    %119 = math.exp %118 : vector<8x16x16xf32>
    %cst_43 = arith.constant dense<0.000000e+00> : vector<8x16xf32>
    %120 = vector.multi_reduction <add>, %119, %cst_43 [2] : vector<8x16x16xf32> to vector<8x16xf32>
    %121 = vector.shape_cast %120 : vector<8x16xf32> to vector<8x16x1xf32>
    %122 = tpu.reciprocal %121 {approx = true} : vector<8x16x1xf32> -> vector<8x16x1xf32>
    %123 = vector.broadcast %122 : vector<8x16x1xf32> to vector<8x16x16xf32>
    %124 = arith.mulf %119, %123 : vector<8x16x16xf32>
    %125 = arith.truncf %124 : vector<8x16x16xf32> to vector<8x16x16xbf16>
    "tpu.trace_start"() <{level = 10 : i32, message = "tjk,tkd->tjd"}> : () -> ()
    %cst_44 = arith.constant dense<0.000000e+00> : vector<8x16x32xf32>
    %126 = tpu.matmul %125, %111, %cst_44 {dimension_numbers = #tpu.dot_dimension_numbers<[2], [1], [1], [2], [0, 0, 0, 1, 1, 2], [0], [0]>} : vector<8x16x16xbf16>, vector<8x16x32xbf16>, vector<8x16x32xf32> -> vector<8x16x32xf32>
    "tpu.trace_stop"() : () -> ()
    %127 = vector.shape_cast %126 : vector<8x16x32xf32> to vector<128x32xf32>
    %128 = arith.truncf %127 : vector<128x32xf32> to vector<128x32xbf16>
    %c0_45 = arith.constant 0 : index
    %c96 = arith.constant 96 : index
    %129 = vector.load %arg12[%c0_45, %c96] : memref<128x128xbf16, #tpu.memory_space<vmem>>, vector<128x32xbf16>
    tpu.vector_store %arg12[%c0_45, %c96], %128 {strides = array<i32>} : memref<128x128xbf16, #tpu.memory_space<vmem>>, vector<128x32xbf16>,
    %c0_46 = arith.constant 0 : index
    %c0_47 = arith.constant 0 : index
    %130 = vector.load %arg12[%c0_46, %c0_47] : memref<128x128xbf16, #tpu.memory_space<vmem>>, vector<128x128xbf16>
    %cst_48 = arith.constant dense<0.000000e+00> : vector<128x128xf32>
    %131 = tpu.matmul %130, %36, %cst_48 {dimension_numbers = #tpu.dot_dimension_numbers<[1], [0], [0], [1], [0, 0, 1, 1], [], []>} : vector<128x128xbf16>, vector<128x128xbf16>, vector<128x128xf32> -> vector<128x128xf32>
    %132 = vector.broadcast %37 : vector<1x128xf32> to vector<128x128xf32>
    %133 = arith.addf %131, %132 : vector<128x128xf32>
    %134 = vector.shape_cast %133 : vector<128x128xf32> to vector<8x16x128xf32>
    %135 = arith.addf %32, %134 : vector<8x16x128xf32>
    %cst_49 = arith.constant dense<0.000000e+00> : vector<8x16xf32>
    %136 = vector.multi_reduction <add>, %135, %cst_49 [2] : vector<8x16x128xf32> to vector<8x16xf32>
    %137 = vector.shape_cast %136 : vector<8x16xf32> to vector<8x16x1xf32>
    %cst_50 = arith.constant 1.280000e+02 : f32
    %138 = vector.broadcast %cst_50 : f32 to vector<8x16x1xf32>
    %139 = arith.divf %137, %138 : vector<8x16x1xf32>
    %140 = vector.broadcast %139 : vector<8x16x1xf32> to vector<8x16x128xf32>
    %141 = arith.subf %135, %140 : vector<8x16x128xf32>
    %142 = arith.mulf %141, %141 : vector<8x16x128xf32>
    %cst_51 = arith.constant dense<0.000000e+00> : vector<8x16xf32>
    %143 = vector.multi_reduction <add>, %142, %cst_51 [2] : vector<8x16x128xf32> to vector<8x16xf32>
    %144 = vector.shape_cast %143 : vector<8x16xf32> to vector<8x16x1xf32>
    %cst_52 = arith.constant 1.280000e+02 : f32
    %145 = vector.broadcast %cst_52 : f32 to vector<8x16x1xf32>
    %146 = arith.divf %144, %145 : vector<8x16x1xf32>
    %cst_53 = arith.constant 9.99999974E-6 : f32
    %147 = vector.broadcast %cst_53 : f32 to vector<8x16x1xf32>
    %148 = arith.addf %146, %147 : vector<8x16x1xf32>
    %149 = math.rsqrt %148 : vector<8x16x1xf32>
    %150 = vector.broadcast %149 : vector<8x16x1xf32> to vector<8x16x128xf32>
    %151 = arith.mulf %141, %150 : vector<8x16x128xf32>
    %152 = vector.shape_cast %1 : vector<1x128xf32> to vector<1x1x128xf32>
    %153 = vector.broadcast %152 : vector<1x1x128xf32> to vector<8x16x128xf32>
    %154 = arith.mulf %151, %153 : vector<8x16x128xf32>
    %155 = vector.shape_cast %2 : vector<1x128xf32> to vector<1x1x128xf32>
    %156 = vector.broadcast %155 : vector<1x1x128xf32> to vector<8x16x128xf32>
    %157 = arith.addf %154, %156 : vector<8x16x128xf32>
    %c0_54 = arith.constant 0 : index
    %c0_55 = arith.constant 0 : index
    %c0_56 = arith.constant 0 : index
    %158 = vector.load %arg11[%c0_54, %c0_55, %c0_56] : memref<8x16x128xf32, #tpu.memory_space<vmem>>, vector<8x16x128xf32>
    tpu.vector_store %arg11[%c0_54, %c0_55, %c0_56], %157 {strides = array<i32>} : memref<8x16x128xf32, #tpu.memory_space<vmem>>, vector<8x16x128xf32>,
    return
  }
  func.func @transform_0(%arg0: i32) -> (i32, i32, i32) {
    %c0_i32 = arith.constant 0 : i32
    %c0_i32_0 = arith.constant 0 : i32
    %c0_i32_1 = arith.constant 0 : i32
    return %arg0, %c0_i32, %c0_i32_0 : i32, i32, i32
  }
  func.func @transform_1(%arg0: i32) -> (i32, i32) {
    %c0_i32 = arith.constant 0 : i32
    %c0_i32_0 = arith.constant 0 : i32
    %c0_i32_1 = arith.constant 0 : i32
    return %c0_i32, %c0_i32_0 : i32, i32
  }
  func.func @transform_2(%arg0: i32) -> (i32, i32) {
    %c0_i32 = arith.constant 0 : i32
    %c0_i32_0 = arith.constant 0 : i32
    return %arg0, %c0_i32 : i32, i32
  }
  func.func @transform_3(%arg0: i32) -> (i32, i32) {
    %c0_i32 = arith.constant 0 : i32
    %c0_i32_0 = arith.constant 0 : i32
    %c0_i32_1 = arith.constant 0 : i32
    return %c0_i32, %c0_i32_0 : i32, i32
  }
  func.func @transform_4(%arg0: i32) -> (i32, i32) {
    %c0_i32 = arith.constant 0 : i32
    %c0_i32_0 = arith.constant 0 : i32
    %c0_i32_1 = arith.constant 0 : i32
    return %c0_i32, %c0_i32_0 : i32, i32
  }
  func.func @transform_5(%arg0: i32) -> (i32, i32) {
    %c0_i32 = arith.constant 0 : i32
    %c0_i32_0 = arith.constant 0 : i32
    %c0_i32_1 = arith.constant 0 : i32
    return %c0_i32, %c0_i32_0 : i32, i32
  }
  func.func @transform_6(%arg0: i32) -> (i32, i32) {
    %c0_i32 = arith.constant 0 : i32
    %c0_i32_0 = arith.constant 0 : i32
    %c0_i32_1 = arith.constant 0 : i32
    return %c0_i32, %c0_i32_0 : i32, i32
  }
  func.func @transform_7(%arg0: i32) -> (i32, i32) {
    %c0_i32 = arith.constant 0 : i32
    %c0_i32_0 = arith.constant 0 : i32
    %c0_i32_1 = arith.constant 0 : i32
    return %c0_i32, %c0_i32_0 : i32, i32
  }
  func.func @transform_8(%arg0: i32) -> (i32, i32) {
    %c0_i32 = arith.constant 0 : i32
    %c0_i32_0 = arith.constant 0 : i32
    %c0_i32_1 = arith.constant 0 : i32
    return %c0_i32, %c0_i32_0 : i32, i32
  }
  func.func @transform_9(%arg0: i32) -> (i32, i32) {
    %c0_i32 = arith.constant 0 : i32
    %c0_i32_0 = arith.constant 0 : i32
    %c0_i32_1 = arith.constant 0 : i32
    return %c0_i32, %c0_i32_0 : i32, i32
  }
  func.func @transform_10(%arg0: i32) -> (i32, i32, i32) {
    %c0_i32 = arith.constant 0 : i32
    %c0_i32_0 = arith.constant 0 : i32
    %c0_i32_1 = arith.constant 0 : i32
    return %arg0, %c0_i32, %c0_i32_0 : i32, i32, i32
  }
}

module attributes {stable_mosaic.version = 11 : i64} {
  func.func @_row_stage_kernel(%arg0: i32, %arg1: memref<8x16x128xf32, #tpu.memory_space<vmem>>, %arg2: memref<16x128xf32, #tpu.memory_space<vmem>>, %arg3: memref<16x16xf32, #tpu.memory_space<vmem>>, %arg4: memref<128x384xbf16, #tpu.memory_space<vmem>>, %arg5: memref<1x384xf32, #tpu.memory_space<vmem>>, %arg6: memref<128x128xbf16, #tpu.memory_space<vmem>>, %arg7: memref<1x128xf32, #tpu.memory_space<vmem>>, %arg8: memref<1x128xf32, #tpu.memory_space<vmem>>, %arg9: memref<1x128xf32, #tpu.memory_space<vmem>>, %arg10: memref<8x16x128xf32, #tpu.memory_space<vmem>>, %arg11: memref<16x128xf32, #tpu.memory_space<vmem>>, %arg12: memref<128x128xbf16, #tpu.memory_space<vmem>>) attributes {dimension_semantics = [#tpu.dimension_semantics<arbitrary>], iteration_bounds = array<i64: 2>, scalar_prefetch = 0 : i64, scratch_operands = 1 : i64, tpu.core_type = #tpu.core_type<tc>, window_params = [{transform_indices = @transform_0, window_bounds = array<i64: 8, 16, 128>}, {pipeline_mode = #tpu.pipeline_mode<synchronous>, transform_indices = @transform_1, window_bounds = array<i64: 16, 128>}, {pipeline_mode = #tpu.pipeline_mode<synchronous>, transform_indices = @transform_2, window_bounds = array<i64: 16, 16>}, {pipeline_mode = #tpu.pipeline_mode<synchronous>, transform_indices = @transform_3, window_bounds = array<i64: 128, 384>}, {pipeline_mode = #tpu.pipeline_mode<synchronous>, transform_indices = @transform_4, window_bounds = array<i64: 1, 384>}, {pipeline_mode = #tpu.pipeline_mode<synchronous>, transform_indices = @transform_5, window_bounds = array<i64: 128, 128>}, {pipeline_mode = #tpu.pipeline_mode<synchronous>, transform_indices = @transform_6, window_bounds = array<i64: 1, 128>}, {pipeline_mode = #tpu.pipeline_mode<synchronous>, transform_indices = @transform_7, window_bounds = array<i64: 1, 128>}, {pipeline_mode = #tpu.pipeline_mode<synchronous>, transform_indices = @transform_8, window_bounds = array<i64: 1, 128>}, {transform_indices = @transform_9, window_bounds = array<i64: 8, 16, 128>}, {pipeline_mode = #tpu.pipeline_mode<synchronous>, transform_indices = @transform_10, window_bounds = array<i64: 16, 128>}]} {
    %c0 = arith.constant 0 : index
    %c0_0 = arith.constant 0 : index
    %c0_1 = arith.constant 0 : index
    %0 = vector.load %arg1[%c0, %c0_0, %c0_1] : memref<8x16x128xf32, #tpu.memory_space<vmem>>, vector<8x16x128xf32>
    %c0_2 = arith.constant 0 : index
    %c0_3 = arith.constant 0 : index
    %1 = vector.load %arg2[%c0_2, %c0_3] : memref<16x128xf32, #tpu.memory_space<vmem>>, vector<16x128xf32>
    %c0_4 = arith.constant 0 : index
    %c0_5 = arith.constant 0 : index
    %2 = vector.load %arg8[%c0_4, %c0_5] : memref<1x128xf32, #tpu.memory_space<vmem>>, vector<1x128xf32>
    %c0_6 = arith.constant 0 : index
    %c0_7 = arith.constant 0 : index
    %3 = vector.load %arg9[%c0_6, %c0_7] : memref<1x128xf32, #tpu.memory_space<vmem>>, vector<1x128xf32>
    %c8_i32 = arith.constant 8 : i32
    %4 = arith.muli %arg0, %c8_i32 : i32
    %5 = tpu.iota {dimensions = array<i32: 0>} : vector<8x16xi32>
    %6 = vector.broadcast %4 : i32 to vector<8x16xi32>
    %7 = arith.addi %6, %5 : vector<8x16xi32>
    %8 = tpu.iota {dimensions = array<i32: 1>} : vector<8x16xi32>
    %9 = arith.cmpi slt, %8, %7 : vector<8x16xi32>
    %10 = arith.extui %9 : vector<8x16xi1> to vector<8x16xi32>
    %11 = arith.sitofp %10 : vector<8x16xi32> to vector<8x16xf32>
    %12 = vector.shape_cast %11 : vector<8x16xf32> to vector<8x16x1xf32>
    %13 = vector.broadcast %12 : vector<8x16x1xf32> to vector<8x16x128xf32>
    %14 = arith.mulf %0, %13 : vector<8x16x128xf32>
    %cst = arith.constant dense<0.000000e+00> : vector<8x128xf32>
    %15 = vector.multi_reduction <add>, %14, %cst [1] : vector<8x16x128xf32> to vector<8x128xf32>
    %16 = vector.shape_cast %1 : vector<16x128xf32> to vector<1x16x128xf32>
    %17 = vector.shape_cast %15 : vector<8x128xf32> to vector<8x1x128xf32>
    %18 = vector.broadcast %16 : vector<1x16x128xf32> to vector<8x16x128xf32>
    %19 = vector.broadcast %17 : vector<8x1x128xf32> to vector<8x16x128xf32>
    %20 = arith.addf %18, %19 : vector<8x16x128xf32>
    %21 = arith.addf %0, %20 : vector<8x16x128xf32>
    %cst_8 = arith.constant dense<0.000000e+00> : vector<8x16xf32>
    %22 = vector.multi_reduction <add>, %21, %cst_8 [2] : vector<8x16x128xf32> to vector<8x16xf32>
    %23 = vector.shape_cast %22 : vector<8x16xf32> to vector<8x16x1xf32>
    %cst_9 = arith.constant 1.280000e+02 : f32
    %24 = vector.broadcast %cst_9 : f32 to vector<8x16x1xf32>
    %25 = arith.divf %23, %24 : vector<8x16x1xf32>
    %26 = vector.broadcast %25 : vector<8x16x1xf32> to vector<8x16x128xf32>
    %27 = arith.subf %21, %26 : vector<8x16x128xf32>
    %28 = arith.mulf %27, %27 : vector<8x16x128xf32>
    %cst_10 = arith.constant dense<0.000000e+00> : vector<8x16xf32>
    %29 = vector.multi_reduction <add>, %28, %cst_10 [2] : vector<8x16x128xf32> to vector<8x16xf32>
    %30 = vector.shape_cast %29 : vector<8x16xf32> to vector<8x16x1xf32>
    %cst_11 = arith.constant 1.280000e+02 : f32
    %31 = vector.broadcast %cst_11 : f32 to vector<8x16x1xf32>
    %32 = arith.divf %30, %31 : vector<8x16x1xf32>
    %cst_12 = arith.constant 9.99999974E-6 : f32
    %33 = vector.broadcast %cst_12 : f32 to vector<8x16x1xf32>
    %34 = arith.addf %32, %33 : vector<8x16x1xf32>
    %35 = math.rsqrt %34 : vector<8x16x1xf32>
    %36 = vector.broadcast %35 : vector<8x16x1xf32> to vector<8x16x128xf32>
    %37 = arith.mulf %27, %36 : vector<8x16x128xf32>
    %38 = vector.shape_cast %2 : vector<1x128xf32> to vector<1x1x128xf32>
    %39 = vector.broadcast %38 : vector<1x1x128xf32> to vector<8x16x128xf32>
    %40 = arith.mulf %37, %39 : vector<8x16x128xf32>
    %41 = vector.shape_cast %3 : vector<1x128xf32> to vector<1x1x128xf32>
    %42 = vector.broadcast %41 : vector<1x1x128xf32> to vector<8x16x128xf32>
    %43 = arith.addf %40, %42 : vector<8x16x128xf32>
    %c0_13 = arith.constant 0 : index
    %c0_14 = arith.constant 0 : index
    %44 = vector.load %arg3[%c0_13, %c0_14] : memref<16x16xf32, #tpu.memory_space<vmem>>, vector<16x16xf32>
    %c0_15 = arith.constant 0 : index
    %c0_16 = arith.constant 0 : index
    %45 = vector.load %arg4[%c0_15, %c0_16] : memref<128x384xbf16, #tpu.memory_space<vmem>>, vector<128x384xbf16>
    %c0_17 = arith.constant 0 : index
    %c0_18 = arith.constant 0 : index
    %46 = vector.load %arg5[%c0_17, %c0_18] : memref<1x384xf32, #tpu.memory_space<vmem>>, vector<1x384xf32>
    %c0_19 = arith.constant 0 : index
    %c0_20 = arith.constant 0 : index
    %47 = vector.load %arg6[%c0_19, %c0_20] : memref<128x128xbf16, #tpu.memory_space<vmem>>, vector<128x128xbf16>
    %c0_21 = arith.constant 0 : index
    %c0_22 = arith.constant 0 : index
    %48 = vector.load %arg7[%c0_21, %c0_22] : memref<1x128xf32, #tpu.memory_space<vmem>>, vector<1x128xf32>
    %49 = vector.shape_cast %43 : vector<8x16x128xf32> to vector<128x128xf32>
    %50 = arith.truncf %49 : vector<128x128xf32> to vector<128x128xbf16>
    %cst_23 = arith.constant dense<0.000000e+00> : vector<128x384xf32>
    %51 = tpu.matmul %50, %45, %cst_23 {dimension_numbers = #tpu.dot_dimension_numbers<[1], [0], [0], [1], [0, 0, 1, 1], [], []>} : vector<128x128xbf16>, vector<128x384xbf16>, vector<128x384xf32> -> vector<128x384xf32>
    %52 = vector.broadcast %46 : vector<1x384xf32> to vector<128x384xf32>
    %53 = arith.addf %51, %52 : vector<128x384xf32>
    %54 = vector.shape_cast %53 : vector<128x384xf32> to vector<8x16x384xf32>
    %55 = arith.truncf %54 : vector<8x16x384xf32> to vector<8x16x384xbf16>
    %56 = vector.shape_cast %44 : vector<16x16xf32> to vector<1x16x16xf32>
    %57 = vector.extract_strided_slice %55 {offsets = [0, 0, 0], sizes = [8, 16, 32], strides = [1, 1, 1]} : vector<8x16x384xbf16> to vector<8x16x32xbf16>
    %58 = vector.extract_strided_slice %55 {offsets = [0, 0, 128], sizes = [8, 16, 32], strides = [1, 1, 1]} : vector<8x16x384xbf16> to vector<8x16x32xbf16>
    %59 = vector.extract_strided_slice %55 {offsets = [0, 0, 256], sizes = [8, 16, 32], strides = [1, 1, 1]} : vector<8x16x384xbf16> to vector<8x16x32xbf16>
    "tpu.trace_start"() <{level = 10 : i32, message = "tjd,tkd->tjk"}> : () -> ()
    %cst_24 = arith.constant dense<0.000000e+00> : vector<8x16x16xf32>
    %60 = tpu.matmul %57, %58, %cst_24 {dimension_numbers = #tpu.dot_dimension_numbers<[2], [2], [1], [1], [0, 0, 0, 1, 1, 1], [0], [0]>} : vector<8x16x32xbf16>, vector<8x16x32xbf16>, vector<8x16x16xf32> -> vector<8x16x16xf32>
    "tpu.trace_stop"() : () -> ()
    %61 = vector.broadcast %56 : vector<1x16x16xf32> to vector<8x16x16xf32>
    %62 = arith.addf %60, %61 : vector<8x16x16xf32>
    %cst_25 = arith.constant dense<0xFF800000> : vector<8x16xf32>
    %63 = vector.multi_reduction <maximumf>, %62, %cst_25 [2] : vector<8x16x16xf32> to vector<8x16xf32>
    %64 = vector.shape_cast %63 : vector<8x16xf32> to vector<8x16x1xf32>
    %65 = vector.broadcast %64 : vector<8x16x1xf32> to vector<8x16x16xf32>
    %66 = arith.subf %62, %65 : vector<8x16x16xf32>
    %67 = math.exp %66 : vector<8x16x16xf32>
    %cst_26 = arith.constant dense<0.000000e+00> : vector<8x16xf32>
    %68 = vector.multi_reduction <add>, %67, %cst_26 [2] : vector<8x16x16xf32> to vector<8x16xf32>
    %69 = vector.shape_cast %68 : vector<8x16xf32> to vector<8x16x1xf32>
    %70 = tpu.reciprocal %69 {approx = true} : vector<8x16x1xf32> -> vector<8x16x1xf32>
    %71 = vector.broadcast %70 : vector<8x16x1xf32> to vector<8x16x16xf32>
    %72 = arith.mulf %67, %71 : vector<8x16x16xf32>
    %73 = arith.truncf %72 : vector<8x16x16xf32> to vector<8x16x16xbf16>
    "tpu.trace_start"() <{level = 10 : i32, message = "tjk,tkd->tjd"}> : () -> ()
    %cst_27 = arith.constant dense<0.000000e+00> : vector<8x16x32xf32>
    %74 = tpu.matmul %73, %59, %cst_27 {dimension_numbers = #tpu.dot_dimension_numbers<[2], [1], [1], [2], [0, 0, 0, 1, 1, 2], [0], [0]>} : vector<8x16x16xbf16>, vector<8x16x32xbf16>, vector<8x16x32xf32> -> vector<8x16x32xf32>
    "tpu.trace_stop"() : () -> ()
    %75 = vector.shape_cast %74 : vector<8x16x32xf32> to vector<128x32xf32>
    %76 = arith.truncf %75 : vector<128x32xf32> to vector<128x32xbf16>
    %c0_28 = arith.constant 0 : index
    %c0_29 = arith.constant 0 : index
    %77 = vector.load %arg12[%c0_28, %c0_29] : memref<128x128xbf16, #tpu.memory_space<vmem>>, vector<128x32xbf16>
    tpu.vector_store %arg12[%c0_28, %c0_29], %76 {strides = array<i32>} : memref<128x128xbf16, #tpu.memory_space<vmem>>, vector<128x32xbf16>,
    %78 = vector.extract_strided_slice %55 {offsets = [0, 0, 32], sizes = [8, 16, 32], strides = [1, 1, 1]} : vector<8x16x384xbf16> to vector<8x16x32xbf16>
    %79 = vector.extract_strided_slice %55 {offsets = [0, 0, 160], sizes = [8, 16, 32], strides = [1, 1, 1]} : vector<8x16x384xbf16> to vector<8x16x32xbf16>
    %80 = vector.extract_strided_slice %55 {offsets = [0, 0, 288], sizes = [8, 16, 32], strides = [1, 1, 1]} : vector<8x16x384xbf16> to vector<8x16x32xbf16>
    "tpu.trace_start"() <{level = 10 : i32, message = "tjd,tkd->tjk"}> : () -> ()
    %cst_30 = arith.constant dense<0.000000e+00> : vector<8x16x16xf32>
    %81 = tpu.matmul %78, %79, %cst_30 {dimension_numbers = #tpu.dot_dimension_numbers<[2], [2], [1], [1], [0, 0, 0, 1, 1, 1], [0], [0]>} : vector<8x16x32xbf16>, vector<8x16x32xbf16>, vector<8x16x16xf32> -> vector<8x16x16xf32>
    "tpu.trace_stop"() : () -> ()
    %82 = vector.broadcast %56 : vector<1x16x16xf32> to vector<8x16x16xf32>
    %83 = arith.addf %81, %82 : vector<8x16x16xf32>
    %cst_31 = arith.constant dense<0xFF800000> : vector<8x16xf32>
    %84 = vector.multi_reduction <maximumf>, %83, %cst_31 [2] : vector<8x16x16xf32> to vector<8x16xf32>
    %85 = vector.shape_cast %84 : vector<8x16xf32> to vector<8x16x1xf32>
    %86 = vector.broadcast %85 : vector<8x16x1xf32> to vector<8x16x16xf32>
    %87 = arith.subf %83, %86 : vector<8x16x16xf32>
    %88 = math.exp %87 : vector<8x16x16xf32>
    %cst_32 = arith.constant dense<0.000000e+00> : vector<8x16xf32>
    %89 = vector.multi_reduction <add>, %88, %cst_32 [2] : vector<8x16x16xf32> to vector<8x16xf32>
    %90 = vector.shape_cast %89 : vector<8x16xf32> to vector<8x16x1xf32>
    %91 = tpu.reciprocal %90 {approx = true} : vector<8x16x1xf32> -> vector<8x16x1xf32>
    %92 = vector.broadcast %91 : vector<8x16x1xf32> to vector<8x16x16xf32>
    %93 = arith.mulf %88, %92 : vector<8x16x16xf32>
    %94 = arith.truncf %93 : vector<8x16x16xf32> to vector<8x16x16xbf16>
    "tpu.trace_start"() <{level = 10 : i32, message = "tjk,tkd->tjd"}> : () -> ()
    %cst_33 = arith.constant dense<0.000000e+00> : vector<8x16x32xf32>
    %95 = tpu.matmul %94, %80, %cst_33 {dimension_numbers = #tpu.dot_dimension_numbers<[2], [1], [1], [2], [0, 0, 0, 1, 1, 2], [0], [0]>} : vector<8x16x16xbf16>, vector<8x16x32xbf16>, vector<8x16x32xf32> -> vector<8x16x32xf32>
    "tpu.trace_stop"() : () -> ()
    %96 = vector.shape_cast %95 : vector<8x16x32xf32> to vector<128x32xf32>
    %97 = arith.truncf %96 : vector<128x32xf32> to vector<128x32xbf16>
    %c0_34 = arith.constant 0 : index
    %c32 = arith.constant 32 : index
    %98 = vector.load %arg12[%c0_34, %c32] : memref<128x128xbf16, #tpu.memory_space<vmem>>, vector<128x32xbf16>
    tpu.vector_store %arg12[%c0_34, %c32], %97 {strides = array<i32>} : memref<128x128xbf16, #tpu.memory_space<vmem>>, vector<128x32xbf16>,
    %99 = vector.extract_strided_slice %55 {offsets = [0, 0, 64], sizes = [8, 16, 32], strides = [1, 1, 1]} : vector<8x16x384xbf16> to vector<8x16x32xbf16>
    %100 = vector.extract_strided_slice %55 {offsets = [0, 0, 192], sizes = [8, 16, 32], strides = [1, 1, 1]} : vector<8x16x384xbf16> to vector<8x16x32xbf16>
    %101 = vector.extract_strided_slice %55 {offsets = [0, 0, 320], sizes = [8, 16, 32], strides = [1, 1, 1]} : vector<8x16x384xbf16> to vector<8x16x32xbf16>
    "tpu.trace_start"() <{level = 10 : i32, message = "tjd,tkd->tjk"}> : () -> ()
    %cst_35 = arith.constant dense<0.000000e+00> : vector<8x16x16xf32>
    %102 = tpu.matmul %99, %100, %cst_35 {dimension_numbers = #tpu.dot_dimension_numbers<[2], [2], [1], [1], [0, 0, 0, 1, 1, 1], [0], [0]>} : vector<8x16x32xbf16>, vector<8x16x32xbf16>, vector<8x16x16xf32> -> vector<8x16x16xf32>
    "tpu.trace_stop"() : () -> ()
    %103 = vector.broadcast %56 : vector<1x16x16xf32> to vector<8x16x16xf32>
    %104 = arith.addf %102, %103 : vector<8x16x16xf32>
    %cst_36 = arith.constant dense<0xFF800000> : vector<8x16xf32>
    %105 = vector.multi_reduction <maximumf>, %104, %cst_36 [2] : vector<8x16x16xf32> to vector<8x16xf32>
    %106 = vector.shape_cast %105 : vector<8x16xf32> to vector<8x16x1xf32>
    %107 = vector.broadcast %106 : vector<8x16x1xf32> to vector<8x16x16xf32>
    %108 = arith.subf %104, %107 : vector<8x16x16xf32>
    %109 = math.exp %108 : vector<8x16x16xf32>
    %cst_37 = arith.constant dense<0.000000e+00> : vector<8x16xf32>
    %110 = vector.multi_reduction <add>, %109, %cst_37 [2] : vector<8x16x16xf32> to vector<8x16xf32>
    %111 = vector.shape_cast %110 : vector<8x16xf32> to vector<8x16x1xf32>
    %112 = tpu.reciprocal %111 {approx = true} : vector<8x16x1xf32> -> vector<8x16x1xf32>
    %113 = vector.broadcast %112 : vector<8x16x1xf32> to vector<8x16x16xf32>
    %114 = arith.mulf %109, %113 : vector<8x16x16xf32>
    %115 = arith.truncf %114 : vector<8x16x16xf32> to vector<8x16x16xbf16>
    "tpu.trace_start"() <{level = 10 : i32, message = "tjk,tkd->tjd"}> : () -> ()
    %cst_38 = arith.constant dense<0.000000e+00> : vector<8x16x32xf32>
    %116 = tpu.matmul %115, %101, %cst_38 {dimension_numbers = #tpu.dot_dimension_numbers<[2], [1], [1], [2], [0, 0, 0, 1, 1, 2], [0], [0]>} : vector<8x16x16xbf16>, vector<8x16x32xbf16>, vector<8x16x32xf32> -> vector<8x16x32xf32>
    "tpu.trace_stop"() : () -> ()
    %117 = vector.shape_cast %116 : vector<8x16x32xf32> to vector<128x32xf32>
    %118 = arith.truncf %117 : vector<128x32xf32> to vector<128x32xbf16>
    %c0_39 = arith.constant 0 : index
    %c64 = arith.constant 64 : index
    %119 = vector.load %arg12[%c0_39, %c64] : memref<128x128xbf16, #tpu.memory_space<vmem>>, vector<128x32xbf16>
    tpu.vector_store %arg12[%c0_39, %c64], %118 {strides = array<i32>} : memref<128x128xbf16, #tpu.memory_space<vmem>>, vector<128x32xbf16>,
    %120 = vector.extract_strided_slice %55 {offsets = [0, 0, 96], sizes = [8, 16, 32], strides = [1, 1, 1]} : vector<8x16x384xbf16> to vector<8x16x32xbf16>
    %121 = vector.extract_strided_slice %55 {offsets = [0, 0, 224], sizes = [8, 16, 32], strides = [1, 1, 1]} : vector<8x16x384xbf16> to vector<8x16x32xbf16>
    %122 = vector.extract_strided_slice %55 {offsets = [0, 0, 352], sizes = [8, 16, 32], strides = [1, 1, 1]} : vector<8x16x384xbf16> to vector<8x16x32xbf16>
    "tpu.trace_start"() <{level = 10 : i32, message = "tjd,tkd->tjk"}> : () -> ()
    %cst_40 = arith.constant dense<0.000000e+00> : vector<8x16x16xf32>
    %123 = tpu.matmul %120, %121, %cst_40 {dimension_numbers = #tpu.dot_dimension_numbers<[2], [2], [1], [1], [0, 0, 0, 1, 1, 1], [0], [0]>} : vector<8x16x32xbf16>, vector<8x16x32xbf16>, vector<8x16x16xf32> -> vector<8x16x16xf32>
    "tpu.trace_stop"() : () -> ()
    %124 = vector.broadcast %56 : vector<1x16x16xf32> to vector<8x16x16xf32>
    %125 = arith.addf %123, %124 : vector<8x16x16xf32>
    %cst_41 = arith.constant dense<0xFF800000> : vector<8x16xf32>
    %126 = vector.multi_reduction <maximumf>, %125, %cst_41 [2] : vector<8x16x16xf32> to vector<8x16xf32>
    %127 = vector.shape_cast %126 : vector<8x16xf32> to vector<8x16x1xf32>
    %128 = vector.broadcast %127 : vector<8x16x1xf32> to vector<8x16x16xf32>
    %129 = arith.subf %125, %128 : vector<8x16x16xf32>
    %130 = math.exp %129 : vector<8x16x16xf32>
    %cst_42 = arith.constant dense<0.000000e+00> : vector<8x16xf32>
    %131 = vector.multi_reduction <add>, %130, %cst_42 [2] : vector<8x16x16xf32> to vector<8x16xf32>
    %132 = vector.shape_cast %131 : vector<8x16xf32> to vector<8x16x1xf32>
    %133 = tpu.reciprocal %132 {approx = true} : vector<8x16x1xf32> -> vector<8x16x1xf32>
    %134 = vector.broadcast %133 : vector<8x16x1xf32> to vector<8x16x16xf32>
    %135 = arith.mulf %130, %134 : vector<8x16x16xf32>
    %136 = arith.truncf %135 : vector<8x16x16xf32> to vector<8x16x16xbf16>
    "tpu.trace_start"() <{level = 10 : i32, message = "tjk,tkd->tjd"}> : () -> ()
    %cst_43 = arith.constant dense<0.000000e+00> : vector<8x16x32xf32>
    %137 = tpu.matmul %136, %122, %cst_43 {dimension_numbers = #tpu.dot_dimension_numbers<[2], [1], [1], [2], [0, 0, 0, 1, 1, 2], [0], [0]>} : vector<8x16x16xbf16>, vector<8x16x32xbf16>, vector<8x16x32xf32> -> vector<8x16x32xf32>
    "tpu.trace_stop"() : () -> ()
    %138 = vector.shape_cast %137 : vector<8x16x32xf32> to vector<128x32xf32>
    %139 = arith.truncf %138 : vector<128x32xf32> to vector<128x32xbf16>
    %c0_44 = arith.constant 0 : index
    %c96 = arith.constant 96 : index
    %140 = vector.load %arg12[%c0_44, %c96] : memref<128x128xbf16, #tpu.memory_space<vmem>>, vector<128x32xbf16>
    tpu.vector_store %arg12[%c0_44, %c96], %139 {strides = array<i32>} : memref<128x128xbf16, #tpu.memory_space<vmem>>, vector<128x32xbf16>,
    %c0_45 = arith.constant 0 : index
    %c0_46 = arith.constant 0 : index
    %141 = vector.load %arg12[%c0_45, %c0_46] : memref<128x128xbf16, #tpu.memory_space<vmem>>, vector<128x128xbf16>
    %cst_47 = arith.constant dense<0.000000e+00> : vector<128x128xf32>
    %142 = tpu.matmul %141, %47, %cst_47 {dimension_numbers = #tpu.dot_dimension_numbers<[1], [0], [0], [1], [0, 0, 1, 1], [], []>} : vector<128x128xbf16>, vector<128x128xbf16>, vector<128x128xf32> -> vector<128x128xf32>
    %143 = vector.broadcast %48 : vector<1x128xf32> to vector<128x128xf32>
    %144 = arith.addf %142, %143 : vector<128x128xf32>
    %145 = vector.shape_cast %144 : vector<128x128xf32> to vector<8x16x128xf32>
    %146 = arith.addf %43, %145 : vector<8x16x128xf32>
    %cst_48 = arith.constant dense<0.000000e+00> : vector<8x16xf32>
    %147 = vector.multi_reduction <add>, %146, %cst_48 [2] : vector<8x16x128xf32> to vector<8x16xf32>
    %148 = vector.shape_cast %147 : vector<8x16xf32> to vector<8x16x1xf32>
    %cst_49 = arith.constant 1.280000e+02 : f32
    %149 = vector.broadcast %cst_49 : f32 to vector<8x16x1xf32>
    %150 = arith.divf %148, %149 : vector<8x16x1xf32>
    %151 = vector.broadcast %150 : vector<8x16x1xf32> to vector<8x16x128xf32>
    %152 = arith.subf %146, %151 : vector<8x16x128xf32>
    %153 = arith.mulf %152, %152 : vector<8x16x128xf32>
    %cst_50 = arith.constant dense<0.000000e+00> : vector<8x16xf32>
    %154 = vector.multi_reduction <add>, %153, %cst_50 [2] : vector<8x16x128xf32> to vector<8x16xf32>
    %155 = vector.shape_cast %154 : vector<8x16xf32> to vector<8x16x1xf32>
    %cst_51 = arith.constant 1.280000e+02 : f32
    %156 = vector.broadcast %cst_51 : f32 to vector<8x16x1xf32>
    %157 = arith.divf %155, %156 : vector<8x16x1xf32>
    %cst_52 = arith.constant 9.99999974E-6 : f32
    %158 = vector.broadcast %cst_52 : f32 to vector<8x16x1xf32>
    %159 = arith.addf %157, %158 : vector<8x16x1xf32>
    %160 = math.rsqrt %159 : vector<8x16x1xf32>
    %161 = vector.broadcast %160 : vector<8x16x1xf32> to vector<8x16x128xf32>
    %162 = arith.mulf %152, %161 : vector<8x16x128xf32>
    %163 = vector.shape_cast %2 : vector<1x128xf32> to vector<1x1x128xf32>
    %164 = vector.broadcast %163 : vector<1x1x128xf32> to vector<8x16x128xf32>
    %165 = arith.mulf %162, %164 : vector<8x16x128xf32>
    %166 = vector.shape_cast %3 : vector<1x128xf32> to vector<1x1x128xf32>
    %167 = vector.broadcast %166 : vector<1x1x128xf32> to vector<8x16x128xf32>
    %168 = arith.addf %165, %167 : vector<8x16x128xf32>
    %c0_53 = arith.constant 0 : index
    %c0_54 = arith.constant 0 : index
    %c0_55 = arith.constant 0 : index
    %169 = vector.load %arg10[%c0_53, %c0_54, %c0_55] : memref<8x16x128xf32, #tpu.memory_space<vmem>>, vector<8x16x128xf32>
    tpu.vector_store %arg10[%c0_53, %c0_54, %c0_55], %168 {strides = array<i32>} : memref<8x16x128xf32, #tpu.memory_space<vmem>>, vector<8x16x128xf32>,
    %c0_i32 = arith.constant 0 : i32
    %170 = arith.cmpi eq, %arg0, %c0_i32 : i32
    %171 = arith.extui %170 : i1 to i32
    %c0_i32_56 = arith.constant 0 : i32
    %172 = arith.cmpi ne, %171, %c0_i32_56 : i32
    scf.if %172 {
      %cst_62 = arith.constant 0.000000e+00 : f32
      %183 = vector.broadcast %cst_62 : f32 to vector<16x128xf32>
      %c0_63 = arith.constant 0 : index
      %c0_64 = arith.constant 0 : index
      %184 = vector.load %arg11[%c0_63, %c0_64] : memref<16x128xf32, #tpu.memory_space<vmem>>, vector<16x128xf32>
      tpu.vector_store %arg11[%c0_63, %c0_64], %183 {strides = array<i32>} : memref<16x128xf32, #tpu.memory_space<vmem>>, vector<16x128xf32>,
    } else {
    }
    %173 = arith.cmpi slt, %7, %8 : vector<8x16xi32>
    %174 = arith.extui %173 : vector<8x16xi1> to vector<8x16xi32>
    %175 = arith.sitofp %174 : vector<8x16xi32> to vector<8x16xf32>
    %c0_57 = arith.constant 0 : index
    %c0_58 = arith.constant 0 : index
    %176 = vector.load %arg11[%c0_57, %c0_58] : memref<16x128xf32, #tpu.memory_space<vmem>>, vector<16x128xf32>
    %177 = vector.shape_cast %175 : vector<8x16xf32> to vector<8x16x1xf32>
    %178 = vector.broadcast %177 : vector<8x16x1xf32> to vector<8x16x128xf32>
    %179 = arith.mulf %168, %178 : vector<8x16x128xf32>
    %cst_59 = arith.constant dense<0.000000e+00> : vector<16x128xf32>
    %180 = vector.multi_reduction <add>, %179, %cst_59 [0] : vector<8x16x128xf32> to vector<16x128xf32>
    %181 = arith.addf %176, %180 : vector<16x128xf32>
    %c0_60 = arith.constant 0 : index
    %c0_61 = arith.constant 0 : index
    %182 = vector.load %arg11[%c0_60, %c0_61] : memref<16x128xf32, #tpu.memory_space<vmem>>, vector<16x128xf32>
    tpu.vector_store %arg11[%c0_60, %c0_61], %181 {strides = array<i32>} : memref<16x128xf32, #tpu.memory_space<vmem>>, vector<16x128xf32>,
    return
  }
  func.func @transform_0(%arg0: i32) -> (i32, i32, i32) {
    %c0_i32 = arith.constant 0 : i32
    %c0_i32_0 = arith.constant 0 : i32
    %c0_i32_1 = arith.constant 0 : i32
    return %arg0, %c0_i32, %c0_i32_0 : i32, i32, i32
  }
  func.func @transform_1(%arg0: i32) -> (i32, i32) {
    %c0_i32 = arith.constant 0 : i32
    %c0_i32_0 = arith.constant 0 : i32
    %c0_i32_1 = arith.constant 0 : i32
    return %c0_i32, %c0_i32_0 : i32, i32
  }
  func.func @transform_2(%arg0: i32) -> (i32, i32) {
    %c0_i32 = arith.constant 0 : i32
    %c0_i32_0 = arith.constant 0 : i32
    %c0_i32_1 = arith.constant 0 : i32
    return %c0_i32, %c0_i32_0 : i32, i32
  }
  func.func @transform_3(%arg0: i32) -> (i32, i32) {
    %c0_i32 = arith.constant 0 : i32
    %c0_i32_0 = arith.constant 0 : i32
    %c0_i32_1 = arith.constant 0 : i32
    return %c0_i32, %c0_i32_0 : i32, i32
  }
  func.func @transform_4(%arg0: i32) -> (i32, i32) {
    %c0_i32 = arith.constant 0 : i32
    %c0_i32_0 = arith.constant 0 : i32
    %c0_i32_1 = arith.constant 0 : i32
    return %c0_i32, %c0_i32_0 : i32, i32
  }
  func.func @transform_5(%arg0: i32) -> (i32, i32) {
    %c0_i32 = arith.constant 0 : i32
    %c0_i32_0 = arith.constant 0 : i32
    %c0_i32_1 = arith.constant 0 : i32
    return %c0_i32, %c0_i32_0 : i32, i32
  }
  func.func @transform_6(%arg0: i32) -> (i32, i32) {
    %c0_i32 = arith.constant 0 : i32
    %c0_i32_0 = arith.constant 0 : i32
    %c0_i32_1 = arith.constant 0 : i32
    return %c0_i32, %c0_i32_0 : i32, i32
  }
  func.func @transform_7(%arg0: i32) -> (i32, i32) {
    %c0_i32 = arith.constant 0 : i32
    %c0_i32_0 = arith.constant 0 : i32
    %c0_i32_1 = arith.constant 0 : i32
    return %c0_i32, %c0_i32_0 : i32, i32
  }
  func.func @transform_8(%arg0: i32) -> (i32, i32) {
    %c0_i32 = arith.constant 0 : i32
    %c0_i32_0 = arith.constant 0 : i32
    %c0_i32_1 = arith.constant 0 : i32
    return %c0_i32, %c0_i32_0 : i32, i32
  }
  func.func @transform_9(%arg0: i32) -> (i32, i32, i32) {
    %c0_i32 = arith.constant 0 : i32
    %c0_i32_0 = arith.constant 0 : i32
    %c0_i32_1 = arith.constant 0 : i32
    return %arg0, %c0_i32, %c0_i32_0 : i32, i32, i32
  }
  func.func @transform_10(%arg0: i32) -> (i32, i32) {
    %c0_i32 = arith.constant 0 : i32
    %c0_i32_0 = arith.constant 0 : i32
    %c0_i32_1 = arith.constant 0 : i32
    return %c0_i32, %c0_i32_0 : i32, i32
  }
}

</mosaic_0001>

<bundles_post_ra>
// kernel: pairformer_block.4
= control target key start
LH: loop header
LB: loop body
LE: loop exit
PB: predicated region body
PF: predicated region fallthrough
CT: control target
= control target key end

     0   :  { %v556_v2 = vmov 0   ;;  %s726_s0 = inlined_call_operand.vmem [shape: f32[16,128], index: 0, kind: input, shape index: {}]   ;;  %s727_s1 = inlined_call_operand.vmem [shape: bf16[128,256], index: 1, kind: input, shape index: {}]   ;;  %s728_s2 = inlined_call_operand.vmem [shape: f32[1,256], index: 2, kind: input, shape index: {}]   ;;  %s729_s3 = inlined_call_operand.vmem [shape: bf16[256,128], index: 3, kind: input, shape index: {}]   ;;  %s730_s4 = inlined_call_operand.vmem [shape: f32[1,128], index: 4, kind: input, shape index: {}]   ;;  %s731_s5 = inlined_call_operand.vmem [shape: f32[1,128], index: 5, kind: input, shape index: {}]   ;;  %s732_s6 = inlined_call_operand.vmem [shape: f32[1,128], index: 6, kind: input, shape index: {}]   ;;  %s733_s7 = inlined_call_operand.hbm [shape: f32[16,128], index: 7, kind: output, shape index: {}]  }
   0x1   :  { %v488_v0 = vld [vmem:[%s727_s1 + $0x4] ss:$8 sps:$4 sm:$0xff]   ;;  %v490_v1 = vld [vmem:[%s727_s1] ss:$8 sps:$4 sm:$0xff]   ;;  %171 = vmatprep.mubr.bf16.mxu0 %v556_v2  ;;  %v491_v3 = vld [vmem:[%s727_s1 + $0x14] ss:$8 sps:$4 sm:$0xff]  }
   0x2   :  { %139 = vmatprep.subr.bf16.mxu0 %v488_v0  ;;  %v493_v4 = vld [vmem:[%s727_s1 + $0x10] ss:$8 sps:$4 sm:$0xff]   ;;  %v494_v5 = vld [vmem:[%s727_s1 + $0x24] ss:$8 sps:$4 sm:$0xff]   ;;  %v496_v6 = vld [vmem:[%s727_s1 + $0x20] ss:$8 sps:$4 sm:$0xff]  }
   0x3   :  { %140 = vmatpush1.bf16.msra.mxu0 %v490_v1  ;;  %v497_v7 = vld [vmem:[%s727_s1 + $0x34] ss:$8 sps:$4 sm:$0xff]   ;;  %v499_v8 = vld [vmem:[%s727_s1 + $0x30] ss:$8 sps:$4 sm:$0xff]   ;;  %v500_v9 = vld [vmem:[%s727_s1 + $0x44] ss:$8 sps:$4 sm:$0xff]  }
   0x4   :  { %141 = vmatprep.subr.bf16.mxu0 %v491_v3  ;;  %v512_v10 = vld [vmem:[%s729_s3 + $0x40] sm:$0xff]   ;;  %v503_v13 = vld [vmem:[%s727_s1 + $0x54] ss:$8 sps:$4 sm:$0xff]   ;;  %v514_v14 = vld [vmem:[%s729_s3 + $0x48] sm:$0xff]  }
   0x5   :  { %v502_v11 = vld [vmem:[%s727_s1 + $0x40] ss:$8 sps:$4 sm:$0xff]   ;;  %462 = vmatprep.subr.bf16.mxu1 %v512_v10  ;;  %v516_v16 = vld [vmem:[%s729_s3 + $0x50] sm:$0xff]   ;;  %v506_v18 = vld [vmem:[%s727_s1 + $0x64] ss:$8 sps:$4 sm:$0xff]  }
   0x6   :  { %v513_v12 = vld [vmem:[%s729_s3] sm:$0xff]   ;;  %v515_v15 = vld [vmem:[%s729_s3 + $0x8] sm:$0xff]   ;;  %v505_v17 = vld [vmem:[%s727_s1 + $0x50] ss:$8 sps:$4 sm:$0xff]  }
   0x7   :  { %142 = vmatpush1.bf16.msra.mxu0 %v493_v4  ;;  %463 = vmatpush3.bf16.msra.mxu1 %v513_v12  ;;  %v517_v19 = vld [vmem:[%s729_s3 + $0x10] sm:$0xff]   ;;  %v518_v20 = vld [vmem:[%s729_s3 + $0x58] sm:$0xff]   ;;  %v508_v21 = vld [vmem:[%s727_s1 + $0x60] ss:$8 sps:$4 sm:$0xff]  }
   0x8   :  { %143 = vmatprep.subr.bf16.mxu0 %v494_v5  ;;  %464 = vmatprep.subr.bf16.mxu1 %v514_v14  ;;  %v509_v22 = vld [vmem:[%s727_s1 + $0x74] ss:$8 sps:$4 sm:$0xff]   ;;  %v520_v24 = vld [vmem:[%s729_s3 + $0x60] sm:$0xff]   ;;  %v511_v25 = vld [vmem:[%s727_s1 + $0x70] ss:$8 sps:$4 sm:$0xff]  }
   0x9   :  { %v519_v23 = vld [vmem:[%s729_s3 + $0x18] sm:$0xff]  }
   0xb   :  { %144 = vmatpush1.bf16.msra.mxu0 %v496_v6  ;;  %465 = vmatpush3.bf16.msra.mxu1 %v515_v15 }
   0xc   :  { %145 = vmatprep.subr.bf16.mxu0 %v497_v7  ;;  %466 = vmatprep.subr.bf16.mxu1 %v516_v16 }
   0xf   :  { %146 = vmatpush1.bf16.msra.mxu0 %v499_v8  ;;  %467 = vmatpush3.bf16.msra.mxu1 %v517_v19 }
  0x10   :  { %147 = vmatprep.subr.bf16.mxu0 %v500_v9  ;;  %468 = vmatprep.subr.bf16.mxu1 %v518_v20 }
  0x13   :  { %148 = vmatpush1.bf16.msra.mxu0 %v502_v11 }
  0x14   :  { %149 = vmatprep.subr.bf16.mxu0 %v503_v13 }
  0x17   :  { %150 = vmatpush1.bf16.msra.mxu0 %v505_v17 }
  0x18   :  { %151 = vmatprep.subr.bf16.mxu0 %v506_v18 }
  0x19   :  { %12 = vsyncpa [#allocation3], 0  ;;  %v28_v26 = vld [vmem:[%s726_s0] sm:$0xff]  ;;  %v29_v27 = vld [vmem:[%s726_s0 + $0x8] sm:$0xff]  ;;  %469 = vmatpush3.bf16.msra.mxu1 %v519_v23  ;;  %v49_v36 = vlaneseq  ;;  %s557_s26 = smov [#allocation2]  }
  0x1a   :  { %v521_v28 = vld [vmem:[%s729_s3 + $0x20] sm:$0xff]   ;;  %470 = vmatprep.subr.bf16.mxu1 %v520_v24  ;;  %v522_v29 = vld [vmem:[%s729_s3 + $0x68] sm:$0xff]   ;;  %v30_v30 = vpack.c.bf16 %v29_v27, %v28_v26  ;;  %v524_v32 = vld [vmem:[%s729_s3 + $0x70] sm:$0xff]   ;;  %s416_s27 = sshll.u32 %s557_s26, 4  ;;  %s417_s27 = int_to_ptr.vmem [resolvable:$true] %s416_s27 }
  0x1b   :  { %152 = vmatpush1.bf16.msra.mxu0 %v508_v21  ;;  %v523_v31 = vld [vmem:[%s729_s3 + $0x28] sm:$0xff]   ;;  %v525_v33 = vld [vmem:[%s729_s3 + $0x30] sm:$0xff]   ;;  %v526_v34 = vld [vmem:[%s729_s3 + $0x78] sm:$0xff]   ;;  %v50_v37 = vshrl.u32 %v49_v36, 7  ;;  %s532_s28 = scalar_lea.vmem %s417_s27, 256  ;;  %p537_p1 = scmp.lt.s32.totalorder %s417_s27, %s417_s27 }
  0x1c   :  { %153 = vmatprep.subr.bf16.mxu0 %v509_v22  ;;  %v527_v35 = vld [vmem:[%s729_s3 + $0x38] sm:$0xff]   ;;  %v47_v39 = vld [vmem:[%s728_s2] sm:$0x3]  ;;  %p533_p0 = scmp.ne.s32.totalorder %s417_s27, %s532_s28  ;;  %p538_p2 = scmp.lt.s32.totalorder %s532_s28, %s532_s28 }
  0x1d   :  { %471 = vmatpush3.bf16.msra.mxu1 %v521_v28  ;;  %v51_v38 = vsub.s32 0, %v50_v37  ;;  %v55_v40 = vsub.s32 1, %v50_v37  ;;  %v443_v58 = vld [vmem:[%s730_s4] ss:$0 sm:$0xff] }
  0x1e   :  { %472 = vmatprep.subr.bf16.mxu1 %v522_v29  ;;  %v460_v21 = vld [vmem:[%s731_s5] ss:$0 sm:$0xff]  ;;  %p539_p3 = por %p538_p2, %p537_p1 }
  0x1f   :  { %154 = vmatpush1.bf16.msra.mxu0 %v511_v25  ;;  %v52_v41 = vrot.slane %v47_v39, %v51_v38  ;;  %v56_v42 = vrot.slane %v47_v39, %v55_v40  ;;  %v461_v23 = vld [vmem:[%s732_s6] ss:$0 sm:$0xff] }
  0x20   :  { %p540_p4 = pnand %p539_p3, %p533_p0 }
  0x21   :  { %473 = vmatpush3.bf16.msra.mxu1 %v523_v31 }
  0x22   :  { %172 = vmatmul.mubr.bf16.vlgmr.msra.gmra.mrb[0].mxu0 %v30_v30  ;;  %474 = vmatprep.subr.bf16.mxu1 %v524_v32 }
  0x25   :  { %475 = vmatpush3.bf16.msra.mxu1 %v525_v33 }
  0x26   :  { %476 = vmatprep.subr.bf16.mxu1 %v526_v34 }
  0x29   :  { %477 = vmatpush3.bf16.msra.mxu1 %v527_v35 }
  0xf5   :  { %v173_v43 = vpop.f32.mrb[0].mxu0 }
  0xf6   :  { %v174_v44 = vadd.f32 %v173_v43, %v52_v41  ;;  %v175_v45 = vpop.f32.mrb[1].mxu0 }
  0xf7   :  { %v176_v46 = vadd.f32 %v175_v45, %v56_v42  ;;  %v177_v47 = vpop.f32.mrb[2].mxu0 }
  0xf8   :  { %v178_v48 = vadd.f32 %v177_v47, %v52_v41  ;;  %v179_v49 = vpop.f32.mrb[3].mxu0  ;;  %v182_v51 = vmax.f32 %v174_v44, 0.0 }
  0xf9   :  { %v180_v50 = vadd.f32 %v179_v49, %v56_v42  ;;  %v183_v53 = vmax.f32 %v176_v46, 0.0 }
  0xfa   :  { %v184_v52 = vmax.f32 %v178_v48, 0.0 }
  0xfb   :  { %v185_v54 = vmax.f32 %v180_v50, 0.0 }
  0xfc   :  { %v186_v55 = vpack.c.bf16 %v184_v52, %v182_v51 }
  0xfd   :  { %v187_v56 = vpack.c.bf16 %v185_v54, %v183_v53 }
  0xff   :  { %355 = vmatprep.mubr.bf16.mxu1 %v187_v56 }
 0x100   :  { %356 = vmatmul.mubr.bf16.vlgmr.msra.gmra.mrb[0].mxu1 %v186_v55 }
 0x1d3   :  { %v478_v57 = vpop.f32.mrb[0].mxu1 }
 0x1d4   :  { %v479_v59 = vpop.f32.mrb[1].mxu1 }
 0x1d5   :  { %v480_v60 = vadd.f32 %v479_v59, %v478_v57  ;;  %v481_v61 = vpop.f32.mrb[2].mxu1 }
 0x1d6   :  { %v482_v62 = vpop.f32.mrb[3].mxu1 }
 0x1d7   :  { %v358_v63 = vadd.f32 %v480_v60, %v443_v58  ;;  %v483_v0 = vadd.f32 %v482_v62, %v481_v61 }
 0x1d9   :  { %v364_v1 = vmax.f32 %v358_v63, 0.0  ;;  %v361_v2 = vadd.f32 %v483_v0, %v443_v58 }
 0x1db   :  { %v365_v3 = vmax.f32 %v361_v2, 0.0  ;;  %v366_v4 = vadd.f32 %v364_v1, %v28_v26 }
 0x1dd   :  { %370 = vadd.xlane.f32.xlu0 %v366_v4  ;;  %v367_v5 = vadd.f32 %v365_v3, %v29_v27 }
 0x1e1   :  { %372 = vadd.xlane.f32.xlu0 %v367_v5 }
 0x26a   :  { %v371_v6 = vpop.xlane.xlu0 %370 }
 0x26b   :  { %v375_v7 = vmul.f32 0.0078125, %v371_v6 }
 0x26d   :  { %v377_v8 = vsub.f32 %v366_v4, %v375_v7 }
 0x26e   :  { %v373_v9 = vpop.xlane.xlu0 %372 }
 0x26f   :  { %v376_v10 = vmul.f32 0.0078125, %v373_v9  ;;  %v379_v11 = vmul.f32 %v377_v8, %v377_v8 }
 0x271   :  { %v378_v12 = vsub.f32 %v367_v5, %v376_v10  ;;  %381 = vadd.xlane.f32.xlu1 %v379_v11 }
 0x273   :  { %v380_v13 = vmul.f32 %v378_v12, %v378_v12 }
 0x275   :  { %383 = vadd.xlane.f32.xlu1 %v380_v13 }
 0x2fe   :  { %v382_v14 = vpop.xlane.xlu1 %381 }
 0x2ff   :  { %v385_v15 = vmul.f32 0.0078125, %v382_v14 }
 0x301   :  { %v387_v16 = vadd.f32 1e-05, %v385_v15 }
 0x302   :  { %v384_v17 = vpop.xlane.xlu1 %383 }
 0x303   :  { %528 = vrsqrt.f32 %v387_v16  ;;  %v386_v18 = vmul.f32 0.0078125, %v384_v17 }
 0x305   :  { %v388_v19 = vadd.f32 1e-05, %v386_v18 }
 0x307   :  { %530 = vrsqrt.f32 %v388_v19 }
 0x30d   :  { %v529_v20 = vpop.eup %528 }
 0x30e   :  { %v391_v22 = vmul.f32 %v529_v20, %v377_v8 }
 0x310   :  { %v399_v24 = vmul.f32 %v460_v21, %v391_v22 }
 0x311   :  { %v531_v25 = vpop.eup %530 }
 0x312   :  { %v392_v26 = vmul.f32 %v531_v25, %v378_v12  ;;  %v407_v27 = vadd.f32 %v461_v23, %v399_v24 }
 0x314   :  { %v400_v28 = vmul.f32 %v460_v21, %v392_v26  ;;  %409 = vst [vmem:[#allocation2] sm:$0xff] %v407_v27 }
 0x316   :  { %v408_v29 = vadd.f32 %v461_v23, %v400_v28 }
 0x318   :  { %410 = vst [vmem:[#allocation2 + $0x8] sm:$0xff] %v408_v29 }
 0x319   :  { %543 = shalt.err (!%p540_p4)
}
 0x31a   :  { %s544_s29 = scalar_lea.hbm %s733_s7, 256 }
 0x31b   :  { %p545_p5 = scmp.ne.s32.totalorder %s733_s7, %s544_s29  ;;  %p548_p6 = scmp.lt.u32.totalorder %s544_s29, %s733_s7 }
 0x31d   :  { %p550_p7 = pnand %p548_p6, %p545_p5 }
 0x31f   :  { %553 = shalt.err (!%p550_p7)
}
 0x320   :  { %s558_s11 = smov 128   ;;  %s559_s12 = smov 8  }
 0x321   :  { %422 = dma.vmem_to_hbm [thread:$0]  %s417_s27, 256, %s733_s7, [#allocation3], %s558_s11, %s558_s11, %s559_s12  }
 0x322   :  { %554 = dma.done.wait [#allocation3], 256  }
 0x323   :  { %555 = vsyncadd [#allocation3], 4294967040 }
 0x324   :  { %426 = vsyncpa [#allocation3], 1 }

// kernel: pairformer_block.5
= control target key start
LH: loop header
LB: loop body
LE: loop exit
PB: predicated region body
PF: predicated region fallthrough
CT: control target
= control target key end

     0   :  { %s6851_s13 = smov 0   ;;  %s9005_s0 = inlined_call_operand.vmem [shape: f32[16,16,128], index: 0, kind: input, shape index: {}, may-alias: {0,10}]   ;;  %s9006_s1 = inlined_call_operand.vmem [shape: f32[16,128], index: 1, kind: input, shape index: {}]   ;;  %s9007_s2 = inlined_call_operand.vmem [shape: f32[16,128], index: 2, kind: input, shape index: {}]   ;;  %s9008_s3 = inlined_call_operand.vmem [shape: f32[16,16], index: 3, kind: input, shape index: {}]   ;;  %s9009_s4 = inlined_call_operand.vmem [shape: bf16[128,384], index: 4, kind: input, shape index: {}]   ;;  %s9010_s5 = inlined_call_operand.vmem [shape: f32[1,384], index: 5, kind: input, shape index: {}]   ;;  %s9011_s6 = inlined_call_operand.vmem [shape: bf16[128,128], index: 6, kind: input, shape index: {}]   ;;  %s9012_s7 = inlined_call_operand.vmem [shape: f32[1,128], index: 7, kind: input, shape index: {}]   ;;  %s9013_s8 = inlined_call_operand.vmem [shape: f32[1,128], index: 8, kind: input, shape index: {}]   ;;  %s9014_s9 = inlined_call_operand.vmem [shape: f32[1,128], index: 9, kind: input, shape index: {}]   ;;  %s9015_s10 = inlined_call_operand.vmem [shape: f32[16,16,128], index: 10, kind: output, shape index: {}, may-alias: {0,10}]  }
   0x1 LB: > { %s5662_s14 = sadd.s32 4294967295, %s6787_s13   ;;  %p5666_p0 = scmp.ge.s32.totalorder %s6787_s13, 1  ;;  %s6787_s13 = sphi %s6851_s13, %s20_s13  }
   0x2   : > { %p323_p1 = scmp.lt.s32.totalorder %s6787_s13, 3 }
   0x4   : > { %p324_p2 = pnand %p5666_p0, %p323_p1 }
   0x6   : > { %327 = sbr.rel (%p324_p2) target bundleno = 3988 (0xf94), region = 60 }
   0xd   : > { %s5667_s15 = sshll.u32 %s5662_s14, 3  ;;  %p374_p3 = scmp.lt.s32.totalorder %s5662_s14, 1  ;;  %v410_v0 = vlaneseq  ;;  %v6789_v1 = vmov 1966171168   ;;  %v6881_v12 = vld [vmem:[%s9006_s1] sm:$0xff]  ;;  %v6886_v13 = vld [vmem:[%s9006_s1 + $0x8] sm:$0xff] }
   0xe   : > { %p368_p4 = scmp.lt.s32.totalorder %s5667_s15, 15  ;;  %v408_v2 = vunpack.c.l.s4 %v6789_v1  ;;  %vm6792_vm0 = vmmov 0   ;;  %vm1188_vm1 = vcmask 261120   ;;  %vm1565_vm2 = vcmask 130048   ;;  %s6793_s18 = smov 96  }
   0xf   : > { %s9109_s14 = smov (!%p374_p3, %s5662_s14), 1  ;;  %v6859_v3 = vshrl.u32 %v410_v0, 7  ;;  %s6794_s19 = smov 64   ;;  %vm3150_vm3 = vcmask 523520   ;;  %vm4167_vm4 = vcmask 785920   ;;  %vm5184_vm5 = vcmask 1048320  }
  0x10   : > { %s9111_s15 = smov (!%p368_p4, %s5667_s15), 15  ;;  %v409_v4 = vunpack.c.0.s8 %v408_v2  ;;  %s5670_s16 = sshll.u32 %s9109_s14, 3 }
  0x11   : > { %s5775_s17 = sshll.u32 %s9111_s15, 4  ;;  %s377_s20 = scalar_lea.vmem %s9007_s2, %s5670_s16  ;;  %v6869_v8 = vsub.s32 0, %v6859_v3 }
  0x12   : > { %v412_v5 = vsub.s32 %v409_v4, %v6859_v3  ;;  %v404_v6 = vld [vmem:[%s377_s20] sm:$0xff]  ;;  %s6876_s23 = scalar_lea.vmem %s9005_s0, %s5775_s17  ;;  %s6795_s24 = smov 32  }
  0x13   : > { %v406_v9 = vcombine.high %v404_v6, %v404_v6  ;;  %v386_v14 = vld [vmem:[%s6876_s23] sm:$0xff]  ;;  %v388_v18 = vld [vmem:[%s6876_s23 + $0x10] sm:$0xff]  ;;  %v387_v19 = vld [vmem:[%s6876_s23 + $0x8] sm:$0xff]  ;;  %s8933_s30 = scalar_lea.vmem %s9015_s10, %s5775_s17 }
  0x14   : > { %v413_v7 = vrot.slane %v404_v6, %v412_v5  ;;  %v389_v25 = vld [vmem:[%s6876_s23 + $0x18] sm:$0xff]  ;;  %v390_v30 = vld [vmem:[%s6876_s23 + $0x20] sm:$0xff]  ;;  %v391_v37 = vld [vmem:[%s6876_s23 + $0x28] sm:$0xff] }
  0x15   : > { %v420_v20 = vrot.slane %v406_v9, %v412_v5  ;;  %v392_v40 = vld [vmem:[%s6876_s23 + $0x30] sm:$0xff]  ;;  %v393_v47 = vld [vmem:[%s6876_s23 + $0x38] sm:$0xff]  ;;  %v394_v52 = vld [vmem:[%s6876_s23 + $0x40] sm:$0xff] }
  0x16   : > { %v429_v10 = vrot.slane %v413_v7, %v412_v5  ;;  %v421_v11 = vcombine.high %v413_v7, %v413_v7  ;;  %v395_v55 = vld [vmem:[%s6876_s23 + $0x48] sm:$0xff]  ;;  %v396_v60 = vld [vmem:[%s6876_s23 + $0x50] sm:$0xff]  ;;  %v397_v63 = vld [vmem:[%s6876_s23 + $0x58] sm:$0xff] }
  0x17   : > { %v436_v31 = vrot.slane %v420_v20, %v412_v5  ;;  %v422_v32 = vcombine.high %v420_v20, %v420_v20  ;;  %v398_v4 = vld [vmem:[%s6876_s23 + $0x60] sm:$0xff]  ;;  %v399_v7 = vld [vmem:[%s6876_s23 + $0x68] sm:$0xff] }
  0x18   : > { %v460_v15 = vrot.slane %v429_v10, %v6869_v8  ;;  %v443_v16 = vrot.slane %v421_v11, %v412_v5  ;;  %v451_v17 = vcombine.high %v429_v10, %v429_v10  ;;  %v400_v11 = vld [vmem:[%s6876_s23 + $0x70] sm:$0xff] }
  0x19   : > { %v476_v43 = vrot.slane %v436_v31, %v6869_v8  ;;  %v450_v44 = vrot.slane %v422_v32, %v412_v5  ;;  %v452_v51 = vcombine.high %v436_v31, %v436_v31  ;;  %v6422_v20 = vld [vmem:[%s9009_s4 + $0x8] ss:$12 sps:$4 sm:$0xff]  }
  0x1a   : > { %v497_v21 = vadd.f32 %v460_v15, %v6881_v12  ;;  %v464_v22 = vrot.slane %v443_v16, %v6869_v8  ;;  %v498_v23 = vadd.f32 %v460_v15, %v6886_v13  ;;  %v468_v24 = vrot.slane %v451_v17, %v6869_v8  ;;  %5937 = vmatprep.subr.bf16.mxu1 %v6422_v20 }
  0x1b   : > { %v453_v26 = vcombine.high %v443_v16, %v443_v16  ;;  %v505_v49 = vadd.f32 %v476_v43, %v6881_v12  ;;  %v480_v50 = vrot.slane %v450_v44, %v6869_v8  ;;  %v506_v54 = vadd.f32 %v476_v43, %v6886_v13  ;;  %v401_v16 = vld [vmem:[%s6876_s23 + $0x78] sm:$0xff]  ;;  %5938 = vmatpush3.bf16.msra.mxu1 %v6422_v20 }
  0x1c   : > { %v6897_v27 = vadd.f32 %v497_v21, %v386_v14  ;;  %v499_v28 = vadd.f32 %v464_v22, %v6881_v12  ;;  %v500_v29 = vadd.f32 %v464_v22, %v6886_v13  ;;  %v6905_v34 = vadd.f32 %v498_v23, %v387_v19  ;;  %v6420_v19 = vld [vmem:[%s9009_s4 + $0x1c] ss:$12 sps:$4 sm:$0xff]  }
  0x1d   : > { %v501_v35 = vadd.f32 %v468_v24, %v6881_v12  ;;  %v472_v36 = vrot.slane %v453_v26, %v6869_v8  ;;  %v502_v39 = vadd.f32 %v468_v24, %v6886_v13  ;;  %v6937_v56 = vadd.f32 %v505_v49, %v394_v52 }
  0x1e   : > { %529 = vadd.xlane.f32.xlu0 %v6897_v27  ;;  %v6903_v33 = vadd.f32 %v499_v28, %v388_v18  ;;  %v6911_v38 = vadd.f32 %v500_v29, %v389_v25  ;;  %v507_v57 = vadd.f32 %v480_v50, %v6881_v12  ;;  %v484_v58 = vrot.slane %v452_v51, %v6869_v8 }
  0x1f   : > { %v6916_v41 = vadd.f32 %v501_v35, %v390_v30  ;;  %v503_v42 = vadd.f32 %v472_v36, %v6881_v12  ;;  %v6921_v45 = vadd.f32 %v502_v39, %v391_v37  ;;  %v504_v46 = vadd.f32 %v472_v36, %v6886_v13 }
  0x20   : > { %533 = vadd.xlane.f32.xlu1 %v6903_v33  ;;  %v454_v59 = vcombine.high %v450_v44, %v450_v44  ;;  %v6943_v61 = vadd.f32 %v506_v54, %v395_v55  ;;  %v508_v62 = vadd.f32 %v480_v50, %v6886_v13  ;;  %v6948_v0 = vadd.f32 %v507_v57, %v396_v60 }
  0x21   : > { %v6926_v48 = vadd.f32 %v503_v42, %v392_v40  ;;  %v6932_v53 = vadd.f32 %v504_v46, %v393_v47  ;;  %v509_v1 = vadd.f32 %v484_v58, %v6881_v12  ;;  %v510_v6 = vadd.f32 %v484_v58, %v6886_v13 }
  0x22   : > { %531 = vadd.xlane.f32.xlu0 %v6905_v34  ;;  %v488_v2 = vrot.slane %v454_v59, %v6869_v8  ;;  %v6954_v5 = vadd.f32 %v508_v62, %v397_v63 }
  0x23   : > { %v6959_v9 = vadd.f32 %v509_v1, %v398_v4  ;;  %v6964_v14 = vadd.f32 %v510_v6, %v399_v7  ;;  %v6424_v4 = vld [vmem:[%s9009_s4 + $0x34] ss:$12 sps:$4 sm:$0xff]  }
  0x24   : > { %535 = vadd.xlane.f32.xlu1 %v6911_v38  ;;  %v511_v10 = vadd.f32 %v488_v2, %v6881_v12  ;;  %v512_v15 = vadd.f32 %v488_v2, %v6886_v13  ;;  %v6417_v12 = vld [vmem:[%s9009_s4 + $0x4] ss:$12 sps:$4 sm:$0xff]   ;;  %v6419_v13 = vld [vmem:[%s9009_s4] ss:$12 sps:$4 sm:$0xff]  }
  0x25   : > { %954 = vmatprep.subr.bf16.mxu0 %v6417_v12 }
  0x26   : > { %537 = vadd.xlane.f32.xlu0 %v6916_v41  ;;  %v6969_v17 = vadd.f32 %v511_v10, %v400_v11  ;;  %v6972_v18 = vadd.f32 %v512_v15, %v401_v16  ;;  %955 = vmatpush1.bf16.msra.mxu0 %v6419_v13  ;;  %v6427_v11 = vld [vmem:[%s9009_s4 + $0x30] ss:$12 sps:$4 sm:$0xff]  }
  0x27   : > { %956 = vmatprep.subr.bf16.mxu0 %v6420_v19 }
  0x28   : > { %539 = vadd.xlane.f32.xlu1 %v6921_v45 }
  0x2a   : > { %541 = vadd.xlane.f32.xlu0 %v6926_v48 }
  0x2c   : > { %543 = vadd.xlane.f32.xlu1 %v6932_v53 }
  0x2e   : > { %545 = vadd.xlane.f32.xlu0 %v6937_v56 }
  0x30   : > { %547 = vadd.xlane.f32.xlu1 %v6943_v61 }
  0x32   : > { %549 = vadd.xlane.f32.xlu0 %v6948_v0 }
  0x34   : > { %551 = vadd.xlane.f32.xlu1 %v6954_v5 }
  0x36   : > { %553 = vadd.xlane.f32.xlu0 %v6959_v9 }
  0x38   : > { %555 = vadd.xlane.f32.xlu1 %v6964_v14 }
  0x3a   : > { %557 = vadd.xlane.f32.xlu0 %v6969_v17 }
  0x3c   : > { %559 = vadd.xlane.f32.xlu1 %v6972_v18 }
  0xab   : > { %v530_v21 = vpop.xlane.xlu0 %529 }
  0xac   : > { %v562_v22 = vmul.f32 0.0078125, %v530_v21  ;;  %v6428_v21 = vld [vmem:[%s9009_s4 + $0x4c] ss:$12 sps:$4 sm:$0xff]  }
  0xad   : > { %v534_v23 = vpop.xlane.xlu1 %533 }
  0xae   : > { %v564_v24 = vmul.f32 0.0078125, %v534_v23  ;;  %v6989_v25 = vsub.f32 %v6897_v27, %v562_v22  ;;  %v6431_v23 = vld [vmem:[%s9009_s4 + $0x48] ss:$12 sps:$4 sm:$0xff]  }
  0xaf   : > { %v532_v26 = vpop.xlane.xlu0 %531 }
  0xb0   : > { %v563_v28 = vmul.f32 0.0078125, %v532_v26  ;;  %v594_v29 = vmul.f32 %v6989_v25, %v6989_v25  ;;  %v6994_v30 = vsub.f32 %v6903_v33, %v564_v24 }
  0xb1   : > { %v536_v31 = vpop.xlane.xlu1 %535 }
  0xb2   : > { %610 = vadd.xlane.f32.xlu0 %v594_v29  ;;  %v565_v32 = vmul.f32 0.0078125, %v536_v31  ;;  %v596_v35 = vmul.f32 %v6994_v30, %v6994_v30  ;;  %v6999_v36 = vsub.f32 %v6905_v34, %v563_v28 }
  0xb3   : > { %v538_v37 = vpop.xlane.xlu0 %537 }
  0xb4   : > { %v566_v27 = vmul.f32 0.0078125, %v538_v37  ;;  %v595_v39 = vmul.f32 %v6999_v36, %v6999_v36  ;;  %v7004_v40 = vsub.f32 %v6911_v38, %v565_v32  ;;  %v6435_v37 = vld [vmem:[%s9009_s4 + $0x60] ss:$12 sps:$4 sm:$0xff]  }
  0xb5   : > { %v540_v42 = vpop.xlane.xlu1 %539 }
  0xb6   : > { %614 = vadd.xlane.f32.xlu0 %v596_v35  ;;  %612 = vadd.xlane.f32.xlu1 %v595_v39  ;;  %v567_v33 = vmul.f32 0.0078125, %v540_v42  ;;  %v597_v43 = vmul.f32 %v7004_v40, %v7004_v40  ;;  %v7009_v44 = vsub.f32 %v6916_v41, %v566_v27  ;;  %v6432_v35 = vld [vmem:[%s9009_s4 + $0x64] ss:$12 sps:$4 sm:$0xff]   ;;  %v6436_v42 = vld [vmem:[%s9009_s4 + $0x7c] ss:$12 sps:$4 sm:$0xff]  }
  0xb7   : > { %v542_v34 = vpop.xlane.xlu0 %541 }
  0xb8   : > { %v568_v46 = vmul.f32 0.0078125, %v542_v34  ;;  %v598_v47 = vmul.f32 %v7009_v44, %v7009_v44  ;;  %v7014_v49 = vsub.f32 %v6921_v45, %v567_v33  ;;  %v6438_v33 = vld [vmem:[%s9009_s4 + $0x68] ss:$12 sps:$4 sm:$0xff]   ;;  %v6442_v34 = vld [vmem:[%s9009_s4 + $0x80] ss:$12 sps:$4 sm:$0xff]  }
  0xb9   : > { %v544_v38 = vpop.xlane.xlu1 %543 }
  0xba   : > { %616 = vadd.xlane.f32.xlu1 %v597_v43  ;;  %618 = vadd.xlane.f32.xlu0 %v598_v47  ;;  %v569_v50 = vmul.f32 0.0078125, %v544_v38  ;;  %v599_v51 = vmul.f32 %v7014_v49, %v7014_v49  ;;  %v7019_v52 = vsub.f32 %v6926_v48, %v568_v46  ;;  %v6423_v48 = vld [vmem:[%s9009_s4 + $0x18] ss:$12 sps:$4 sm:$0xff]   ;;  %v6440_v43 = vld [vmem:[%s9009_s4 + $0x94] ss:$12 sps:$4 sm:$0xff]  }
  0xbb   : > { %v546_v41 = vpop.xlane.xlu0 %545  ;;  %957 = vmatpush1.bf16.msra.mxu0 %v6423_v48  ;;  %v6443_v46 = vld [vmem:[%s9009_s4 + $0x90] ss:$12 sps:$4 sm:$0xff]   ;;  %v6444_v47 = vld [vmem:[%s9009_s4 + $0xac] ss:$12 sps:$4 sm:$0xff]  }
  0xbc   : > { %v570_v54 = vmul.f32 0.0078125, %v546_v41  ;;  %v600_v55 = vmul.f32 %v7019_v52, %v7019_v52  ;;  %v7024_v57 = vsub.f32 %v6932_v53, %v569_v50  ;;  %958 = vmatprep.subr.bf16.mxu0 %v6424_v4  ;;  %v6446_v38 = vld [vmem:[%s9009_s4 + $0x98] ss:$12 sps:$4 sm:$0xff]   ;;  %v6447_v50 = vld [vmem:[%s9009_s4 + $0xa8] ss:$12 sps:$4 sm:$0xff]   ;;  %v6790_v41 = vmov 0  }
  0xbd   : > { %v548_v45 = vpop.xlane.xlu1 %547  ;;  %986 = vmatprep.mubr.bf16.mxu0 %v6790_v41 }
  0xbe   : > { %620 = vadd.xlane.f32.xlu1 %v599_v51  ;;  %622 = vadd.xlane.f32.xlu0 %v600_v55  ;;  %v571_v58 = vmul.f32 0.0078125, %v548_v45  ;;  %v601_v59 = vmul.f32 %v7024_v57, %v7024_v57  ;;  %v7029_v60 = vsub.f32 %v6937_v56, %v570_v54  ;;  %v6426_v56 = vld [vmem:[%s9009_s4 + $0x20] ss:$12 sps:$4 sm:$0xff]   ;;  %v6448_v51 = vld [vmem:[%s9009_s4 + $0xb0] ss:$12 sps:$4 sm:$0xff]  }
  0xbf   : > { %v550_v62 = vpop.xlane.xlu0 %549  ;;  %5939 = vmatprep.subr.bf16.mxu1 %v6426_v56  ;;  %959 = vmatpush1.bf16.msra.mxu0 %v6427_v11 }
  0xc0   : > { %v572_v63 = vmul.f32 0.0078125, %v550_v62  ;;  %v602_v53 = vmul.f32 %v7029_v60, %v7029_v60  ;;  %v7037_v1 = vsub.f32 %v6943_v61, %v571_v58  ;;  %5940 = vmatpush3.bf16.msra.mxu1 %v6426_v56  ;;  %960 = vmatprep.subr.bf16.mxu0 %v6428_v21 }
  0xc1   : > { %v552_v2 = vpop.xlane.xlu1 %551 }
  0xc2   : > { %624 = vadd.xlane.f32.xlu1 %v601_v59  ;;  %626 = vadd.xlane.f32.xlu0 %v602_v53  ;;  %v573_v6 = vmul.f32 0.0078125, %v552_v2  ;;  %v603_v7 = vmul.f32 %v7037_v1, %v7037_v1  ;;  %v7048_v10 = vsub.f32 %v6948_v0, %v572_v63 }
  0xc3   : > { %v554_v61 = vpop.xlane.xlu0 %553  ;;  %961 = vmatpush1.bf16.msra.mxu0 %v6431_v23 }
  0xc4   : > { %v574_v15 = vmul.f32 0.0078125, %v554_v61  ;;  %v604_v16 = vmul.f32 %v7048_v10, %v7048_v10  ;;  %v7056_v12 = vsub.f32 %v6954_v5, %v573_v6  ;;  %v6430_v5 = vld [vmem:[%s9009_s4 + $0x38] ss:$12 sps:$4 sm:$0xff]   ;;  %962 = vmatprep.subr.bf16.mxu0 %v6432_v35 }
  0xc5   : > { %v556_v13 = vpop.xlane.xlu1 %555  ;;  %5941 = vmatprep.subr.bf16.mxu1 %v6430_v5 }
  0xc6   : > { %628 = vadd.xlane.f32.xlu1 %v603_v7  ;;  %630 = vadd.xlane.f32.xlu0 %v604_v16  ;;  %v575_v0 = vmul.f32 0.0078125, %v556_v13  ;;  %v605_v19 = vmul.f32 %v7056_v12, %v7056_v12  ;;  %v7061_v20 = vsub.f32 %v6959_v9, %v574_v15 }
  0xc7   : > { %v558_v22 = vpop.xlane.xlu0 %557  ;;  %5942 = vmatpush3.bf16.msra.mxu1 %v6430_v5  ;;  %963 = vmatpush1.bf16.msra.mxu0 %v6435_v37 }
  0xc8   : > { %v576_v24 = vmul.f32 0.0078125, %v558_v22  ;;  %v606_v26 = vmul.f32 %v7061_v20, %v7061_v20  ;;  %v7075_v9 = vsub.f32 %v6964_v14, %v575_v0  ;;  %v6434_v14 = vld [vmem:[%s9009_s4 + $0x50] ss:$12 sps:$4 sm:$0xff]   ;;  %964 = vmatprep.subr.bf16.mxu0 %v6436_v42 }
  0xc9   : > { %v560_v28 = vpop.xlane.xlu1 %559  ;;  %5943 = vmatprep.subr.bf16.mxu1 %v6434_v14 }
  0xca   : > { %632 = vadd.xlane.f32.xlu1 %v605_v19  ;;  %634 = vadd.xlane.f32.xlu0 %v606_v26  ;;  %v577_v29 = vmul.f32 0.0078125, %v560_v28  ;;  %v607_v31 = vmul.f32 %v7075_v9, %v7075_v9  ;;  %v7080_v32 = vsub.f32 %v6969_v17, %v576_v24  ;;  %v7133_v28 = vld [vmem:[%s9013_s8] ss:$0 sm:$0xff] }
  0xcb   : > { %5944 = vmatpush3.bf16.msra.mxu1 %v6434_v14 }
  0xcc   : > { %v608_v27 = vmul.f32 %v7080_v32, %v7080_v32  ;;  %v7094_v39 = vsub.f32 %v6972_v18, %v577_v29  ;;  %v6439_v18 = vld [vmem:[%s9009_s4 + $0x78] ss:$12 sps:$4 sm:$0xff]   ;;  %5945 = vmatprep.subr.bf16.mxu1 %v6438_v33 }
  0xcd   : > { %965 = vmatpush1.bf16.msra.mxu0 %v6439_v18  ;;  %v7140_v18 = vld [vmem:[%s9014_s9] ss:$0 sm:$0xff] }
  0xce   : > { %636 = vadd.xlane.f32.xlu1 %v607_v31  ;;  %638 = vadd.xlane.f32.xlu0 %v608_v27  ;;  %v609_v17 = vmul.f32 %v7094_v39, %v7094_v39 }
  0xcf   : > { %5946 = vmatpush3.bf16.msra.mxu1 %v6438_v33  ;;  %966 = vmatprep.subr.bf16.mxu0 %v6440_v43 }
  0xd0   : > { %5947 = vmatprep.subr.bf16.mxu1 %v6442_v34 }
  0xd1   : > { %967 = vmatpush1.bf16.msra.mxu0 %v6443_v46 }
  0xd2   : > { %640 = vadd.xlane.f32.xlu1 %v609_v17  ;;  %968 = vmatprep.subr.bf16.mxu0 %v6444_v47 }
  0xd3   : > { %5948 = vmatpush3.bf16.msra.mxu1 %v6442_v34 }
  0xd4   : > { %5949 = vmatprep.subr.bf16.mxu1 %v6446_v38 }
  0xd5   : > { %969 = vmatpush1.bf16.msra.mxu0 %v6447_v50 }
  0xd7   : > { %5950 = vmatpush3.bf16.msra.mxu1 %v6446_v38 }
  0xd8   : > { %5951 = vmatprep.subr.bf16.mxu1 %v6448_v51 }
  0xdb   : > { %5952 = vmatpush3.bf16.msra.mxu1 %v6448_v51 }
 0x13f   : > { %v611_v54 = vpop.xlane.xlu0 %610 }
 0x140   : > { %v642_v55 = vmul.f32 0.0078125, %v611_v54 }
 0x142   : > { %v658_v45 = vadd.f32 1e-05, %v642_v55 }
 0x143   : > { %v613_v58 = vpop.xlane.xlu1 %612  ;;  %v615_v59 = vpop.xlane.xlu0 %614 }
 0x144   : > { %6457 = vrsqrt.f32 %v658_v45  ;;  %v643_v48 = vmul.f32 0.0078125, %v613_v58  ;;  %v644_v62 = vmul.f32 0.0078125, %v615_v59 }
 0x146   : > { %v659_v63 = vadd.f32 1e-05, %v643_v48  ;;  %v660_v53 = vadd.f32 1e-05, %v644_v62 }
 0x147   : > { %v617_v2 = vpop.xlane.xlu1 %616  ;;  %v619_v4 = vpop.xlane.xlu0 %618 }
 0x148   : > { %6459 = vrsqrt.f32 %v659_v63  ;;  %v645_v56 = vmul.f32 0.0078125, %v617_v2  ;;  %v646_v6 = vmul.f32 0.0078125, %v619_v4 }
 0x149   : > { %6461 = vrsqrt.f32 %v660_v53 }
 0x14a   : > { %v661_v7 = vadd.f32 1e-05, %v645_v56  ;;  %v662_v61 = vadd.f32 1e-05, %v646_v6 }
 0x14b   : > { %v621_v11 = vpop.xlane.xlu1 %620  ;;  %v623_v15 = vpop.xlane.xlu0 %622 }
 0x14c   : > { %6463 = vrsqrt.f32 %v661_v7  ;;  %v647_v16 = vmul.f32 0.0078125, %v621_v11  ;;  %v648_v13 = vmul.f32 0.0078125, %v623_v15 }
 0x14d   : > { %6465 = vrsqrt.f32 %v662_v61 }
 0x14e   : > { %v6458_v0 = vpop.eup %6457  ;;  %v663_v19 = vadd.f32 1e-05, %v647_v16  ;;  %v664_v21 = vadd.f32 1e-05, %v648_v13 }
 0x14f   : > { %v625_v5 = vpop.xlane.xlu1 %624  ;;  %v627_v22 = vpop.xlane.xlu0 %626  ;;  %v690_v23 = vmul.f32 %v6458_v0, %v6989_v25 }
 0x150   : > { %6467 = vrsqrt.f32 %v663_v19  ;;  %v649_v24 = vmul.f32 0.0078125, %v625_v5  ;;  %v650_v26 = vmul.f32 0.0078125, %v627_v22 }
 0x151   : > { %6469 = vrsqrt.f32 %v664_v21  ;;  %v712_v42 = vmul.f32 %v7133_v28, %v690_v23 }
 0x152   : > { %v6460_v29 = vpop.eup %6459  ;;  %v665_v31 = vadd.f32 1e-05, %v649_v24  ;;  %v666_v35 = vadd.f32 1e-05, %v650_v26 }
 0x153   : > { %v6462_v14 = vpop.eup %6461  ;;  %v629_v37 = vpop.xlane.xlu1 %628  ;;  %v691_v17 = vmul.f32 %v6460_v29, %v6999_v36  ;;  %v7146_v55 = vadd.f32 %v7140_v18, %v712_v42 }
 0x154   : > { %v631_v27 = vpop.xlane.xlu0 %630  ;;  %6471 = vrsqrt.f32 %v665_v31  ;;  %v651_v25 = vmul.f32 0.0078125, %v629_v37  ;;  %v692_v43 = vmul.f32 %v6462_v14, %v6994_v30 }
 0x155   : > { %v652_v33 = vmul.f32 0.0078125, %v631_v27  ;;  %6473 = vrsqrt.f32 %v666_v35  ;;  %v713_v34 = vmul.f32 %v7133_v28, %v691_v17  ;;  %9045 = vst [vmem:[#allocation3_spill] sm:$0xff] %v7146_v55 }
 0x156   : > { %v6464_v46 = vpop.eup %6463  ;;  %v667_v47 = vadd.f32 1e-05, %v651_v25  ;;  %v714_v36 = vmul.f32 %v7133_v28, %v692_v43 }
 0x157   : > { %v668_v38 = vadd.f32 1e-05, %v652_v33  ;;  %v6466_v50 = vpop.eup %6465  ;;  %v633_v51 = vpop.xlane.xlu1 %632  ;;  %v7149_v45 = vadd.f32 %v7140_v18, %v713_v34  ;;  %v693_v58 = vmul.f32 %v6464_v46, %v7004_v40 }
 0x158   : > { %v635_v54 = vpop.xlane.xlu0 %634  ;;  %6475 = vrsqrt.f32 %v667_v47  ;;  %v653_v30 = vmul.f32 0.0078125, %v633_v51  ;;  %v694_v63 = vmul.f32 %v6466_v50, %v7009_v44  ;;  %v7157_v56 = vadd.f32 %v7140_v18, %v714_v36 }
 0x159   : > { %9046 = vst [vmem:[#allocation4_spill] sm:$0xff] %v7149_v45  ;;  %v654_v59 = vmul.f32 0.0078125, %v635_v54  ;;  %6477 = vrsqrt.f32 %v668_v38  ;;  %v802_v48 = vpack.c.bf16 %v7149_v45, %v7146_v55  ;;  %v715_v62 = vmul.f32 %v7133_v28, %v693_v58 }
 0x15a   : > { %v6468_v53 = vpop.eup %6467  ;;  %v669_v2 = vadd.f32 1e-05, %v653_v30  ;;  %9047 = vst [vmem:[#allocation5_spill] sm:$0xff] %v7157_v56  ;;  %v716_v15 = vmul.f32 %v7133_v28, %v694_v63 }
 0x15b   : > { %v670_v4 = vadd.f32 1e-05, %v654_v59  ;;  %v6470_v6 = vpop.eup %6469  ;;  %v637_v7 = vpop.xlane.xlu1 %636  ;;  %987 = vmatmul.mubr.bf16.vlgmr.msra.gmra.mrb[0].mxu0 %v802_v48  ;;  %5953 = vmatprep.mubr.bf16.mxu1 %v802_v48  ;;  %v7160_v61 = vadd.f32 %v7140_v18, %v715_v62  ;;  %v695_v11 = vmul.f32 %v6468_v53, %v7014_v49 }
 0x15c   : > { %v639_v40 = vpop.xlane.xlu0 %638  ;;  %6479 = vrsqrt.f32 %v669_v2  ;;  %v655_v44 = vmul.f32 0.0078125, %v637_v7  ;;  %996 = vmatprep.mubr.bf16.mxu0 %v6790_v41  ;;  %v696_v13 = vmul.f32 %v6470_v6, %v7019_v52  ;;  %v7171_v26 = vadd.f32 %v7140_v18, %v716_v15 }
 0x15d   : > { %9048 = vst [vmem:[#allocation6_spill] sm:$0xff] %v7160_v61  ;;  %v656_v16 = vmul.f32 0.0078125, %v639_v40  ;;  %6481 = vrsqrt.f32 %v670_v4  ;;  %v803_v0 = vpack.c.bf16 %v7160_v61, %v7157_v56  ;;  %v717_v19 = vmul.f32 %v7133_v28, %v695_v11 }
 0x15e   : > { %v6472_v21 = vpop.eup %6471  ;;  %v671_v5 = vadd.f32 1e-05, %v655_v44  ;;  %v718_v49 = vmul.f32 %v7133_v28, %v696_v13  ;;  %9049 = vst [vmem:[#allocation7_spill] sm:$0xff] %v7171_v26  ;;  %v821_v13 = vsub.s32 2, %v6859_v3 }
 0x15f   : > { %v672_v22 = vadd.f32 1e-05, %v656_v16  ;;  %v6474_v23 = vpop.eup %6473  ;;  %v641_v24 = vpop.xlane.xlu1 %640  ;;  %5954 = vmatmul.mubr.bf16.vlgmr.msra.gmra.mrb[0].mxu1 %v803_v0  ;;  %v7174_v29 = vadd.f32 %v7140_v18, %v717_v19  ;;  %v697_v52 = vmul.f32 %v6472_v21, %v7024_v57  ;;  %v817_v16 = vsub.s32 1, %v6859_v3 }
 0x160   : > { %6483 = vrsqrt.f32 %v671_v5  ;;  %v657_v31 = vmul.f32 0.0078125, %v641_v24  ;;  %v698_v35 = vmul.f32 %v6474_v23, %v7029_v60  ;;  %v7182_v42 = vadd.f32 %v7140_v18, %v718_v49 }
 0x161   : > { %9050 = vst [vmem:[#allocation8_spill] sm:$0xff] %v7174_v29  ;;  %6485 = vrsqrt.f32 %v672_v22  ;;  %v804_v14 = vpack.c.bf16 %v7174_v29, %v7171_v26  ;;  %v719_v37 = vmul.f32 %v7133_v28, %v697_v52 }
 0x162   : > { %v6476_v27 = vpop.eup %6475  ;;  %v673_v17 = vadd.f32 1e-05, %v657_v31  ;;  %9051 = vst [vmem:[#allocation9_spill] sm:$0xff] %v7182_v42  ;;  %v720_v60 = vmul.f32 %v7133_v28, %v698_v35 }
 0x163   : > { %v6478_v25 = vpop.eup %6477  ;;  %997 = vmatmul.mubr.bf16.gmra.mrb[4].mxu0 %v803_v0  ;;  %5957 = vmatprep.mubr.bf16.mxu1 %v804_v14  ;;  %v7185_v57 = vadd.f32 %v7140_v18, %v719_v37  ;;  %v699_v33 = vmul.f32 %v6476_v27, %v7037_v1 }
 0x164   : > { %6487 = vrsqrt.f32 %v673_v17  ;;  %1006 = vmatprep.mubr.bf16.mxu0 %v6790_v41  ;;  %v700_v43 = vmul.f32 %v6478_v25, %v7048_v10  ;;  %v7196_v50 = vadd.f32 %v7140_v18, %v720_v60 }
 0x165   : > { %9052 = vst [vmem:[#allocation10_spill] sm:$0xff] %v7185_v57  ;;  %v805_v34 = vpack.c.bf16 %v7185_v57, %v7182_v42  ;;  %v721_v46 = vmul.f32 %v7133_v28, %v699_v33 }
 0x166   : > { %v6480_v47 = vpop.eup %6479  ;;  %v722_v38 = vmul.f32 %v7133_v28, %v700_v43  ;;  %9053 = vst [vmem:[#allocation11_spill] sm:$0xff] %v7196_v50 }
 0x167   : > { %v6482_v36 = vpop.eup %6481  ;;  %5958 = vmatmul.mubr.bf16.gmra.mrb[4].mxu1 %v805_v34  ;;  %v7199_v1 = vadd.f32 %v7140_v18, %v721_v46  ;;  %v701_v51 = vmul.f32 %v6480_v47, %v7056_v12 }
 0x168   : > { %v702_v10 = vmul.f32 %v6482_v36, %v7061_v20  ;;  %v7207_v59 = vadd.f32 %v7140_v18, %v722_v38 }
 0x169   : > { %9054 = vst [vmem:[#allocation12_spill] sm:$0xff] %v7199_v1  ;;  %v806_v54 = vpack.c.bf16 %v7199_v1, %v7196_v50  ;;  %v723_v58 = vmul.f32 %v7133_v28, %v701_v51 }
 0x16a   : > { %v6484_v30 = vpop.eup %6483  ;;  %9055 = vst [vmem:[#allocation13_spill] sm:$0xff] %v7207_v59  ;;  %v724_v12 = vmul.f32 %v7133_v28, %v702_v10 }
 0x16b   : > { %v6486_v48 = vpop.eup %6485  ;;  %1007 = vmatmul.mubr.bf16.gmra.mrb[8].mxu0 %v804_v14  ;;  %5961 = vmatprep.mubr.bf16.mxu1 %v806_v54  ;;  %v7210_v62 = vadd.f32 %v7140_v18, %v723_v58  ;;  %v703_v63 = vmul.f32 %v6484_v30, %v7075_v9 }
 0x16c   : > { %1016 = vmatprep.mubr.bf16.mxu0 %v6790_v41  ;;  %v704_v20 = vmul.f32 %v6486_v48, %v7080_v32  ;;  %v7220_v6 = vadd.f32 %v7140_v18, %v724_v12 }
 0x16d   : > { %9056 = vst [vmem:[#allocation14_spill] sm:$0xff] %v7210_v62  ;;  %v807_v53 = vpack.c.bf16 %v7210_v62, %v7207_v59  ;;  %v725_v2 = vmul.f32 %v7133_v28, %v703_v63 }
 0x16e   : > { %v6488_v4 = vpop.eup %6487  ;;  %9057 = vst [vmem:[#allocation15_spill] sm:$0xff] %v7220_v6  ;;  %v726_v40 = vmul.f32 %v7133_v28, %v704_v20 }
 0x16f   : > { %5962 = vmatmul.mubr.bf16.gmra.mrb[8].mxu1 %v807_v53  ;;  %v7223_v7 = vadd.f32 %v7140_v18, %v725_v2  ;;  %v705_v9 = vmul.f32 %v6488_v4, %v7094_v39 }
 0x170   : > { %v7231_v15 = vadd.f32 %v7140_v18, %v726_v40 }
 0x171   : > { %9058 = vst [vmem:[#allocation16_spill] sm:$0xff] %v7223_v7  ;;  %v808_v32 = vpack.c.bf16 %v7223_v7, %v7220_v6  ;;  %v727_v11 = vmul.f32 %v7133_v28, %v705_v9  ;;  %v9016_v28 = vmov 0.0  }
 0x172   : > { %9059 = vst [vmem:[#allocation17_spill] sm:$0xff] %v7231_v15  ;;  %5969 = vmatprep.subr.bf16.mxu1 %v9016_v28  ;;  %5993 = vmatprep.subr.bf16.mxu0 %v9016_v28 }
 0x173   : > { %1017 = vmatmul.mubr.bf16.gmra.mrb[12].mxu0 %v805_v34  ;;  %5965 = vmatprep.mubr.bf16.mxu1 %v808_v32  ;;  %v7234_v44 = vadd.f32 %v7140_v18, %v727_v11  ;;  %v784_v18 = vld [vmem:[%s9010_s5] sm:$0x7] }
 0x174   : > { %1026 = vmatprep.mubr.bf16.mxu0 %v6790_v41  ;;  %v7256_v0 = vrot.slane %v784_v18, %v817_v16  ;;  %v7258_v21 = vrot.slane %v784_v18, %v821_v13 }
 0x175   : > { %9060 = vst [vmem:[#allocation18_spill] sm:$0xff] %v7234_v44  ;;  %v809_v39 = vpack.c.bf16 %v7234_v44, %v7231_v15 }
 0x177   : > { %5966 = vmatmul.mubr.bf16.gmra.mrb[12].mxu1 %v809_v39 }
 0x178   : > { %5971 = vmatprep.mubr.msk.bf16.mxu1 %vm6792_vm0, %v9016_v28 }
 0x17b   : > { %1027 = vmatmul.mubr.bf16.gmra.mrb[16].mxu0 %v806_v54 }
 0x17c   : > { %1036 = vmatprep.mubr.bf16.mxu0 %v6790_v41 }
 0x183   : > { %1037 = vmatmul.mubr.bf16.gmra.mrb[20].mxu0 %v807_v53 }
 0x184   : > { %1046 = vmatprep.mubr.bf16.mxu0 %v6790_v41 }
 0x18b   : > { %1047 = vmatmul.mubr.bf16.gmra.mrb[24].mxu0 %v808_v32 }
 0x18c   : > { %1056 = vmatprep.mubr.bf16.mxu0 %v6790_v41  ;;  %v7253_v41 = vrot.slane %v784_v18, %v6869_v8 }
 0x193   : > { %1057 = vmatmul.mubr.bf16.gmra.mrb[28].mxu0 %v809_v39 }
 0x194   : > { %5995 = vmatprep.mubr.msk.bf16.mxu0 %vm6792_vm0, %v9016_v28 }
 0x22e   : > { %v988_v19 = vpop.f32.mrb[0].mxu0 }
 0x22f   : > { %v989_v5 = vadd.f32 %v988_v19, %v7253_v41  ;;  %v990_v22 = vpop.f32.mrb[1].mxu0 }
 0x230   : > { %v991_v49 = vadd.f32 %v990_v22, %v7256_v0  ;;  %v992_v23 = vpop.f32.mrb[2].mxu0 }
 0x231   : > { %v993_v24 = vadd.f32 %v992_v23, %v7253_v41  ;;  %v994_v52 = vpop.f32.mrb[3].mxu0 }
 0x232   : > { %v995_v31 = vadd.f32 %v994_v52, %v7256_v0  ;;  %v5955_v8 = vpop.f32.mrb[0].mxu1 }
 0x233   : > { %v7264_v35 = vpack.c.bf16 %v993_v24, %v989_v5  ;;  %v1110_v3 = vadd.f32 %v5955_v8, %v7258_v21  ;;  %v1101_v14 = vpop.f32.mrb[1].mxu1 }
 0x234   : > { %v7267_v37 = vpack.c.bf16 %v995_v31, %v991_v49  ;;  %v1102_v27 = vadd.f32 %v1101_v14, %v7258_v21  ;;  %v5956_v17 = vpop.f32.mrb[2].mxu1 }
 0x235   : > { %v1113_v25 = vadd.f32 %v5956_v17, %v7258_v21  ;;  %v1104_v33 = vpop.f32.mrb[3].mxu1 }
 0x236   : > { %v1105_v60 = vadd.f32 %v1104_v33, %v7258_v21  ;;  %v998_v43 = vpop.f32.mrb[4].mxu0  ;;  %v1193_v34 = vsel %vm1188_vm1, %v7267_v37, 0 }
 0x237   : > { %v7274_v46 = vpack.c.bf16 %v1113_v25, %v1110_v3  ;;  %v999_v47 = vadd.f32 %v998_v43, %v7253_v41  ;;  %v1000_v38 = vpop.f32.mrb[5].mxu0  ;;  %5970 = vmatpush3.bf16.xpose.msra.mxu1 %v1193_v34 }
 0x238   : > { %v7277_v36 = vpack.c.bf16 %v1105_v60, %v1102_v27  ;;  %v1001_v51 = vadd.f32 %v1000_v38, %v7256_v0  ;;  %v1002_v10 = vpop.f32.mrb[6].mxu0  ;;  %5975 = vmatprep.subr.bf16.mxu1 %v9016_v28 }
 0x239   : > { %v1003_v54 = vadd.f32 %v1002_v10, %v7253_v41  ;;  %v1004_v58 = vpop.f32.mrb[7].mxu0 }
 0x23a   : > { %v1005_v30 = vadd.f32 %v1004_v58, %v7256_v0  ;;  %v5959_v48 = vpop.f32.mrb[4].mxu1 }
 0x23b   : > { %v7283_v63 = vpack.c.bf16 %v1003_v54, %v999_v47  ;;  %v1126_v12 = vadd.f32 %v5959_v48, %v7258_v21  ;;  %v1117_v20 = vpop.f32.mrb[5].mxu1 }
 0x23c   : > { %v7286_v53 = vpack.c.bf16 %v1005_v30, %v1001_v51  ;;  %v1118_v2 = vadd.f32 %v1117_v20, %v7258_v21  ;;  %v5960_v4 = vpop.f32.mrb[6].mxu1 }
 0x23d   : > { %v1129_v9 = vadd.f32 %v5960_v4, %v7258_v21  ;;  %v1120_v40 = vpop.f32.mrb[7].mxu1 }
 0x23e   : > { %v1121_v32 = vadd.f32 %v1120_v40, %v7258_v21  ;;  %v1008_v11 = vpop.f32.mrb[8].mxu0  ;;  %5972 = vmatmul.mubr.msk.bf16.vlgmr.msra.gmra.mrb[16].mxu1 %vm1188_vm1, %v7264_v35  ;;  %v1240_v39 = vsel %vm1188_vm1, %v7286_v53, 0 }
 0x23f   : > { %v7295_v18 = vpack.c.bf16 %v1129_v9, %v1126_v12  ;;  %v1009_v16 = vadd.f32 %v1008_v11, %v7253_v41  ;;  %v1010_v13 = vpop.f32.mrb[9].mxu0  ;;  %5976 = vmatpush3.bf16.xpose.msra.mxu1 %v1240_v39  ;;  %5977 = vmatprep.mubr.msk.bf16.mxu1 %vm6792_vm0, %v9016_v28 }
 0x240   : > { %v7300_v19 = vpack.c.bf16 %v1121_v32, %v1118_v2  ;;  %v1011_v5 = vadd.f32 %v1010_v13, %v7256_v0  ;;  %v1012_v22 = vpop.f32.mrb[10].mxu0  ;;  %5981 = vmatprep.subr.bf16.mxu1 %v9016_v28 }
 0x241   : > { %v1013_v49 = vadd.f32 %v1012_v22, %v7253_v41  ;;  %v1014_v23 = vpop.f32.mrb[11].mxu0 }
 0x242   : > { %v1015_v24 = vadd.f32 %v1014_v23, %v7256_v0  ;;  %v5963_v52 = vpop.f32.mrb[8].mxu1 }
 0x243   : > { %v7306_v31 = vpack.c.bf16 %v1013_v49, %v1009_v16  ;;  %v1142_v8 = vadd.f32 %v5963_v52, %v7258_v21  ;;  %v1133_v3 = vpop.f32.mrb[9].mxu1 }
 0x244   : > { %v7309_v14 = vpack.c.bf16 %v1015_v24, %v1011_v5  ;;  %v1134_v27 = vadd.f32 %v1133_v3, %v7258_v21  ;;  %v5964_v17 = vpop.f32.mrb[10].mxu1 }
 0x245   : > { %v1145_v25 = vadd.f32 %v5964_v17, %v7258_v21  ;;  %v1136_v33 = vpop.f32.mrb[11].mxu1 }
 0x246   : > { %v1137_v60 = vadd.f32 %v1136_v33, %v7258_v21  ;;  %v1018_v43 = vpop.f32.mrb[12].mxu0  ;;  %5978 = vmatmul.mubr.msk.bf16.vlgmr.msra.gmra.mrb[20].mxu1 %vm1188_vm1, %v7283_v63  ;;  %v1287_v34 = vsel %vm1188_vm1, %v7309_v14, 0 }
 0x247   : > { %v7318_v47 = vpack.c.bf16 %v1145_v25, %v1142_v8  ;;  %v1019_v38 = vadd.f32 %v1018_v43, %v7253_v41  ;;  %v1020_v51 = vpop.f32.mrb[13].mxu0  ;;  %5982 = vmatpush3.bf16.xpose.msra.mxu1 %v1287_v34  ;;  %5983 = vmatprep.mubr.msk.bf16.mxu1 %vm6792_vm0, %v9016_v28 }
 0x248   : > { %v7323_v10 = vpack.c.bf16 %v1137_v60, %v1134_v27  ;;  %v1021_v54 = vadd.f32 %v1020_v51, %v7256_v0  ;;  %v1022_v58 = vpop.f32.mrb[14].mxu0  ;;  %5987 = vmatprep.subr.bf16.mxu1 %v9016_v28 }
 0x249   : > { %v1023_v30 = vadd.f32 %v1022_v58, %v7253_v41  ;;  %v1024_v48 = vpop.f32.mrb[15].mxu0 }
 0x24a   : > { %v1025_v12 = vadd.f32 %v1024_v48, %v7256_v0  ;;  %v5967_v20 = vpop.f32.mrb[12].mxu1 }
 0x24b   : > { %v7329_v2 = vpack.c.bf16 %v1023_v30, %v1019_v38  ;;  %v1158_v4 = vadd.f32 %v5967_v20, %v7258_v21  ;;  %v1149_v9 = vpop.f32.mrb[13].mxu1 }
 0x24c   : > { %v7332_v40 = vpack.c.bf16 %v1025_v12, %v1021_v54  ;;  %v1150_v32 = vadd.f32 %v1149_v9, %v7258_v21  ;;  %v5968_v11 = vpop.f32.mrb[14].mxu1 }
 0x24d   : > { %v1161_v39 = vadd.f32 %v5968_v11, %v7258_v21  ;;  %v1152_v16 = vpop.f32.mrb[15].mxu1 }
 0x24e   : > { %v1153_v13 = vadd.f32 %v1152_v16, %v7258_v21  ;;  %v1028_v5 = vpop.f32.mrb[16].mxu0  ;;  %5984 = vmatmul.mubr.msk.bf16.vlgmr.msra.gmra.mrb[24].mxu1 %vm1188_vm1, %v7306_v31  ;;  %v1334_v22 = vsel %vm1188_vm1, %v7332_v40, 0 }
 0x24f   : > { %v7341_v49 = vpack.c.bf16 %v1161_v39, %v1158_v4  ;;  %v1029_v23 = vadd.f32 %v1028_v5, %v7253_v41  ;;  %v1030_v24 = vpop.f32.mrb[17].mxu0  ;;  %5988 = vmatpush3.bf16.xpose.msra.mxu1 %v1334_v22  ;;  %5989 = vmatprep.mubr.msk.bf16.mxu1 %vm6792_vm0, %v9016_v28 }
 0x250   : > { %v7346_v52 = vpack.c.bf16 %v1153_v13, %v1150_v32  ;;  %v1031_v21 = vadd.f32 %v1030_v24, %v7256_v0  ;;  %v1032_v8 = vpop.f32.mrb[18].mxu0  ;;  %5999 = vmatprep.subr.bf16.mxu1 %v9016_v28 }
 0x251   : > { %9061 = vst [vmem:[#allocation19_spill] sm:$0xff] %v7341_v49  ;;  %v1033_v3 = vadd.f32 %v1032_v8, %v7253_v41  ;;  %v1034_v27 = vpop.f32.mrb[19].mxu0 }
 0x252   : > { %v1035_v17 = vadd.f32 %v1034_v27, %v7256_v0 }
 0x253   : > { %v7352_v25 = vpack.c.bf16 %v1033_v3, %v1029_v23 }
 0x254   : > { %v7354_v33 = vpack.c.bf16 %v1035_v17, %v1031_v21 }
 0x256   : > { %v1038_v60 = vpop.f32.mrb[20].mxu0  ;;  %5990 = vmatmul.mubr.msk.bf16.vlgmr.msra.gmra.mrb[28].mxu1 %vm1188_vm1, %v7329_v2  ;;  %v1381_v43 = vsel %vm1188_vm1, %v7354_v33, 0 }
 0x257   : > { %v1039_v34 = vadd.f32 %v1038_v60, %v7253_v41  ;;  %v1040_v38 = vpop.f32.mrb[21].mxu0  ;;  %5994 = vmatpush3.bf16.xpose.msra.mxu0 %v1381_v43  ;;  %6001 = vmatprep.mubr.msk.bf16.mxu1 %vm6792_vm0, %v9016_v28 }
 0x258   : > { %v1041_v51 = vadd.f32 %v1040_v38, %v7256_v0  ;;  %v1042_v54 = vpop.f32.mrb[22].mxu0  ;;  %6005 = vmatprep.subr.bf16.mxu0 %v9016_v28 }
 0x259   : > { %v1043_v58 = vadd.f32 %v1042_v54, %v7253_v41  ;;  %v1044_v30 = vpop.f32.mrb[23].mxu0 }
 0x25a   : > { %v1045_v48 = vadd.f32 %v1044_v30, %v7256_v0  ;;  %v7424_v30 = vld [vmem:[%s9008_s3 + $0x8] sm:$0xff] }
 0x25b   : > { %v7367_v12 = vpack.c.bf16 %v1043_v58, %v1039_v34 }
 0x25c   : > { %v7369_v20 = vpack.c.bf16 %v1045_v48, %v1041_v51 }
 0x25e   : > { %v1048_v4 = vpop.f32.mrb[24].mxu0  ;;  %5996 = vmatmul.mubr.msk.bf16.vlgmr.msra.gmra.mrb[32].mxu0 %vm1188_vm1, %v7352_v25  ;;  %v1428_v9 = vsel %vm1188_vm1, %v7369_v20, 0 }
 0x25f   : > { %v1049_v32 = vadd.f32 %v1048_v4, %v7253_v41  ;;  %v1050_v11 = vpop.f32.mrb[25].mxu0  ;;  %6000 = vmatpush3.bf16.xpose.msra.mxu1 %v1428_v9  ;;  %6007 = vmatprep.mubr.msk.bf16.mxu0 %vm6792_vm0, %v9016_v28 }
 0x260   : > { %v1051_v39 = vadd.f32 %v1050_v11, %v7256_v0  ;;  %v1052_v16 = vpop.f32.mrb[26].mxu0  ;;  %6011 = vmatprep.subr.bf16.mxu1 %v9016_v28 }
 0x261   : > { %v1053_v13 = vadd.f32 %v1052_v16, %v7253_v41  ;;  %v1054_v5 = vpop.f32.mrb[27].mxu0 }
 0x262   : > { %v1055_v22 = vadd.f32 %v1054_v5, %v7256_v0 }
 0x263   : > { %v7382_v23 = vpack.c.bf16 %v1053_v13, %v1049_v32 }
 0x264   : > { %v7384_v24 = vpack.c.bf16 %v1055_v22, %v1051_v39 }
 0x266   : > { %v1058_v21 = vpop.f32.mrb[28].mxu0  ;;  %6002 = vmatmul.mubr.msk.bf16.vlgmr.msra.gmra.mrb[32].mxu1 %vm1188_vm1, %v7367_v12  ;;  %v1475_v8 = vsel %vm1188_vm1, %v7384_v24, 0 }
 0x267   : > { %v1059_v3 = vadd.f32 %v1058_v21, %v7253_v41  ;;  %v1060_v27 = vpop.f32.mrb[29].mxu0  ;;  %6006 = vmatpush3.bf16.xpose.msra.mxu0 %v1475_v8  ;;  %6013 = vmatprep.mubr.msk.bf16.mxu1 %vm6792_vm0, %v9016_v28 }
 0x268   : > { %v1061_v17 = vadd.f32 %v1060_v27, %v7256_v0  ;;  %v1062_v60 = vpop.f32.mrb[30].mxu0  ;;  %6017 = vmatprep.subr.bf16.mxu0 %v9016_v28 }
 0x269   : > { %v1063_v43 = vadd.f32 %v1062_v60, %v7253_v41  ;;  %v1064_v34 = vpop.f32.mrb[31].mxu0  ;;  %v7419_v41 = vld [vmem:[%s9008_s3] sm:$0xff] }
 0x26a   : > { %v1065_v38 = vadd.f32 %v1064_v34, %v7256_v0 }
 0x26b   : > { %v7397_v51 = vpack.c.bf16 %v1063_v43, %v1059_v3 }
 0x26c   : > { %v7399_v54 = vpack.c.bf16 %v1065_v38, %v1061_v17 }
 0x26e   : > { %6008 = vmatmul.mubr.msk.bf16.vlgmr.msra.gmra.mrb[36].mxu0 %vm1188_vm1, %v7382_v23  ;;  %v1522_v58 = vsel %vm1188_vm1, %v7399_v54, 0 }
 0x26f   : > { %6012 = vmatpush3.bf16.xpose.msra.mxu1 %v1522_v58  ;;  %6018 = vmatpush3.bf16.msra.mxu0 %v7277_v36 }
 0x270   : > { %6023 = vmatprep.subr.bf16.mxu1 %v9016_v28  ;;  %6019 = vmatprep.mubr.msk.bf16.mxu0 %vm6792_vm0, %v9016_v28 }
 0x271   : > { %6029 = vmatprep.subr.bf16.mxu0 %v9016_v28 }
 0x276   : > { %6014 = vmatmul.mubr.msk.bf16.vlgmr.msra.gmra.mrb[36].mxu1 %vm1188_vm1, %v7397_v51 }
 0x277   : > { %6024 = vmatpush3.bf16.msra.mxu1 %v7274_v46  ;;  %6025 = vmatprep.mubr.msk.bf16.mxu1 %vm6792_vm0, %v9016_v28 }
 0x278   : > { %6035 = vmatprep.subr.bf16.mxu1 %v9016_v28 }
 0x311   : > { %v1229_v0 = vpop.f32.mrb[16].mxu1 }
 0x312   : > { %v7427_v48 = vadd.f32 %v1229_v0, %v7419_v41  ;;  %v5973_v4 = vpop.f32.mrb[17].mxu1 }
 0x313   : > { %v1232_v9 = vpop.f32.mrb[18].mxu1 }
 0x314   : > { %v7430_v32 = vadd.f32 %v1232_v9, %v7424_v30  ;;  %v5974_v11 = vpop.f32.mrb[19].mxu1  ;;  %v1566_v39 = vsel %vm1565_vm2, %v7427_v48, -inf }
 0x315   : > { %1567 = vmax.xlane.f32.xlu0 %v1566_v39 }
 0x316   : > { %v1569_v16 = vsel %vm1565_vm2, %v7430_v32, -inf }
 0x317   : > { %1570 = vmax.xlane.f32.xlu1 %v1569_v16 }
 0x319   : > { %v1276_v13 = vpop.f32.mrb[20].mxu1 }
 0x31a   : > { %v7437_v5 = vadd.f32 %v1276_v13, %v7419_v41  ;;  %v5979_v22 = vpop.f32.mrb[21].mxu1 }
 0x31b   : > { %v1279_v21 = vpop.f32.mrb[22].mxu1 }
 0x31c   : > { %v7440_v8 = vadd.f32 %v1279_v21, %v7424_v30  ;;  %v5980_v3 = vpop.f32.mrb[23].mxu1  ;;  %v1572_v27 = vsel %vm1565_vm2, %v7437_v5, -inf }
 0x31d   : > { %1573 = vmax.xlane.f32.xlu0 %v1572_v27 }
 0x31e   : > { %v1575_v17 = vsel %vm1565_vm2, %v7440_v8, -inf }
 0x31f   : > { %1576 = vmax.xlane.f32.xlu1 %v1575_v17 }
 0x321   : > { %v1323_v60 = vpop.f32.mrb[24].mxu1 }
 0x322   : > { %v7447_v43 = vadd.f32 %v1323_v60, %v7419_v41  ;;  %v5985_v34 = vpop.f32.mrb[25].mxu1 }
 0x323   : > { %v1326_v38 = vpop.f32.mrb[26].mxu1 }
 0x324   : > { %v7450_v58 = vadd.f32 %v1326_v38, %v7424_v30  ;;  %v5986_v0 = vpop.f32.mrb[27].mxu1  ;;  %v1578_v4 = vsel %vm1565_vm2, %v7447_v43, -inf }
 0x325   : > { %1579 = vmax.xlane.f32.xlu0 %v1578_v4 }
 0x326   : > { %v1581_v9 = vsel %vm1565_vm2, %v7450_v58, -inf }
 0x327   : > { %1582 = vmax.xlane.f32.xlu1 %v1581_v9 }
 0x329   : > { %v1370_v11 = vpop.f32.mrb[28].mxu1 }
 0x32a   : > { %v7457_v39 = vadd.f32 %v1370_v11, %v7419_v41  ;;  %v5991_v16 = vpop.f32.mrb[29].mxu1 }
 0x32b   : > { %v1373_v13 = vpop.f32.mrb[30].mxu1 }
 0x32c   : > { %v7460_v22 = vadd.f32 %v1373_v13, %v7424_v30  ;;  %v5992_v21 = vpop.f32.mrb[31].mxu1  ;;  %v1584_v3 = vsel %vm1565_vm2, %v7457_v39, -inf }
 0x32d   : > { %1585 = vmax.xlane.f32.xlu0 %v1584_v3 }
 0x32e   : > { %v1587_v27 = vsel %vm1565_vm2, %v7460_v22, -inf }
 0x32f   : > { %1588 = vmax.xlane.f32.xlu1 %v1587_v27 }
 0x331   : > { %v1417_v17 = vpop.f32.mrb[32].mxu0 }
 0x332   : > { %v7467_v60 = vadd.f32 %v1417_v17, %v7419_v41  ;;  %v5997_v34 = vpop.f32.mrb[33].mxu0 }
 0x333   : > { %v1420_v38 = vpop.f32.mrb[34].mxu0 }
 0x334   : > { %v7470_v0 = vadd.f32 %v1420_v38, %v7424_v30  ;;  %v5998_v4 = vpop.f32.mrb[35].mxu0  ;;  %v1590_v9 = vsel %vm1565_vm2, %v7467_v60, -inf }
 0x335   : > { %1591 = vmax.xlane.f32.xlu0 %v1590_v9 }
 0x336   : > { %v1593_v11 = vsel %vm1565_vm2, %v7470_v0, -inf }
 0x337   : > { %1594 = vmax.xlane.f32.xlu1 %v1593_v11 }
 0x339   : > { %v1464_v16 = vpop.f32.mrb[32].mxu1 }
 0x33a   : > { %v7477_v13 = vadd.f32 %v1464_v16, %v7419_v41  ;;  %v6003_v21 = vpop.f32.mrb[33].mxu1 }
 0x33b   : > { %v1467_v3 = vpop.f32.mrb[34].mxu1 }
 0x33c   : > { %v7480_v27 = vadd.f32 %v1467_v3, %v7424_v30  ;;  %v6004_v17 = vpop.f32.mrb[35].mxu1  ;;  %v1596_v34 = vsel %vm1565_vm2, %v7477_v13, -inf }
 0x33d   : > { %1597 = vmax.xlane.f32.xlu0 %v1596_v34 }
 0x33e   : > { %v1599_v38 = vsel %vm1565_vm2, %v7480_v27, -inf }
 0x33f   : > { %1600 = vmax.xlane.f32.xlu1 %v1599_v38 }
 0x341   : > { %v1511_v4 = vpop.f32.mrb[36].mxu0 }
 0x342   : > { %v7487_v9 = vadd.f32 %v1511_v4, %v7419_v41  ;;  %v6009_v11 = vpop.f32.mrb[37].mxu0 }
 0x343   : > { %v1514_v16 = vpop.f32.mrb[38].mxu0 }
 0x344   : > { %v7490_v21 = vadd.f32 %v1514_v16, %v7424_v30  ;;  %v6010_v3 = vpop.f32.mrb[39].mxu0  ;;  %v1602_v17 = vsel %vm1565_vm2, %v7487_v9, -inf }
 0x345   : > { %1603 = vmax.xlane.f32.xlu0 %v1602_v17 }
 0x346   : > { %v1605_v34 = vsel %vm1565_vm2, %v7490_v21, -inf }
 0x347   : > { %1606 = vmax.xlane.f32.xlu1 %v1605_v34 }
 0x349   : > { %v1558_v28 = vpop.f32.mrb[36].mxu1 }
 0x34a   : > { %v7497_v38 = vadd.f32 %v1558_v28, %v7419_v41  ;;  %v6015_v4 = vpop.f32.mrb[37].mxu1 }
 0x34b   : > { %v1561_v44 = vpop.f32.mrb[38].mxu1 }
 0x34c   : > { %v7500_v11 = vadd.f32 %v1561_v44, %v7424_v30  ;;  %v6016_v16 = vpop.f32.mrb[39].mxu1  ;;  %v1608_v3 = vsel %vm1565_vm2, %v7497_v38, -inf }
 0x34d   : > { %1609 = vmax.xlane.f32.xlu0 %v1608_v3 }
 0x34e   : > { %v1611_v17 = vsel %vm1565_vm2, %v7500_v11, -inf }
 0x34f   : > { %1612 = vmax.xlane.f32.xlu1 %v1611_v17 }
 0x3a2   : > { %v1568_v15 = vpop.xlane.xlu0 %1567 }
 0x3a3   : > { %v1614_v34 = vsub.f32 %v7427_v48, %v1568_v15 }
 0x3a4   : > { %v1571_v7 = vpop.xlane.xlu1 %1570 }
 0x3a5   : > { %v1630_v28 = vmul.f32 1.442695, %v1614_v34  ;;  %v1615_v4 = vsub.f32 %v7430_v32, %v1571_v7 }
 0x3a7   : > { %6489 = vpow2.f32 %v1630_v28  ;;  %v1632_v6 = vmul.f32 1.442695, %v1615_v4 }
 0x3a9   : > { %6491 = vpow2.f32 %v1632_v6 }
 0x3aa   : > { %v1574_v44 = vpop.xlane.xlu0 %1573 }
 0x3ab   : > { %v1616_v16 = vsub.f32 %v7437_v5, %v1574_v44 }
 0x3ac   : > { %v1577_v50 = vpop.xlane.xlu1 %1576 }
 0x3ad   : > { %v1634_v1 = vmul.f32 1.442695, %v1616_v16  ;;  %v1617_v3 = vsub.f32 %v7440_v8, %v1577_v50 }
 0x3af   : > { %6493 = vpow2.f32 %v1634_v1  ;;  %v1636_v59 = vmul.f32 1.442695, %v1617_v3 }
 0x3b1   : > { %v7510_v17 = vpop.eup %6489  ;;  %6495 = vpow2.f32 %v1636_v59 }
 0x3b2   : > { %v1580_v15 = vpop.xlane.xlu0 %1579  ;;  %v1662_v48 = vsel %vm1565_vm2, %v7510_v17, 0.0 }
 0x3b3   : > { %v7514_v7 = vpop.eup %6491  ;;  %v1618_v6 = vsub.f32 %v7447_v43, %v1580_v15  ;;  %1663 = vadd.xlane.f32.xlu0 %v1662_v48 }
 0x3b4   : > { %v1583_v32 = vpop.xlane.xlu1 %1582  ;;  %v1665_v5 = vsel %vm1565_vm2, %v7514_v7, 0.0 }
 0x3b5   : > { %v1638_v34 = vmul.f32 1.442695, %v1618_v6  ;;  %v1619_v50 = vsub.f32 %v7450_v58, %v1583_v32  ;;  %1666 = vadd.xlane.f32.xlu1 %v1665_v5 }
 0x3b7   : > { %6497 = vpow2.f32 %v1638_v34  ;;  %v1640_v1 = vmul.f32 1.442695, %v1619_v50 }
 0x3b9   : > { %v7520_v59 = vpop.eup %6493  ;;  %6499 = vpow2.f32 %v1640_v1 }
 0x3ba   : > { %v1586_v8 = vpop.xlane.xlu0 %1585  ;;  %v1668_v28 = vsel %vm1565_vm2, %v7520_v59, 0.0 }
 0x3bb   : > { %v7524_v4 = vpop.eup %6495  ;;  %v1620_v43 = vsub.f32 %v7457_v39, %v1586_v8  ;;  %1669 = vadd.xlane.f32.xlu0 %v1668_v28 }
 0x3bc   : > { %v1589_v44 = vpop.xlane.xlu1 %1588  ;;  %v1671_v16 = vsel %vm1565_vm2, %v7524_v4, 0.0 }
 0x3bd   : > { %v1642_v58 = vmul.f32 1.442695, %v1620_v43  ;;  %v1621_v3 = vsub.f32 %v7460_v22, %v1589_v44  ;;  %1672 = vadd.xlane.f32.xlu1 %v1671_v16 }
 0x3bf   : > { %6501 = vpow2.f32 %v1642_v58  ;;  %v1644_v15 = vmul.f32 1.442695, %v1621_v3 }
 0x3c1   : > { %v7530_v48 = vpop.eup %6497  ;;  %6503 = vpow2.f32 %v1644_v15 }
 0x3c2   : > { %v1592_v6 = vpop.xlane.xlu0 %1591  ;;  %v1674_v32 = vsel %vm1565_vm2, %v7530_v48, 0.0 }
 0x3c3   : > { %v7534_v5 = vpop.eup %6499  ;;  %v1622_v39 = vsub.f32 %v7467_v60, %v1592_v6  ;;  %1675 = vadd.xlane.f32.xlu0 %v1674_v32 }
 0x3c4   : > { %v1595_v34 = vpop.xlane.xlu1 %1594  ;;  %v1677_v50 = vsel %vm1565_vm2, %v7534_v5, 0.0 }
 0x3c5   : > { %v1646_v22 = vmul.f32 1.442695, %v1622_v39  ;;  %v1623_v1 = vsub.f32 %v7470_v0, %v1595_v34  ;;  %1678 = vadd.xlane.f32.xlu1 %v1677_v50 }
 0x3c7   : > { %6505 = vpow2.f32 %v1646_v22  ;;  %v1648_v8 = vmul.f32 1.442695, %v1623_v1 }
 0x3c9   : > { %v7540_v28 = vpop.eup %6501  ;;  %6507 = vpow2.f32 %v1648_v8 }
 0x3ca   : > { %v1598_v43 = vpop.xlane.xlu0 %1597  ;;  %v1680_v44 = vsel %vm1565_vm2, %v7540_v28, 0.0 }
 0x3cb   : > { %v7544_v16 = vpop.eup %6503  ;;  %v1624_v60 = vsub.f32 %v7477_v13, %v1598_v43  ;;  %1681 = vadd.xlane.f32.xlu0 %v1680_v44 }
 0x3cc   : > { %v1601_v58 = vpop.xlane.xlu1 %1600  ;;  %v1683_v3 = vsel %vm1565_vm2, %v7544_v16, 0.0 }
 0x3cd   : > { %v1650_v0 = vmul.f32 1.442695, %v1624_v60  ;;  %v1625_v15 = vsub.f32 %v7480_v27, %v1601_v58  ;;  %1684 = vadd.xlane.f32.xlu1 %v1683_v3 }
 0x3cf   : > { %6509 = vpow2.f32 %v1650_v0  ;;  %v1652_v6 = vmul.f32 1.442695, %v1625_v15 }
 0x3d1   : > { %v7550_v32 = vpop.eup %6505  ;;  %6511 = vpow2.f32 %v1652_v6 }
 0x3d2   : > { %v1604_v39 = vpop.xlane.xlu0 %1603  ;;  %v1686_v34 = vsel %vm1565_vm2, %v7550_v32, 0.0 }
 0x3d3   : > { %v7554_v50 = vpop.eup %6507  ;;  %v1626_v13 = vsub.f32 %v7487_v9, %v1604_v39  ;;  %1687 = vadd.xlane.f32.xlu0 %v1686_v34 }
 0x3d4   : > { %v1607_v22 = vpop.xlane.xlu1 %1606  ;;  %v1689_v1 = vsel %vm1565_vm2, %v7554_v50, 0.0 }
 0x3d5   : > { %v1654_v27 = vmul.f32 1.442695, %v1626_v13  ;;  %v1627_v8 = vsub.f32 %v7490_v21, %v1607_v22  ;;  %1690 = vadd.xlane.f32.xlu1 %v1689_v1 }
 0x3d7   : > { %6513 = vpow2.f32 %v1654_v27  ;;  %v1656_v43 = vmul.f32 1.442695, %v1627_v8 }
 0x3d9   : > { %v7560_v44 = vpop.eup %6509  ;;  %6515 = vpow2.f32 %v1656_v43 }
 0x3da   : > { %v1610_v60 = vpop.xlane.xlu0 %1609  ;;  %v1692_v58 = vsel %vm1565_vm2, %v7560_v44, 0.0 }
 0x3db   : > { %v7564_v3 = vpop.eup %6511  ;;  %v1628_v9 = vsub.f32 %v7497_v38, %v1610_v60  ;;  %1693 = vadd.xlane.f32.xlu0 %v1692_v58 }
 0x3dc   : > { %v1695_v0 = vsel %vm1565_vm2, %v7564_v3, 0.0  ;;  %v1613_v22 = vpop.xlane.xlu1 %1612 }
 0x3dd   : > { %v1658_v15 = vmul.f32 1.442695, %v1628_v9  ;;  %1696 = vadd.xlane.f32.xlu1 %v1695_v0  ;;  %v1629_v1 = vsub.f32 %v7500_v11, %v1613_v22 }
 0x3df   : > { %6517 = vpow2.f32 %v1658_v15  ;;  %v1660_v27 = vmul.f32 1.442695, %v1629_v1 }
 0x3e1   : > { %v7569_v21 = vpop.eup %6513  ;;  %6519 = vpow2.f32 %v1660_v27 }
 0x3e2   : > { %v1698_v6 = vsel %vm1565_vm2, %v7569_v21, 0.0 }
 0x3e3   : > { %v7573_v39 = vpop.eup %6515  ;;  %1699 = vadd.xlane.f32.xlu0 %v1698_v6 }
 0x3e4   : > { %v1701_v34 = vsel %vm1565_vm2, %v7573_v39, 0.0 }
 0x3e5   : > { %1702 = vadd.xlane.f32.xlu1 %v1701_v34 }
 0x3e9   : > { %v7577_v38 = vpop.eup %6517 }
 0x3ea   : > { %v1704_v13 = vsel %vm1565_vm2, %v7577_v38, 0.0 }
 0x3eb   : > { %1705 = vadd.xlane.f32.xlu0 %v1704_v13  ;;  %v7600_v8 = vpop.eup %6519 }
 0x3ec   : > { %v1707_v11 = vsel %vm1565_vm2, %v7600_v8, 0.0 }
 0x3f6   : > { %2175 = vrot.lane.b32.xlu1 %v7286_v53, %s6793_s18 }
 0x3fa   : > { %2119 = vrot.lane.b32.xlu1 %v7264_v35, %s6793_s18 }
 0x401   : > { %2122 = vrot.lane.b32.xlu0 %v7267_v37, %s6793_s18 }
 0x405   : > { %2172 = vrot.lane.b32.xlu0 %v7283_v63, %s6793_s18 }
 0x409   : > { %2225 = vrot.lane.b32.xlu0 %v7306_v31, %s6793_s18 }
 0x40d   : > { %2278 = vrot.lane.b32.xlu0 %v7329_v2, %s6793_s18 }
 0x411   : > { %2331 = vrot.lane.b32.xlu0 %v7352_v25, %s6793_s18 }
 0x415   : > { %2384 = vrot.lane.b32.xlu0 %v7367_v12, %s6793_s18 }
 0x419   : > { %2437 = vrot.lane.b32.xlu0 %v7382_v23, %s6793_s18 }
 0x41e   : > { %1708 = vadd.xlane.f32.xlu1 %v1707_v11  ;;  %v9062_v11 = vmov 0.0  }
 0x42f   : > { %2228 = vrot.lane.b32.xlu1 %v7309_v14, %s6793_s18 }
 0x433   : > { %2281 = vrot.lane.b32.xlu1 %v7332_v40, %s6793_s18 }
 0x437   : > { %2334 = vrot.lane.b32.xlu1 %v7354_v33, %s6793_s18 }
 0x43b   : > { %2387 = vrot.lane.b32.xlu1 %v7369_v20, %s6793_s18 }
 0x43f   : > { %2440 = vrot.lane.b32.xlu1 %v7384_v24, %s6793_s18 }
 0x440   : > { %v1664_v43 = vpop.xlane.xlu0 %1663 }
 0x441   : > { %6521 = vrcp.f32 %v1664_v43 }
 0x442   : > { %v1667_v60 = vpop.xlane.xlu1 %1666 }
 0x443   : > { %6523 = vrcp.f32 %v1667_v60  ;;  %2493 = vrot.lane.b32.xlu1 %v7399_v54, %s6793_s18 }
 0x447   : > { %2490 = vrot.lane.b32.xlu1 %v7397_v51, %s6793_s18 }
 0x448   : > { %v1670_v58 = vpop.xlane.xlu0 %1669 }
 0x449   : > { %6525 = vrcp.f32 %v1670_v58 }
 0x44a   : > { %v1673_v9 = vpop.xlane.xlu1 %1672 }
 0x44b   : > { %v6522_v0 = vpop.eup %6521  ;;  %6527 = vrcp.f32 %v1673_v9 }
 0x44c   : > { %v1726_v6 = vmul.f32 %v6522_v0, %v7510_v17 }
 0x44d   : > { %v6524_v15 = vpop.eup %6523 }
 0x44e   : > { %v1727_v34 = vmul.f32 %v6524_v15, %v7514_v7 }
 0x450   : > { %v1676_v13 = vpop.xlane.xlu0 %1675  ;;  %v1742_v22 = vpack.c.bf16 %v1727_v34, %v1726_v6 }
 0x451   : > { %6529 = vrcp.f32 %v1676_v13 }
 0x452   : > { %6020 = vmatmul.mubr.msk.bf16.vlgmr.msra.gmra.mrb[40].mxu0 %vm1565_vm2, %v1742_v22  ;;  %v1679_v1 = vpop.xlane.xlu1 %1678 }
 0x453   : > { %v6526_v27 = vpop.eup %6525  ;;  %6030 = vmatpush3.bf16.msra.mxu0 %v7300_v19  ;;  %6531 = vrcp.f32 %v1679_v1  ;;  %6031 = vmatprep.mubr.msk.bf16.mxu0 %vm6792_vm0, %v9062_v11 }
 0x454   : > { %6041 = vmatprep.subr.bf16.mxu0 %v9062_v11  ;;  %v1728_v17 = vmul.f32 %v6526_v27, %v7520_v59 }
 0x455   : > { %v6528_v43 = vpop.eup %6527 }
 0x456   : > { %v1729_v7 = vmul.f32 %v6528_v43, %v7524_v4 }
 0x458   : > { %v1682_v60 = vpop.xlane.xlu0 %1681  ;;  %v1743_v58 = vpack.c.bf16 %v1729_v7, %v1728_v17 }
 0x459   : > { %6533 = vrcp.f32 %v1682_v60 }
 0x45a   : > { %6026 = vmatmul.mubr.msk.bf16.vlgmr.msra.gmra.mrb[40].mxu1 %vm1565_vm2, %v1743_v58  ;;  %v1685_v9 = vpop.xlane.xlu1 %1684 }
 0x45b   : > { %v6530_v0 = vpop.eup %6529  ;;  %6036 = vmatpush3.bf16.msra.mxu1 %v7295_v18  ;;  %6535 = vrcp.f32 %v1685_v9  ;;  %6037 = vmatprep.mubr.msk.bf16.mxu1 %vm6792_vm0, %v9062_v11 }
 0x45c   : > { %6047 = vmatprep.subr.bf16.mxu1 %v9062_v11  ;;  %v1730_v59 = vmul.f32 %v6530_v0, %v7530_v48 }
 0x45d   : > { %v6532_v15 = vpop.eup %6531 }
 0x45e   : > { %v1731_v4 = vmul.f32 %v6532_v15, %v7534_v5 }
 0x460   : > { %v1688_v6 = vpop.xlane.xlu0 %1687  ;;  %v1744_v34 = vpack.c.bf16 %v1731_v4, %v1730_v59 }
 0x461   : > { %6537 = vrcp.f32 %v1688_v6 }
 0x462   : > { %6032 = vmatmul.mubr.msk.bf16.vlgmr.msra.gmra.mrb[44].mxu0 %vm1565_vm2, %v1744_v34  ;;  %v1691_v13 = vpop.xlane.xlu1 %1690 }
 0x463   : > { %v6534_v22 = vpop.eup %6533  ;;  %6042 = vmatpush3.bf16.msra.mxu0 %v7323_v10  ;;  %6539 = vrcp.f32 %v1691_v13  ;;  %6043 = vmatprep.mubr.msk.bf16.mxu0 %vm6792_vm0, %v9062_v11 }
 0x464   : > { %6053 = vmatprep.subr.bf16.mxu0 %v9062_v11  ;;  %v1732_v48 = vmul.f32 %v6534_v22, %v7540_v28 }
 0x465   : > { %v6536_v1 = vpop.eup %6535 }
 0x466   : > { %v1733_v5 = vmul.f32 %v6536_v1, %v7544_v16 }
 0x468   : > { %v1694_v27 = vpop.xlane.xlu0 %1693  ;;  %v1745_v43 = vpack.c.bf16 %v1733_v5, %v1732_v48 }
 0x469   : > { %6541 = vrcp.f32 %v1694_v27 }
 0x46a   : > { %6038 = vmatmul.mubr.msk.bf16.vlgmr.msra.gmra.mrb[44].mxu1 %vm1565_vm2, %v1745_v43  ;;  %v1697_v17 = vpop.xlane.xlu1 %1696 }
 0x46b   : > { %v6538_v7 = vpop.eup %6537  ;;  %6048 = vmatpush3.bf16.msra.mxu1 %v7318_v47  ;;  %6543 = vrcp.f32 %v1697_v17  ;;  %6049 = vmatprep.mubr.msk.bf16.mxu1 %vm6792_vm0, %v9062_v11 }
 0x46c   : > { %6059 = vmatprep.subr.bf16.mxu1 %v9062_v11  ;;  %v1734_v28 = vmul.f32 %v6538_v7, %v7550_v32 }
 0x46d   : > { %v6540_v60 = vpop.eup %6539 }
 0x46e   : > { %v1735_v16 = vmul.f32 %v6540_v60, %v7554_v50 }
 0x470   : > { %v1700_v58 = vpop.xlane.xlu0 %1699  ;;  %v1746_v9 = vpack.c.bf16 %v1735_v16, %v1734_v28 }
 0x471   : > { %6545 = vrcp.f32 %v1700_v58 }
 0x472   : > { %6044 = vmatmul.mubr.msk.bf16.vlgmr.msra.gmra.mrb[48].mxu0 %vm1565_vm2, %v1746_v9  ;;  %v1703_v0 = vpop.xlane.xlu1 %1702 }
 0x473   : > { %v6542_v15 = vpop.eup %6541  ;;  %6054 = vmatpush3.bf16.msra.mxu0 %v7346_v52  ;;  %6547 = vrcp.f32 %v1703_v0  ;;  %6055 = vmatprep.mubr.msk.bf16.mxu0 %vm6792_vm0, %v9062_v11 }
 0x474   : > { %6065 = vmatprep.subr.bf16.mxu0 %v9062_v11  ;;  %v1736_v32 = vmul.f32 %v6542_v15, %v7560_v44 }
 0x475   : > { %v6544_v59 = vpop.eup %6543 }
 0x476   : > { %v1737_v50 = vmul.f32 %v6544_v59, %v7564_v3  ;;  %v2176_v5 = vpop.permute.xlu1 %2175 }
 0x478   : > { %v1747_v4 = vpack.c.bf16 %v1737_v50, %v1736_v32  ;;  %v1706_v6 = vpop.xlane.xlu0 %1705  ;;  %v2181_v50 = vsel %vm1188_vm1, %v2176_v5, 0 }
 0x479   : > { %6549 = vrcp.f32 %v1706_v6 }
 0x47a   : > { %6050 = vmatmul.mubr.msk.bf16.vlgmr.msra.gmra.mrb[48].mxu1 %vm1565_vm2, %v1747_v4  ;;  %v2120_v27 = vpop.permute.xlu1 %2119 }
 0x47b   : > { %v6546_v34 = vpop.eup %6545  ;;  %6060 = vmatpush3.bf16.msra.mxu1 %v7341_v49  ;;  %6061 = vmatprep.mubr.msk.bf16.mxu1 %vm6792_vm0, %v9062_v11 }
 0x47c   : > { %6071 = vmatprep.subr.bf16.mxu1 %v9062_v11  ;;  %v1738_v22 = vmul.f32 %v6546_v34, %v7569_v21  ;;  %v2123_v44 = vpop.permute.xlu0 %2122 }
 0x47d   : > { %v6548_v13 = vpop.eup %6547  ;;  %v2128_v3 = vsel %vm1188_vm1, %v2123_v44, 0 }
 0x47e   : > { %v1739_v1 = vmul.f32 %v6548_v13, %v7573_v39 }
 0x480   : > { %v1748_v48 = vpack.c.bf16 %v1739_v1, %v1738_v22  ;;  %v2173_v21 = vpop.permute.xlu0 %2172 }
 0x482   : > { %6056 = vmatmul.mubr.msk.bf16.vlgmr.msra.gmra.mrb[52].mxu0 %vm1565_vm2, %v1748_v48 }
 0x483   : > { %6066 = vmatpush3.bf16.xpose.msra.mxu0 %v2128_v3  ;;  %6067 = vmatprep.mubr.msk.bf16.mxu0 %vm6792_vm0, %v9062_v11  ;;  %v6550_v28 = vpop.eup %6549 }
 0x484   : > { %6077 = vmatprep.subr.bf16.mxu0 %v9062_v11  ;;  %v2226_v43 = vpop.permute.xlu0 %2225  ;;  %v1740_v9 = vmul.f32 %v6550_v28, %v7577_v38 }
 0x488   : > { %v2279_v16 = vpop.permute.xlu0 %2278 }
 0x48a   : > { %6068 = vmatmul.mubr.msk.bf16.vlgmr.msra.gmra.mrb[56].mxu0 %vm1188_vm1, %v2120_v27 }
 0x48b   : > { %6079 = vmatprep.mubr.msk.bf16.mxu0 %vm6792_vm0, %v9062_v11 }
 0x48c   : > { %v2332_v4 = vpop.permute.xlu0 %2331 }
 0x490   : > { %v2385_v34 = vpop.permute.xlu0 %2384 }
 0x494   : > { %v2438_v22 = vpop.permute.xlu0 %2437 }
 0x4ab   : > { %v1709_v39 = vpop.xlane.xlu1 %1708 }
 0x4ac   : > { %6551 = vrcp.f32 %v1709_v39 }
 0x4af   : > { %v2229_v17 = vpop.permute.xlu1 %2228 }
 0x4b0   : > { %v2234_v7 = vsel %vm1188_vm1, %v2229_v17, 0 }
 0x4b1   : > { %6078 = vmatpush3.bf16.xpose.msra.mxu0 %v2234_v7 }
 0x4b2   : > { %6089 = vmatprep.subr.bf16.mxu0 %v9062_v11 }
 0x4b3   : > { %v2282_v60 = vpop.permute.xlu1 %2281 }
 0x4b4   : > { %v2287_v13 = vsel %vm1188_vm1, %v2282_v60, 0 }
 0x4b6   : > { %v6552_v58 = vpop.eup %6551 }
 0x4b7   : > { %v1741_v0 = vmul.f32 %v6552_v58, %v7600_v8  ;;  %v2335_v15 = vpop.permute.xlu1 %2334 }
 0x4b8   : > { %v2340_v59 = vsel %vm1188_vm1, %v2335_v15, 0  ;;  %6080 = vmatmul.mubr.msk.bf16.vlgmr.msra.gmra.mrb[60].mxu0 %vm1188_vm1, %v2226_v43 }
 0x4b9   : > { %6090 = vmatpush3.bf16.xpose.msra.mxu0 %v2340_v59  ;;  %v1749_v32 = vpack.c.bf16 %v1741_v0, %v1740_v9  ;;  %6091 = vmatprep.mubr.msk.bf16.mxu0 %vm6792_vm0, %v9062_v11 }
 0x4ba   : > { %6101 = vmatprep.subr.bf16.mxu0 %v9062_v11 }
 0x4bb   : > { %6062 = vmatmul.mubr.msk.bf16.vlgmr.msra.gmra.mrb[52].mxu1 %vm1565_vm2, %v1749_v32  ;;  %v2388_v38 = vpop.permute.xlu1 %2387 }
 0x4bc   : > { %6072 = vmatpush3.bf16.xpose.msra.mxu1 %v2181_v50  ;;  %6073 = vmatprep.mubr.msk.bf16.mxu1 %vm6792_vm0, %v9062_v11  ;;  %v2393_v1 = vsel %vm1188_vm1, %v2388_v38, 0 }
 0x4bd   : > { %6083 = vmatprep.subr.bf16.mxu1 %v9062_v11 }
 0x4bf   : > { %v2441_v8 = vpop.permute.xlu1 %2440 }
 0x4c0   : > { %v2446_v6 = vsel %vm1188_vm1, %v2441_v8, 0  ;;  %6092 = vmatmul.mubr.msk.bf16.vlgmr.msra.gmra.mrb[64].mxu0 %vm1188_vm1, %v2332_v4 }
 0x4c1   : > { %6102 = vmatpush3.bf16.xpose.msra.mxu0 %v2446_v6  ;;  %6103 = vmatprep.mubr.msk.bf16.mxu0 %vm6792_vm0, %v9062_v11 }
 0x4c2   : > { %6113 = vmatprep.subr.bf16.mxu0 %v9062_v11 }
 0x4c3   : > { %6074 = vmatmul.mubr.msk.bf16.vlgmr.msra.gmra.mrb[56].mxu1 %vm1188_vm1, %v2173_v21  ;;  %v2494_v44 = vpop.permute.xlu1 %2493 }
 0x4c4   : > { %6084 = vmatpush3.bf16.xpose.msra.mxu1 %v2287_v13  ;;  %6085 = vmatprep.mubr.msk.bf16.mxu1 %vm6792_vm0, %v9062_v11  ;;  %v2499_v48 = vsel %vm1188_vm1, %v2494_v44, 0 }
 0x4c5   : > { %6095 = vmatprep.subr.bf16.mxu1 %v9062_v11 }
 0x4c7   : > { %v2491_v3 = vpop.permute.xlu1 %2490 }
 0x4c8   : > { %6104 = vmatmul.mubr.msk.bf16.vlgmr.msra.gmra.mrb[68].mxu0 %vm1188_vm1, %v2438_v22 }
 0x4c9   : > { %6115 = vmatprep.mubr.msk.bf16.mxu0 %vm6792_vm0, %v9062_v11 }
 0x4cb   : > { %6086 = vmatmul.mubr.msk.bf16.vlgmr.msra.gmra.mrb[60].mxu1 %vm1188_vm1, %v2279_v16 }
 0x4cc   : > { %6096 = vmatpush3.bf16.xpose.msra.mxu1 %v2393_v1  ;;  %6097 = vmatprep.mubr.msk.bf16.mxu1 %vm6792_vm0, %v9062_v11 }
 0x4cd   : > { %6107 = vmatprep.subr.bf16.mxu1 %v9062_v11 }
 0x4d3   : > { %6098 = vmatmul.mubr.msk.bf16.vlgmr.msra.gmra.mrb[64].mxu1 %vm1188_vm1, %v2385_v34 }
 0x4d4   : > { %6108 = vmatpush3.bf16.xpose.msra.mxu1 %v2499_v48  ;;  %6109 = vmatprep.mubr.msk.bf16.mxu1 %vm6792_vm0, %v9062_v11 }
 0x4d5   : > { %6119 = vmatprep.subr.bf16.mxu1 %v9062_v11 }
 0x4db   : > { %6110 = vmatmul.mubr.msk.bf16.vlgmr.msra.gmra.mrb[68].mxu1 %vm1188_vm1, %v2491_v3 }
 0x4dc   : > { %6121 = vmatprep.mubr.msk.bf16.mxu1 %vm6792_vm0, %v9062_v11 }
 0x525   : > { %v1787_v5 = vpop.f32.mrb[40].mxu0 }
 0x526   : > { %v6021_v27 = vpop.f32.mrb[41].mxu0 }
 0x527   : > { %v1790_v21 = vpop.f32.mrb[42].mxu0 }
 0x528   : > { %v2102_v39 = vpack.c.bf16 %v1790_v21, %v1787_v5  ;;  %v6022_v43 = vpop.f32.mrb[43].mxu0 }
 0x52a   : > { %2110 = vst.msk [vmem:[#allocation2] sm:$0xff] %vm1188_vm1, %v2102_v39 }
 0x52d   : > { %v1831_v17 = vpop.f32.mrb[40].mxu1 }
 0x52e   : > { %v6027_v7 = vpop.f32.mrb[41].mxu1 }
 0x52f   : > { %v1834_v60 = vpop.f32.mrb[42].mxu1 }
 0x530   : > { %v2103_v28 = vpack.c.bf16 %v1834_v60, %v1831_v17  ;;  %v6028_v16 = vpop.f32.mrb[43].mxu1 }
 0x532   : > { %2111 = vst.msk [vmem:[#allocation2 + $0x8] sm:$0xff] %vm1188_vm1, %v2103_v28 }
 0x535   : > { %v1875_v58 = vpop.f32.mrb[44].mxu0 }
 0x536   : > { %v6033_v9 = vpop.f32.mrb[45].mxu0 }
 0x537   : > { %v1878_v0 = vpop.f32.mrb[46].mxu0 }
 0x538   : > { %v2104_v15 = vpack.c.bf16 %v1878_v0, %v1875_v58  ;;  %v6034_v59 = vpop.f32.mrb[47].mxu0 }
 0x53a   : > { %2112 = vst.msk [vmem:[#allocation2 + $0x10] sm:$0xff] %vm1188_vm1, %v2104_v15 }
 0x53d   : > { %v1919_v32 = vpop.f32.mrb[44].mxu1 }
 0x53e   : > { %v6039_v50 = vpop.f32.mrb[45].mxu1 }
 0x53f   : > { %v1922_v4 = vpop.f32.mrb[46].mxu1 }
 0x540   : > { %v2105_v38 = vpack.c.bf16 %v1922_v4, %v1919_v32  ;;  %v6040_v8 = vpop.f32.mrb[47].mxu1 }
 0x542   : > { %2113 = vst.msk [vmem:[#allocation2 + $0x18] sm:$0xff] %vm1188_vm1, %v2105_v38 }
 0x545   : > { %v1963_v6 = vpop.f32.mrb[48].mxu0 }
 0x546   : > { %v6045_v34 = vpop.f32.mrb[49].mxu0 }
 0x547   : > { %v1966_v13 = vpop.f32.mrb[50].mxu0 }
 0x548   : > { %v2106_v22 = vpack.c.bf16 %v1966_v13, %v1963_v6  ;;  %v6046_v1 = vpop.f32.mrb[51].mxu0 }
 0x54a   : > { %2114 = vst.msk [vmem:[#allocation2 + $0x20] sm:$0xff] %vm1188_vm1, %v2106_v22 }
 0x54d   : > { %v2007_v44 = vpop.f32.mrb[48].mxu1 }
 0x54e   : > { %v6051_v48 = vpop.f32.mrb[49].mxu1 }
 0x54f   : > { %v2010_v3 = vpop.f32.mrb[50].mxu1 }
 0x550   : > { %v2107_v5 = vpack.c.bf16 %v2010_v3, %v2007_v44  ;;  %v6052_v27 = vpop.f32.mrb[51].mxu1 }
 0x552   : > { %2115 = vst.msk [vmem:[#allocation2 + $0x28] sm:$0xff] %vm1188_vm1, %v2107_v5 }
 0x555   : > { %v2051_v21 = vpop.f32.mrb[52].mxu0 }
 0x556   : > { %v6057_v39 = vpop.f32.mrb[53].mxu0 }
 0x557   : > { %v2054_v43 = vpop.f32.mrb[54].mxu0 }
 0x558   : > { %v2108_v17 = vpack.c.bf16 %v2054_v43, %v2051_v21  ;;  %v6058_v7 = vpop.f32.mrb[55].mxu0 }
 0x55a   : > { %2116 = vst.msk [vmem:[#allocation2 + $0x30] sm:$0xff] %vm1188_vm1, %v2108_v17 }
 0x55d   : > { %v2164_v60 = vpop.f32.mrb[56].mxu0 }
 0x55e   : > { %v7718_v28 = vadd.f32 %v2164_v60, %v7419_v41  ;;  %v6069_v16 = vpop.f32.mrb[57].mxu0 }
 0x55f   : > { %v2167_v58 = vpop.f32.mrb[58].mxu0 }
 0x560   : > { %v7721_v9 = vadd.f32 %v2167_v58, %v7424_v30  ;;  %v6070_v0 = vpop.f32.mrb[59].mxu0  ;;  %v2542_v15 = vsel %vm1565_vm2, %v7718_v28, -inf }
 0x561   : > { %2543 = vmax.xlane.f32.xlu0 %v2542_v15 }
 0x562   : > { %v2545_v59 = vsel %vm1565_vm2, %v7721_v9, -inf }
 0x563   : > { %2546 = vmax.xlane.f32.xlu1 %v2545_v59 }
 0x574   : > { %2775 = vrot.lane.b32.xlu1 %v7274_v46, %s6793_s18 }
 0x578   : > { %2823 = vrot.lane.b32.xlu1 %v7300_v19, %s6793_s18 }
 0x57c   : > { %2871 = vrot.lane.b32.xlu1 %v7295_v18, %s6793_s18 }
 0x58b   : > { %v2270_v32 = vpop.f32.mrb[60].mxu0 }
 0x58c   : > { %v6081_v50 = vpop.f32.mrb[61].mxu0  ;;  %v7738_v43 = vadd.f32 %v2270_v32, %v7419_v41 }
 0x58d   : > { %v2273_v4 = vpop.f32.mrb[62].mxu0 }
 0x58e   : > { %v2095_v38 = vpop.f32.mrb[52].mxu1  ;;  %v6082_v8 = vpop.f32.mrb[63].mxu0  ;;  %v7743_v60 = vadd.f32 %v2273_v4, %v7424_v30  ;;  %v2554_v59 = vsel %vm1565_vm2, %v7738_v43, -inf }
 0x58f   : > { %v6063_v6 = vpop.f32.mrb[53].mxu1 }
 0x590   : > { %v2098_v34 = vpop.f32.mrb[54].mxu1  ;;  %v2557_v8 = vsel %vm1565_vm2, %v7743_v60, -inf }
 0x591   : > { %v2109_v13 = vpack.c.bf16 %v2098_v34, %v2095_v38  ;;  %v6064_v22 = vpop.f32.mrb[55].mxu1 }
 0x593   : > { %2117 = vst.msk [vmem:[#allocation2 + $0x38] sm:$0xff] %vm1188_vm1, %v2109_v13  ;;  %v2376_v1 = vpop.f32.mrb[64].mxu0 }
 0x594   : > { %v6093_v44 = vpop.f32.mrb[65].mxu0 }
 0x595   : > { %v2379_v48 = vpop.f32.mrb[66].mxu0 }
 0x596   : > { %v2217_v3 = vpop.f32.mrb[56].mxu1  ;;  %v6094_v5 = vpop.f32.mrb[67].mxu0  ;;  %v7758_v22 = vadd.f32 %v2379_v48, %v7424_v30 }
 0x597   : > { %v7735_v27 = vadd.f32 %v2217_v3, %v7419_v41  ;;  %v6075_v21 = vpop.f32.mrb[57].mxu1 }
 0x598   : > { %v2220_v39 = vpop.f32.mrb[58].mxu1  ;;  %v2569_v21 = vsel %vm1565_vm2, %v7758_v22, -inf }
 0x599   : > { %v6076_v17 = vpop.f32.mrb[59].mxu1  ;;  %v2548_v7 = vsel %vm1565_vm2, %v7735_v27, -inf  ;;  %v7746_v0 = vadd.f32 %v2220_v39, %v7424_v30 }
 0x59a   : > { %2549 = vmax.xlane.f32.xlu0 %v2548_v7 }
 0x59b   : > { %v2482_v16 = vpop.f32.mrb[68].mxu0  ;;  %v2551_v13 = vsel %vm1565_vm2, %v7746_v0, -inf }
 0x59c   : > { %v6105_v58 = vpop.f32.mrb[69].mxu0 }
 0x59d   : > { %v2485_v15 = vpop.f32.mrb[70].mxu0 }
 0x59e   : > { %v6106_v50 = vpop.f32.mrb[71].mxu0  ;;  %2555 = vmax.xlane.f32.xlu0 %v2554_v59  ;;  %v2323_v32 = vpop.f32.mrb[60].mxu1  ;;  %v7768_v58 = vadd.f32 %v2485_v15, %v7424_v30 }
 0x59f   : > { %v6087_v38 = vpop.f32.mrb[61].mxu1  ;;  %v7779_v15 = vadd.f32 %v2323_v32, %v7419_v41 }
 0x5a0   : > { %2558 = vmax.xlane.f32.xlu1 %v2557_v8  ;;  %v2326_v6 = vpop.f32.mrb[62].mxu1  ;;  %v2581_v38 = vsel %vm1565_vm2, %v7768_v58, -inf }
 0x5a1   : > { %v7753_v4 = vadd.f32 %v2326_v6, %v7424_v30  ;;  %v6088_v34 = vpop.f32.mrb[63].mxu1 }
 0x5a2   : > { %2552 = vmax.xlane.f32.xlu0 %v2551_v13  ;;  %v7782_v34 = vadd.f32 %v2376_v1, %v7419_v41  ;;  %v2560_v13 = vsel %vm1565_vm2, %v7779_v15, -inf }
 0x5a3   : > { %v2563_v44 = vsel %vm1565_vm2, %v7753_v4, -inf }
 0x5a4   : > { %2564 = vmax.xlane.f32.xlu1 %v2563_v44 }
 0x5a6   : > { %v2429_v3 = vpop.f32.mrb[64].mxu1 }
 0x5a7   : > { %v6099_v5 = vpop.f32.mrb[65].mxu1  ;;  %v7787_v44 = vadd.f32 %v2429_v3, %v7419_v41 }
 0x5a8   : > { %2570 = vmax.xlane.f32.xlu1 %v2569_v21  ;;  %v2432_v39 = vpop.f32.mrb[66].mxu1  ;;  %v2566_v5 = vsel %vm1565_vm2, %v7782_v34, -inf  ;;  %v7792_v21 = vadd.f32 %v2482_v16, %v7419_v41 }
 0x5a9   : > { %v7765_v17 = vadd.f32 %v2432_v39, %v7424_v30  ;;  %v6100_v7 = vpop.f32.mrb[67].mxu1  ;;  %v2572_v32 = vsel %vm1565_vm2, %v7787_v44, -inf }
 0x5aa   : > { %v2578_v3 = vsel %vm1565_vm2, %v7792_v21, -inf }
 0x5ab   : > { %v2575_v48 = vsel %vm1565_vm2, %v7765_v17, -inf }
 0x5ac   : > { %2576 = vmax.xlane.f32.xlu1 %v2575_v48 }
 0x5ae   : > { %v2535_v59 = vpop.f32.mrb[68].mxu1 }
 0x5af   : > { %v6111_v50 = vpop.f32.mrb[69].mxu1  ;;  %v7800_v39 = vadd.f32 %v2535_v59, %v7419_v41 }
 0x5b0   : > { %2582 = vmax.xlane.f32.xlu1 %v2581_v38  ;;  %v2538_v8 = vpop.f32.mrb[70].mxu1 }
 0x5b1   : > { %v6112_v6 = vpop.f32.mrb[71].mxu1  ;;  %v7797_v1 = vadd.f32 %v2538_v8, %v7424_v30  ;;  %v2584_v16 = vsel %vm1565_vm2, %v7800_v39, -inf }
 0x5b3   : > { %v2587_v7 = vsel %vm1565_vm2, %v7797_v1, -inf }
 0x5b8   : > { %2727 = vrot.lane.b32.xlu0 %v7277_v36, %s6793_s18 }
 0x5c1   : > { %2967 = vrot.lane.b32.xlu1 %v7318_v47, %s6793_s18 }
 0x5d7   : > { %2561 = vmax.xlane.f32.xlu0 %v2560_v13 }
 0x5db   : > { %2567 = vmax.xlane.f32.xlu0 %v2566_v5 }
 0x5df   : > { %2573 = vmax.xlane.f32.xlu0 %v2572_v32 }
 0x5e3   : > { %2579 = vmax.xlane.f32.xlu0 %v2578_v3 }
 0x5e5   : > { %2588 = vmax.xlane.f32.xlu1 %v2587_v7 }
 0x5e7   : > { %2585 = vmax.xlane.f32.xlu0 %v2584_v16 }
 0x5ee   : > { %v2544_v30 = vpop.xlane.xlu0 %2543 }
 0x5ef   : > { %v2590_v38 = vsub.f32 %v7718_v28, %v2544_v30 }
 0x5f0   : > { %v2547_v48 = vpop.xlane.xlu1 %2546 }
 0x5f1   : > { %v2591_v41 = vsub.f32 %v7721_v9, %v2547_v48  ;;  %v2606_v8 = vmul.f32 1.442695, %v2590_v38 }
 0x5f3   : > { %v2608_v59 = vmul.f32 1.442695, %v2591_v41 }
 0x5f4   : > { %v2776_v50 = vpop.permute.xlu1 %2775 }
 0x5f5   : > { %6120 = vmatpush3.bf16.msra.mxu1 %v2776_v50  ;;  %6553 = vpow2.f32 %v2608_v59 }
 0x5f6   : > { %3063 = vrot.lane.b32.xlu1 %v7341_v49, %s6793_s18  ;;  %6131 = vmatprep.subr.bf16.mxu1 %v9062_v11  ;;  %6555 = vpow2.f32 %v2606_v8 }
 0x5f8   : > { %v7825_v9 = vpop.permute.xlu1 %2823 }
 0x5fc   : > { %v7828_v7 = vpop.permute.xlu1 %2871 }
 0x5fd   : > { %2919 = vrot.lane.b32.xlu0 %v7323_v10, %s6793_s18 }
 0x5ff   : > { %v7817_v6 = vpop.eup %6553 }
 0x600   : > { %v2641_v13 = vsel %vm1565_vm2, %v7817_v6, 0.0  ;;  %v7821_v5 = vpop.eup %6555 }
 0x601   : > { %3015 = vrot.lane.b32.xlu0 %v7346_v52, %s6793_s18  ;;  %v2638_v32 = vsel %vm1565_vm2, %v7821_v5, 0.0 }
 0x61a   : > { %2642 = vadd.xlane.f32.xlu1 %v2641_v13 }
 0x620   : > { %2639 = vadd.xlane.f32.xlu0 %v2638_v32 }
 0x627   : > { %v2550_v3 = vpop.xlane.xlu0 %2549 }
 0x628   : > { %v2592_v28 = vsub.f32 %v7735_v27, %v2550_v3 }
 0x62a   : > { %v2610_v16 = vmul.f32 1.442695, %v2592_v28 }
 0x62b   : > { %v2556_v48 = vpop.xlane.xlu0 %2555 }
 0x62c   : > { %6557 = vpow2.f32 %v2610_v16  ;;  %v2594_v50 = vsub.f32 %v7738_v43, %v2556_v48 }
 0x62d   : > { %v2559_v41 = vpop.xlane.xlu1 %2558 }
 0x62e   : > { %v2614_v30 = vmul.f32 1.442695, %v2594_v50  ;;  %v2595_v59 = vsub.f32 %v7743_v60, %v2559_v41 }
 0x62f   : > { %v2553_v38 = vpop.xlane.xlu0 %2552 }
 0x630   : > { %6559 = vpow2.f32 %v2614_v30  ;;  %v2593_v8 = vsub.f32 %v7746_v0, %v2553_v38  ;;  %v2616_v32 = vmul.f32 1.442695, %v2595_v59 }
 0x631   : > { %v2565_v13 = vpop.xlane.xlu1 %2564 }
 0x632   : > { %v2612_v62 = vmul.f32 1.442695, %v2593_v8  ;;  %v2597_v27 = vsub.f32 %v7753_v4, %v2565_v13 }
 0x633   : > { %v2728_v3 = vpop.permute.xlu0 %2727 }
 0x634   : > { %6561 = vpow2.f32 %v2612_v62  ;;  %6114 = vmatpush3.bf16.msra.mxu0 %v2728_v3  ;;  %v2620_v16 = vmul.f32 1.442695, %v2597_v27 }
 0x635   : > { %v2571_v28 = vpop.xlane.xlu1 %2570  ;;  %6125 = vmatprep.subr.bf16.mxu0 %v9062_v11  ;;  %6563 = vpow2.f32 %v2616_v32 }
 0x636   : > { %v7835_v43 = vpop.eup %6557  ;;  %v2599_v60 = vsub.f32 %v7758_v22, %v2571_v28  ;;  %6565 = vpow2.f32 %v2620_v16 }
 0x637   : > { %v2644_v0 = vsel %vm1565_vm2, %v7835_v43, 0.0 }
 0x638   : > { %2645 = vadd.xlane.f32.xlu0 %v2644_v0  ;;  %v2624_v4 = vmul.f32 1.442695, %v2599_v60 }
 0x639   : > { %v2577_v48 = vpop.xlane.xlu1 %2576 }
 0x63a   : > { %v7840_v50 = vpop.eup %6559  ;;  %v2601_v62 = vsub.f32 %v7765_v17, %v2577_v48  ;;  %6567 = vpow2.f32 %v2624_v4 }
 0x63b   : > { %v2650_v41 = vsel %vm1565_vm2, %v7840_v50, 0.0 }
 0x63c   : > { %2651 = vadd.xlane.f32.xlu0 %v2650_v41  ;;  %v2628_v22 = vmul.f32 1.442695, %v2601_v62 }
 0x63d   : > { %v2583_v30 = vpop.xlane.xlu1 %2582 }
 0x63e   : > { %v7845_v59 = vpop.eup %6561  ;;  %v2603_v38 = vsub.f32 %v7768_v58, %v2583_v30  ;;  %6569 = vpow2.f32 %v2628_v22 }
 0x63f   : > { %v2647_v8 = vsel %vm1565_vm2, %v7845_v59, 0.0  ;;  %v7850_v13 = vpop.eup %6563 }
 0x640   : > { %2648 = vadd.xlane.f32.xlu1 %v2647_v8  ;;  %v2632_v32 = vmul.f32 1.442695, %v2603_v38  ;;  %v2653_v17 = vsel %vm1565_vm2, %v7850_v13, 0.0  ;;  %v7854_v27 = vpop.eup %6565 }
 0x641   : > { %v2659_v3 = vsel %vm1565_vm2, %v7854_v27, 0.0 }
 0x642   : > { %6571 = vpow2.f32 %v2632_v32 }
 0x644   : > { %2654 = vadd.xlane.f32.xlu1 %v2653_v17  ;;  %v7858_v28 = vpop.eup %6567  ;;  %v7875_v17 = vpop.permute.xlu1 %2967 }
 0x645   : > { %v2665_v58 = vsel %vm1565_vm2, %v7858_v28, 0.0 }
 0x648   : > { %2660 = vadd.xlane.f32.xlu1 %v2659_v3  ;;  %v7862_v16 = vpop.eup %6569 }
 0x649   : > { %v2671_v60 = vsel %vm1565_vm2, %v7862_v16, 0.0 }
 0x64c   : > { %2666 = vadd.xlane.f32.xlu1 %v2665_v58  ;;  %v7866_v0 = vpop.eup %6571 }
 0x64d   : > { %v2677_v48 = vsel %vm1565_vm2, %v7866_v0, 0.0 }
 0x650   : > { %2672 = vadd.xlane.f32.xlu1 %v2671_v60 }
 0x654   : > { %2678 = vadd.xlane.f32.xlu1 %v2677_v48 }
 0x664   : > { %v2562_v4 = vpop.xlane.xlu0 %2561 }
 0x665   : > { %v2596_v62 = vsub.f32 %v7779_v15, %v2562_v4  ;;  %3212 = vrot.lane.b32.xlu1 %v7286_v53, %s6794_s19 }
 0x667   : > { %v2618_v41 = vmul.f32 1.442695, %v2596_v62 }
 0x668   : > { %v2568_v30 = vpop.xlane.xlu0 %2567 }
 0x669   : > { %6573 = vpow2.f32 %v2618_v41  ;;  %v2598_v22 = vsub.f32 %v7782_v34, %v2568_v30 }
 0x66b   : > { %v2622_v38 = vmul.f32 1.442695, %v2598_v22 }
 0x66c   : > { %v2574_v8 = vpop.xlane.xlu0 %2573 }
 0x66d   : > { %6575 = vpow2.f32 %v2622_v38  ;;  %v2600_v32 = vsub.f32 %v7787_v44, %v2574_v8 }
 0x66f   : > { %v2626_v3 = vmul.f32 1.442695, %v2600_v32 }
 0x670   : > { %v2580_v58 = vpop.xlane.xlu0 %2579 }
 0x671   : > { %6577 = vpow2.f32 %v2626_v3  ;;  %v2602_v15 = vsub.f32 %v7792_v21, %v2580_v58 }
 0x672   : > { %v2589_v60 = vpop.xlane.xlu1 %2588 }
 0x673   : > { %v7878_v48 = vpop.eup %6573  ;;  %v2630_v4 = vmul.f32 1.442695, %v2602_v15  ;;  %v2605_v62 = vsub.f32 %v7797_v1, %v2589_v60 }
 0x674   : > { %v2586_v41 = vpop.xlane.xlu0 %2585  ;;  %v2656_v34 = vsel %vm1565_vm2, %v7878_v48, 0.0 }
 0x675   : > { %6579 = vpow2.f32 %v2630_v4  ;;  %v2604_v44 = vsub.f32 %v7800_v39, %v2586_v41  ;;  %2657 = vadd.xlane.f32.xlu0 %v2656_v34  ;;  %v2636_v22 = vmul.f32 1.442695, %v2605_v62 }
 0x676   : > { %v7916_v62 = vpop.permute.xlu1 %3063 }
 0x677   : > { %v7884_v30 = vpop.eup %6575  ;;  %v2634_v38 = vmul.f32 1.442695, %v2604_v44 }
 0x678   : > { %v2662_v21 = vsel %vm1565_vm2, %v7884_v30, 0.0  ;;  %v2920_v4 = vpop.permute.xlu0 %2919 }
 0x679   : > { %6581 = vpow2.f32 %v2634_v38  ;;  %2663 = vadd.xlane.f32.xlu0 %v2662_v21 }
 0x67a   : > { %6583 = vpow2.f32 %v2636_v22 }
 0x67b   : > { %v7888_v8 = vpop.eup %6577 }
 0x67c   : > { %v2668_v1 = vsel %vm1565_vm2, %v7888_v8, 0.0  ;;  %v7922_v41 = vpop.permute.xlu0 %3015 }
 0x67d   : > { %2669 = vadd.xlane.f32.xlu0 %v2668_v1 }
 0x67f   : > { %v7892_v32 = vpop.eup %6579 }
 0x680   : > { %v2674_v39 = vsel %vm1565_vm2, %v7892_v32, 0.0 }
 0x681   : > { %2675 = vadd.xlane.f32.xlu0 %v2674_v39 }
 0x683   : > { %v7896_v3 = vpop.eup %6581 }
 0x684   : > { %v2680_v58 = vsel %vm1565_vm2, %v7896_v3, 0.0  ;;  %v7900_v15 = vpop.eup %6583 }
 0x685   : > { %2681 = vadd.xlane.f32.xlu0 %v2680_v58  ;;  %v2683_v60 = vsel %vm1565_vm2, %v7900_v15, 0.0 }
 0x689   : > { %2684 = vadd.xlane.f32.xlu1 %v2683_v60 }
 0x69a   : > { %3263 = vrot.lane.b32.xlu1 %v7309_v14, %s6794_s19 }
 0x69b   : > { %3161 = vrot.lane.b32.xlu0 %v7267_v37, %s6794_s19 }
 0x69e   : > { %3314 = vrot.lane.b32.xlu1 %v7332_v40, %s6794_s19 }
 0x69f   : > { %3159 = vrot.lane.b32.xlu0 %v7264_v35, %s6794_s19 }
 0x6a2   : > { %3365 = vrot.lane.b32.xlu1 %v7354_v33, %s6794_s19 }
 0x6a3   : > { %3210 = vrot.lane.b32.xlu0 %v7283_v63, %s6794_s19 }
 0x6a6   : > { %3416 = vrot.lane.b32.xlu1 %v7369_v20, %s6794_s19 }
 0x6a7   : > { %3261 = vrot.lane.b32.xlu0 %v7306_v31, %s6794_s19  ;;  %v2643_v34 = vpop.xlane.xlu1 %2642 }
 0x6a8   : > { %6585 = vrcp.f32 %v2643_v34 }
 0x6aa   : > { %3467 = vrot.lane.b32.xlu1 %v7384_v24, %s6794_s19 }
 0x6ab   : > { %3312 = vrot.lane.b32.xlu0 %v7329_v2, %s6794_s19 }
 0x6ad   : > { %v2640_v44 = vpop.xlane.xlu0 %2639 }
 0x6ae   : > { %6587 = vrcp.f32 %v2640_v44  ;;  %3518 = vrot.lane.b32.xlu1 %v7399_v54, %s6794_s19 }
 0x6af   : > { %3363 = vrot.lane.b32.xlu0 %v7352_v25, %s6794_s19 }
 0x6b2   : > { %3516 = vrot.lane.b32.xlu1 %v7397_v51, %s6794_s19  ;;  %v6586_v22 = vpop.eup %6585 }
 0x6b3   : > { %3414 = vrot.lane.b32.xlu0 %v7367_v12, %s6794_s19  ;;  %v2703_v21 = vmul.f32 %v6586_v22, %v7817_v6 }
 0x6b7   : > { %3465 = vrot.lane.b32.xlu0 %v7382_v23, %s6794_s19 }
 0x6b8   : > { %v6588_v38 = vpop.eup %6587 }
 0x6b9   : > { %v2702_v1 = vmul.f32 %v6588_v38, %v7821_v5 }
 0x6bb   : > { %v2718_v39 = vpack.c.bf16 %v2703_v21, %v2702_v1 }
 0x6bd   : > { %6116 = vmatmul.mubr.msk.bf16.vlgmr.msra.gmra.mrb[72].mxu0 %vm1565_vm2, %v2718_v39 }
 0x6be   : > { %6126 = vmatpush3.bf16.msra.mxu0 %v7825_v9  ;;  %6127 = vmatprep.mubr.msk.bf16.mxu0 %vm6792_vm0, %v9062_v11 }
 0x6bf   : > { %6137 = vmatprep.subr.bf16.mxu0 %v9062_v11 }
 0x6c5   : > { %v2646_v58 = vpop.xlane.xlu0 %2645 }
 0x6c6   : > { %6589 = vrcp.f32 %v2646_v58 }
 0x6c9   : > { %v2652_v60 = vpop.xlane.xlu0 %2651 }
 0x6cd   : > { %v2649_v34 = vpop.xlane.xlu1 %2648 }
 0x6ce   : > { %6591 = vrcp.f32 %v2649_v34 }
 0x6cf   : > { %6593 = vrcp.f32 %v2652_v60 }
 0x6d0   : > { %v6590_v6 = vpop.eup %6589 }
 0x6d1   : > { %v2655_v44 = vpop.xlane.xlu1 %2654  ;;  %v2704_v22 = vmul.f32 %v6590_v6, %v7835_v43 }
 0x6d2   : > { %6595 = vrcp.f32 %v2655_v44 }
 0x6d5   : > { %v2661_v43 = vpop.xlane.xlu1 %2660 }
 0x6d6   : > { %6597 = vrcp.f32 %v2661_v43 }
 0x6d8   : > { %v6592_v5 = vpop.eup %6591 }
 0x6d9   : > { %v2705_v38 = vmul.f32 %v6592_v5, %v7845_v59  ;;  %v6594_v9 = vpop.eup %6593 }
 0x6da   : > { %v2706_v39 = vmul.f32 %v6594_v9, %v7840_v50  ;;  %v2667_v50 = vpop.xlane.xlu1 %2666 }
 0x6db   : > { %v2719_v21 = vpack.c.bf16 %v2705_v38, %v2704_v22 }
 0x6dc   : > { %v6596_v1 = vpop.eup %6595 }
 0x6dd   : > { %v2707_v26 = vmul.f32 %v6596_v1, %v7850_v13  ;;  %6122 = vmatmul.mubr.msk.bf16.vlgmr.msra.gmra.mrb[72].mxu1 %vm1565_vm2, %v2719_v21 }
 0x6de   : > { %6132 = vmatpush3.bf16.msra.mxu1 %v7828_v7  ;;  %6133 = vmatprep.mubr.msk.bf16.mxu1 %vm6792_vm0, %v9062_v11  ;;  %v2673_v7 = vpop.xlane.xlu1 %2672 }
 0x6df   : > { %v2720_v58 = vpack.c.bf16 %v2707_v26, %v2706_v39  ;;  %6143 = vmatprep.subr.bf16.mxu1 %v9062_v11 }
 0x6e0   : > { %v6598_v34 = vpop.eup %6597 }
 0x6e1   : > { %6128 = vmatmul.mubr.msk.bf16.vlgmr.msra.gmra.mrb[76].mxu0 %vm1565_vm2, %v2720_v58  ;;  %v2709_v44 = vmul.f32 %v6598_v34, %v7854_v27 }
 0x6e2   : > { %6138 = vmatpush3.bf16.msra.mxu0 %v2920_v4  ;;  %6139 = vmatprep.mubr.msk.bf16.mxu0 %vm6792_vm0, %v9062_v11  ;;  %v2679_v26 = vpop.xlane.xlu1 %2678 }
 0x6e3   : > { %6149 = vmatprep.subr.bf16.mxu0 %v9062_v11 }
 0x6e6   : > { %v3213_v1 = vpop.permute.xlu1 %3212 }
 0x702   : > { %v2658_v59 = vpop.xlane.xlu0 %2657 }
 0x703   : > { %6599 = vrcp.f32 %v2658_v59 }
 0x704   : > { %6601 = vrcp.f32 %v2667_v50 }
 0x706   : > { %v2664_v13 = vpop.xlane.xlu0 %2663 }
 0x707   : > { %6603 = vrcp.f32 %v2664_v13 }
 0x708   : > { %6605 = vrcp.f32 %v2673_v7 }
 0x70a   : > { %v2670_v60 = vpop.xlane.xlu0 %2669 }
 0x70b   : > { %6607 = vrcp.f32 %v2670_v60 }
 0x70c   : > { %6609 = vrcp.f32 %v2679_v26 }
 0x70d   : > { %v6600_v4 = vpop.eup %6599 }
 0x70e   : > { %v2708_v6 = vmul.f32 %v6600_v4, %v7878_v48  ;;  %v2676_v5 = vpop.xlane.xlu0 %2675  ;;  %v6602_v22 = vpop.eup %6601 }
 0x70f   : > { %6611 = vrcp.f32 %v2676_v5  ;;  %v2711_v21 = vmul.f32 %v6602_v22, %v7858_v28  ;;  %v3218_v22 = vsel %vm1188_vm1, %v3213_v1, 0 }
 0x710   : > { %v2721_v38 = vpack.c.bf16 %v2709_v44, %v2708_v6 }
 0x711   : > { %v6604_v9 = vpop.eup %6603 }
 0x712   : > { %v2710_v39 = vmul.f32 %v6604_v9, %v7884_v30  ;;  %v2682_v58 = vpop.xlane.xlu0 %2681  ;;  %6134 = vmatmul.mubr.msk.bf16.vlgmr.msra.gmra.mrb[76].mxu1 %vm1565_vm2, %v2721_v38  ;;  %v6606_v43 = vpop.eup %6605 }
 0x713   : > { %6144 = vmatpush3.bf16.msra.mxu1 %v7875_v17  ;;  %6145 = vmatprep.mubr.msk.bf16.mxu1 %vm6792_vm0, %v9062_v11  ;;  %6613 = vrcp.f32 %v2682_v58  ;;  %v2713_v50 = vmul.f32 %v6606_v43, %v7862_v16 }
 0x714   : > { %v2722_v27 = vpack.c.bf16 %v2711_v21, %v2710_v39  ;;  %6155 = vmatprep.subr.bf16.mxu1 %v9062_v11 }
 0x715   : > { %v6608_v48 = vpop.eup %6607 }
 0x716   : > { %v2712_v28 = vmul.f32 %v6608_v48, %v7888_v8  ;;  %v3162_v59 = vpop.permute.xlu0 %3161  ;;  %6140 = vmatmul.mubr.msk.bf16.vlgmr.msra.gmra.mrb[80].mxu0 %vm1565_vm2, %v2722_v27  ;;  %v2685_v30 = vpop.xlane.xlu1 %2684 }
 0x717   : > { %v6610_v7 = vpop.eup %6609  ;;  %6150 = vmatpush3.bf16.msra.mxu0 %v7922_v41  ;;  %6615 = vrcp.f32 %v2685_v30  ;;  %6151 = vmatprep.mubr.msk.bf16.mxu0 %vm6792_vm0, %v9062_v11  ;;  %v3167_v4 = vsel %vm1188_vm1, %v3162_v59, 0 }
 0x718   : > { %v2723_v17 = vpack.c.bf16 %v2713_v50, %v2712_v28  ;;  %6161 = vmatprep.subr.bf16.mxu0 %v9062_v11  ;;  %v2715_v26 = vmul.f32 %v6610_v7, %v7866_v0 }
 0x719   : > { %v6612_v13 = vpop.eup %6611 }
 0x71a   : > { %v2714_v16 = vmul.f32 %v6612_v13, %v7892_v32  ;;  %v3160_v8 = vpop.permute.xlu0 %3159  ;;  %6146 = vmatmul.mubr.msk.bf16.vlgmr.msra.gmra.mrb[80].mxu1 %vm1565_vm2, %v2723_v17  ;;  %v3264_v41 = vpop.permute.xlu1 %3263 }
 0x71b   : > { %6156 = vmatpush3.bf16.msra.mxu1 %v7916_v62  ;;  %6157 = vmatprep.mubr.msk.bf16.mxu1 %vm6792_vm0, %v9062_v11  ;;  %v3269_v9 = vsel %vm1188_vm1, %v3264_v41, 0 }
 0x71c   : > { %v2724_v60 = vpack.c.bf16 %v2715_v26, %v2714_v16  ;;  %6167 = vmatprep.subr.bf16.mxu1 %v9062_v11 }
 0x71d   : > { %v6614_v34 = vpop.eup %6613 }
 0x71e   : > { %6152 = vmatmul.mubr.msk.bf16.vlgmr.msra.gmra.mrb[84].mxu0 %vm1565_vm2, %v2724_v60  ;;  %v3211_v0 = vpop.permute.xlu0 %3210  ;;  %v2716_v62 = vmul.f32 %v6614_v34, %v7896_v3  ;;  %v3315_v6 = vpop.permute.xlu1 %3314 }
 0x71f   : > { %6163 = vmatprep.mubr.msk.bf16.mxu0 %vm6792_vm0, %v9062_v11 }
 0x720   : > { %6162 = vmatpush3.bf16.xpose.msra.mxu0 %v3167_v4 }
 0x721   : > { %v6616_v32 = vpop.eup %6615  ;;  %6173 = vmatprep.subr.bf16.mxu0 %v9062_v11 }
 0x722   : > { %v2717_v44 = vmul.f32 %v6616_v32, %v7900_v15  ;;  %v3262_v38 = vpop.permute.xlu0 %3261  ;;  %v3366_v21 = vpop.permute.xlu1 %3365  ;;  %v3320_v15 = vsel %vm1188_vm1, %v3315_v6, 0 }
 0x723   : > { %v3371_v39 = vsel %vm1188_vm1, %v3366_v21, 0 }
 0x724   : > { %v2725_v5 = vpack.c.bf16 %v2717_v44, %v2716_v62 }
 0x726   : > { %6158 = vmatmul.mubr.msk.bf16.vlgmr.msra.gmra.mrb[84].mxu1 %vm1565_vm2, %v2725_v5  ;;  %v3313_v3 = vpop.permute.xlu0 %3312  ;;  %v3417_v1 = vpop.permute.xlu1 %3416 }
 0x727   : > { %6164 = vmatmul.mubr.msk.bf16.vlgmr.msra.gmra.mrb[88].mxu0 %vm1188_vm1, %v3160_v8  ;;  %6168 = vmatpush3.bf16.xpose.msra.mxu1 %v3218_v22  ;;  %v3422_v27 = vsel %vm1188_vm1, %v3417_v1, 0 }
 0x728   : > { %6174 = vmatpush3.bf16.xpose.msra.mxu0 %v3269_v9  ;;  %6169 = vmatprep.mubr.msk.bf16.mxu1 %vm6792_vm0, %v9062_v11 }
 0x729   : > { %6175 = vmatprep.mubr.msk.bf16.mxu0 %vm6792_vm0, %v9062_v11  ;;  %6179 = vmatprep.subr.bf16.mxu1 %v9062_v11 }
 0x72a   : > { %6185 = vmatprep.subr.bf16.mxu0 %v9062_v11  ;;  %v3364_v58 = vpop.permute.xlu0 %3363  ;;  %v3468_v43 = vpop.permute.xlu1 %3467 }
 0x72b   : > { %v3473_v48 = vsel %vm1188_vm1, %v3468_v43, 0 }
 0x72e   : > { %6170 = vmatmul.mubr.msk.bf16.vlgmr.msra.gmra.mrb[88].mxu1 %vm1188_vm1, %v3211_v0  ;;  %v3415_v50 = vpop.permute.xlu0 %3414  ;;  %v3519_v28 = vpop.permute.xlu1 %3518 }
 0x72f   : > { %6176 = vmatmul.mubr.msk.bf16.vlgmr.msra.gmra.mrb[92].mxu0 %vm1188_vm1, %v3262_v38  ;;  %6180 = vmatpush3.bf16.xpose.msra.mxu1 %v3320_v15  ;;  %v3524_v59 = vsel %vm1188_vm1, %v3519_v28, 0 }
 0x730   : > { %6186 = vmatpush3.bf16.xpose.msra.mxu0 %v3371_v39  ;;  %6181 = vmatprep.mubr.msk.bf16.mxu1 %vm6792_vm0, %v9062_v11 }
 0x731   : > { %6187 = vmatprep.mubr.msk.bf16.mxu0 %vm6792_vm0, %v9062_v11  ;;  %6191 = vmatprep.subr.bf16.mxu1 %v9062_v11 }
 0x732   : > { %6197 = vmatprep.subr.bf16.mxu0 %v9062_v11  ;;  %v3466_v30 = vpop.permute.xlu0 %3465  ;;  %v3517_v7 = vpop.permute.xlu1 %3516 }
 0x736   : > { %6182 = vmatmul.mubr.msk.bf16.vlgmr.msra.gmra.mrb[92].mxu1 %vm1188_vm1, %v3313_v3 }
 0x737   : > { %6188 = vmatmul.mubr.msk.bf16.vlgmr.msra.gmra.mrb[96].mxu0 %vm1188_vm1, %v3364_v58  ;;  %6192 = vmatpush3.bf16.xpose.msra.mxu1 %v3422_v27 }
 0x738   : > { %6198 = vmatpush3.bf16.xpose.msra.mxu0 %v3473_v48  ;;  %6193 = vmatprep.mubr.msk.bf16.mxu1 %vm6792_vm0, %v9062_v11 }
 0x739   : > { %6199 = vmatprep.mubr.msk.bf16.mxu0 %vm6792_vm0, %v9062_v11  ;;  %6203 = vmatprep.subr.bf16.mxu1 %v9062_v11 }
 0x73a   : > { %6209 = vmatprep.subr.bf16.mxu0 %v9062_v11 }
 0x73e   : > { %6194 = vmatmul.mubr.msk.bf16.vlgmr.msra.gmra.mrb[96].mxu1 %vm1188_vm1, %v3415_v50 }
 0x73f   : > { %6200 = vmatmul.mubr.msk.bf16.vlgmr.msra.gmra.mrb[100].mxu0 %vm1188_vm1, %v3466_v30  ;;  %6204 = vmatpush3.bf16.xpose.msra.mxu1 %v3524_v59 }
 0x740   : > { %6205 = vmatprep.mubr.msk.bf16.mxu1 %vm6792_vm0, %v9062_v11  ;;  %6215 = vmatprep.subr.bf16.mxu1 %v9062_v11 }
 0x741   : > { %6211 = vmatprep.mubr.msk.bf16.mxu0 %vm6792_vm0, %v9062_v11 }
 0x746   : > { %6206 = vmatmul.mubr.msk.bf16.vlgmr.msra.gmra.mrb[100].mxu1 %vm1188_vm1, %v3517_v7 }
 0x747   : > { %6217 = vmatprep.mubr.msk.bf16.mxu1 %vm6792_vm0, %v9062_v11 }
 0x790   : > { %v8029_v17 = vpop.f32.mrb[72].mxu0 }
 0x791   : > { %v6117_v13 = vpop.f32.mrb[73].mxu0 }
 0x792   : > { %v8031_v26 = vpop.f32.mrb[74].mxu0 }
 0x793   : > { %v6118_v8 = vpop.f32.mrb[75].mxu0 }
 0x7b0   : > { %v8035_v41 = vpop.f32.mrb[72].mxu1 }
 0x7b1   : > { %v6123_v60 = vpop.f32.mrb[73].mxu1 }
 0x7b2   : > { %v8037_v34 = vpop.f32.mrb[74].mxu1 }
 0x7b3   : > { %v6124_v0 = vpop.f32.mrb[75].mxu1 }
 0x7b4   : > { %v8041_v32 = vpop.f32.mrb[76].mxu0 }
 0x7b5   : > { %v6129_v62 = vpop.f32.mrb[77].mxu0 }
 0x7b6   : > { %v8043_v44 = vpop.f32.mrb[78].mxu0 }
 0x7b7   : > { %v6130_v5 = vpop.f32.mrb[79].mxu0 }
 0x7e5   : > { %v8047_v22 = vpop.f32.mrb[76].mxu1 }
 0x7e6   : > { %9063 = vst [vmem:[#allocation20_spill] sm:$0xff] %v8047_v22  ;;  %v6135_v38 = vpop.f32.mrb[77].mxu1 }
 0x7e7   : > { %v8049_v9 = vpop.f32.mrb[78].mxu1  ;;  %v8076_v38 = vld [vmem:[%s9008_s3] sm:$0xff] }
 0x7e8   : > { %9064 = vst [vmem:[#allocation21_spill] sm:$0xff] %v8049_v9  ;;  %v6136_v3 = vpop.f32.mrb[79].mxu1 }
 0x7e9   : > { %v8053_v15 = vpop.f32.mrb[80].mxu0 }
 0x7ea   : > { %9065 = vst [vmem:[#allocation22_spill] sm:$0xff] %v8053_v15  ;;  %v6141_v1 = vpop.f32.mrb[81].mxu0 }
 0x7eb   : > { %v8055_v39 = vpop.f32.mrb[82].mxu0 }
 0x7ec   : > { %9066 = vst [vmem:[#allocation23_spill] sm:$0xff] %v8055_v39  ;;  %v6142_v43 = vpop.f32.mrb[83].mxu0 }
 0x7ed   : > { %v8059_v27 = vpop.f32.mrb[80].mxu1 }
 0x7ee   : > { %9067 = vst [vmem:[#allocation24_spill] sm:$0xff] %v8059_v27  ;;  %v6147_v48 = vpop.f32.mrb[81].mxu1 }
 0x7ef   : > { %v8061_v50 = vpop.f32.mrb[82].mxu1 }
 0x7f0   : > { %9068 = vst [vmem:[#allocation25_spill] sm:$0xff] %v8061_v50  ;;  %v6148_v59 = vpop.f32.mrb[83].mxu1 }
 0x7f1   : > { %v8065_v30 = vpop.f32.mrb[84].mxu0 }
 0x7f2   : > { %9069 = vst [vmem:[#allocation26_spill] sm:$0xff] %v8065_v30  ;;  %v6153_v7 = vpop.f32.mrb[85].mxu0 }
 0x7f3   : > { %v8067_v13 = vpop.f32.mrb[86].mxu0 }
 0x7f4   : > { %9070 = vst [vmem:[#allocation27_spill] sm:$0xff] %v8067_v13  ;;  %v6154_v60 = vpop.f32.mrb[87].mxu0 }
 0x7f5   : > { %v8088_v60 = vld [vmem:[%s9008_s3 + $0x8] sm:$0xff] }
 0x7f9   : > { %v8071_v0 = vpop.f32.mrb[84].mxu1 }
 0x7fa   : > { %9071 = vst [vmem:[#allocation28_spill] sm:$0xff] %v8071_v0  ;;  %v3203_v62 = vpop.f32.mrb[88].mxu0  ;;  %v6159_v5 = vpop.f32.mrb[85].mxu1 }
 0x7fb   : > { %v8079_v3 = vadd.f32 %v8076_v38, %v3203_v62  ;;  %v6165_v1 = vpop.f32.mrb[89].mxu0  ;;  %v8081_v43 = vpop.f32.mrb[86].mxu1 }
 0x7fc   : > { %9072 = vst [vmem:[#allocation29_spill] sm:$0xff] %v8081_v43  ;;  %v3206_v59 = vpop.f32.mrb[90].mxu0  ;;  %v6160_v7 = vpop.f32.mrb[87].mxu1 }
 0x7fd   : > { %v8091_v5 = vadd.f32 %v8088_v60, %v3206_v59  ;;  %v6166_v8 = vpop.f32.mrb[91].mxu0  ;;  %v3567_v62 = vsel %vm1565_vm2, %v8079_v3, -inf }
 0x7fe   : > { %3568 = vmax.xlane.f32.xlu0 %v3567_v62 }
 0x7ff   : > { %v3570_v1 = vsel %vm1565_vm2, %v8091_v5, -inf }
 0x800   : > { %3571 = vmax.xlane.f32.xlu1 %v3570_v1 }
 0x801   : > { %v3254_v48 = vpop.f32.mrb[88].mxu1 }
 0x802   : > { %v8098_v7 = vadd.f32 %v8076_v38, %v3254_v48  ;;  %v3305_v28 = vpop.f32.mrb[92].mxu0  ;;  %v6171_v58 = vpop.f32.mrb[89].mxu1 }
 0x803   : > { %v6177_v21 = vpop.f32.mrb[93].mxu0  ;;  %v3257_v6 = vpop.f32.mrb[90].mxu1  ;;  %v8101_v59 = vadd.f32 %v8076_v38, %v3305_v28 }
 0x804   : > { %v3308_v8 = vpop.f32.mrb[94].mxu0  ;;  %v6172_v4 = vpop.f32.mrb[91].mxu1  ;;  %v3573_v62 = vsel %vm1565_vm2, %v8098_v7, -inf  ;;  %v8106_v1 = vadd.f32 %v8088_v60, %v3257_v6 }
 0x805   : > { %v6178_v16 = vpop.f32.mrb[95].mxu0  ;;  %3574 = vmax.xlane.f32.xlu0 %v3573_v62  ;;  %v3579_v48 = vsel %vm1565_vm2, %v8101_v59, -inf }
 0x806   : > { %v3576_v4 = vsel %vm1565_vm2, %v8106_v1, -inf }
 0x809   : > { %3580 = vmax.xlane.f32.xlu0 %v3579_v48  ;;  %v3356_v58 = vpop.f32.mrb[92].mxu1 }
 0x80a   : > { %v3407_v21 = vpop.f32.mrb[96].mxu0  ;;  %v6183_v29 = vpop.f32.mrb[93].mxu1 }
 0x80b   : > { %v6189_v42 = vpop.f32.mrb[97].mxu0  ;;  %v3359_v28 = vpop.f32.mrb[94].mxu1  ;;  %v8137_v43 = vadd.f32 %v8076_v38, %v3407_v21 }
 0x80c   : > { %v3410_v57 = vpop.f32.mrb[98].mxu0  ;;  %v6184_v61 = vpop.f32.mrb[95].mxu1 }
 0x80d   : > { %v6190_v55 = vpop.f32.mrb[99].mxu0  ;;  %3577 = vmax.xlane.f32.xlu0 %v3576_v4 }
 0x811   : > { %3798 = vrot.lane.b32.xlu1 %v7274_v46, %s6794_s19  ;;  %v3458_v16 = vpop.f32.mrb[96].mxu1 }
 0x812   : > { %v3509_v6 = vpop.f32.mrb[100].mxu0  ;;  %v6195_v62 = vpop.f32.mrb[97].mxu1 }
 0x813   : > { %v6201_v45 = vpop.f32.mrb[101].mxu0  ;;  %v3461_v48 = vpop.f32.mrb[98].mxu1  ;;  %v8121_v62 = vadd.f32 %v8088_v60, %v3308_v8 }
 0x814   : > { %v3512_v56 = vpop.f32.mrb[102].mxu0  ;;  %v6196_v0 = vpop.f32.mrb[99].mxu1  ;;  %v8124_v45 = vadd.f32 %v8088_v60, %v3359_v28  ;;  %v8142_v28 = vadd.f32 %v8088_v60, %v3461_v48  ;;  %v8157_v48 = vadd.f32 %v8076_v38, %v3509_v6 }
 0x815   : > { %3845 = vrot.lane.b32.xlu1 %v7300_v19, %s6794_s19  ;;  %v6202_v29 = vpop.f32.mrb[103].mxu0  ;;  %v3582_v0 = vsel %vm1565_vm2, %v8121_v62, -inf  ;;  %v8152_v21 = vadd.f32 %v8088_v60, %v3512_v56 }
 0x816   : > { %v8129_v29 = vadd.f32 %v8076_v38, %v3356_v58  ;;  %v3603_v56 = vsel %vm1565_vm2, %v8157_v48, -inf }
 0x818   : > { %v3585_v8 = vsel %vm1565_vm2, %v8129_v29, -inf }
 0x819   : > { %3892 = vrot.lane.b32.xlu1 %v7295_v18, %s6794_s19  ;;  %v3560_v61 = vpop.f32.mrb[100].mxu1 }
 0x81a   : > { %v6207_v55 = vpop.f32.mrb[101].mxu1 }
 0x81b   : > { %v3563_v42 = vpop.f32.mrb[102].mxu1  ;;  %v8132_v55 = vadd.f32 %v8088_v60, %v3410_v57  ;;  %v8147_v57 = vadd.f32 %v8076_v38, %v3458_v16  ;;  %v3606_v16 = vsel %vm1565_vm2, %v8152_v21, -inf }
 0x81c   : > { %v6208_v4 = vpop.f32.mrb[103].mxu1 }
 0x81d   : > { %v3588_v4 = vsel %vm1565_vm2, %v8124_v45, -inf  ;;  %v3594_v58 = vsel %vm1565_vm2, %v8132_v55, -inf }
 0x823   : > { %3751 = vrot.lane.b32.xlu0 %v7277_v36, %s6794_s19 }
 0x83d   : > { %3583 = vmax.xlane.f32.xlu1 %v3582_v0  ;;  %v3591_v0 = vsel %vm1565_vm2, %v8137_v43, -inf }
 0x841   : > { %3589 = vmax.xlane.f32.xlu1 %v3588_v4  ;;  %v3600_v4 = vsel %vm1565_vm2, %v8142_v28, -inf }
 0x842   : > { %3586 = vmax.xlane.f32.xlu0 %v3585_v8  ;;  %v3597_v8 = vsel %vm1565_vm2, %v8147_v57, -inf }
 0x845   : > { %3595 = vmax.xlane.f32.xlu1 %v3594_v58  ;;  %v8164_v58 = vadd.f32 %v8076_v38, %v3560_v61  ;;  %v8177_v61 = vadd.f32 %v8088_v60, %v3563_v42 }
 0x846   : > { %3592 = vmax.xlane.f32.xlu0 %v3591_v0 }
 0x847   : > { %v3609_v6 = vsel %vm1565_vm2, %v8164_v58, -inf  ;;  %v3612_v0 = vsel %vm1565_vm2, %v8177_v61, -inf }
 0x849   : > { %3601 = vmax.xlane.f32.xlu1 %v3600_v4 }
 0x84a   : > { %3598 = vmax.xlane.f32.xlu0 %v3597_v8 }
 0x84d   : > { %3607 = vmax.xlane.f32.xlu1 %v3606_v16 }
 0x84e   : > { %3604 = vmax.xlane.f32.xlu0 %v3603_v56 }
 0x852   : > { %3610 = vmax.xlane.f32.xlu0 %v3609_v6 }
 0x85e   : > { %3986 = vrot.lane.b32.xlu1 %v7318_v47, %s6794_s19 }
 0x868   : > { %3939 = vrot.lane.b32.xlu0 %v7323_v10, %s6794_s19 }
 0x86c   : > { %4033 = vrot.lane.b32.xlu0 %v7346_v52, %s6794_s19 }
 0x882   : > { %3613 = vmax.xlane.f32.xlu1 %v3612_v0 }
 0x88b   : > { %v3569_v4 = vpop.xlane.xlu0 %3568 }
 0x88c   : > { %v3615_v8 = vsub.f32 %v8079_v3, %v3569_v4 }
 0x88d   : > { %v3572_v16 = vpop.xlane.xlu1 %3571 }
 0x88e   : > { %v3631_v56 = vmul.f32 1.442695, %v3615_v8 }
 0x890   : > { %6617 = vpow2.f32 %v3631_v56 }
 0x891   : > { %v3799_v6 = vpop.permute.xlu1 %3798 }
 0x892   : > { %6216 = vmatpush3.bf16.msra.mxu1 %v3799_v6  ;;  %v3575_v30 = vpop.xlane.xlu0 %3574 }
 0x893   : > { %v3617_v13 = vsub.f32 %v8098_v7, %v3575_v30  ;;  %4080 = vrot.lane.b32.xlu1 %v7341_v49, %s6794_s19  ;;  %6227 = vmatprep.subr.bf16.mxu1 %v9062_v11 }
 0x895   : > { %v3635_v42 = vmul.f32 1.442695, %v3617_v13  ;;  %v3616_v13 = vsub.f32 %v8091_v5, %v3572_v16 }
 0x896   : > { %v3581_v27 = vpop.xlane.xlu0 %3580 }
 0x897   : > { %6619 = vpow2.f32 %v3635_v42  ;;  %v3619_v0 = vsub.f32 %v8101_v59, %v3581_v27  ;;  %v3633_v56 = vmul.f32 1.442695, %v3616_v13 }
 0x899   : > { %v3639_v50 = vmul.f32 1.442695, %v3619_v0 }
 0x89a   : > { %v8187_v3 = vpop.eup %6617  ;;  %v3578_v4 = vpop.xlane.xlu0 %3577 }
 0x89b   : > { %6621 = vpow2.f32 %v3639_v50  ;;  %v3663_v8 = vsel %vm1565_vm2, %v8187_v3, 0.0  ;;  %v3618_v50 = vsub.f32 %v8106_v1, %v3578_v4  ;;  %v8210_v1 = vpop.permute.xlu1 %3845 }
 0x89c   : > { %3664 = vadd.xlane.f32.xlu0 %v3663_v8  ;;  %6623 = vpow2.f32 %v3633_v56 }
 0x89d   : > { %v3637_v42 = vmul.f32 1.442695, %v3618_v50 }
 0x89e   : > { %v3752_v30 = vpop.permute.xlu0 %3751 }
 0x89f   : > { %6210 = vmatpush3.bf16.msra.mxu0 %v3752_v30  ;;  %6625 = vpow2.f32 %v3637_v42  ;;  %v8212_v4 = vpop.permute.xlu1 %3892 }
 0x8a0   : > { %6221 = vmatprep.subr.bf16.mxu0 %v9062_v11 }
 0x8a1   : > { %v8192_v7 = vpop.eup %6619 }
 0x8a2   : > { %v3669_v27 = vsel %vm1565_vm2, %v8192_v7, 0.0 }
 0x8a3   : > { %3670 = vadd.xlane.f32.xlu0 %v3669_v27 }
 0x8a5   : > { %v8197_v59 = vpop.eup %6621 }
 0x8a6   : > { %v3675_v6 = vsel %vm1565_vm2, %v8197_v59, 0.0  ;;  %v8202_v0 = vpop.eup %6623 }
 0x8a7   : > { %3676 = vadd.xlane.f32.xlu0 %v3675_v6  ;;  %v3666_v5 = vsel %vm1565_vm2, %v8202_v0, 0.0 }
 0x8a9   : > { %v8206_v16 = vpop.eup %6625 }
 0x8aa   : > { %v3672_v8 = vsel %vm1565_vm2, %v8206_v16, 0.0 }
 0x8b7   : > { %3667 = vadd.xlane.f32.xlu1 %v3666_v5 }
 0x8bb   : > { %3673 = vadd.xlane.f32.xlu1 %v3672_v8 }
 0x8ca   : > { %v3584_v30 = vpop.xlane.xlu1 %3583 }
 0x8cb   : > { %v3620_v13 = vsub.f32 %v8121_v62, %v3584_v30 }
 0x8cd   : > { %v3641_v27 = vmul.f32 1.442695, %v3620_v13 }
 0x8ce   : > { %v3590_v56 = vpop.xlane.xlu1 %3589 }
 0x8cf   : > { %6627 = vpow2.f32 %v3641_v27  ;;  %v3622_v50 = vsub.f32 %v8124_v45, %v3590_v56  ;;  %v3587_v6 = vpop.xlane.xlu0 %3586 }
 0x8d0   : > { %v3621_v42 = vsub.f32 %v8129_v29, %v3587_v6 }
 0x8d1   : > { %v3645_v5 = vmul.f32 1.442695, %v3622_v50 }
 0x8d2   : > { %v3643_v15 = vmul.f32 1.442695, %v3621_v42  ;;  %v3596_v39 = vpop.xlane.xlu1 %3595 }
 0x8d3   : > { %6629 = vpow2.f32 %v3645_v5  ;;  %v3624_v8 = vsub.f32 %v8132_v55, %v3596_v39  ;;  %v3593_v49 = vpop.xlane.xlu0 %3592 }
 0x8d4   : > { %6631 = vpow2.f32 %v3643_v15  ;;  %v3623_v22 = vsub.f32 %v8137_v43, %v3593_v49 }
 0x8d5   : > { %v3649_v9 = vmul.f32 1.442695, %v3624_v8 }
 0x8d6   : > { %v3647_v62 = vmul.f32 1.442695, %v3623_v22  ;;  %v3602_v30 = vpop.xlane.xlu1 %3601 }
 0x8d7   : > { %6633 = vpow2.f32 %v3649_v9  ;;  %v3626_v13 = vsub.f32 %v8142_v28, %v3602_v30  ;;  %v3599_v45 = vpop.xlane.xlu0 %3598 }
 0x8d8   : > { %6635 = vpow2.f32 %v3647_v62  ;;  %v3625_v29 = vsub.f32 %v8147_v57, %v3599_v45 }
 0x8d9   : > { %v8221_v27 = vpop.eup %6627  ;;  %v3653_v56 = vmul.f32 1.442695, %v3626_v13 }
 0x8da   : > { %v3651_v50 = vmul.f32 1.442695, %v3625_v29  ;;  %v3608_v6 = vpop.xlane.xlu1 %3607  ;;  %v3678_v15 = vsel %vm1565_vm2, %v8221_v27, 0.0 }
 0x8db   : > { %6637 = vpow2.f32 %v3653_v56  ;;  %v3628_v49 = vsub.f32 %v8152_v21, %v3608_v6  ;;  %3679 = vadd.xlane.f32.xlu1 %v3678_v15  ;;  %v3605_v22 = vpop.xlane.xlu0 %3604 }
 0x8dc   : > { %6639 = vpow2.f32 %v3651_v50  ;;  %v3627_v9 = vsub.f32 %v8157_v48, %v3605_v22 }
 0x8dd   : > { %v8227_v39 = vpop.eup %6629  ;;  %v3657_v43 = vmul.f32 1.442695, %v3628_v49 }
 0x8de   : > { %v8229_v55 = vpop.eup %6631  ;;  %v3655_v28 = vmul.f32 1.442695, %v3627_v9  ;;  %v3684_v57 = vsel %vm1565_vm2, %v8227_v39, 0.0 }
 0x8df   : > { %6641 = vpow2.f32 %v3657_v43  ;;  %3685 = vadd.xlane.f32.xlu1 %v3684_v57  ;;  %v3611_v42 = vpop.xlane.xlu0 %3610  ;;  %v3681_v21 = vsel %vm1565_vm2, %v8229_v55, 0.0  ;;  %v8270_v43 = vpop.permute.xlu1 %3986 }
 0x8e0   : > { %6643 = vpow2.f32 %v3655_v28  ;;  %v3629_v5 = vsub.f32 %v8164_v58, %v3611_v42  ;;  %3682 = vadd.xlane.f32.xlu0 %v3681_v21 }
 0x8e1   : > { %v8236_v48 = vpop.eup %6633 }
 0x8e2   : > { %v8238_v8 = vpop.eup %6635  ;;  %v3659_v62 = vmul.f32 1.442695, %v3629_v5  ;;  %v3690_v30 = vsel %vm1565_vm2, %v8236_v48, 0.0 }
 0x8e3   : > { %3691 = vadd.xlane.f32.xlu1 %v3690_v30  ;;  %v3687_v13 = vsel %vm1565_vm2, %v8238_v8, 0.0 }
 0x8e4   : > { %6645 = vpow2.f32 %v3659_v62  ;;  %3688 = vadd.xlane.f32.xlu0 %v3687_v13 }
 0x8e5   : > { %v8244_v45 = vpop.eup %6637 }
 0x8e6   : > { %v8246_v29 = vpop.eup %6639  ;;  %v3696_v58 = vsel %vm1565_vm2, %v8244_v45, 0.0 }
 0x8e7   : > { %3697 = vadd.xlane.f32.xlu1 %v3696_v58  ;;  %v3693_v56 = vsel %vm1565_vm2, %v8246_v29, 0.0 }
 0x8e8   : > { %3694 = vadd.xlane.f32.xlu0 %v3693_v56 }
 0x8e9   : > { %v8252_v50 = vpop.eup %6641 }
 0x8ea   : > { %v8254_v6 = vpop.eup %6643  ;;  %v3702_v15 = vsel %vm1565_vm2, %v8252_v50, 0.0 }
 0x8eb   : > { %3703 = vadd.xlane.f32.xlu1 %v3702_v15  ;;  %v3699_v49 = vsel %vm1565_vm2, %v8254_v6, 0.0 }
 0x8ec   : > { %3700 = vadd.xlane.f32.xlu0 %v3699_v49 }
 0x8ee   : > { %v8260_v22 = vpop.eup %6645 }
 0x8ef   : > { %v3705_v9 = vsel %vm1565_vm2, %v8260_v22, 0.0 }
 0x8f0   : > { %3706 = vadd.xlane.f32.xlu0 %v3705_v9 }
 0x8fc   : > { %4229 = vrot.lane.b32.xlu1 %v7286_v53, %s6795_s24 }
 0x906   : > { %4178 = vrot.lane.b32.xlu0 %v7267_v37, %s6795_s24 }
 0x90a   : > { %4176 = vrot.lane.b32.xlu0 %v7264_v35, %s6795_s24 }
 0x90e   : > { %4227 = vrot.lane.b32.xlu0 %v7283_v63, %s6795_s24  ;;  %v3940_v63 = vpop.permute.xlu0 %3939 }
 0x90f   : > { %v3614_v28 = vpop.xlane.xlu1 %3613 }
 0x910   : > { %v3630_v57 = vsub.f32 %v8177_v61, %v3614_v28 }
 0x912   : > { %v3661_v42 = vmul.f32 1.442695, %v3630_v57  ;;  %4278 = vrot.lane.b32.xlu0 %v7306_v31, %s6795_s24  ;;  %v8295_v53 = vpop.permute.xlu0 %4033 }
 0x913   : > { %v8299_v31 = vpop.permute.xlu1 %4080 }
 0x914   : > { %6647 = vpow2.f32 %v3661_v42 }
 0x916   : > { %4329 = vrot.lane.b32.xlu0 %v7329_v2, %s6795_s24 }
 0x91a   : > { %4380 = vrot.lane.b32.xlu0 %v7352_v25, %s6795_s24 }
 0x91e   : > { %v8281_v35 = vpop.eup %6647  ;;  %4431 = vrot.lane.b32.xlu0 %v7367_v12, %s6795_s24 }
 0x91f   : > { %v3708_v37 = vsel %vm1565_vm2, %v8281_v35, 0.0 }
 0x920   : > { %3709 = vadd.xlane.f32.xlu1 %v3708_v37 }
 0x922   : > { %4482 = vrot.lane.b32.xlu0 %v7382_v23, %s6795_s24 }
 0x929   : > { %v3665_v2 = vpop.xlane.xlu0 %3664 }
 0x92a   : > { %6649 = vrcp.f32 %v3665_v2 }
 0x931   : > { %4280 = vrot.lane.b32.xlu1 %v7309_v14, %s6795_s24  ;;  %v3671_v14 = vpop.xlane.xlu0 %3670 }
 0x935   : > { %4331 = vrot.lane.b32.xlu1 %v7332_v40, %s6795_s24 }
 0x939   : > { %4382 = vrot.lane.b32.xlu1 %v7354_v33, %s6795_s24  ;;  %v6650_v33 = vpop.eup %6649 }
 0x93d   : > { %4433 = vrot.lane.b32.xlu1 %v7369_v20, %s6795_s24  ;;  %v3727_v20 = vmul.f32 %v6650_v33, %v8187_v3 }
 0x941   : > { %4484 = vrot.lane.b32.xlu1 %v7384_v24, %s6795_s24 }
 0x944   : > { %v3668_v25 = vpop.xlane.xlu1 %3667 }
 0x945   : > { %6651 = vrcp.f32 %v3668_v25  ;;  %4535 = vrot.lane.b32.xlu1 %v7399_v54, %s6795_s24  ;;  %v3677_v54 = vpop.xlane.xlu0 %3676 }
 0x946   : > { %6653 = vrcp.f32 %v3671_v14 }
 0x948   : > { %v3674_v40 = vpop.xlane.xlu1 %3673 }
 0x949   : > { %6655 = vrcp.f32 %v3674_v40  ;;  %4533 = vrot.lane.b32.xlu1 %v7397_v51, %s6795_s24 }
 0x94a   : > { %6657 = vrcp.f32 %v3677_v54 }
 0x94f   : > { %v6652_v12 = vpop.eup %6651 }
 0x950   : > { %v3728_v23 = vmul.f32 %v6652_v12, %v8202_v0  ;;  %v6654_v24 = vpop.eup %6653 }
 0x951   : > { %v3729_v5 = vmul.f32 %v6654_v24, %v8192_v7 }
 0x952   : > { %v3743_v61 = vpack.c.bf16 %v3728_v23, %v3727_v20 }
 0x953   : > { %v6656_v21 = vpop.eup %6655 }
 0x954   : > { %v3730_v62 = vmul.f32 %v6656_v21, %v8206_v16  ;;  %6212 = vmatmul.mubr.msk.bf16.vlgmr.msra.gmra.mrb[104].mxu0 %vm1565_vm2, %v3743_v61 }
 0x955   : > { %6222 = vmatpush3.bf16.msra.mxu0 %v8210_v1  ;;  %6223 = vmatprep.mubr.msk.bf16.mxu0 %vm6792_vm0, %v9062_v11  ;;  %v6658_v1 = vpop.eup %6657 }
 0x956   : > { %v3744_v51 = vpack.c.bf16 %v3730_v62, %v3729_v5  ;;  %6233 = vmatprep.subr.bf16.mxu0 %v9062_v11 }
 0x958   : > { %6218 = vmatmul.mubr.msk.bf16.vlgmr.msra.gmra.mrb[104].mxu1 %vm1565_vm2, %v3744_v51 }
 0x959   : > { %6228 = vmatpush3.bf16.msra.mxu1 %v8212_v4  ;;  %6229 = vmatprep.mubr.msk.bf16.mxu1 %vm6792_vm0, %v9062_v11  ;;  %v3731_v4 = vmul.f32 %v6658_v1, %v8197_v59 }
 0x95a   : > { %6239 = vmatprep.subr.bf16.mxu1 %v9062_v11 }
 0x968   : > { %v3680_v3 = vpop.xlane.xlu1 %3679 }
 0x969   : > { %6659 = vrcp.f32 %v3680_v3 }
 0x96c   : > { %v3686_v7 = vpop.xlane.xlu1 %3685 }
 0x96d   : > { %6661 = vrcp.f32 %v3686_v7  ;;  %v3683_v0 = vpop.xlane.xlu0 %3682 }
 0x96e   : > { %6663 = vrcp.f32 %v3683_v0 }
 0x970   : > { %v3692_v16 = vpop.xlane.xlu1 %3691 }
 0x971   : > { %6665 = vrcp.f32 %v3692_v16  ;;  %v3689_v30 = vpop.xlane.xlu0 %3688 }
 0x972   : > { %6667 = vrcp.f32 %v3689_v30 }
 0x973   : > { %v6660_v13 = vpop.eup %6659 }
 0x974   : > { %v3732_v58 = vmul.f32 %v6660_v13, %v8221_v27  ;;  %v3698_v56 = vpop.xlane.xlu1 %3697 }
 0x975   : > { %6669 = vrcp.f32 %v3698_v56  ;;  %v3695_v15 = vpop.xlane.xlu0 %3694 }
 0x976   : > { %6671 = vrcp.f32 %v3695_v15  ;;  %v3745_v49 = vpack.c.bf16 %v3732_v58, %v3731_v4 }
 0x977   : > { %v6662_v9 = vpop.eup %6661 }
 0x978   : > { %v6664_v28 = vpop.eup %6663  ;;  %6224 = vmatmul.mubr.msk.bf16.vlgmr.msra.gmra.mrb[108].mxu0 %vm1565_vm2, %v3745_v49  ;;  %v3704_v57 = vpop.xlane.xlu1 %3703  ;;  %v3734_v42 = vmul.f32 %v6662_v9, %v8227_v39 }
 0x979   : > { %v3733_v37 = vmul.f32 %v6664_v28, %v8229_v55  ;;  %6234 = vmatpush3.bf16.msra.mxu0 %v3940_v63  ;;  %6673 = vrcp.f32 %v3704_v57  ;;  %v3701_v2 = vpop.xlane.xlu0 %3700  ;;  %6235 = vmatprep.mubr.msk.bf16.mxu0 %vm6792_vm0, %v9062_v11 }
 0x97a   : > { %6675 = vrcp.f32 %v3701_v2  ;;  %6245 = vmatprep.subr.bf16.mxu0 %v9062_v11 }
 0x97b   : > { %v6666_v59 = vpop.eup %6665  ;;  %v3746_v27 = vpack.c.bf16 %v3734_v42, %v3733_v37 }
 0x97c   : > { %v6668_v14 = vpop.eup %6667  ;;  %v3736_v25 = vmul.f32 %v6666_v59, %v8236_v48 }
 0x97d   : > { %v3735_v40 = vmul.f32 %v6668_v14, %v8238_v8  ;;  %6230 = vmatmul.mubr.msk.bf16.vlgmr.msra.gmra.mrb[108].mxu1 %vm1565_vm2, %v3746_v27  ;;  %v3707_v20 = vpop.xlane.xlu0 %3706 }
 0x97e   : > { %6240 = vmatpush3.bf16.msra.mxu1 %v8270_v43  ;;  %6241 = vmatprep.mubr.msk.bf16.mxu1 %vm6792_vm0, %v9062_v11  ;;  %6677 = vrcp.f32 %v3707_v20 }
 0x97f   : > { %v6670_v39 = vpop.eup %6669  ;;  %v3747_v55 = vpack.c.bf16 %v3736_v25, %v3735_v40  ;;  %6251 = vmatprep.subr.bf16.mxu1 %v9062_v11 }
 0x980   : > { %v6672_v63 = vpop.eup %6671  ;;  %v3738_v33 = vmul.f32 %v6670_v39, %v8244_v45 }
 0x981   : > { %v3737_v12 = vmul.f32 %v6672_v63, %v8246_v29  ;;  %6236 = vmatmul.mubr.msk.bf16.vlgmr.msra.gmra.mrb[112].mxu0 %vm1565_vm2, %v3747_v55  ;;  %v4179_v45 = vpop.permute.xlu0 %4178 }
 0x982   : > { %6246 = vmatpush3.bf16.msra.mxu0 %v8295_v53  ;;  %6247 = vmatprep.mubr.msk.bf16.mxu0 %vm6792_vm0, %v9062_v11  ;;  %v4184_v53 = vsel %vm1188_vm1, %v4179_v45, 0 }
 0x983   : > { %v6674_v48 = vpop.eup %6673  ;;  %v3748_v8 = vpack.c.bf16 %v3738_v33, %v3737_v12  ;;  %6257 = vmatprep.subr.bf16.mxu0 %v9062_v11 }
 0x984   : > { %v6676_v43 = vpop.eup %6675  ;;  %v3740_v23 = vmul.f32 %v6674_v48, %v8252_v50 }
 0x985   : > { %v3739_v24 = vmul.f32 %v6676_v43, %v8254_v6  ;;  %6242 = vmatmul.mubr.msk.bf16.vlgmr.msra.gmra.mrb[112].mxu1 %vm1565_vm2, %v3748_v8  ;;  %v4177_v50 = vpop.permute.xlu0 %4176  ;;  %v4230_v6 = vpop.permute.xlu1 %4229 }
 0x986   : > { %6252 = vmatpush3.bf16.msra.mxu1 %v8299_v31  ;;  %6253 = vmatprep.mubr.msk.bf16.mxu1 %vm6792_vm0, %v9062_v11  ;;  %v4235_v4 = vsel %vm1188_vm1, %v4230_v6, 0 }
 0x987   : > { %v3749_v29 = vpack.c.bf16 %v3740_v23, %v3739_v24  ;;  %6263 = vmatprep.subr.bf16.mxu1 %v9062_v11 }
 0x988   : > { %v6678_v54 = vpop.eup %6677 }
 0x989   : > { %6248 = vmatmul.mubr.msk.bf16.vlgmr.msra.gmra.mrb[116].mxu0 %vm1565_vm2, %v3749_v29  ;;  %v4228_v31 = vpop.permute.xlu0 %4227  ;;  %v3741_v0 = vmul.f32 %v6678_v54, %v8260_v22 }
 0x98a   : > { %6259 = vmatprep.mubr.msk.bf16.mxu0 %vm6792_vm0, %v9062_v11 }
 0x98b   : > { %6258 = vmatpush3.bf16.xpose.msra.mxu0 %v4184_v53 }
 0x98c   : > { %6269 = vmatprep.subr.bf16.mxu0 %v9062_v11 }
 0x98d   : > { %v4279_v21 = vpop.permute.xlu0 %4278 }
 0x991   : > { %v4330_v3 = vpop.permute.xlu0 %4329 }
 0x992   : > { %6260 = vmatmul.mubr.msk.bf16.vlgmr.msra.gmra.mrb[120].mxu0 %vm1188_vm1, %v4177_v50 }
 0x993   : > { %6271 = vmatprep.mubr.msk.bf16.mxu0 %vm6792_vm0, %v9062_v11 }
 0x995   : > { %v4381_v58 = vpop.permute.xlu0 %4380 }
 0x999   : > { %v4432_v15 = vpop.permute.xlu0 %4431 }
 0x99d   : > { %v4483_v9 = vpop.permute.xlu0 %4482 }
 0x9ad   : > { %v3710_v61 = vpop.xlane.xlu1 %3709 }
 0x9ae   : > { %6679 = vrcp.f32 %v3710_v61 }
 0x9b1   : > { %v4281_v5 = vpop.permute.xlu1 %4280 }
 0x9b2   : > { %v4286_v62 = vsel %vm1188_vm1, %v4281_v5, 0 }
 0x9b3   : > { %6270 = vmatpush3.bf16.xpose.msra.mxu0 %v4286_v62 }
 0x9b4   : > { %6281 = vmatprep.subr.bf16.mxu0 %v9062_v11 }
 0x9b5   : > { %v4332_v51 = vpop.permute.xlu1 %4331 }
 0x9b6   : > { %v4337_v49 = vsel %vm1188_vm1, %v4332_v51, 0 }
 0x9b8   : > { %v6680_v7 = vpop.eup %6679 }
 0x9b9   : > { %v3742_v16 = vmul.f32 %v6680_v7, %v8281_v35  ;;  %v4383_v1 = vpop.permute.xlu1 %4382 }
 0x9ba   : > { %v4388_v30 = vsel %vm1188_vm1, %v4383_v1, 0  ;;  %6272 = vmatmul.mubr.msk.bf16.vlgmr.msra.gmra.mrb[124].mxu0 %vm1188_vm1, %v4279_v21 }
 0x9bb   : > { %6282 = vmatpush3.bf16.xpose.msra.mxu0 %v4388_v30  ;;  %v3750_v13 = vpack.c.bf16 %v3742_v16, %v3741_v0  ;;  %6283 = vmatprep.mubr.msk.bf16.mxu0 %vm6792_vm0, %v9062_v11 }
 0x9bc   : > { %6293 = vmatprep.subr.bf16.mxu0 %v9062_v11 }
 0x9bd   : > { %6254 = vmatmul.mubr.msk.bf16.vlgmr.msra.gmra.mrb[116].mxu1 %vm1565_vm2, %v3750_v13  ;;  %v4434_v22 = vpop.permute.xlu1 %4433 }
 0x9be   : > { %6264 = vmatpush3.bf16.xpose.msra.mxu1 %v4235_v4  ;;  %6265 = vmatprep.mubr.msk.bf16.mxu1 %vm6792_vm0, %v9062_v11  ;;  %v4439_v28 = vsel %vm1188_vm1, %v4434_v22, 0 }
 0x9bf   : > { %6275 = vmatprep.subr.bf16.mxu1 %v9062_v11 }
 0x9c1   : > { %v4485_v35 = vpop.permute.xlu1 %4484 }
 0x9c2   : > { %v4490_v56 = vsel %vm1188_vm1, %v4485_v35, 0  ;;  %6284 = vmatmul.mubr.msk.bf16.vlgmr.msra.gmra.mrb[128].mxu0 %vm1188_vm1, %v4381_v58 }
 0x9c3   : > { %6294 = vmatpush3.bf16.xpose.msra.mxu0 %v4490_v56  ;;  %6295 = vmatprep.mubr.msk.bf16.mxu0 %vm6792_vm0, %v9062_v11 }
 0x9c4   : > { %6305 = vmatprep.subr.bf16.mxu0 %v9062_v11 }
 0x9c5   : > { %6266 = vmatmul.mubr.msk.bf16.vlgmr.msra.gmra.mrb[120].mxu1 %vm1188_vm1, %v4228_v31  ;;  %v4536_v57 = vpop.permute.xlu1 %4535 }
 0x9c6   : > { %6276 = vmatpush3.bf16.xpose.msra.mxu1 %v4337_v49  ;;  %6277 = vmatprep.mubr.msk.bf16.mxu1 %vm6792_vm0, %v9062_v11  ;;  %v4541_v42 = vsel %vm1188_vm1, %v4536_v57, 0 }
 0x9c7   : > { %6287 = vmatprep.subr.bf16.mxu1 %v9062_v11 }
 0x9c9   : > { %v4534_v37 = vpop.permute.xlu1 %4533 }
 0x9ca   : > { %6296 = vmatmul.mubr.msk.bf16.vlgmr.msra.gmra.mrb[132].mxu0 %vm1188_vm1, %v4483_v9 }
 0x9cb   : > { %6307 = vmatprep.mubr.msk.bf16.mxu0 %vm6792_vm0, %v9062_v11 }
 0x9cd   : > { %6278 = vmatmul.mubr.msk.bf16.vlgmr.msra.gmra.mrb[124].mxu1 %vm1188_vm1, %v4330_v3 }
 0x9ce   : > { %6288 = vmatpush3.bf16.xpose.msra.mxu1 %v4439_v28  ;;  %6289 = vmatprep.mubr.msk.bf16.mxu1 %vm6792_vm0, %v9062_v11 }
 0x9cf   : > { %6299 = vmatprep.subr.bf16.mxu1 %v9062_v11 }
 0x9d5   : > { %6290 = vmatmul.mubr.msk.bf16.vlgmr.msra.gmra.mrb[128].mxu1 %vm1188_vm1, %v4432_v15 }
 0x9d6   : > { %6300 = vmatpush3.bf16.xpose.msra.mxu1 %v4541_v42  ;;  %6301 = vmatprep.mubr.msk.bf16.mxu1 %vm6792_vm0, %v9062_v11 }
 0x9d7   : > { %6311 = vmatprep.subr.bf16.mxu1 %v9062_v11 }
 0x9dd   : > { %6302 = vmatmul.mubr.msk.bf16.vlgmr.msra.gmra.mrb[132].mxu1 %vm1188_vm1, %v4534_v37 }
 0x9de   : > { %6313 = vmatprep.mubr.msk.bf16.mxu1 %vm6792_vm0, %v9062_v11 }
 0xa27   : > { %v8398_v2 = vpop.f32.mrb[104].mxu0 }
 0xa28   : > { %v6213_v59 = vpop.f32.mrb[105].mxu0 }
 0xa29   : > { %v8400_v27 = vpop.f32.mrb[106].mxu0 }
 0xa2a   : > { %v4127_v14 = vpack.c.bf16 %v8400_v27, %v8398_v2  ;;  %v6214_v25 = vpop.f32.mrb[107].mxu0 }
 0xa2b   : > { %v8404_v40 = vpop.f32.mrb[104].mxu1 }
 0xa2c   : > { %v6219_v39 = vpop.f32.mrb[105].mxu1 }
 0xa2d   : > { %v8406_v55 = vpop.f32.mrb[106].mxu1 }
 0xa2e   : > { %v4128_v63 = vpack.c.bf16 %v8406_v55, %v8404_v40  ;;  %v6220_v33 = vpop.f32.mrb[107].mxu1  ;;  %v9081_v40 = vld [vmem:[#allocation22_spill] sm:$0xff] }
 0xa4b   : > { %v8410_v12 = vpop.f32.mrb[108].mxu0 }
 0xa4c   : > { %v6225_v20 = vpop.f32.mrb[109].mxu0 }
 0xa4d   : > { %v8412_v48 = vpop.f32.mrb[110].mxu0 }
 0xa4e   : > { %v4129_v8 = vpack.c.bf16 %v8412_v48, %v8410_v12  ;;  %v6226_v43 = vpop.f32.mrb[111].mxu0  ;;  %v9084_v12 = vld [vmem:[#allocation24_spill] sm:$0xff] }
 0xa50   : > { %v8416_v23 = vpop.f32.mrb[108].mxu1 }
 0xa51   : > { %v6231_v24 = vpop.f32.mrb[109].mxu1 }
 0xa52   : > { %v8418_v45 = vpop.f32.mrb[110].mxu1 }
 0xa53   : > { %v4130_v29 = vpack.c.bf16 %v8418_v45, %v8416_v23  ;;  %v6232_v53 = vpop.f32.mrb[111].mxu1 }
 0xa54   : > { %v8422_v50 = vpop.f32.mrb[112].mxu0 }
 0xa55   : > { %v6237_v6 = vpop.f32.mrb[113].mxu0 }
 0xa56   : > { %v8424_v31 = vpop.f32.mrb[114].mxu0 }
 0xa57   : > { %v4131_v61 = vpack.c.bf16 %v8424_v31, %v8422_v50  ;;  %v6238_v21 = vpop.f32.mrb[115].mxu0  ;;  %v9090_v50 = vld [vmem:[#allocation28_spill] sm:$0xff] }
 0xa58   : > { %v8428_v5 = vpop.f32.mrb[112].mxu1 }
 0xa59   : > { %v6243_v62 = vpop.f32.mrb[113].mxu1 }
 0xa5a   : > { %v8430_v51 = vpop.f32.mrb[114].mxu1 }
 0xa5b   : > { %v4132_v54 = vpack.c.bf16 %v8430_v51, %v8428_v5  ;;  %v6244_v3 = vpop.f32.mrb[115].mxu1 }
 0xa5c   : > { %v8434_v7 = vpop.f32.mrb[116].mxu0 }
 0xa5d   : > { %v6249_v0 = vpop.f32.mrb[117].mxu0 }
 0xa5e   : > { %v8436_v16 = vpop.f32.mrb[118].mxu0 }
 0xa5f   : > { %v4133_v1 = vpack.c.bf16 %v8436_v16, %v8434_v7  ;;  %v6250_v30 = vpop.f32.mrb[119].mxu0 }
 0xa65   : > { %v4220_v13 = vpop.f32.mrb[120].mxu0 }
 0xa66   : > { %v8441_v4 = vadd.f32 %v8076_v38, %v4220_v13  ;;  %v6261_v58 = vpop.f32.mrb[121].mxu0 }
 0xa67   : > { %v4223_v22 = vpop.f32.mrb[122].mxu0 }
 0xa68   : > { %v8444_v35 = vadd.f32 %v8088_v60, %v4223_v22  ;;  %v6262_v56 = vpop.f32.mrb[123].mxu0  ;;  %v4584_v15 = vsel %vm1565_vm2, %v8441_v4, -inf }
 0xa69   : > { %4585 = vmax.xlane.f32.xlu0 %v4584_v15 }
 0xa6a   : > { %v4587_v49 = vsel %vm1565_vm2, %v8444_v35, -inf }
 0xa6b   : > { %4588 = vmax.xlane.f32.xlu1 %v4587_v49 }
 0xa8d   : > { %v4322_v9 = vpop.f32.mrb[124].mxu0 }
 0xa8e   : > { %v6273_v28 = vpop.f32.mrb[125].mxu0  ;;  %v8470_v49 = vadd.f32 %v8076_v38, %v4322_v9 }
 0xa8f   : > { %v4325_v57 = vpop.f32.mrb[126].mxu0 }
 0xa90   : > { %v8451_v42 = vadd.f32 %v8088_v60, %v4325_v57  ;;  %v8453_v37 = vpop.f32.mrb[116].mxu1  ;;  %v6274_v59 = vpop.f32.mrb[127].mxu0  ;;  %v4596_v9 = vsel %vm1565_vm2, %v8470_v49, -inf }
 0xa91   : > { %v6255_v25 = vpop.f32.mrb[117].mxu1 }
 0xa92   : > { %v8455_v39 = vpop.f32.mrb[118].mxu1  ;;  %v4599_v33 = vsel %vm1565_vm2, %v8451_v42, -inf }
 0xa93   : > { %v4134_v20 = vpack.c.bf16 %v8455_v39, %v8453_v37  ;;  %4600 = vmax.xlane.f32.xlu1 %v4599_v33  ;;  %v6256_v43 = vpop.f32.mrb[119].mxu1 }
 0xa95   : > { %v4424_v24 = vpop.f32.mrb[128].mxu0 }
 0xa96   : > { %v6285_v53 = vpop.f32.mrb[129].mxu0 }
 0xa97   : > { %v4427_v6 = vpop.f32.mrb[130].mxu0 }
 0xa98   : > { %v4271_v21 = vpop.f32.mrb[120].mxu1  ;;  %v6286_v62 = vpop.f32.mrb[131].mxu0 }
 0xa99   : > { %v8462_v3 = vadd.f32 %v8076_v38, %v4271_v21  ;;  %v6267_v0 = vpop.f32.mrb[121].mxu1 }
 0xa9a   : > { %v4274_v30 = vpop.f32.mrb[122].mxu1  ;;  %v8483_v0 = vadd.f32 %v8088_v60, %v4427_v6 }
 0xa9b   : > { %v8465_v13 = vadd.f32 %v8088_v60, %v4274_v30  ;;  %v6268_v58 = vpop.f32.mrb[123].mxu1  ;;  %v4590_v22 = vsel %vm1565_vm2, %v8462_v3, -inf }
 0xa9c   : > { %4591 = vmax.xlane.f32.xlu0 %v4590_v22  ;;  %v8488_v58 = vadd.f32 %v8076_v38, %v4424_v24 }
 0xa9d   : > { %v4526_v56 = vpop.f32.mrb[132].mxu0  ;;  %v4593_v57 = vsel %vm1565_vm2, %v8465_v13, -inf }
 0xa9e   : > { %v6297_v15 = vpop.f32.mrb[133].mxu0  ;;  %v4608_v24 = vsel %vm1565_vm2, %v8488_v58, -inf }
 0xa9f   : > { %v4529_v28 = vpop.f32.mrb[134].mxu0 }
 0xaa0   : > { %v6298_v59 = vpop.f32.mrb[135].mxu0  ;;  %4594 = vmax.xlane.f32.xlu0 %v4593_v57  ;;  %v4373_v25 = vpop.f32.mrb[124].mxu1 }
 0xaa1   : > { %v6279_v33 = vpop.f32.mrb[125].mxu1  ;;  %v8475_v53 = vadd.f32 %v8076_v38, %v4373_v25  ;;  %v4611_v59 = vsel %vm1565_vm2, %v8483_v0, -inf }
 0xaa2   : > { %v4376_v43 = vpop.f32.mrb[126].mxu1 }
 0xaa3   : > { %v8478_v21 = vadd.f32 %v8088_v60, %v4376_v43  ;;  %v6280_v62 = vpop.f32.mrb[127].mxu1  ;;  %v4602_v22 = vsel %vm1565_vm2, %v8475_v53, -inf }
 0xaa4   : > { %4597 = vmax.xlane.f32.xlu0 %v4596_v9  ;;  %v8503_v62 = vadd.f32 %v8088_v60, %v4529_v28 }
 0xaa5   : > { %v4605_v30 = vsel %vm1565_vm2, %v8478_v21, -inf }
 0xaa6   : > { %4606 = vmax.xlane.f32.xlu1 %v4605_v30  ;;  %v8508_v30 = vadd.f32 %v8076_v38, %v4526_v56 }
 0xaa8   : > { %4603 = vmax.xlane.f32.xlu0 %v4602_v22  ;;  %v4475_v15 = vpop.f32.mrb[128].mxu1 }
 0xaa9   : > { %v6291_v57 = vpop.f32.mrb[129].mxu1  ;;  %v8495_v6 = vadd.f32 %v8076_v38, %v4475_v15 }
 0xaaa   : > { %4612 = vmax.xlane.f32.xlu1 %v4611_v59  ;;  %v4478_v25 = vpop.f32.mrb[130].mxu1  ;;  %v4623_v59 = vsel %vm1565_vm2, %v8503_v62, -inf }
 0xaab   : > { %v8498_v33 = vadd.f32 %v8088_v60, %v4478_v25  ;;  %v6292_v43 = vpop.f32.mrb[131].mxu1  ;;  %v4614_v22 = vsel %vm1565_vm2, %v8495_v6, -inf }
 0xaac   : > { %4609 = vmax.xlane.f32.xlu0 %v4608_v24  ;;  %v4620_v24 = vsel %vm1565_vm2, %v8508_v30, -inf }
 0xaad   : > { %v4617_v9 = vsel %vm1565_vm2, %v8498_v33, -inf }
 0xaae   : > { %4618 = vmax.xlane.f32.xlu1 %v4617_v9 }
 0xab0   : > { %4615 = vmax.xlane.f32.xlu0 %v4614_v22  ;;  %v4577_v15 = vpop.f32.mrb[132].mxu1 }
 0xab1   : > { %v6303_v57 = vpop.f32.mrb[133].mxu1  ;;  %v8515_v28 = vadd.f32 %v8076_v38, %v4577_v15 }
 0xab2   : > { %4624 = vmax.xlane.f32.xlu1 %v4623_v59  ;;  %v4580_v25 = vpop.f32.mrb[134].mxu1 }
 0xab3   : > { %v6304_v43 = vpop.f32.mrb[135].mxu1  ;;  %v4626_v56 = vsel %vm1565_vm2, %v8515_v28, -inf  ;;  %v8532_v38 = vadd.f32 %v8088_v60, %v4580_v25 }
 0xab4   : > { %4621 = vmax.xlane.f32.xlu0 %v4620_v24 }
 0xab5   : > { %v4629_v9 = vsel %vm1565_vm2, %v8532_v38, -inf }
 0xab8   : > { %4627 = vmax.xlane.f32.xlu0 %v4626_v56 }
 0xac3   : > { %4815 = vrot.lane.b32.xlu1 %v7274_v46, %s6795_s24 }
 0xac7   : > { %4862 = vrot.lane.b32.xlu1 %v7300_v19, %s6795_s24 }
 0xacb   : > { %4909 = vrot.lane.b32.xlu1 %v7295_v18, %s6795_s24 }
 0xace   : > { %4768 = vrot.lane.b32.xlu0 %v7277_v36, %s6795_s24 }
 0xad2   : > { %4956 = vrot.lane.b32.xlu0 %v7323_v10, %s6795_s24 }
 0xaef   : > { %4630 = vmax.xlane.f32.xlu1 %v4629_v9 }
 0xaf6   : > { %v4586_v46 = vpop.xlane.xlu0 %4585 }
 0xaf7   : > { %v4632_v22 = vsub.f32 %v8441_v4, %v4586_v46 }
 0xaf8   : > { %v4589_v10 = vpop.xlane.xlu1 %4588 }
 0xaf9   : > { %v4648_v19 = vmul.f32 1.442695, %v4632_v22  ;;  %v4633_v60 = vsub.f32 %v8444_v35, %v4589_v10 }
 0xafb   : > { %6681 = vpow2.f32 %v4648_v19  ;;  %v4650_v15 = vmul.f32 1.442695, %v4633_v60 }
 0xafd   : > { %6683 = vpow2.f32 %v4650_v15 }
 0xb00   : > { %5003 = vrot.lane.b32.xlu1 %v7318_v47, %s6795_s24 }
 0xb05   : > { %v8539_v18 = vpop.eup %6681 }
 0xb06   : > { %v4680_v36 = vsel %vm1565_vm2, %v8539_v18, 0.0 }
 0xb07   : > { %4681 = vadd.xlane.f32.xlu0 %v4680_v36  ;;  %v8544_v57 = vpop.eup %6683 }
 0xb08   : > { %v4683_v4 = vsel %vm1565_vm2, %v8544_v57, 0.0 }
 0xb20   : > { %v4601_v59 = vpop.xlane.xlu1 %4600 }
 0xb21   : > { %v4637_v43 = vsub.f32 %v8451_v42, %v4601_v59 }
 0xb23   : > { %v4658_v35 = vmul.f32 1.442695, %v4637_v43 }
 0xb24   : > { %4684 = vadd.xlane.f32.xlu1 %v4683_v4 }
 0xb29   : > { %v4592_v25 = vpop.xlane.xlu0 %4591 }
 0xb2a   : > { %v4634_v47 = vsub.f32 %v8462_v3, %v4592_v25 }
 0xb2c   : > { %v4652_v24 = vmul.f32 1.442695, %v4634_v47 }
 0xb2d   : > { %v4595_v56 = vpop.xlane.xlu0 %4594 }
 0xb2e   : > { %6685 = vpow2.f32 %v4652_v24  ;;  %v4635_v9 = vsub.f32 %v8465_v13, %v4595_v56 }
 0xb30   : > { %v4654_v46 = vmul.f32 1.442695, %v4635_v9 }
 0xb31   : > { %v4598_v22 = vpop.xlane.xlu0 %4597 }
 0xb32   : > { %6687 = vpow2.f32 %v4654_v46  ;;  %v4636_v19 = vsub.f32 %v8470_v49, %v4598_v22 }
 0xb33   : > { %v4607_v36 = vpop.xlane.xlu1 %4606  ;;  %6689 = vpow2.f32 %v4658_v35 }
 0xb34   : > { %v4656_v10 = vmul.f32 1.442695, %v4636_v19  ;;  %v4639_v60 = vsub.f32 %v8478_v21, %v4607_v36 }
 0xb35   : > { %v4604_v15 = vpop.xlane.xlu0 %4603 }
 0xb36   : > { %6691 = vpow2.f32 %v4656_v10  ;;  %v4662_v3 = vmul.f32 1.442695, %v4639_v60  ;;  %v4638_v42 = vsub.f32 %v8475_v53, %v4604_v15 }
 0xb37   : > { %v4613_v4 = vpop.xlane.xlu1 %4612 }
 0xb38   : > { %v8554_v59 = vpop.eup %6685  ;;  %6693 = vpow2.f32 %v4662_v3  ;;  %v4660_v13 = vmul.f32 1.442695, %v4638_v42  ;;  %v4641_v25 = vsub.f32 %v8483_v0, %v4613_v4 }
 0xb39   : > { %v4610_v47 = vpop.xlane.xlu0 %4609  ;;  %v4686_v49 = vsel %vm1565_vm2, %v8554_v59, 0.0 }
 0xb3a   : > { %6695 = vpow2.f32 %v4660_v13  ;;  %v4666_v43 = vmul.f32 1.442695, %v4641_v25  ;;  %v4640_v21 = vsub.f32 %v8488_v58, %v4610_v47  ;;  %4687 = vadd.xlane.f32.xlu0 %v4686_v49 }
 0xb3b   : > { %v4619_v24 = vpop.xlane.xlu1 %4618 }
 0xb3c   : > { %v8560_v56 = vpop.eup %6687  ;;  %v4664_v53 = vmul.f32 1.442695, %v4640_v21  ;;  %v4643_v9 = vsub.f32 %v8498_v33, %v4619_v24  ;;  %6697 = vpow2.f32 %v4666_v43 }
 0xb3d   : > { %v4616_v35 = vpop.xlane.xlu0 %4615  ;;  %v4689_v0 = vsel %vm1565_vm2, %v8560_v56, 0.0  ;;  %v8565_v46 = vpop.eup %6689 }
 0xb3e   : > { %6699 = vpow2.f32 %v4664_v53  ;;  %v4670_v22 = vmul.f32 1.442695, %v4643_v9  ;;  %v4642_v19 = vsub.f32 %v8495_v6, %v4616_v35  ;;  %4690 = vadd.xlane.f32.xlu1 %v4689_v0  ;;  %v4695_v3 = vsel %vm1565_vm2, %v8565_v46, 0.0 }
 0xb3f   : > { %v4625_v58 = vpop.xlane.xlu1 %4624 }
 0xb40   : > { %v8568_v36 = vpop.eup %6691  ;;  %v4668_v10 = vmul.f32 1.442695, %v4642_v19  ;;  %v4645_v60 = vsub.f32 %v8503_v62, %v4625_v58  ;;  %6701 = vpow2.f32 %v4670_v22 }
 0xb41   : > { %v4622_v33 = vpop.xlane.xlu0 %4621  ;;  %v4692_v15 = vsel %vm1565_vm2, %v8568_v36, 0.0 }
 0xb42   : > { %v8575_v42 = vpop.eup %6693  ;;  %6703 = vpow2.f32 %v4668_v10  ;;  %v4674_v4 = vmul.f32 1.442695, %v4645_v60  ;;  %v4644_v6 = vsub.f32 %v8508_v30, %v4622_v33  ;;  %4693 = vadd.xlane.f32.xlu0 %v4692_v15  ;;  %4696 = vadd.xlane.f32.xlu1 %v4695_v3 }
 0xb43   : > { %v4816_v13 = vpop.permute.xlu1 %4815  ;;  %v4701_v43 = vsel %vm1565_vm2, %v8575_v42, 0.0 }
 0xb44   : > { %v8578_v25 = vpop.eup %6695  ;;  %v4672_v62 = vmul.f32 1.442695, %v4644_v6  ;;  %6312 = vmatpush3.bf16.msra.mxu1 %v4816_v13  ;;  %6705 = vpow2.f32 %v4674_v4  ;;  %v9073_v6 = vpack.c.bf16 %v8031_v26, %v8029_v17 }
 0xb45   : > { %v4628_v47 = vpop.xlane.xlu0 %4627  ;;  %v4698_v49 = vsel %vm1565_vm2, %v8578_v25, 0.0  ;;  %6323 = vmatprep.subr.bf16.mxu1 %v9062_v11 }
 0xb46   : > { %6707 = vpow2.f32 %v4672_v62  ;;  %v4646_v30 = vsub.f32 %v8515_v28, %v4628_v47  ;;  %4699 = vadd.xlane.f32.xlu0 %v4698_v49  ;;  %4702 = vadd.xlane.f32.xlu1 %v4701_v43  ;;  %v8586_v21 = vpop.eup %6697  ;;  %v9074_v62 = vpack.c.bf16 %v8037_v34, %v8035_v41  ;;  %v9075_v41 = vpack.c.bf16 %v8043_v44, %v8041_v32  ;;  %v9076_v34 = vld [vmem:[#allocation21_spill] sm:$0xff]  ;;  %v9077_v49 = vld [vmem:[#allocation20_spill] sm:$0xff]  ;;  %v9079_v44 = vld [vmem:[#allocation19_spill] sm:$0xff] }
 0xb47   : > { %v4707_v0 = vsel %vm1565_vm2, %v8586_v21, 0.0  ;;  %v4863_v13 = vpop.permute.xlu1 %4862  ;;  %v9078_v2 = vpack.c.bf16 %v9076_v34, %v9077_v49  ;;  %v9087_v43 = vld [vmem:[#allocation26_spill] sm:$0xff] }
 0xb48   : > { %v8588_v24 = vpop.eup %6699  ;;  %v4676_v53 = vmul.f32 1.442695, %v4646_v30 }
 0xb49   : > { %v4769_v9 = vpop.permute.xlu0 %4768  ;;  %v4704_v35 = vsel %vm1565_vm2, %v8588_v24, 0.0 }
 0xb4a   : > { %6709 = vpow2.f32 %v4676_v53  ;;  %4705 = vadd.xlane.f32.xlu0 %v4704_v35  ;;  %6306 = vmatpush3.bf16.msra.mxu0 %v4769_v9  ;;  %v8594_v22 = vpop.eup %6701  ;;  %v9089_v53 = vld [vmem:[#allocation29_spill] sm:$0xff] }
 0xb4b   : > { %4708 = vadd.xlane.f32.xlu1 %v4707_v0  ;;  %6317 = vmatprep.subr.bf16.mxu0 %v9062_v11  ;;  %v4713_v58 = vsel %vm1565_vm2, %v8594_v22, 0.0  ;;  %v8625_v47 = vpop.permute.xlu1 %4909  ;;  %v9091_v31 = vpack.c.bf16 %v9089_v53, %v9090_v50 }
 0xb4c   : > { %v8597_v28 = vpop.eup %6703 }
 0xb4d   : > { %v4710_v19 = vsel %vm1565_vm2, %v8597_v28, 0.0 }
 0xb4e   : > { %4711 = vadd.xlane.f32.xlu0 %v4710_v19  ;;  %v8603_v10 = vpop.eup %6705 }
 0xb4f   : > { %4714 = vadd.xlane.f32.xlu1 %v4713_v58  ;;  %v4719_v15 = vsel %vm1565_vm2, %v8603_v10, 0.0 }
 0xb50   : > { %v8605_v60 = vpop.eup %6707 }
 0xb51   : > { %v4716_v33 = vsel %vm1565_vm2, %v8605_v60, 0.0 }
 0xb52   : > { %4717 = vadd.xlane.f32.xlu0 %v4716_v33 }
 0xb53   : > { %4720 = vadd.xlane.f32.xlu1 %v4719_v15 }
 0xb54   : > { %v8611_v3 = vpop.eup %6709 }
 0xb55   : > { %v4722_v4 = vsel %vm1565_vm2, %v8611_v3, 0.0 }
 0xb56   : > { %4723 = vadd.xlane.f32.xlu0 %v4722_v4 }
 0xb6c   : > { %5050 = vrot.lane.b32.xlu0 %v7346_v52, %s6795_s24 }
 0xb70   : > { %3126 = vrot.lane.b32.xlu0 %v9073_v6, %s6795_s24 }
 0xb74   : > { %3128 = vrot.lane.b32.xlu0 %v9074_v62, %s6795_s24 }
 0xb78   : > { %4143 = vrot.lane.b32.xlu0 %v4127_v14, %s6794_s19  ;;  %v9080_v14 = vld [vmem:[#allocation23_spill] sm:$0xff] }
 0xb79   : > { %v9082_v55 = vpack.c.bf16 %v9080_v14, %v9081_v40 }
 0xb7c   : > { %4145 = vrot.lane.b32.xlu0 %v4128_v63, %s6794_s19  ;;  %v4631_v52 = vpop.xlane.xlu1 %4630  ;;  %v9083_v63 = vld [vmem:[#allocation25_spill] sm:$0xff] }
 0xb7d   : > { %v4647_v17 = vsub.f32 %v8532_v38, %v4631_v52  ;;  %v9085_v48 = vpack.c.bf16 %v9083_v63, %v9084_v12  ;;  %v9086_v38 = vld [vmem:[#allocation27_spill] sm:$0xff] }
 0xb7e   : > { %v9088_v30 = vpack.c.bf16 %v9086_v38, %v9087_v43 }
 0xb7f   : > { %v4678_v26 = vmul.f32 1.442695, %v4647_v17 }
 0xb80   : > { %3130 = vrot.lane.b32.xlu0 %v9075_v41, %s6795_s24  ;;  %v8670_v23 = vpop.permute.xlu1 %5003 }
 0xb81   : > { %6711 = vpow2.f32 %v4678_v26 }
 0xb84   : > { %3132 = vrot.lane.b32.xlu0 %v9078_v2, %s6795_s24 }
 0xb88   : > { %4147 = vrot.lane.b32.xlu0 %v4129_v8, %s6794_s19  ;;  %v4957_v8 = vpop.permute.xlu0 %4956 }
 0xb8b   : > { %v8648_v27 = vpop.eup %6711 }
 0xb8c   : > { %4149 = vrot.lane.b32.xlu0 %v4130_v29, %s6794_s19  ;;  %v4725_v32 = vsel %vm1565_vm2, %v8648_v27, 0.0 }
 0xb8d   : > { %4726 = vadd.xlane.f32.xlu1 %v4725_v32 }
 0xb94   : > { %v4682_v45 = vpop.xlane.xlu0 %4681 }
 0xb95   : > { %6713 = vrcp.f32 %v4682_v45 }
 0xb9e   : > { %5097 = vrot.lane.b32.xlu1 %v9079_v44, %s6795_s24 }
 0xba2   : > { %3134 = vrot.lane.b32.xlu1 %v9082_v55, %s6795_s24 }
 0xba6   : > { %3136 = vrot.lane.b32.xlu1 %v9085_v48, %s6795_s24 }
 0xbaa   : > { %4151 = vrot.lane.b32.xlu1 %v4131_v61, %s6794_s19  ;;  %v6714_v61 = vpop.eup %6713 }
 0xbab   : > { %v4744_v51 = vmul.f32 %v6714_v61, %v8539_v18 }
 0xbae   : > { %4153 = vrot.lane.b32.xlu1 %v4132_v54, %s6794_s19 }
 0xbb1   : > { %v4685_v29 = vpop.xlane.xlu1 %4684 }
 0xbb2   : > { %6715 = vrcp.f32 %v4685_v29  ;;  %3138 = vrot.lane.b32.xlu1 %v9088_v30, %s6795_s24 }
 0xbb6   : > { %3140 = vrot.lane.b32.xlu1 %v9091_v31, %s6795_s24 }
 0xbba   : > { %4155 = vrot.lane.b32.xlu1 %v4133_v1, %s6794_s19 }
 0xbbc   : > { %v6716_v5 = vpop.eup %6715 }
 0xbbd   : > { %v4745_v54 = vmul.f32 %v6716_v5, %v8544_v57 }
 0xbbe   : > { %4157 = vrot.lane.b32.xlu1 %v4134_v20, %s6794_s19 }
 0xbbf   : > { %v4760_v9 = vpack.c.bf16 %v4745_v54, %v4744_v51 }
 0xbc1   : > { %6308 = vmatmul.mubr.msk.bf16.vlgmr.msra.gmra.mrb[136].mxu0 %vm1565_vm2, %v4760_v9 }
 0xbc2   : > { %6318 = vmatpush3.bf16.msra.mxu0 %v4863_v13  ;;  %6319 = vmatprep.mubr.msk.bf16.mxu0 %vm6792_vm0, %v9062_v11 }
 0xbc3   : > { %6329 = vmatprep.subr.bf16.mxu0 %v9062_v11 }
 0xbc7   : > { %v4688_v7 = vpop.xlane.xlu0 %4687 }
 0xbc8   : > { %6717 = vrcp.f32 %v4688_v7 }
 0xbcb   : > { %v4691_v16 = vpop.xlane.xlu1 %4690 }
 0xbcc   : > { %6719 = vrcp.f32 %v4691_v16 }
 0xbcf   : > { %v4694_v1 = vpop.xlane.xlu0 %4693  ;;  %v4697_v18 = vpop.xlane.xlu1 %4696 }
 0xbd0   : > { %6721 = vrcp.f32 %v4694_v1 }
 0xbd1   : > { %6723 = vrcp.f32 %v4697_v18  ;;  %v6449_v18 = vld [vmem:[%s9011_s6] sm:$0xff]  }
 0xbd2   : > { %v6718_v39 = vpop.eup %6717 }
 0xbd3   : > { %v4700_v57 = vpop.xlane.xlu0 %4699  ;;  %v4703_v37 = vpop.xlane.xlu1 %4702  ;;  %v4746_v35 = vmul.f32 %v6718_v39, %v8554_v59  ;;  %v6451_v39 = vld [vmem:[%s9011_s6 + $0x10] sm:$0xff]  }
 0xbd4   : > { %6725 = vrcp.f32 %v4700_v57  ;;  %v6450_v57 = vld [vmem:[%s9011_s6 + $0x8] sm:$0xff]  }
 0xbd5   : > { %6727 = vrcp.f32 %v4703_v37 }
 0xbd6   : > { %v6720_v20 = vpop.eup %6719 }
 0xbd7   : > { %v4747_v0 = vmul.f32 %v6720_v20, %v8560_v56  ;;  %v4706_v19 = vpop.xlane.xlu0 %4705  ;;  %v6452_v20 = vld [vmem:[%s9011_s6 + $0x18] sm:$0xff]  }
 0xbd8   : > { %6729 = vrcp.f32 %v4706_v19  ;;  %v4709_v58 = vpop.xlane.xlu1 %4708 }
 0xbd9   : > { %6731 = vrcp.f32 %v4709_v58  ;;  %v4761_v33 = vpack.c.bf16 %v4747_v0, %v4746_v35 }
 0xbda   : > { %v6722_v15 = vpop.eup %6721 }
 0xbdb   : > { %v6724_v4 = vpop.eup %6723  ;;  %v4748_v6 = vmul.f32 %v6722_v15, %v8568_v36  ;;  %v4712_v13 = vpop.xlane.xlu0 %4711  ;;  %6314 = vmatmul.mubr.msk.bf16.vlgmr.msra.gmra.mrb[136].mxu1 %vm1565_vm2, %v4761_v33  ;;  %v6453_v33 = vld [vmem:[%s9011_s6 + $0x20] sm:$0xff]   ;;  %v6454_v15 = vld [vmem:[%s9011_s6 + $0x28] sm:$0xff]  }
 0xbdc   : > { %v4749_v62 = vmul.f32 %v6724_v4, %v8565_v46  ;;  %6733 = vrcp.f32 %v4712_v13  ;;  %6324 = vmatpush3.bf16.msra.mxu1 %v8625_v47  ;;  %v4715_v59 = vpop.xlane.xlu1 %4714  ;;  %6325 = vmatprep.mubr.msk.bf16.mxu1 %vm6792_vm0, %v9062_v11  ;;  %v6455_v4 = vld [vmem:[%s9011_s6 + $0x30] sm:$0xff]  }
 0xbdd   : > { %6735 = vrcp.f32 %v4715_v59  ;;  %6335 = vmatprep.subr.bf16.mxu1 %v9062_v11 }
 0xbde   : > { %v6726_v56 = vpop.eup %6725  ;;  %v4762_v52 = vpack.c.bf16 %v4749_v62, %v4748_v6  ;;  %v6456_v6 = vld [vmem:[%s9011_s6 + $0x38] sm:$0xff]  }
 0xbdf   : > { %v6728_v17 = vpop.eup %6727  ;;  %v4750_v36 = vmul.f32 %v6726_v56, %v8578_v25  ;;  %v4718_v26 = vpop.xlane.xlu0 %4717 }
 0xbe0   : > { %v4751_v41 = vmul.f32 %v6728_v17, %v8575_v42  ;;  %6737 = vrcp.f32 %v4718_v26  ;;  %6320 = vmatmul.mubr.msk.bf16.vlgmr.msra.gmra.mrb[140].mxu0 %vm1565_vm2, %v4762_v52  ;;  %v4721_v46 = vpop.xlane.xlu1 %4720 }
 0xbe1   : > { %6330 = vmatpush3.bf16.msra.mxu0 %v4957_v8  ;;  %6739 = vrcp.f32 %v4721_v46  ;;  %6331 = vmatprep.mubr.msk.bf16.mxu0 %vm6792_vm0, %v9062_v11 }
 0xbe2   : > { %v6730_v47 = vpop.eup %6729  ;;  %v4763_v34 = vpack.c.bf16 %v4751_v41, %v4750_v36  ;;  %6341 = vmatprep.subr.bf16.mxu0 %v9062_v11 }
 0xbe3   : > { %v6732_v49 = vpop.eup %6731  ;;  %v4752_v2 = vmul.f32 %v6730_v47, %v8588_v24  ;;  %v4724_v25 = vpop.xlane.xlu0 %4723 }
 0xbe4   : > { %v4753_v32 = vmul.f32 %v6732_v49, %v8586_v21  ;;  %6326 = vmatmul.mubr.msk.bf16.vlgmr.msra.gmra.mrb[140].mxu1 %vm1565_vm2, %v4763_v34  ;;  %6741 = vrcp.f32 %v4724_v25 }
 0xbe5   : > { %6336 = vmatpush3.bf16.msra.mxu1 %v8670_v23  ;;  %6337 = vmatprep.mubr.msk.bf16.mxu1 %vm6792_vm0, %v9062_v11 }
 0xbe6   : > { %v6734_v42 = vpop.eup %6733  ;;  %v4764_v44 = vpack.c.bf16 %v4753_v32, %v4752_v2  ;;  %6347 = vmatprep.subr.bf16.mxu1 %v9062_v11 }
 0xbe7   : > { %v6736_v14 = vpop.eup %6735  ;;  %v4754_v40 = vmul.f32 %v6734_v42, %v8597_v28  ;;  %v5051_v55 = vpop.permute.xlu0 %5050 }
 0xbe8   : > { %v4755_v24 = vmul.f32 %v6736_v14, %v8594_v22  ;;  %6332 = vmatmul.mubr.msk.bf16.vlgmr.msra.gmra.mrb[144].mxu0 %vm1565_vm2, %v4764_v44 }
 0xbe9   : > { %6342 = vmatpush3.bf16.msra.mxu0 %v5051_v55  ;;  %6343 = vmatprep.mubr.msk.bf16.mxu0 %vm6792_vm0, %v9062_v11 }
 0xbea   : > { %v6738_v21 = vpop.eup %6737  ;;  %v4765_v63 = vpack.c.bf16 %v4755_v24, %v4754_v40  ;;  %6353 = vmatprep.subr.bf16.mxu0 %v6449_v18 }
 0xbeb   : > { %v6740_v12 = vpop.eup %6739  ;;  %v4756_v48 = vmul.f32 %v6738_v21, %v8605_v60  ;;  %v3127_v8 = vpop.permute.xlu0 %3126 }
 0xbec   : > { %v4757_v23 = vmul.f32 %v6740_v12, %v8603_v10  ;;  %3151 = vst.msk [vmem:[#allocation2] sm:$0xff] %vm3150_vm3, %v3127_v8  ;;  %6338 = vmatmul.mubr.msk.bf16.vlgmr.msra.gmra.mrb[144].mxu1 %vm1565_vm2, %v4765_v63 }
 0xbed   : > { %6349 = vmatprep.mubr.msk.bf16.mxu1 %vm6792_vm0, %v9062_v11 }
 0xbee   : > { %v4766_v22 = vpack.c.bf16 %v4757_v23, %v4756_v48  ;;  %v6742_v50 = vpop.eup %6741 }
 0xbef   : > { %v3129_v28 = vpop.permute.xlu0 %3128  ;;  %v4758_v61 = vmul.f32 %v6742_v50, %v8611_v3 }
 0xbf0   : > { %3152 = vst.msk [vmem:[#allocation2 + $0x8] sm:$0xff] %vm3150_vm3, %v3129_v28  ;;  %6344 = vmatmul.mubr.msk.bf16.vlgmr.msra.gmra.mrb[148].mxu0 %vm1565_vm2, %v4766_v22 }
 0xbf1   : > { %6354 = vmatpush3.bf16.msra.mxu0 %v6449_v18 }
 0xbf2   : > { %6355 = vmatprep.subr.bf16.mxu0 %v6450_v57 }
 0xbf3   : > { %v4144_v45 = vpop.permute.xlu0 %4143 }
 0xbf4   : > { %4168 = vst.msk [vmem:[#allocation2] sm:$0xff] %vm4167_vm4, %v4144_v45 }
 0xbf5   : > { %6356 = vmatpush3.bf16.msra.mxu0 %v6450_v57 }
 0xbf6   : > { %6357 = vmatprep.subr.bf16.mxu0 %v6451_v39 }
 0xbf7   : > { %v4146_v60 = vpop.permute.xlu0 %4145 }
 0xbf8   : > { %4169 = vst.msk [vmem:[#allocation2 + $0x8] sm:$0xff] %vm4167_vm4, %v4146_v60 }
 0xbf9   : > { %6358 = vmatpush3.bf16.msra.mxu0 %v6451_v39 }
 0xbfa   : > { %6359 = vmatprep.subr.bf16.mxu0 %v6452_v20 }
 0xbfb   : > { %v3131_v10 = vpop.permute.xlu0 %3130 }
 0xbfc   : > { %3153 = vst.msk [vmem:[#allocation2 + $0x10] sm:$0xff] %vm3150_vm3, %v3131_v10 }
 0xbfd   : > { %6360 = vmatpush3.bf16.msra.mxu0 %v6452_v20 }
 0xbfe   : > { %6361 = vmatprep.subr.bf16.mxu0 %v6453_v33 }
 0xbff   : > { %v3133_v29 = vpop.permute.xlu0 %3132 }
 0xc00   : > { %3154 = vst.msk [vmem:[#allocation2 + $0x18] sm:$0xff] %vm3150_vm3, %v3133_v29 }
 0xc01   : > { %6362 = vmatpush3.bf16.msra.mxu0 %v6453_v33 }
 0xc02   : > { %6363 = vmatprep.subr.bf16.mxu0 %v6454_v15 }
 0xc03   : > { %v4148_v11 = vpop.permute.xlu0 %4147 }
 0xc04   : > { %4170 = vst.msk [vmem:[#allocation2 + $0x10] sm:$0xff] %vm4167_vm4, %v4148_v11 }
 0xc05   : > { %6364 = vmatpush3.bf16.msra.mxu0 %v6454_v15 }
 0xc06   : > { %6365 = vmatprep.subr.bf16.mxu0 %v6455_v4 }
 0xc07   : > { %v4150_v38 = vpop.permute.xlu0 %4149 }
 0xc08   : > { %4171 = vst.msk [vmem:[#allocation2 + $0x18] sm:$0xff] %vm4167_vm4, %v4150_v38 }
 0xc09   : > { %6366 = vmatpush3.bf16.msra.mxu0 %v6455_v4 }
 0xc0a   : > { %6367 = vmatprep.subr.bf16.mxu0 %v6456_v6 }
 0xc0d   : > { %6368 = vmatpush3.bf16.msra.mxu0 %v6456_v6 }
 0xc1a   : > { %v4727_v43 = vpop.xlane.xlu1 %4726 }
 0xc1b   : > { %6743 = vrcp.f32 %v4727_v43 }
 0xc1e   : > { %v5098_v30 = vpop.permute.xlu1 %5097 }
 0xc1f   : > { %6348 = vmatpush3.bf16.msra.mxu1 %v5098_v30 }
 0xc20   : > { %6385 = vmatprep.subr.bf16.mxu1 %v6449_v18 }
 0xc22   : > { %v3135_v53 = vpop.permute.xlu1 %3134 }
 0xc23   : > { %3155 = vst.msk [vmem:[#allocation2 + $0x20] sm:$0xff] %vm3150_vm3, %v3135_v53 }
 0xc25   : > { %v6744_v31 = vpop.eup %6743 }
 0xc26   : > { %v4759_v5 = vmul.f32 %v6744_v31, %v8648_v27  ;;  %v3137_v51 = vpop.permute.xlu1 %3136 }
 0xc27   : > { %3156 = vst.msk [vmem:[#allocation2 + $0x28] sm:$0xff] %vm3150_vm3, %v3137_v51 }
 0xc28   : > { %v4767_v54 = vpack.c.bf16 %v4759_v5, %v4758_v61 }
 0xc2a   : > { %6350 = vmatmul.mubr.msk.bf16.vlgmr.msra.gmra.mrb[148].mxu1 %vm1565_vm2, %v4767_v54  ;;  %v4152_v9 = vpop.permute.xlu1 %4151 }
 0xc2b   : > { %4172 = vst.msk [vmem:[#allocation2 + $0x20] sm:$0xff] %vm4167_vm4, %v4152_v9  ;;  %6393 = vmatpush3.bf16.msra.mxu1 %v6449_v18  ;;  %v5764_v18 = vld [vmem:[%s9012_s7] ss:$0 sm:$0xff] }
 0xc2c   : > { %6386 = vmatprep.subr.bf16.mxu1 %v6450_v57 }
 0xc2e   : > { %v4154_v7 = vpop.permute.xlu1 %4153 }
 0xc2f   : > { %4173 = vst.msk [vmem:[#allocation2 + $0x28] sm:$0xff] %vm4167_vm4, %v4154_v7  ;;  %6394 = vmatpush3.bf16.msra.mxu1 %v6450_v57 }
 0xc30   : > { %6387 = vmatprep.subr.bf16.mxu1 %v6451_v39 }
 0xc32   : > { %v3139_v16 = vpop.permute.xlu1 %3138 }
 0xc33   : > { %3157 = vst.msk [vmem:[#allocation2 + $0x30] sm:$0xff] %vm3150_vm3, %v3139_v16  ;;  %6395 = vmatpush3.bf16.msra.mxu1 %v6451_v39 }
 0xc34   : > { %6388 = vmatprep.subr.bf16.mxu1 %v6452_v20 }
 0xc36   : > { %v3141_v1 = vpop.permute.xlu1 %3140 }
 0xc37   : > { %3158 = vst.msk [vmem:[#allocation2 + $0x38] sm:$0xff] %vm3150_vm3, %v3141_v1  ;;  %6396 = vmatpush3.bf16.msra.mxu1 %v6452_v20 }
 0xc38   : > { %6389 = vmatprep.subr.bf16.mxu1 %v6453_v33 }
 0xc3a   : > { %v4156_v3 = vpop.permute.xlu1 %4155 }
 0xc3b   : > { %4174 = vst.msk [vmem:[#allocation2 + $0x30] sm:$0xff] %vm4167_vm4, %v4156_v3  ;;  %6397 = vmatpush3.bf16.msra.mxu1 %v6453_v33 }
 0xc3c   : > { %6390 = vmatprep.subr.bf16.mxu1 %v6454_v15 }
 0xc3e   : > { %v4158_v27 = vpop.permute.xlu1 %4157 }
 0xc3f   : > { %4175 = vst.msk [vmem:[#allocation2 + $0x38] sm:$0xff] %vm4167_vm4, %v4158_v27  ;;  %6398 = vmatpush3.bf16.msra.mxu1 %v6454_v15  ;;  %v9093_v15 = vld [vmem:[#allocation4_spill] sm:$0xff] }
 0xc40   : > { %6391 = vmatprep.subr.bf16.mxu1 %v6455_v4 }
 0xc43   : > { %6399 = vmatpush3.bf16.msra.mxu1 %v6455_v4 }
 0xc44   : > { %6392 = vmatprep.subr.bf16.mxu1 %v6456_v6 }
 0xc47   : > { %6400 = vmatpush3.bf16.msra.mxu1 %v6456_v6  ;;  %v9094_v6 = vld [vmem:[#allocation3_spill] sm:$0xff] }
 0xc94   : > { %v4808_v37 = vpop.f32.mrb[136].mxu0 }
 0xc95   : > { %v6309_v35 = vpop.f32.mrb[137].mxu0 }
 0xc96   : > { %v4811_v0 = vpop.f32.mrb[138].mxu0  ;;  %v9092_v35 = vld [vmem:[#allocation5_spill] sm:$0xff] }
 0xc97   : > { %v5144_v19 = vpack.c.bf16 %v4811_v0, %v4808_v37  ;;  %v6310_v58 = vpop.f32.mrb[139].mxu0 }
 0xc99   : > { %5160 = vrot.lane.b32.xlu0 %v5144_v19, %s6793_s18 }
 0xcae   : > { %v4855_v13 = vpop.f32.mrb[136].mxu1 }
 0xcaf   : > { %v6315_v62 = vpop.f32.mrb[137].mxu1 }
 0xcb0   : > { %v4858_v59 = vpop.f32.mrb[138].mxu1 }
 0xcb1   : > { %v5145_v56 = vpack.c.bf16 %v4858_v59, %v4855_v13  ;;  %v6316_v52 = vpop.f32.mrb[139].mxu1 }
 0xcb2   : > { %v9095_v52 = vld [vmem:[#allocation6_spill] sm:$0xff] }
 0xcb3   : > { %v4902_v17 = vpop.f32.mrb[140].mxu0  ;;  %5162 = vrot.lane.b32.xlu0 %v5145_v56, %s6793_s18 }
 0xcb4   : > { %v6321_v36 = vpop.f32.mrb[141].mxu0 }
 0xcb5   : > { %v4905_v26 = vpop.f32.mrb[142].mxu0 }
 0xcb6   : > { %v5146_v41 = vpack.c.bf16 %v4905_v26, %v4902_v17  ;;  %v6322_v46 = vpop.f32.mrb[143].mxu0 }
 0xcb7   : > { %v4949_v47 = vpop.f32.mrb[140].mxu1 }
 0xcb8   : > { %5164 = vrot.lane.b32.xlu0 %v5146_v41, %s6793_s18  ;;  %v6327_v34 = vpop.f32.mrb[141].mxu1 }
 0xcb9   : > { %v4952_v49 = vpop.f32.mrb[142].mxu1 }
 0xcba   : > { %v5147_v2 = vpack.c.bf16 %v4952_v49, %v4949_v47  ;;  %v6328_v25 = vpop.f32.mrb[143].mxu1  ;;  %v9096_v47 = vld [vmem:[#allocation10_spill] sm:$0xff] }
 0xcbb   : > { %v4996_v32 = vpop.f32.mrb[144].mxu0 }
 0xcbc   : > { %v6333_v42 = vpop.f32.mrb[145].mxu0  ;;  %5166 = vrot.lane.b32.xlu0 %v5147_v2, %s6793_s18  ;;  %v9097_v2 = vld [vmem:[#allocation9_spill] sm:$0xff] }
 0xcbd   : > { %v4999_v44 = vpop.f32.mrb[146].mxu0 }
 0xcbe   : > { %v5148_v14 = vpack.c.bf16 %v4999_v44, %v4996_v32  ;;  %v6334_v40 = vpop.f32.mrb[147].mxu0  ;;  %v9098_v44 = vld [vmem:[#allocation8_spill] sm:$0xff] }
 0xcbf   : > { %v5043_v55 = vpop.f32.mrb[144].mxu1 }
 0xcc0   : > { %5168 = vrot.lane.b32.xlu1 %v5148_v14, %s6793_s18  ;;  %v6339_v24 = vpop.f32.mrb[145].mxu1 }
 0xcc1   : > { %v5046_v21 = vpop.f32.mrb[146].mxu1 }
 0xcc2   : > { %v5149_v63 = vpack.c.bf16 %v5046_v21, %v5043_v55  ;;  %v6340_v12 = vpop.f32.mrb[147].mxu1  ;;  %v9099_v55 = vld [vmem:[#allocation7_spill] sm:$0xff] }
 0xcc3   : > { %v5090_v48 = vpop.f32.mrb[148].mxu0 }
 0xcc4   : > { %v6345_v8 = vpop.f32.mrb[149].mxu0  ;;  %5170 = vrot.lane.b32.xlu1 %v5149_v63, %s6793_s18 }
 0xcc5   : > { %v5093_v23 = vpop.f32.mrb[150].mxu0  ;;  %v9100_v8 = vld [vmem:[#allocation14_spill] sm:$0xff] }
 0xcc6   : > { %v5150_v22 = vpack.c.bf16 %v5093_v23, %v5090_v48  ;;  %v6346_v28 = vpop.f32.mrb[151].mxu0 }
 0xcc7   : > { %v9101_v28 = vld [vmem:[#allocation13_spill] sm:$0xff] }
 0xcc8   : > { %5172 = vrot.lane.b32.xlu1 %v5150_v22, %s6793_s18 }
 0xcfd   : > { %v5137_v45 = vpop.f32.mrb[148].mxu1 }
 0xcfe   : > { %v6351_v60 = vpop.f32.mrb[149].mxu1 }
 0xcff   : > { %v5140_v10 = vpop.f32.mrb[150].mxu1 }
 0xd00   : > { %v5151_v29 = vpack.c.bf16 %v5140_v10, %v5137_v45  ;;  %v6352_v11 = vpop.f32.mrb[151].mxu1  ;;  %v9102_v10 = vld [vmem:[#allocation12_spill] sm:$0xff] }
 0xd01   : > { %v9103_v11 = vld [vmem:[#allocation11_spill] sm:$0xff] }
 0xd02   : > { %5174 = vrot.lane.b32.xlu1 %v5151_v29, %s6793_s18 }
 0xd0b   : > { %v5161_v38 = vpop.permute.xlu0 %5160 }
 0xd0c   : > { %5185 = vst.msk [vmem:[#allocation2] sm:$0xff] %vm5184_vm5, %v5161_v38 }
 0xd13   : > { %v5193_v43 = vld [vmem:[#allocation2] sm:$0xff] }
 0xd14   : > { %6369 = vmatprep.mubr.bf16.mxu0 %v5193_v43 }
 0xd25   : > { %v5163_v30 = vpop.permute.xlu0 %5162 }
 0xd26   : > { %5186 = vst.msk [vmem:[#allocation2 + $0x8] sm:$0xff] %vm5184_vm5, %v5163_v30 }
 0xd2a   : > { %v5165_v53 = vpop.permute.xlu0 %5164 }
 0xd2b   : > { %5187 = vst.msk [vmem:[#allocation2 + $0x10] sm:$0xff] %vm5184_vm5, %v5165_v53 }
 0xd2d   : > { %v5194_v50 = vld [vmem:[#allocation2 + $0x8] sm:$0xff] }
 0xd2e   : > { %v5167_v31 = vpop.permute.xlu0 %5166  ;;  %6370 = vmatmul.mubr.bf16.vlgmr.msra.gmra.mrb[152].mxu0 %v5194_v50 }
 0xd2f   : > { %5188 = vst.msk [vmem:[#allocation2 + $0x18] sm:$0xff] %vm5184_vm5, %v5167_v31 }
 0xd32   : > { %v5169_v61 = vpop.permute.xlu1 %5168  ;;  %v5195_v5 = vld [vmem:[#allocation2 + $0x10] sm:$0xff] }
 0xd33   : > { %5189 = vst.msk [vmem:[#allocation2 + $0x20] sm:$0xff] %vm5184_vm5, %v5169_v61  ;;  %6373 = vmatprep.mubr.bf16.mxu0 %v5195_v5  ;;  %v9104_v5 = vld [vmem:[#allocation15_spill] sm:$0xff] }
 0xd36   : > { %v5171_v51 = vpop.permute.xlu1 %5170  ;;  %v5196_v54 = vld [vmem:[#allocation2 + $0x18] sm:$0xff] }
 0xd37   : > { %5190 = vst.msk [vmem:[#allocation2 + $0x28] sm:$0xff] %vm5184_vm5, %v5171_v51  ;;  %6374 = vmatmul.mubr.bf16.gmra.mrb[156].mxu0 %v5196_v54 }
 0xd3a   : > { %v5173_v9 = vpop.permute.xlu1 %5172  ;;  %v5197_v7 = vld [vmem:[#allocation2 + $0x20] sm:$0xff] }
 0xd3b   : > { %5191 = vst.msk [vmem:[#allocation2 + $0x30] sm:$0xff] %vm5184_vm5, %v5173_v9  ;;  %6377 = vmatprep.mubr.bf16.mxu1 %v5197_v7  ;;  %v9105_v7 = vld [vmem:[#allocation16_spill] sm:$0xff] }
 0xd3e   : > { %v5198_v16 = vld [vmem:[#allocation2 + $0x28] sm:$0xff] }
 0xd3f   : > { %6378 = vmatmul.mubr.bf16.vlgmr.msra.gmra.mrb[152].mxu1 %v5198_v16 }
 0xd42   : > { %v5199_v1 = vld [vmem:[#allocation2 + $0x30] sm:$0xff] }
 0xd43   : > { %6381 = vmatprep.mubr.bf16.mxu1 %v5199_v1  ;;  %v9106_v1 = vld [vmem:[#allocation17_spill] sm:$0xff] }
 0xd74   : > { %v5175_v3 = vpop.permute.xlu1 %5174 }
 0xd75   : > { %5192 = vst.msk [vmem:[#allocation2 + $0x38] sm:$0xff] %vm5184_vm5, %v5175_v3 }
 0xd7c   : > { %v5200_v27 = vld [vmem:[#allocation2 + $0x38] sm:$0xff] }
 0xd7d   : > { %6382 = vmatmul.mubr.bf16.gmra.mrb[156].mxu1 %v5200_v27  ;;  %v9107_v27 = vld [vmem:[#allocation18_spill] sm:$0xff] }
 0xe01   : > { %v6371_v57 = vpop.f32.mrb[152].mxu0 }
 0xe02   : > { %v5298_v37 = vadd.f32 %v6371_v57, %v5764_v18  ;;  %v5289_v39 = vpop.f32.mrb[153].mxu0 }
 0xe03   : > { %v6372_v20 = vpop.f32.mrb[154].mxu0  ;;  %v5290_v19 = vadd.f32 %v5764_v18, %v5289_v39 }
 0xe04   : > { %v5354_v0 = vadd.f32 %v5298_v37, %v9092_v35  ;;  %v5292_v58 = vpop.f32.mrb[155].mxu0  ;;  %v5301_v62 = vadd.f32 %v6372_v20, %v5764_v18 }
 0xe05   : > { %v5293_v33 = vadd.f32 %v5764_v18, %v5292_v58  ;;  %v5352_v13 = vadd.f32 %v5290_v19, %v9094_v6 }
 0xe06   : > { %5372 = vadd.xlane.f32.xlu0 %v5354_v0  ;;  %v5355_v17 = vadd.f32 %v5301_v62, %v9095_v52 }
 0xe07   : > { %v8795_v4 = vadd.f32 %v5293_v33, %v9093_v15 }
 0xe09   : > { %5370 = vadd.xlane.f32.xlu1 %v8795_v4 }
 0xe0a   : > { %v6375_v59 = vpop.f32.mrb[156].mxu0  ;;  %5368 = vadd.xlane.f32.xlu0 %v5352_v13 }
 0xe0b   : > { %v5305_v56 = vpop.f32.mrb[157].mxu0  ;;  %v5314_v36 = vadd.f32 %v6375_v59, %v5764_v18 }
 0xe0c   : > { %v6376_v26 = vpop.f32.mrb[158].mxu0  ;;  %v5306_v32 = vadd.f32 %v5764_v18, %v5305_v56 }
 0xe0d   : > { %v5317_v41 = vadd.f32 %v6376_v26, %v5764_v18  ;;  %v5308_v46 = vpop.f32.mrb[159].mxu0  ;;  %v5358_v25 = vadd.f32 %v5314_v36, %v9097_v2 }
 0xe0e   : > { %5374 = vadd.xlane.f32.xlu0 %v5355_v17  ;;  %v5309_v49 = vadd.f32 %v5764_v18, %v5308_v46  ;;  %v8809_v24 = vadd.f32 %v5306_v32, %v9099_v55 }
 0xe0f   : > { %v8801_v34 = vadd.f32 %v5317_v41, %v9096_v47 }
 0xe10   : > { %v8806_v14 = vadd.f32 %v5309_v49, %v9098_v44 }
 0xe11   : > { %5382 = vadd.xlane.f32.xlu1 %v8801_v34 }
 0xe12   : > { %v6379_v42 = vpop.f32.mrb[152].mxu1  ;;  %5380 = vadd.xlane.f32.xlu0 %v5358_v25 }
 0xe13   : > { %v5321_v40 = vpop.f32.mrb[153].mxu1  ;;  %v5330_v21 = vadd.f32 %v6379_v42, %v5764_v18 }
 0xe14   : > { %v6380_v63 = vpop.f32.mrb[154].mxu1  ;;  %v5322_v60 = vadd.f32 %v5764_v18, %v5321_v40 }
 0xe15   : > { %v5333_v12 = vadd.f32 %v6380_v63, %v5764_v18  ;;  %5378 = vadd.xlane.f32.xlu1 %v8806_v14  ;;  %v5324_v48 = vpop.f32.mrb[155].mxu1  ;;  %v8817_v45 = vadd.f32 %v5330_v21, %v9101_v28 }
 0xe16   : > { %5376 = vadd.xlane.f32.xlu0 %v8809_v24  ;;  %v5325_v22 = vadd.f32 %v5764_v18, %v5324_v48  ;;  %v8825_v38 = vadd.f32 %v5322_v60, %v9103_v11 }
 0xe17   : > { %v8814_v23 = vadd.f32 %v5333_v12, %v9100_v8 }
 0xe18   : > { %v8822_v29 = vadd.f32 %v5325_v22, %v9102_v10 }
 0xe19   : > { %5390 = vadd.xlane.f32.xlu1 %v8814_v23 }
 0xe1a   : > { %5388 = vadd.xlane.f32.xlu0 %v8817_v45 }
 0xe1d   : > { %5386 = vadd.xlane.f32.xlu1 %v8822_v29 }
 0xe1e   : > { %5384 = vadd.xlane.f32.xlu0 %v8825_v38 }
 0xe50   : > { %v6383_v43 = vpop.f32.mrb[156].mxu1 }
 0xe51   : > { %v5337_v30 = vpop.f32.mrb[157].mxu1  ;;  %v5346_v61 = vadd.f32 %v6383_v43, %v5764_v18 }
 0xe52   : > { %v5338_v53 = vadd.f32 %v5764_v18, %v5337_v30  ;;  %v6384_v50 = vpop.f32.mrb[158].mxu1 }
 0xe53   : > { %v5340_v31 = vpop.f32.mrb[159].mxu1  ;;  %v5349_v9 = vadd.f32 %v6384_v50, %v5764_v18  ;;  %v8837_v3 = vadd.f32 %v5346_v61, %v9106_v1 }
 0xe54   : > { %v8830_v51 = vadd.f32 %v5338_v53, %v9104_v5  ;;  %v5341_v54 = vadd.f32 %v5764_v18, %v5340_v31 }
 0xe55   : > { %v8841_v57 = vadd.f32 %v5349_v9, %v9107_v27 }
 0xe56   : > { %v8833_v16 = vadd.f32 %v5341_v54, %v9105_v7  ;;  %5392 = vadd.xlane.f32.xlu0 %v8830_v51 }
 0xe58   : > { %5394 = vadd.xlane.f32.xlu1 %v8833_v16 }
 0xe5a   : > { %5396 = vadd.xlane.f32.xlu0 %v8837_v3 }
 0xe5c   : > { %5398 = vadd.xlane.f32.xlu1 %v8841_v57 }
 0xe93   : > { %v5373_v37 = vpop.xlane.xlu0 %5372 }
 0xe94   : > { %v5402_v39 = vmul.f32 0.0078125, %v5373_v37 }
 0xe96   : > { %v8845_v18 = vsub.f32 %v5354_v0, %v5402_v39  ;;  %v5371_v58 = vpop.xlane.xlu1 %5370 }
 0xe97   : > { %v5369_v20 = vpop.xlane.xlu0 %5368  ;;  %v5401_v6 = vmul.f32 0.0078125, %v5371_v58 }
 0xe98   : > { %v5400_v35 = vmul.f32 0.0078125, %v5369_v20  ;;  %v5434_v19 = vmul.f32 %v8845_v18, %v8845_v18 }
 0xe99   : > { %v8856_v36 = vsub.f32 %v8795_v4, %v5401_v6 }
 0xe9a   : > { %v8849_v33 = vsub.f32 %v5352_v13, %v5400_v35  ;;  %5452 = vadd.xlane.f32.xlu0 %v5434_v19 }
 0xe9b   : > { %v5375_v15 = vpop.xlane.xlu0 %5374  ;;  %v5433_v42 = vmul.f32 %v8856_v36, %v8856_v36 }
 0xe9c   : > { %v5403_v62 = vmul.f32 0.0078125, %v5375_v15  ;;  %v5432_v59 = vmul.f32 %v8849_v33, %v8849_v33 }
 0xe9e   : > { %v8853_v56 = vsub.f32 %v5355_v17, %v5403_v62  ;;  %v5383_v52 = vpop.xlane.xlu1 %5382  ;;  %5448 = vadd.xlane.f32.xlu0 %v5432_v59 }
 0xe9f   : > { %v5381_v0 = vpop.xlane.xlu0 %5380  ;;  %v5407_v26 = vmul.f32 0.0078125, %v5383_v52 }
 0xea0   : > { %v5406_v41 = vmul.f32 0.0078125, %v5381_v0  ;;  %v5435_v13 = vmul.f32 %v8853_v56, %v8853_v56 }
 0xea1   : > { %v8863_v17 = vsub.f32 %v8801_v34, %v5407_v26 }
 0xea2   : > { %v8860_v46 = vsub.f32 %v5358_v25, %v5406_v41  ;;  %v5379_v47 = vpop.xlane.xlu1 %5378  ;;  %5454 = vadd.xlane.f32.xlu1 %v5435_v13 }
 0xea3   : > { %v5405_v49 = vmul.f32 0.0078125, %v5379_v47  ;;  %v5377_v2 = vpop.xlane.xlu0 %5376  ;;  %v5439_v63 = vmul.f32 %v8863_v17, %v8863_v17 }
 0xea4   : > { %v5404_v32 = vmul.f32 0.0078125, %v5377_v2  ;;  %v5438_v4 = vmul.f32 %v8860_v46, %v8860_v46 }
 0xea5   : > { %v8873_v25 = vsub.f32 %v8806_v14, %v5405_v49 }
 0xea6   : > { %v8870_v44 = vsub.f32 %v8809_v24, %v5404_v32  ;;  %v5391_v40 = vpop.xlane.xlu1 %5390  ;;  %5450 = vadd.xlane.f32.xlu1 %v5433_v42  ;;  %5460 = vadd.xlane.f32.xlu0 %v5438_v4 }
 0xea7   : > { %v5389_v55 = vpop.xlane.xlu0 %5388  ;;  %v5411_v21 = vmul.f32 0.0078125, %v5391_v40  ;;  %v5437_v14 = vmul.f32 %v8873_v25, %v8873_v25  ;;  %v8925_v40 = vld [vmem:[%s9013_s8] ss:$0 sm:$0xff] }
 0xea8   : > { %v5410_v34 = vmul.f32 0.0078125, %v5389_v55  ;;  %v5436_v12 = vmul.f32 %v8870_v44, %v8870_v44 }
 0xea9   : > { %v8885_v22 = vsub.f32 %v8814_v23, %v5411_v21 }
 0xeaa   : > { %v8880_v48 = vsub.f32 %v8817_v45, %v5410_v34  ;;  %v5387_v24 = vpop.xlane.xlu1 %5386  ;;  %5462 = vadd.xlane.f32.xlu1 %v5439_v63  ;;  %5456 = vadd.xlane.f32.xlu0 %v5436_v12  ;;  %v8938_v63 = vld [vmem:[%s9014_s9] ss:$0 sm:$0xff] }
 0xeab   : > { %v5385_v8 = vpop.xlane.xlu0 %5384  ;;  %v5409_v28 = vmul.f32 0.0078125, %v5387_v24  ;;  %v5443_v43 = vmul.f32 %v8885_v22, %v8885_v22 }
 0xeac   : > { %v5408_v60 = vmul.f32 0.0078125, %v5385_v8  ;;  %v5442_v10 = vmul.f32 %v8880_v48, %v8880_v48 }
 0xead   : > { %v8893_v45 = vsub.f32 %v8822_v29, %v5409_v28 }
 0xeae   : > { %v8890_v11 = vsub.f32 %v8825_v38, %v5408_v60  ;;  %5458 = vadd.xlane.f32.xlu1 %v5437_v14  ;;  %5468 = vadd.xlane.f32.xlu0 %v5442_v10 }
 0xeaf   : > { %v5441_v30 = vmul.f32 %v8893_v45, %v8893_v45 }
 0xeb0   : > { %v5440_v23 = vmul.f32 %v8890_v11, %v8890_v11 }
 0xeb2   : > { %5470 = vadd.xlane.f32.xlu1 %v5443_v43  ;;  %5464 = vadd.xlane.f32.xlu0 %v5440_v23 }
 0xeb6   : > { %5466 = vadd.xlane.f32.xlu1 %v5441_v30 }
 0xee3   : > { %v5393_v53 = vpop.xlane.xlu0 %5392 }
 0xee4   : > { %v5412_v38 = vmul.f32 0.0078125, %v5393_v53 }
 0xee5   : > { %v5395_v50 = vpop.xlane.xlu1 %5394 }
 0xee6   : > { %v8902_v31 = vsub.f32 %v8830_v51, %v5412_v38  ;;  %v5413_v29 = vmul.f32 0.0078125, %v5395_v50 }
 0xee7   : > { %v5397_v61 = vpop.xlane.xlu0 %5396 }
 0xee8   : > { %v8905_v5 = vsub.f32 %v8833_v16, %v5413_v29  ;;  %v5414_v54 = vmul.f32 0.0078125, %v5397_v61  ;;  %v5444_v9 = vmul.f32 %v8902_v31, %v8902_v31 }
 0xee9   : > { %v5399_v7 = vpop.xlane.xlu1 %5398 }
 0xeea   : > { %v8910_v1 = vsub.f32 %v8837_v3, %v5414_v54  ;;  %v5415_v27 = vmul.f32 0.0078125, %v5399_v7  ;;  %5472 = vadd.xlane.f32.xlu0 %v5444_v9  ;;  %v5445_v37 = vmul.f32 %v8905_v5, %v8905_v5 }
 0xeec   : > { %v8915_v51 = vsub.f32 %v8841_v57, %v5415_v27  ;;  %5474 = vadd.xlane.f32.xlu1 %v5445_v37  ;;  %v5446_v16 = vmul.f32 %v8910_v1, %v8910_v1 }
 0xeee   : > { %5476 = vadd.xlane.f32.xlu0 %v5446_v16  ;;  %v5447_v39 = vmul.f32 %v8915_v51, %v8915_v51 }
 0xef0   : > { %5478 = vadd.xlane.f32.xlu1 %v5447_v39 }
 0xf27   : > { %v5453_v20 = vpop.xlane.xlu0 %5452 }
 0xf28   : > { %v5482_v3 = vmul.f32 0.0078125, %v5453_v20 }
 0xf2a   : > { %v5498_v35 = vadd.f32 1e-05, %v5482_v3 }
 0xf2b   : > { %v5449_v19 = vpop.xlane.xlu0 %5448 }
 0xf2c   : > { %6745 = vrsqrt.f32 %v5498_v35  ;;  %v5480_v58 = vmul.f32 0.0078125, %v5449_v19 }
 0xf2e   : > { %v5496_v15 = vadd.f32 1e-05, %v5480_v58 }
 0xf2f   : > { %v5455_v6 = vpop.xlane.xlu1 %5454 }
 0xf30   : > { %6747 = vrsqrt.f32 %v5496_v15  ;;  %v5483_v57 = vmul.f32 0.0078125, %v5455_v6 }
 0xf32   : > { %v5499_v62 = vadd.f32 1e-05, %v5483_v57 }
 0xf33   : > { %v5451_v59 = vpop.xlane.xlu1 %5450  ;;  %v5461_v52 = vpop.xlane.xlu0 %5460 }
 0xf34   : > { %6749 = vrsqrt.f32 %v5499_v62  ;;  %v5481_v0 = vmul.f32 0.0078125, %v5451_v59  ;;  %v5486_v26 = vmul.f32 0.0078125, %v5461_v52 }
 0xf36   : > { %v6746_v41 = vpop.eup %6745  ;;  %v5497_v13 = vadd.f32 1e-05, %v5481_v0  ;;  %v5502_v47 = vadd.f32 1e-05, %v5486_v26 }
 0xf37   : > { %v5530_v49 = vmul.f32 %v6746_v41, %v8845_v18  ;;  %v5463_v2 = vpop.xlane.xlu1 %5462  ;;  %v5457_v32 = vpop.xlane.xlu0 %5456 }
 0xf38   : > { %6751 = vrsqrt.f32 %v5497_v13  ;;  %v5487_v42 = vmul.f32 0.0078125, %v5463_v2  ;;  %v5484_v4 = vmul.f32 0.0078125, %v5457_v32 }
 0xf39   : > { %v5546_v55 = vmul.f32 %v8925_v40, %v5530_v49  ;;  %6753 = vrsqrt.f32 %v5502_v47 }
 0xf3a   : > { %v6748_v21 = vpop.eup %6747  ;;  %v5503_v18 = vadd.f32 1e-05, %v5487_v42  ;;  %v5500_v34 = vadd.f32 1e-05, %v5484_v4 }
 0xf3b   : > { %v5562_v12 = vadd.f32 %v8938_v63, %v5546_v55  ;;  %v5528_v24 = vmul.f32 %v6748_v21, %v8849_v33  ;;  %v5459_v8 = vpop.xlane.xlu1 %5458  ;;  %v5469_v14 = vpop.xlane.xlu0 %5468 }
 0xf3c   : > { %6755 = vrsqrt.f32 %v5503_v18  ;;  %v5485_v28 = vmul.f32 0.0078125, %v5459_v8  ;;  %v5490_v60 = vmul.f32 0.0078125, %v5469_v14 }
 0xf3d   : > { %5578 = vst [vmem:[%s8933_s30 + $0x10] sm:$0xff] %v5562_v12  ;;  %v5544_v10 = vmul.f32 %v8925_v40, %v5528_v24  ;;  %6757 = vrsqrt.f32 %v5500_v34 }
 0xf3e   : > { %v6750_v43 = vpop.eup %6749  ;;  %v5501_v23 = vadd.f32 1e-05, %v5485_v28  ;;  %v5506_v30 = vadd.f32 1e-05, %v5490_v60 }
 0xf3f   : > { %v5560_v53 = vadd.f32 %v8938_v63, %v5544_v10  ;;  %v5531_v38 = vmul.f32 %v6750_v43, %v8853_v56  ;;  %v5471_v50 = vpop.xlane.xlu1 %5470  ;;  %v5465_v29 = vpop.xlane.xlu0 %5464 }
 0xf40   : > { %6759 = vrsqrt.f32 %v5501_v23  ;;  %v5491_v33 = vmul.f32 0.0078125, %v5471_v50  ;;  %v5488_v61 = vmul.f32 0.0078125, %v5465_v29 }
 0xf41   : > { %5576 = vst [vmem:[%s8933_s30] sm:$0xff] %v5560_v53  ;;  %v5547_v54 = vmul.f32 %v8925_v40, %v5531_v38  ;;  %6761 = vrsqrt.f32 %v5506_v30 }
 0xf42   : > { %v6752_v9 = vpop.eup %6751  ;;  %v5507_v7 = vadd.f32 1e-05, %v5491_v33  ;;  %v5504_v27 = vadd.f32 1e-05, %v5488_v61 }
 0xf43   : > { %v6754_v37 = vpop.eup %6753  ;;  %v5563_v16 = vadd.f32 %v8938_v63, %v5547_v54  ;;  %v5529_v39 = vmul.f32 %v6752_v9, %v8856_v36  ;;  %v5467_v20 = vpop.xlane.xlu1 %5466 }
 0xf44   : > { %v5534_v56 = vmul.f32 %v6754_v37, %v8860_v46  ;;  %6763 = vrsqrt.f32 %v5507_v7  ;;  %v5489_v3 = vmul.f32 0.0078125, %v5467_v20 }
 0xf45   : > { %5579 = vst [vmem:[%s8933_s30 + $0x18] sm:$0xff] %v5563_v16  ;;  %v5545_v35 = vmul.f32 %v8925_v40, %v5529_v39  ;;  %6765 = vrsqrt.f32 %v5504_v27 }
 0xf46   : > { %v6756_v19 = vpop.eup %6755  ;;  %v5550_v58 = vmul.f32 %v8925_v40, %v5534_v56  ;;  %v5505_v15 = vadd.f32 1e-05, %v5489_v3 }
 0xf47   : > { %v6758_v6 = vpop.eup %6757  ;;  %v5561_v57 = vadd.f32 %v8938_v63, %v5545_v35  ;;  %v5535_v36 = vmul.f32 %v6756_v19, %v8863_v17 }
 0xf48   : > { %v5566_v62 = vadd.f32 %v8938_v63, %v5550_v58  ;;  %v5532_v46 = vmul.f32 %v6758_v6, %v8870_v44  ;;  %6767 = vrsqrt.f32 %v5505_v15 }
 0xf49   : > { %5577 = vst [vmem:[%s8933_s30 + $0x8] sm:$0xff] %v5561_v57  ;;  %v5551_v59 = vmul.f32 %v8925_v40, %v5535_v36 }
 0xf4a   : > { %v6760_v52 = vpop.eup %6759  ;;  %5582 = vst [vmem:[%s8933_s30 + $0x30] sm:$0xff] %v5566_v62  ;;  %v5548_v0 = vmul.f32 %v8925_v40, %v5532_v46 }
 0xf4b   : > { %v6762_v26 = vpop.eup %6761  ;;  %v5567_v41 = vadd.f32 %v8938_v63, %v5551_v59  ;;  %v5533_v13 = vmul.f32 %v6760_v52, %v8873_v25 }
 0xf4c   : > { %v5564_v17 = vadd.f32 %v8938_v63, %v5548_v0  ;;  %v5538_v47 = vmul.f32 %v6762_v26, %v8880_v48 }
 0xf4d   : > { %5583 = vst [vmem:[%s8933_s30 + $0x38] sm:$0xff] %v5567_v41  ;;  %v5549_v44 = vmul.f32 %v8925_v40, %v5533_v13 }
 0xf4e   : > { %v6764_v49 = vpop.eup %6763  ;;  %5580 = vst [vmem:[%s8933_s30 + $0x20] sm:$0xff] %v5564_v17  ;;  %v5554_v2 = vmul.f32 %v8925_v40, %v5538_v47 }
 0xf4f   : > { %v6766_v32 = vpop.eup %6765  ;;  %v5565_v42 = vadd.f32 %v8938_v63, %v5549_v44  ;;  %v5539_v25 = vmul.f32 %v6764_v49, %v8885_v22 }
 0xf50   : > { %v5570_v4 = vadd.f32 %v8938_v63, %v5554_v2  ;;  %v5536_v55 = vmul.f32 %v6766_v32, %v8890_v11 }
 0xf51   : > { %5581 = vst [vmem:[%s8933_s30 + $0x28] sm:$0xff] %v5565_v42  ;;  %v5555_v48 = vmul.f32 %v8925_v40, %v5539_v25 }
 0xf52   : > { %v6768_v21 = vpop.eup %6767  ;;  %5586 = vst [vmem:[%s8933_s30 + $0x50] sm:$0xff] %v5570_v4  ;;  %v5552_v18 = vmul.f32 %v8925_v40, %v5536_v55 }
 0xf53   : > { %v5571_v34 = vadd.f32 %v8938_v63, %v5555_v48  ;;  %v5537_v12 = vmul.f32 %v6768_v21, %v8893_v45 }
 0xf54   : > { %v5568_v24 = vadd.f32 %v8938_v63, %v5552_v18 }
 0xf55   : > { %5587 = vst [vmem:[%s8933_s30 + $0x58] sm:$0xff] %v5571_v34  ;;  %v5553_v22 = vmul.f32 %v8925_v40, %v5537_v12 }
 0xf56   : > { %5584 = vst [vmem:[%s8933_s30 + $0x40] sm:$0xff] %v5568_v24 }
 0xf57   : > { %v5569_v8 = vadd.f32 %v8938_v63, %v5553_v22 }
 0xf59   : > { %5585 = vst [vmem:[%s8933_s30 + $0x48] sm:$0xff] %v5569_v8 }
 0xf77   : > { %v5473_v11 = vpop.xlane.xlu0 %5472 }
 0xf78   : > { %v5492_v14 = vmul.f32 0.0078125, %v5473_v11 }
 0xf79   : > { %v5475_v28 = vpop.xlane.xlu1 %5474 }
 0xf7a   : > { %v5508_v60 = vadd.f32 1e-05, %v5492_v14  ;;  %v5493_v10 = vmul.f32 0.0078125, %v5475_v28 }
 0xf7b   : > { %v5477_v43 = vpop.xlane.xlu0 %5476 }
 0xf7c   : > { %6769 = vrsqrt.f32 %v5508_v60  ;;  %v5509_v23 = vadd.f32 1e-05, %v5493_v10  ;;  %v5494_v30 = vmul.f32 0.0078125, %v5477_v43 }
 0xf7d   : > { %v5479_v53 = vpop.xlane.xlu1 %5478 }
 0xf7e   : > { %6771 = vrsqrt.f32 %v5509_v23  ;;  %v5510_v45 = vadd.f32 1e-05, %v5494_v30  ;;  %v5495_v38 = vmul.f32 0.0078125, %v5479_v53 }
 0xf80   : > { %6773 = vrsqrt.f32 %v5510_v45  ;;  %v5511_v50 = vadd.f32 1e-05, %v5495_v38 }
 0xf82   : > { %6775 = vrsqrt.f32 %v5511_v50 }
 0xf86   : > { %v6770_v29 = vpop.eup %6769 }
 0xf87   : > { %v5540_v33 = vmul.f32 %v6770_v29, %v8902_v31 }
 0xf88   : > { %v6772_v61 = vpop.eup %6771 }
 0xf89   : > { %v5556_v54 = vmul.f32 %v8925_v40, %v5540_v33  ;;  %v5541_v9 = vmul.f32 %v6772_v61, %v8905_v5 }
 0xf8a   : > { %v6774_v7 = vpop.eup %6773 }
 0xf8b   : > { %v5572_v27 = vadd.f32 %v8938_v63, %v5556_v54  ;;  %v5557_v37 = vmul.f32 %v8925_v40, %v5541_v9  ;;  %v5542_v16 = vmul.f32 %v6774_v7, %v8910_v1 }
 0xf8c   : > { %v6776_v39 = vpop.eup %6775 }
 0xf8d   : > { %5588 = vst [vmem:[%s8933_s30 + $0x60] sm:$0xff] %v5572_v27  ;;  %v5573_v20 = vadd.f32 %v8938_v63, %v5557_v37  ;;  %v5558_v31 = vmul.f32 %v8925_v40, %v5542_v16  ;;  %v5543_v56 = vmul.f32 %v6776_v39, %v8915_v51 }
 0xf8f   : > { %5589 = vst [vmem:[%s8933_s30 + $0x68] sm:$0xff] %v5573_v20  ;;  %v5574_v3 = vadd.f32 %v8938_v63, %v5558_v31  ;;  %v5559_v5 = vmul.f32 %v8925_v40, %v5543_v56 }
 0xf91   : > { %5590 = vst [vmem:[%s8933_s30 + $0x70] sm:$0xff] %v5574_v3  ;;  %v5575_v35 = vadd.f32 %v8938_v63, %v5559_v5 }
 0xf93   : > { %5591 = vst [vmem:[%s8933_s30 + $0x78] sm:$0xff] %v5575_v35 }
 0xf94 PF: > { %s20_s13 = sadd.s32 1, %s6787_s13  }
 0xf95   : > { %p17_p5 = scmp.ge.s32.totalorder %s20_s13, 4  }
 0xf97   :  { %19 = sbr.rel (!%p17_p5) target bundleno = 1 (0x1), region = 93 }

// kernel: pairformer_block.3
= control target key start
LH: loop header
LB: loop body
LE: loop exit
PB: predicated region body
PF: predicated region fallthrough
CT: control target
= control target key end

     0   :  { %s7040_s13 = smov 0   ;;  %s9381_s0 = inlined_call_operand.vmem [shape: f32[16,16,128], index: 0, kind: input, shape index: {}, may-alias: {0,9}]   ;;  %s9382_s1 = inlined_call_operand.vmem [shape: f32[16,128], index: 1, kind: input, shape index: {}]   ;;  %s9383_s2 = inlined_call_operand.vmem [shape: f32[16,16], index: 2, kind: input, shape index: {}]   ;;  %s9384_s3 = inlined_call_operand.vmem [shape: bf16[128,384], index: 3, kind: input, shape index: {}]   ;;  %s9385_s4 = inlined_call_operand.vmem [shape: f32[1,384], index: 4, kind: input, shape index: {}]   ;;  %s9386_s5 = inlined_call_operand.vmem [shape: bf16[128,128], index: 5, kind: input, shape index: {}]   ;;  %s9387_s6 = inlined_call_operand.vmem [shape: f32[1,128], index: 6, kind: input, shape index: {}]   ;;  %s9388_s7 = inlined_call_operand.vmem [shape: f32[1,128], index: 7, kind: input, shape index: {}]   ;;  %s9389_s8 = inlined_call_operand.vmem [shape: f32[1,128], index: 8, kind: input, shape index: {}]   ;;  %s9390_s9 = inlined_call_operand.vmem [shape: f32[16,16,128], index: 9, kind: output, shape index: {0}, may-alias: {0,9}]   ;;  %s9391_s10 = inlined_call_operand.vmem [shape: f32[16,128], index: 10, kind: output, shape index: {1}]  }
   0x1 LB: > { %s5849_s14 = sadd.s32 4294967295, %s6976_s13   ;;  %p5853_p0 = scmp.ge.s32.totalorder %s6976_s13, 1  ;;  %s6976_s13 = sphi %s7040_s13, %s21_s13  }
   0x2   : > { %p312_p1 = scmp.lt.s32.totalorder %s6976_s13, 3 }
   0x4   : > { %p313_p2 = pnand %p5853_p0, %p312_p1 }
   0x6   : > { %316 = sbr.rel (%p313_p2) target bundleno = 4030 (0xfbe), region = 56 }
   0xd   : > { %s7050_s15 = sshll.u32 %s5849_s14, 3  ;;  %v388_v0 = vlaneseq  ;;  %v9397_v7 = vmov 0.0   ;;  %vm6980_vm1 = vmmov 0   ;;  %vm1248_vm2 = vcmask 261120   ;;  %s6981_s18 = smov 96  }
   0xe   : > { %v390_v1 = vstv %s7050_s15  ;;  %p353_p3 = scmp.lt.s32.totalorder %s7050_s15, 15  ;;  %vm1625_vm3 = vcmask 130048   ;;  %s6983_s24 = smov 32   ;;  %vm3210_vm4 = vcmask 523520   ;;  %vm4227_vm5 = vcmask 785920  }
   0xf   : > { %v7053_v2 = vshrl.u32 %v388_v0, 7  ;;  %v7055_v3 = vand.u32 127, %v388_v0  ;;  %vm5244_vm6 = vcmask 1048320   ;;  %p5961_p4 = scmp.ne.s32.totalorder %s5849_s14, 0 }
  0x10   : > { %s9515_s15 = smov (!%p353_p3, %s7050_s15), 15 }
  0x11   : > { %9433 = vst [vmem:[#allocation3_spill] sm:$0xff] %v7053_v2  ;;  %9434 = vst [vmem:[#allocation4_spill] sm:$0xff] %v7055_v3  ;;  %v7058_v4 = vadd.s32 %v390_v1, %v7053_v2  ;;  %v7061_v5 = vsub.s32 1, %v7053_v2  ;;  %v7064_v6 = vsub.s32 0, %v7053_v2  ;;  %v7072_v11 = vsub.s32 2, %v7053_v2  ;;  %s5965_s16 = sshll.u32 %s9515_s15, 4 }
  0x12   : > { %v9396_v12 = vsub.s32 3, %v7053_v2  ;;  %v9395_v15 = vsub.s32 4, %v7053_v2  ;;  %v9394_v16 = vsub.s32 5, %v7053_v2  ;;  %v9393_v19 = vsub.s32 6, %v7053_v2  ;;  %s7100_s19 = scalar_lea.vmem %s9381_s0, %s5965_s16  ;;  %s9209_s11 = scalar_lea.vmem %s9390_s9, %s5965_s16 }
  0x13   : > { %9435 = vst [vmem:[#allocation5_spill] sm:$0xff] %v7058_v4  ;;  %9436 = vst [vmem:[#allocation6_spill] sm:$0xff] %v7061_v5  ;;  %vm394_vm0 = vcmp.lt.s32.totalorder %v7055_v3, %v7058_v4  ;;  %v9392_v21 = vsub.s32 7, %v7053_v2  ;;  %v7103_v24 = vld [vmem:[%s7100_s19 + $0x10] sm:$0xff]  ;;  %v7106_v26 = vld [vmem:[%s7100_s19] sm:$0xff] }
  0x14   : > { %9437 = vst [vmem:[#allocation7_spill] sm:$0xff] %v7064_v6  ;;  %v5861_v8 = vsel %vm394_vm0, 1.0, %v9397_v7  ;;  %9438 = vst [vmem:[#allocation8_spill] sm:$0xff] %v7072_v11  ;;  %v7109_v27 = vld [vmem:[%s7100_s19 + $0x18] sm:$0xff]  ;;  %v7112_v28 = vld [vmem:[%s7100_s19 + $0x8] sm:$0xff] }
  0x15   : > { %v411_v9 = vrot.slane %v5861_v8, %v7061_v5  ;;  %v400_v10 = vrot.slane %v5861_v8, %v7064_v6  ;;  %v422_v13 = vrot.slane %v5861_v8, %v7072_v11  ;;  %v433_v14 = vrot.slane %v5861_v8, %v9396_v12  ;;  %v7119_v35 = vld [vmem:[%s7100_s19 + $0x28] sm:$0xff]  ;;  %v7122_v36 = vld [vmem:[%s7100_s19 + $0x20] sm:$0xff]  ;;  %v7127_v45 = vld [vmem:[%s7100_s19 + $0x38] sm:$0xff] }
  0x16   : > { %v444_v17 = vrot.slane %v5861_v8, %v9395_v15  ;;  %v455_v18 = vrot.slane %v5861_v8, %v9394_v16  ;;  %v466_v20 = vrot.slane %v5861_v8, %v9393_v19  ;;  %v477_v22 = vrot.slane %v5861_v8, %v9392_v21  ;;  %v7130_v49 = vld [vmem:[%s7100_s19 + $0x30] sm:$0xff]  ;;  %v7135_v57 = vld [vmem:[%s7100_s19 + $0x48] sm:$0xff]  ;;  %v7138_v58 = vld [vmem:[%s7100_s19 + $0x40] sm:$0xff] }
  0x17   : > { %413 = vbcast.lane.b32.xlu1 %v411_v9, 256  ;;  %402 = vbcast.lane.b32.xlu0 %v400_v10, 256 }
  0x1b   : > { %417 = vbcast.lane.b32.xlu1 %v411_v9, 264  ;;  %406 = vbcast.lane.b32.xlu0 %v400_v10, 264 }
  0x1f   : > { %428 = vbcast.lane.b32.xlu1 %v422_v13, 264  ;;  %424 = vbcast.lane.b32.xlu0 %v422_v13, 256 }
  0x23   : > { %439 = vbcast.lane.b32.xlu1 %v433_v14, 264  ;;  %435 = vbcast.lane.b32.xlu0 %v433_v14, 256  ;;  %v7143_v14 = vld [vmem:[%s7100_s19 + $0x58] sm:$0xff] }
  0x27   : > { %450 = vbcast.lane.b32.xlu1 %v444_v17, 264  ;;  %446 = vbcast.lane.b32.xlu0 %v444_v17, 256  ;;  %v7146_v17 = vld [vmem:[%s7100_s19 + $0x50] sm:$0xff] }
  0x2b   : > { %461 = vbcast.lane.b32.xlu1 %v455_v18, 264  ;;  %457 = vbcast.lane.b32.xlu0 %v455_v18, 256  ;;  %v7151_v18 = vld [vmem:[%s9382_s1 + $0x8] sm:$0xff] }
  0x2f   : > { %472 = vbcast.lane.b32.xlu1 %v466_v20, 264  ;;  %468 = vbcast.lane.b32.xlu0 %v466_v20, 256 }
  0x33   : > { %483 = vbcast.lane.b32.xlu1 %v477_v22, 264  ;;  %479 = vbcast.lane.b32.xlu0 %v477_v22, 256 }
  0x89   : > { %v414_v23 = vpop.permute.xlu1 %413  ;;  %v403_v25 = vpop.permute.xlu0 %402 }
  0x8a   : > { %v487_v29 = vmul.f32 %v414_v23, %v7103_v24  ;;  %v485_v32 = vmul.f32 %v403_v25, %v7106_v26  ;;  %v7156_v25 = vld [vmem:[%s9382_s1] sm:$0xff] }
  0x8d   : > { %v418_v30 = vpop.permute.xlu1 %417  ;;  %v407_v31 = vpop.permute.xlu0 %406 }
  0x8e   : > { %v488_v33 = vmul.f32 %v418_v30, %v7109_v27  ;;  %v486_v34 = vmul.f32 %v407_v31, %v7112_v28 }
  0x90   : > { %v508_v37 = vadd.f32 %v488_v33, %v487_v29  ;;  %v501_v38 = vadd.f32 %v486_v34, %v485_v32 }
  0x91   : > { %v429_v39 = vpop.permute.xlu1 %428  ;;  %v425_v40 = vpop.permute.xlu0 %424 }
  0x92   : > { %v509_v41 = vrot.slane %v508_v37, 4  ;;  %v502_v42 = vrot.slane %v501_v38, 4  ;;  %v490_v43 = vmul.f32 %v429_v39, %v7119_v35  ;;  %v489_v44 = vmul.f32 %v425_v40, %v7122_v36 }
  0x94   : > { %v510_v46 = vadd.f32 %v509_v41, %v508_v37  ;;  %v503_v47 = vadd.f32 %v502_v42, %v501_v38  ;;  %v515_v48 = vadd.f32 %v490_v43, %v489_v44  ;;  %v7162_v41 = vld [vmem:[%s7100_s19 + $0x68] sm:$0xff]  ;;  %v7165_v42 = vld [vmem:[%s7100_s19 + $0x60] sm:$0xff] }
  0x95   : > { %v440_v50 = vpop.permute.xlu1 %439  ;;  %v436_v51 = vpop.permute.xlu0 %435 }
  0x96   : > { %v511_v52 = vrot.slane %v510_v46, 2  ;;  %v504_v53 = vrot.slane %v503_v47, 2  ;;  %v516_v54 = vrot.slane %v515_v48, 4  ;;  %v492_v55 = vmul.f32 %v440_v50, %v7127_v45 }
  0x97   : > { %v491_v56 = vmul.f32 %v436_v51, %v7130_v49 }
  0x98   : > { %v517_v59 = vadd.f32 %v516_v54, %v515_v48  ;;  %v505_v60 = vadd.f32 %v504_v53, %v503_v47  ;;  %v512_v61 = vadd.f32 %v511_v52, %v510_v46 }
  0x99   : > { %v522_v62 = vadd.f32 %v492_v55, %v491_v56  ;;  %v451_v63 = vpop.permute.xlu1 %450  ;;  %v447_v0 = vpop.permute.xlu0 %446 }
  0x9a   : > { %v518_v1 = vrot.slane %v517_v59, 2  ;;  %v494_v8 = vmul.f32 %v451_v63, %v7135_v57  ;;  %v493_v9 = vmul.f32 %v447_v0, %v7138_v58  ;;  %v506_v10 = vrot.slane %v505_v60, 1 }
  0x9b   : > { %v523_v13 = vrot.slane %v522_v62, 4  ;;  %v513_v20 = vrot.slane %v512_v61, 1 }
  0x9c   : > { %v529_v22 = vadd.f32 %v494_v8, %v493_v9  ;;  %v507_v23 = vadd.f32 %v506_v10, %v505_v60  ;;  %v519_v29 = vadd.f32 %v518_v1, %v517_v59 }
  0x9d   : > { %v524_v30 = vadd.f32 %v523_v13, %v522_v62  ;;  %v462_v31 = vpop.permute.xlu1 %461  ;;  %v458_v32 = vpop.permute.xlu0 %457  ;;  %v514_v33 = vadd.f32 %v513_v20, %v512_v61  ;;  %v381_v62 = vld [vmem:[%s7100_s19 + $0x70] sm:$0xff] }
  0x9e   : > { %v530_v34 = vrot.slane %v529_v22, 4  ;;  %v496_v37 = vmul.f32 %v462_v31, %v7143_v14  ;;  %v495_v38 = vmul.f32 %v458_v32, %v7146_v17  ;;  %v558_v39 = vadd.f32 %v507_v23, %v7151_v18 }
  0x9f   : > { %v525_v40 = vrot.slane %v524_v30, 2  ;;  %v557_v43 = vadd.f32 %v507_v23, %v7156_v25  ;;  %v520_v44 = vrot.slane %v519_v29, 1  ;;  %v559_v54 = vadd.f32 %v514_v33, %v7156_v25 }
  0xa0   : > { %v531_v46 = vadd.f32 %v530_v34, %v529_v22  ;;  %v536_v47 = vadd.f32 %v496_v37, %v495_v38  ;;  %v7169_v48 = vadd.f32 %v558_v39, %v7112_v28  ;;  %v7180_v28 = vld [vmem:[%s7100_s19 + $0x78] sm:$0xff]  ;;  %v560_v23 = vadd.f32 %v514_v33, %v7151_v18  ;;  %s6982_s19 = smov 64  }
  0xa1   : > { %v473_v50 = vpop.permute.xlu1 %472  ;;  %v469_v51 = vpop.permute.xlu0 %468  ;;  %v7172_v52 = vadd.f32 %v557_v43, %v7106_v26  ;;  %v521_v53 = vadd.f32 %v520_v44, %v519_v29  ;;  %v526_v55 = vadd.f32 %v525_v40, %v524_v30  ;;  %v7188_v20 = vadd.f32 %v559_v54, %v7103_v24 }
  0xa2   : > { %v532_v56 = vrot.slane %v531_v46, 2  ;;  %v537_v59 = vrot.slane %v536_v47, 4  ;;  %v498_v60 = vmul.f32 %v473_v50, %v7162_v41  ;;  %v497_v61 = vmul.f32 %v469_v51, %v7165_v42  ;;  %591 = vadd.xlane.f32.xlu1 %v7169_v48 }
  0xa3   : > { %589 = vadd.xlane.f32.xlu0 %v7172_v52  ;;  %v561_v26 = vadd.f32 %v521_v53, %v7156_v25  ;;  %v527_v63 = vrot.slane %v526_v55, 1  ;;  %v7199_v33 = vadd.f32 %v560_v23, %v7109_v27  ;;  %v562_v43 = vadd.f32 %v521_v53, %v7151_v18 }
  0xa4   : > { %v538_v0 = vadd.f32 %v537_v59, %v536_v47  ;;  %v543_v1 = vadd.f32 %v498_v60, %v497_v61  ;;  %v533_v8 = vadd.f32 %v532_v56, %v531_v46 }
  0xa5   : > { %v484_v9 = vpop.permute.xlu1 %483  ;;  %v480_v10 = vpop.permute.xlu0 %479  ;;  %v7185_v13 = vadd.f32 %v561_v26, %v7122_v36  ;;  %v528_v22 = vadd.f32 %v527_v63, %v526_v55  ;;  %v7210_v56 = vadd.f32 %v562_v43, %v7119_v35 }
  0xa6   : > { %v539_v29 = vrot.slane %v538_v0, 2  ;;  %v544_v30 = vrot.slane %v543_v1, 4  ;;  %v500_v31 = vmul.f32 %v484_v9, %v7180_v28  ;;  %v499_v32 = vmul.f32 %v480_v10, %v381_v62 }
  0xa7   : > { %597 = vadd.xlane.f32.xlu1 %v7185_v13  ;;  %593 = vadd.xlane.f32.xlu0 %v7188_v20  ;;  %v563_v34 = vadd.f32 %v528_v22, %v7156_v25  ;;  %v534_v37 = vrot.slane %v533_v8, 1  ;;  %v564_v51 = vadd.f32 %v528_v22, %v7151_v18 }
  0xa8   : > { %v545_v36 = vadd.f32 %v544_v30, %v543_v1  ;;  %v550_v38 = vadd.f32 %v500_v31, %v499_v32  ;;  %v540_v39 = vadd.f32 %v539_v29, %v538_v0  ;;  %v6612_v30 = vld [vmem:[%s9384_s3 + $0x34] ss:$12 sps:$4 sm:$0xff]  }
  0xa9   : > { %v7196_v24 = vadd.f32 %v563_v34, %v7130_v49  ;;  %v535_v40 = vadd.f32 %v534_v37, %v533_v8  ;;  %v7216_v61 = vadd.f32 %v564_v51, %v7127_v45 }
  0xaa   : > { %v546_v44 = vrot.slane %v545_v36, 2  ;;  %v551_v46 = vrot.slane %v550_v38, 4  ;;  %v541_v47 = vrot.slane %v540_v39, 1 }
  0xab   : > { %601 = vadd.xlane.f32.xlu1 %v7196_v24  ;;  %595 = vadd.xlane.f32.xlu0 %v7199_v33  ;;  %v565_v50 = vadd.f32 %v535_v40, %v7156_v25  ;;  %v566_v26 = vadd.f32 %v535_v40, %v7151_v18 }
  0xac   : > { %v552_v54 = vadd.f32 %v551_v46, %v550_v38  ;;  %v542_v49 = vadd.f32 %v541_v47, %v540_v39  ;;  %v547_v55 = vadd.f32 %v546_v44, %v545_v36 }
  0xad   : > { %v7207_v27 = vadd.f32 %v565_v50, %v7138_v58  ;;  %v7226_v8 = vadd.f32 %v566_v26, %v7135_v57 }
  0xae   : > { %v553_v53 = vrot.slane %v552_v54, 2  ;;  %v567_v59 = vadd.f32 %v542_v49, %v7156_v25  ;;  %v548_v60 = vrot.slane %v547_v55, 1  ;;  %v568_v45 = vadd.f32 %v542_v49, %v7151_v18 }
  0xaf   : > { %605 = vadd.xlane.f32.xlu1 %v7207_v27  ;;  %599 = vadd.xlane.f32.xlu0 %v7210_v56 }
  0xb0   : > { %v7220_v63 = vadd.f32 %v567_v59, %v7146_v17  ;;  %v549_v58 = vadd.f32 %v548_v60, %v547_v55  ;;  %v554_v0 = vadd.f32 %v553_v53, %v552_v54  ;;  %v7236_v22 = vadd.f32 %v568_v45, %v7143_v14  ;;  %v6606_v14 = vld [vmem:[%s9384_s3 + $0x4] ss:$12 sps:$4 sm:$0xff]  }
  0xb1   : > { %1014 = vmatprep.subr.bf16.mxu0 %v6606_v14 }
  0xb2   : > { %v569_v35 = vadd.f32 %v549_v58, %v7156_v25  ;;  %v555_v1 = vrot.slane %v554_v0, 1  ;;  %v570_v23 = vadd.f32 %v549_v58, %v7151_v18 }
  0xb3   : > { %609 = vadd.xlane.f32.xlu1 %v7220_v63  ;;  %603 = vadd.xlane.f32.xlu0 %v7216_v61 }
  0xb4   : > { %v7230_v9 = vadd.f32 %v569_v35, %v7165_v42  ;;  %v556_v10 = vadd.f32 %v555_v1, %v554_v0  ;;  %v7244_v57 = vadd.f32 %v570_v23, %v7162_v41  ;;  %v6609_v41 = vld [vmem:[%s9384_s3 + $0x1c] ss:$12 sps:$4 sm:$0xff]  }
  0xb6   : > { %v571_v17 = vadd.f32 %v556_v10, %v7156_v25  ;;  %v572_v25 = vadd.f32 %v556_v10, %v7151_v18  ;;  %v6614_v18 = vld [vmem:[%s9384_s3 + $0x8] ss:$12 sps:$4 sm:$0xff]  }
  0xb7   : > { %613 = vadd.xlane.f32.xlu1 %v7230_v9  ;;  %607 = vadd.xlane.f32.xlu0 %v7226_v8 }
  0xb8   : > { %v7239_v29 = vadd.f32 %v571_v17, %v381_v62  ;;  %v7249_v42 = vadd.f32 %v572_v25, %v7180_v28  ;;  %v6608_v62 = vld [vmem:[%s9384_s3] ss:$12 sps:$4 sm:$0xff]   ;;  %v6611_v28 = vld [vmem:[%s9384_s3 + $0x18] ss:$12 sps:$4 sm:$0xff]   ;;  %6127 = vmatprep.subr.bf16.mxu1 %v6614_v18 }
  0xb9   : > { %1015 = vmatpush1.bf16.msra.mxu0 %v6608_v62  ;;  %6128 = vmatpush3.bf16.msra.mxu1 %v6614_v18 }
  0xba   : > { %1016 = vmatprep.subr.bf16.mxu0 %v6609_v41 }
  0xbb   : > { %617 = vadd.xlane.f32.xlu1 %v7239_v29  ;;  %611 = vadd.xlane.f32.xlu0 %v7236_v22 }
  0xbd   : > { %1017 = vmatpush1.bf16.msra.mxu0 %v6611_v28 }
  0xbe   : > { %1018 = vmatprep.subr.bf16.mxu0 %v6612_v30 }
  0xbf   : > { %615 = vadd.xlane.f32.xlu0 %v7244_v57 }
  0xc3   : > { %619 = vadd.xlane.f32.xlu0 %v7249_v42 }
 0x12f   : > { %v592_v31 = vpop.xlane.xlu1 %591 }
 0x130   : > { %v623_v32 = vmul.f32 0.0078125, %v592_v31  ;;  %v590_v34 = vpop.xlane.xlu0 %589 }
 0x131   : > { %v622_v37 = vmul.f32 0.0078125, %v590_v34  ;;  %v6616_v34 = vld [vmem:[%s9384_s3 + $0x4c] ss:$12 sps:$4 sm:$0xff]  }
 0x132   : > { %v7271_v36 = vsub.f32 %v7169_v48, %v623_v32 }
 0x133   : > { %v7274_v38 = vsub.f32 %v7172_v52, %v622_v37  ;;  %v6618_v37 = vld [vmem:[%s9384_s3 + $0x20] ss:$12 sps:$4 sm:$0xff]  }
 0x134   : > { %v598_v39 = vpop.xlane.xlu1 %597  ;;  %v594_v40 = vpop.xlane.xlu0 %593  ;;  %v655_v43 = vmul.f32 %v7271_v36, %v7271_v36  ;;  %6129 = vmatprep.subr.bf16.mxu1 %v6618_v37 }
 0x135   : > { %v626_v44 = vmul.f32 0.0078125, %v598_v39  ;;  %v624_v46 = vmul.f32 0.0078125, %v594_v40  ;;  %v654_v47 = vmul.f32 %v7274_v38, %v7274_v38  ;;  %6130 = vmatpush3.bf16.msra.mxu1 %v6618_v37 }
 0x136   : > { %672 = vadd.xlane.f32.xlu0 %v655_v43 }
 0x137   : > { %670 = vadd.xlane.f32.xlu1 %v654_v47  ;;  %v7281_v50 = vsub.f32 %v7188_v20, %v624_v46  ;;  %v7286_v55 = vsub.f32 %v7185_v13, %v626_v44  ;;  %v6619_v44 = vld [vmem:[%s9384_s3 + $0x48] ss:$12 sps:$4 sm:$0xff]  }
 0x138   : > { %v602_v48 = vpop.xlane.xlu1 %601  ;;  %v596_v51 = vpop.xlane.xlu0 %595 }
 0x139   : > { %v628_v54 = vmul.f32 0.0078125, %v602_v48  ;;  %v625_v52 = vmul.f32 0.0078125, %v596_v51  ;;  %v656_v49 = vmul.f32 %v7281_v50, %v7281_v50  ;;  %v658_v0 = vmul.f32 %v7286_v55, %v7286_v55  ;;  %v6620_v48 = vld [vmem:[%s9384_s3 + $0x64] ss:$12 sps:$4 sm:$0xff]  }
 0x13b   : > { %674 = vadd.xlane.f32.xlu1 %v656_v49  ;;  %v7289_v53 = vsub.f32 %v7199_v33, %v625_v52  ;;  %v7292_v26 = vsub.f32 %v7196_v24, %v628_v54  ;;  %v6623_v49 = vld [vmem:[%s9384_s3 + $0x60] ss:$12 sps:$4 sm:$0xff]  }
 0x13c   : > { %v606_v59 = vpop.xlane.xlu1 %605  ;;  %v600_v60 = vpop.xlane.xlu0 %599 }
 0x13d   : > { %v630_v20 = vmul.f32 0.0078125, %v606_v59  ;;  %v627_v58 = vmul.f32 0.0078125, %v600_v60  ;;  %v657_v35 = vmul.f32 %v7289_v53, %v7289_v53  ;;  %v660_v45 = vmul.f32 %v7292_v26, %v7292_v26 }
 0x13f   : > { %678 = vadd.xlane.f32.xlu1 %v658_v0  ;;  %676 = vadd.xlane.f32.xlu0 %v657_v35  ;;  %v7299_v13 = vsub.f32 %v7210_v56, %v627_v58  ;;  %v7306_v23 = vsub.f32 %v7207_v27, %v630_v20  ;;  %v6615_v27 = vld [vmem:[%s9384_s3 + $0x30] ss:$12 sps:$4 sm:$0xff]  }
 0x140   : > { %v610_v33 = vpop.xlane.xlu1 %609  ;;  %v604_v1 = vpop.xlane.xlu0 %603  ;;  %1019 = vmatpush1.bf16.msra.mxu0 %v6615_v27  ;;  %v6624_v20 = vld [vmem:[%s9384_s3 + $0x7c] ss:$12 sps:$4 sm:$0xff]  }
 0x141   : > { %v632_v24 = vmul.f32 0.0078125, %v610_v33  ;;  %v629_v10 = vmul.f32 0.0078125, %v604_v1  ;;  %v659_v17 = vmul.f32 %v7299_v13, %v7299_v13  ;;  %v662_v28 = vmul.f32 %v7306_v23, %v7306_v23  ;;  %1020 = vmatprep.subr.bf16.mxu0 %v6616_v34  ;;  %v6628_v1 = vld [vmem:[%s9384_s3 + $0x94] ss:$12 sps:$4 sm:$0xff]  }
 0x143   : > { %682 = vadd.xlane.f32.xlu1 %v660_v45  ;;  %680 = vadd.xlane.f32.xlu0 %v659_v17  ;;  %v7309_v25 = vsub.f32 %v7216_v61, %v629_v10  ;;  %v7312_v62 = vsub.f32 %v7220_v63, %v632_v24  ;;  %v6630_v45 = vld [vmem:[%s9384_s3 + $0x68] ss:$12 sps:$4 sm:$0xff]   ;;  %v6631_v10 = vld [vmem:[%s9384_s3 + $0x90] ss:$12 sps:$4 sm:$0xff]   ;;  %v6634_v17 = vld [vmem:[%s9384_s3 + $0x80] ss:$12 sps:$4 sm:$0xff]  }
 0x144   : > { %v614_v56 = vpop.xlane.xlu1 %613  ;;  %v608_v14 = vpop.xlane.xlu0 %607  ;;  %1021 = vmatpush1.bf16.msra.mxu0 %v6619_v44 }
 0x145   : > { %v634_v41 = vmul.f32 0.0078125, %v614_v56  ;;  %v631_v18 = vmul.f32 0.0078125, %v608_v14  ;;  %v661_v30 = vmul.f32 %v7309_v25, %v7309_v25  ;;  %v664_v32 = vmul.f32 %v7312_v62, %v7312_v62  ;;  %1022 = vmatprep.subr.bf16.mxu0 %v6620_v48  ;;  %v6635_v56 = vld [vmem:[%s9384_s3 + $0xa8] ss:$12 sps:$4 sm:$0xff]   ;;  %v6636_v14 = vld [vmem:[%s9384_s3 + $0x98] ss:$12 sps:$4 sm:$0xff]  }
 0x147   : > { %686 = vadd.xlane.f32.xlu1 %v662_v28  ;;  %684 = vadd.xlane.f32.xlu0 %v661_v30  ;;  %v7322_v61 = vsub.f32 %v7226_v8, %v631_v18  ;;  %v7335_v43 = vsub.f32 %v7230_v9, %v634_v41  ;;  %v6622_v9 = vld [vmem:[%s9384_s3 + $0x38] ss:$12 sps:$4 sm:$0xff]   ;;  %v6979_v41 = vmov 0   ;;  %v6637_v18 = vld [vmem:[%s9384_s3 + $0xb0] ss:$12 sps:$4 sm:$0xff]  }
 0x148   : > { %v618_v31 = vpop.xlane.xlu1 %617  ;;  %v612_v63 = vpop.xlane.xlu0 %611  ;;  %6131 = vmatprep.subr.bf16.mxu1 %v6622_v9  ;;  %1023 = vmatpush1.bf16.msra.mxu0 %v6623_v49 }
 0x149   : > { %v636_v39 = vmul.f32 0.0078125, %v618_v31  ;;  %v633_v40 = vmul.f32 0.0078125, %v612_v63  ;;  %v663_v8 = vmul.f32 %v7322_v61, %v7322_v61  ;;  %v666_v54 = vmul.f32 %v7335_v43, %v7335_v43  ;;  %6132 = vmatpush3.bf16.msra.mxu1 %v6622_v9  ;;  %1024 = vmatprep.subr.bf16.mxu0 %v6624_v20  ;;  %v7410_v20 = vld [vmem:[%s9388_s7] ss:$0 sm:$0xff] }
 0x14a   : > { %1046 = vmatprep.mubr.bf16.mxu0 %v6979_v41 }
 0x14b   : > { %690 = vadd.xlane.f32.xlu1 %v664_v32  ;;  %688 = vadd.xlane.f32.xlu0 %v663_v8  ;;  %v7341_v46 = vsub.f32 %v7236_v22, %v633_v40  ;;  %v7354_v22 = vsub.f32 %v7239_v29, %v636_v39  ;;  %v6626_v29 = vld [vmem:[%s9384_s3 + $0x50] ss:$12 sps:$4 sm:$0xff]  }
 0x14c   : > { %v616_v47 = vpop.xlane.xlu0 %615  ;;  %6133 = vmatprep.subr.bf16.mxu1 %v6626_v29 }
 0x14d   : > { %v635_v51 = vmul.f32 0.0078125, %v616_v47  ;;  %v665_v52 = vmul.f32 %v7341_v46, %v7341_v46  ;;  %v668_v0 = vmul.f32 %v7354_v22, %v7354_v22  ;;  %6134 = vmatpush3.bf16.msra.mxu1 %v6626_v29 }
 0x14e   : > { %6135 = vmatprep.subr.bf16.mxu1 %v6630_v45 }
 0x14f   : > { %694 = vadd.xlane.f32.xlu1 %v666_v54  ;;  %692 = vadd.xlane.f32.xlu0 %v665_v52  ;;  %v7360_v59 = vsub.f32 %v7244_v57, %v635_v51  ;;  %v6627_v57 = vld [vmem:[%s9384_s3 + $0x78] ss:$12 sps:$4 sm:$0xff]  }
 0x150   : > { %v620_v60 = vpop.xlane.xlu0 %619  ;;  %1025 = vmatpush1.bf16.msra.mxu0 %v6627_v57 }
 0x151   : > { %v637_v58 = vmul.f32 0.0078125, %v620_v60  ;;  %v667_v35 = vmul.f32 %v7360_v59, %v7360_v59  ;;  %1026 = vmatprep.subr.bf16.mxu0 %v6628_v1  ;;  %6136 = vmatpush3.bf16.msra.mxu1 %v6630_v45  ;;  %v7416_v45 = vld [vmem:[%s9389_s8] ss:$0 sm:$0xff] }
 0x152   : > { %6137 = vmatprep.subr.bf16.mxu1 %v6634_v17 }
 0x153   : > { %698 = vadd.xlane.f32.xlu1 %v668_v0  ;;  %696 = vadd.xlane.f32.xlu0 %v667_v35  ;;  %v7376_v33 = vsub.f32 %v7249_v42, %v637_v58  ;;  %v6632_v42 = vld [vmem:[%s9384_s3 + $0xac] ss:$12 sps:$4 sm:$0xff]  }
 0x154   : > { %1027 = vmatpush1.bf16.msra.mxu0 %v6631_v10 }
 0x155   : > { %v669_v24 = vmul.f32 %v7376_v33, %v7376_v33  ;;  %1028 = vmatprep.subr.bf16.mxu0 %v6632_v42  ;;  %6138 = vmatpush3.bf16.msra.mxu1 %v6634_v17 }
 0x156   : > { %6139 = vmatprep.subr.bf16.mxu1 %v6636_v14 }
 0x157   : > { %700 = vadd.xlane.f32.xlu0 %v669_v24 }
 0x158   : > { %1029 = vmatpush1.bf16.msra.mxu0 %v6635_v56 }
 0x159   : > { %6183 = vmatprep.subr.bf16.mxu0 %v9397_v7  ;;  %6140 = vmatpush3.bf16.msra.mxu1 %v6636_v14 }
 0x15a   : > { %6141 = vmatprep.subr.bf16.mxu1 %v6637_v18 }
 0x15d   : > { %6142 = vmatpush3.bf16.msra.mxu1 %v6637_v18 }
 0x15e   : > { %6159 = vmatprep.subr.bf16.mxu1 %v9397_v7 }
 0x1c3   : > { %v673_v28 = vpop.xlane.xlu0 %672 }
 0x1c4   : > { %v671_v30 = vpop.xlane.xlu1 %670  ;;  %v703_v27 = vmul.f32 0.0078125, %v673_v28 }
 0x1c5   : > { %v702_v31 = vmul.f32 0.0078125, %v671_v30 }
 0x1c6   : > { %v719_v63 = vadd.f32 1e-05, %v703_v27 }
 0x1c7   : > { %v718_v32 = vadd.f32 1e-05, %v702_v31 }
 0x1c8   : > { %6646 = vrsqrt.f32 %v719_v63  ;;  %v675_v34 = vpop.xlane.xlu1 %674 }
 0x1c9   : > { %6648 = vrsqrt.f32 %v718_v32  ;;  %v704_v37 = vmul.f32 0.0078125, %v675_v34 }
 0x1cb   : > { %v720_v39 = vadd.f32 1e-05, %v704_v37 }
 0x1cc   : > { %v679_v40 = vpop.xlane.xlu1 %678  ;;  %v677_v8 = vpop.xlane.xlu0 %676 }
 0x1cd   : > { %6650 = vrsqrt.f32 %v720_v39  ;;  %v706_v44 = vmul.f32 0.0078125, %v679_v40  ;;  %v705_v47 = vmul.f32 0.0078125, %v677_v8 }
 0x1cf   : > { %v722_v48 = vadd.f32 1e-05, %v706_v44  ;;  %v721_v9 = vadd.f32 1e-05, %v705_v47 }
 0x1d0   : > { %v683_v51 = vpop.xlane.xlu1 %682  ;;  %v681_v54 = vpop.xlane.xlu0 %680 }
 0x1d1   : > { %6652 = vrsqrt.f32 %v722_v48  ;;  %v708_v52 = vmul.f32 0.0078125, %v683_v51  ;;  %v707_v49 = vmul.f32 0.0078125, %v681_v54 }
 0x1d2   : > { %v6647_v60 = vpop.eup %6646  ;;  %6654 = vrsqrt.f32 %v721_v9 }
 0x1d3   : > { %v6649_v29 = vpop.eup %6648  ;;  %v724_v58 = vadd.f32 1e-05, %v708_v52  ;;  %v723_v0 = vadd.f32 1e-05, %v707_v49  ;;  %v751_v35 = vmul.f32 %v6647_v60, %v7271_v36 }
 0x1d4   : > { %v687_v57 = vpop.xlane.xlu1 %686  ;;  %v685_v1 = vpop.xlane.xlu0 %684  ;;  %v750_v24 = vmul.f32 %v6649_v29, %v7274_v38 }
 0x1d5   : > { %6656 = vrsqrt.f32 %v724_v58  ;;  %v710_v10 = vmul.f32 0.0078125, %v687_v57  ;;  %v709_v42 = vmul.f32 0.0078125, %v685_v1  ;;  %v773_v17 = vmul.f32 %v7410_v20, %v751_v35 }
 0x1d6   : > { %6658 = vrsqrt.f32 %v723_v0  ;;  %v772_v56 = vmul.f32 %v7410_v20, %v750_v24 }
 0x1d7   : > { %v6651_v14 = vpop.eup %6650  ;;  %v726_v18 = vadd.f32 1e-05, %v710_v10  ;;  %v725_v36 = vadd.f32 1e-05, %v709_v42  ;;  %v7422_v28 = vadd.f32 %v7416_v45, %v773_v17 }
 0x1d8   : > { %v691_v30 = vpop.xlane.xlu1 %690  ;;  %v689_v27 = vpop.xlane.xlu0 %688  ;;  %v7425_v31 = vadd.f32 %v7416_v45, %v772_v56  ;;  %v752_v38 = vmul.f32 %v6651_v14, %v7281_v50 }
 0x1d9   : > { %9439 = vst [vmem:[#allocation9_spill] sm:$0xff] %v7422_v28  ;;  %6660 = vrsqrt.f32 %v726_v18  ;;  %v712_v63 = vmul.f32 0.0078125, %v691_v30  ;;  %v711_v32 = vmul.f32 0.0078125, %v689_v27 }
 0x1da   : > { %9440 = vst [vmem:[#allocation10_spill] sm:$0xff] %v7425_v31  ;;  %6662 = vrsqrt.f32 %v725_v36  ;;  %v862_v34 = vpack.c.bf16 %v7422_v28, %v7425_v31  ;;  %v774_v48 = vmul.f32 %v7410_v20, %v752_v38 }
 0x1db   : > { %v6653_v37 = vpop.eup %6652  ;;  %v728_v39 = vadd.f32 1e-05, %v712_v63  ;;  %v727_v40 = vadd.f32 1e-05, %v711_v32 }
 0x1dc   : > { %v6655_v8 = vpop.eup %6654  ;;  %v695_v44 = vpop.xlane.xlu1 %694  ;;  %1047 = vmatmul.mubr.bf16.vlgmr.msra.gmra.mrb[0].mxu0 %v862_v34  ;;  %6143 = vmatprep.mubr.bf16.mxu1 %v862_v34  ;;  %v754_v54 = vmul.f32 %v6653_v37, %v7286_v55  ;;  %v7436_v57 = vadd.f32 %v7416_v45, %v774_v48 }
 0x1dd   : > { %v693_v47 = vpop.xlane.xlu0 %692  ;;  %6664 = vrsqrt.f32 %v728_v39  ;;  %v714_v9 = vmul.f32 0.0078125, %v695_v44  ;;  %1056 = vmatprep.mubr.bf16.mxu0 %v6979_v41  ;;  %v753_v51 = vmul.f32 %v6655_v8, %v7289_v53 }
 0x1de   : > { %v713_v50 = vmul.f32 0.0078125, %v693_v47  ;;  %6666 = vrsqrt.f32 %v727_v40  ;;  %9441 = vst [vmem:[#allocation11_spill] sm:$0xff] %v7436_v57  ;;  %v776_v42 = vmul.f32 %v7410_v20, %v754_v54 }
 0x1df   : > { %v6657_v52 = vpop.eup %6656  ;;  %v730_v49 = vadd.f32 1e-05, %v714_v9  ;;  %v775_v29 = vmul.f32 %v7410_v20, %v753_v51 }
 0x1e0   : > { %v729_v60 = vadd.f32 1e-05, %v713_v50  ;;  %v6659_v58 = vpop.eup %6658  ;;  %v699_v0 = vpop.xlane.xlu1 %698  ;;  %v756_v1 = vmul.f32 %v6657_v52, %v7292_v26  ;;  %v7451_v32 = vadd.f32 %v7416_v45, %v776_v42 }
 0x1e1   : > { %v697_v35 = vpop.xlane.xlu0 %696  ;;  %6668 = vrsqrt.f32 %v730_v49  ;;  %v716_v24 = vmul.f32 0.0078125, %v699_v0  ;;  %v7440_v53 = vadd.f32 %v7416_v45, %v775_v29  ;;  %v755_v55 = vmul.f32 %v6659_v58, %v7299_v13 }
 0x1e2   : > { %v715_v10 = vmul.f32 0.0078125, %v697_v35  ;;  %6670 = vrsqrt.f32 %v729_v60  ;;  %v778_v63 = vmul.f32 %v7410_v20, %v756_v1  ;;  %9443 = vst [vmem:[#allocation13_spill] sm:$0xff] %v7451_v32 }
 0x1e3   : > { %9442 = vst [vmem:[#allocation12_spill] sm:$0xff] %v7440_v53  ;;  %v6661_v17 = vpop.eup %6660  ;;  %v732_v56 = vadd.f32 1e-05, %v716_v24  ;;  %v863_v18 = vpack.c.bf16 %v7440_v53, %v7436_v57  ;;  %v777_v26 = vmul.f32 %v7410_v20, %v755_v55 }
 0x1e4   : > { %v731_v14 = vadd.f32 1e-05, %v715_v10  ;;  %v6663_v36 = vpop.eup %6662  ;;  %v758_v27 = vmul.f32 %v6661_v17, %v7306_v23  ;;  %v7463_v47 = vadd.f32 %v7416_v45, %v778_v63 }
 0x1e5   : > { %v701_v30 = vpop.xlane.xlu0 %700  ;;  %6672 = vrsqrt.f32 %v732_v56  ;;  %1057 = vmatmul.mubr.bf16.gmra.mrb[4].mxu0 %v863_v18  ;;  %6144 = vmatmul.mubr.bf16.vlgmr.msra.gmra.mrb[0].mxu1 %v863_v18  ;;  %v757_v13 = vmul.f32 %v6663_v36, %v7309_v25  ;;  %v7454_v34 = vadd.f32 %v7416_v45, %v777_v26 }
 0x1e6   : > { %v717_v38 = vmul.f32 0.0078125, %v701_v30  ;;  %6674 = vrsqrt.f32 %v731_v14  ;;  %1066 = vmatprep.mubr.bf16.mxu0 %v6979_v41  ;;  %v780_v25 = vmul.f32 %v7410_v20, %v758_v27  ;;  %9445 = vst [vmem:[#allocation15_spill] sm:$0xff] %v7463_v47 }
 0x1e7   : > { %9444 = vst [vmem:[#allocation14_spill] sm:$0xff] %v7454_v34  ;;  %v6665_v37 = vpop.eup %6664  ;;  %v779_v23 = vmul.f32 %v7410_v20, %v757_v13  ;;  %v864_v8 = vpack.c.bf16 %v7454_v34, %v7451_v32 }
 0x1e8   : > { %v733_v39 = vadd.f32 1e-05, %v717_v38  ;;  %v6667_v40 = vpop.eup %6666  ;;  %v760_v44 = vmul.f32 %v6665_v37, %v7312_v62  ;;  %v7473_v49 = vadd.f32 %v7416_v45, %v780_v25 }
 0x1e9   : > { %v7466_v48 = vadd.f32 %v7416_v45, %v779_v23  ;;  %v759_v9 = vmul.f32 %v6667_v40, %v7322_v61  ;;  %6147 = vmatprep.mubr.bf16.mxu1 %v864_v8 }
 0x1ea   : > { %6676 = vrsqrt.f32 %v733_v39  ;;  %9447 = vst [vmem:[#allocation17_spill] sm:$0xff] %v7473_v49  ;;  %v782_v62 = vmul.f32 %v7410_v20, %v760_v44 }
 0x1eb   : > { %9446 = vst [vmem:[#allocation16_spill] sm:$0xff] %v7466_v48  ;;  %v6669_v50 = vpop.eup %6668  ;;  %v865_v51 = vpack.c.bf16 %v7466_v48, %v7463_v47  ;;  %v781_v54 = vmul.f32 %v7410_v20, %v759_v9 }
 0x1ec   : > { %v6671_v52 = vpop.eup %6670  ;;  %v762_v29 = vmul.f32 %v6669_v50, %v7335_v43  ;;  %v7487_v10 = vadd.f32 %v7416_v45, %v782_v62 }
 0x1ed   : > { %1067 = vmatmul.mubr.bf16.gmra.mrb[8].mxu0 %v864_v8  ;;  %6148 = vmatmul.mubr.bf16.gmra.mrb[4].mxu1 %v865_v51  ;;  %v7477_v60 = vadd.f32 %v7416_v45, %v781_v54  ;;  %v761_v61 = vmul.f32 %v6671_v52, %v7341_v46 }
 0x1ee   : > { %1076 = vmatprep.mubr.bf16.mxu0 %v6979_v41  ;;  %9449 = vst [vmem:[#allocation19_spill] sm:$0xff] %v7487_v10  ;;  %v784_v46 = vmul.f32 %v7410_v20, %v762_v29 }
 0x1ef   : > { %9448 = vst [vmem:[#allocation18_spill] sm:$0xff] %v7477_v60  ;;  %v6673_v58 = vpop.eup %6672  ;;  %v866_v0 = vpack.c.bf16 %v7477_v60, %v7473_v49  ;;  %v783_v35 = vmul.f32 %v7410_v20, %v761_v61 }
 0x1f0   : > { %v6675_v1 = vpop.eup %6674  ;;  %v764_v24 = vmul.f32 %v6673_v58, %v7354_v22  ;;  %v7500_v18 = vadd.f32 %v7416_v45, %v784_v46 }
 0x1f1   : > { %6151 = vmatprep.mubr.bf16.mxu1 %v866_v0  ;;  %v7490_v55 = vadd.f32 %v7416_v45, %v783_v35  ;;  %v763_v43 = vmul.f32 %v6675_v1, %v7360_v59 }
 0x1f2   : > { %v786_v22 = vmul.f32 %v7410_v20, %v764_v24  ;;  %9451 = vst [vmem:[#allocation21_spill] sm:$0xff] %v7500_v18 }
 0x1f3   : > { %9450 = vst [vmem:[#allocation20_spill] sm:$0xff] %v7490_v55  ;;  %v867_v17 = vpack.c.bf16 %v7490_v55, %v7487_v10  ;;  %v785_v56 = vmul.f32 %v7410_v20, %v763_v43 }
 0x1f4   : > { %v6677_v42 = vpop.eup %6676  ;;  %v7510_v26 = vadd.f32 %v7416_v45, %v786_v22 }
 0x1f5   : > { %v765_v14 = vmul.f32 %v6677_v42, %v7376_v33  ;;  %1077 = vmatmul.mubr.bf16.gmra.mrb[12].mxu0 %v865_v51  ;;  %6152 = vmatmul.mubr.bf16.gmra.mrb[8].mxu1 %v867_v17  ;;  %v7503_v36 = vadd.f32 %v7416_v45, %v785_v56 }
 0x1f6   : > { %1086 = vmatprep.mubr.bf16.mxu0 %v6979_v41  ;;  %9453 = vst [vmem:[#allocation23_spill] sm:$0xff] %v7510_v26 }
 0x1f7   : > { %9452 = vst [vmem:[#allocation22_spill] sm:$0xff] %v7503_v36  ;;  %v787_v59 = vmul.f32 %v7410_v20, %v765_v14  ;;  %v868_v30 = vpack.c.bf16 %v7503_v36, %v7500_v18  ;;  %v844_v20 = vld [vmem:[%s9385_s4] sm:$0x7] }
 0x1f8   : > { %v7531_v38 = vrot.slane %v844_v20, %v7061_v5  ;;  %v7540_v44 = vrot.slane %v844_v20, %v7072_v11 }
 0x1f9   : > { %v7513_v33 = vadd.f32 %v7416_v45, %v787_v59  ;;  %6155 = vmatprep.mubr.bf16.mxu1 %v868_v30  ;;  %v7528_v45 = vrot.slane %v844_v20, %v7064_v6 }
 0x1fb   : > { %9454 = vst [vmem:[#allocation24_spill] sm:$0xff] %v7513_v33  ;;  %v869_v27 = vpack.c.bf16 %v7513_v33, %v7510_v26 }
 0x1fd   : > { %1087 = vmatmul.mubr.bf16.gmra.mrb[16].mxu0 %v866_v0  ;;  %6156 = vmatmul.mubr.bf16.gmra.mrb[12].mxu1 %v869_v27 }
 0x1fe   : > { %1096 = vmatprep.mubr.bf16.mxu0 %v6979_v41  ;;  %6161 = vmatprep.mubr.msk.bf16.mxu1 %vm6980_vm1, %v9397_v7 }
 0x205   : > { %1097 = vmatmul.mubr.bf16.gmra.mrb[20].mxu0 %v867_v17 }
 0x206   : > { %1106 = vmatprep.mubr.bf16.mxu0 %v6979_v41 }
 0x20d   : > { %1107 = vmatmul.mubr.bf16.gmra.mrb[24].mxu0 %v868_v30 }
 0x20e   : > { %1116 = vmatprep.mubr.bf16.mxu0 %v6979_v41 }
 0x215   : > { %1117 = vmatmul.mubr.bf16.gmra.mrb[28].mxu0 %v869_v27 }
 0x216   : > { %6185 = vmatprep.mubr.msk.bf16.mxu0 %vm6980_vm1, %v9397_v7 }
 0x2af   : > { %v1048_v13 = vpop.f32.mrb[0].mxu0 }
 0x2b0   : > { %v1049_v41 = vadd.f32 %v1048_v13, %v7528_v45  ;;  %v1050_v63 = vpop.f32.mrb[1].mxu0 }
 0x2b1   : > { %v1051_v37 = vadd.f32 %v1050_v63, %v7531_v38  ;;  %v1052_v39 = vpop.f32.mrb[2].mxu0 }
 0x2b2   : > { %v1053_v23 = vadd.f32 %v1052_v39, %v7528_v45  ;;  %v1054_v40 = vpop.f32.mrb[3].mxu0 }
 0x2b3   : > { %v1055_v8 = vadd.f32 %v1054_v40, %v7531_v38 }
 0x2b4   : > { %v7537_v25 = vpack.c.bf16 %v1053_v23, %v1049_v41 }
 0x2b5   : > { %v7542_v9 = vpack.c.bf16 %v1055_v8, %v1051_v37 }
 0x2b7   : > { %v1253_v50 = vsel %vm1248_vm2, %v7542_v9, 0 }
 0x2b8   : > { %v1058_v51 = vpop.f32.mrb[4].mxu0  ;;  %v6145_v54 = vpop.f32.mrb[0].mxu1  ;;  %6160 = vmatpush3.bf16.xpose.msra.mxu1 %v1253_v50 }
 0x2b9   : > { %v1059_v52 = vadd.f32 %v1058_v51, %v7528_v45  ;;  %v1170_v62 = vadd.f32 %v6145_v54, %v7540_v44  ;;  %v1060_v61 = vpop.f32.mrb[5].mxu0  ;;  %v1161_v29 = vpop.f32.mrb[1].mxu1  ;;  %6165 = vmatprep.subr.bf16.mxu1 %v9397_v7 }
 0x2ba   : > { %v1061_v58 = vadd.f32 %v1060_v61, %v7531_v38  ;;  %v1162_v0 = vadd.f32 %v1161_v29, %v7540_v44  ;;  %v1062_v35 = vpop.f32.mrb[6].mxu0  ;;  %v6146_v1 = vpop.f32.mrb[2].mxu1 }
 0x2bb   : > { %v1063_v24 = vadd.f32 %v1062_v35, %v7528_v45  ;;  %v1173_v43 = vadd.f32 %v6146_v1, %v7540_v44  ;;  %v1064_v46 = vpop.f32.mrb[7].mxu0  ;;  %v1164_v42 = vpop.f32.mrb[3].mxu1 }
 0x2bc   : > { %v1065_v17 = vadd.f32 %v1064_v46, %v7531_v38  ;;  %v1165_v56 = vadd.f32 %v1164_v42, %v7540_v44 }
 0x2bd   : > { %v7555_v14 = vpack.c.bf16 %v1063_v24, %v1059_v52  ;;  %v7557_v22 = vpack.c.bf16 %v1173_v43, %v1170_v62 }
 0x2be   : > { %v7559_v59 = vpack.c.bf16 %v1065_v17, %v1061_v58  ;;  %v7561_v30 = vpack.c.bf16 %v1165_v56, %v1162_v0 }
 0x2bf   : > { %6162 = vmatmul.mubr.msk.bf16.vlgmr.msra.gmra.mrb[16].mxu1 %vm1248_vm2, %v7537_v25 }
 0x2c0   : > { %v1068_v27 = vpop.f32.mrb[8].mxu0  ;;  %v6149_v20 = vpop.f32.mrb[4].mxu1  ;;  %v1300_v13 = vsel %vm1248_vm2, %v7559_v59, 0  ;;  %6167 = vmatprep.mubr.msk.bf16.mxu1 %vm6980_vm1, %v9397_v7 }
 0x2c1   : > { %v1069_v41 = vadd.f32 %v1068_v27, %v7528_v45  ;;  %v1186_v63 = vadd.f32 %v6149_v20, %v7540_v44  ;;  %v1070_v37 = vpop.f32.mrb[9].mxu0  ;;  %v1177_v39 = vpop.f32.mrb[5].mxu1  ;;  %6166 = vmatpush3.bf16.xpose.msra.mxu1 %v1300_v13 }
 0x2c2   : > { %v1071_v23 = vadd.f32 %v1070_v37, %v7531_v38  ;;  %v1178_v40 = vadd.f32 %v1177_v39, %v7540_v44  ;;  %v1072_v8 = vpop.f32.mrb[10].mxu0  ;;  %v6150_v50 = vpop.f32.mrb[6].mxu1  ;;  %6171 = vmatprep.subr.bf16.mxu1 %v9397_v7 }
 0x2c3   : > { %v1073_v51 = vadd.f32 %v1072_v8, %v7528_v45  ;;  %v1189_v54 = vadd.f32 %v6150_v50, %v7540_v44  ;;  %v1074_v52 = vpop.f32.mrb[11].mxu0  ;;  %v1180_v62 = vpop.f32.mrb[7].mxu1 }
 0x2c4   : > { %v1075_v61 = vadd.f32 %v1074_v52, %v7531_v38  ;;  %v1181_v29 = vadd.f32 %v1180_v62, %v7540_v44 }
 0x2c5   : > { %v7578_v58 = vpack.c.bf16 %v1073_v51, %v1069_v41  ;;  %v7580_v0 = vpack.c.bf16 %v1189_v54, %v1186_v63 }
 0x2c6   : > { %v7582_v35 = vpack.c.bf16 %v1075_v61, %v1071_v23  ;;  %v7584_v1 = vpack.c.bf16 %v1181_v29, %v1178_v40 }
 0x2c8   : > { %v1078_v24 = vpop.f32.mrb[12].mxu0  ;;  %v6153_v43 = vpop.f32.mrb[8].mxu1  ;;  %6168 = vmatmul.mubr.msk.bf16.vlgmr.msra.gmra.mrb[20].mxu1 %vm1248_vm2, %v7555_v14  ;;  %v1347_v46 = vsel %vm1248_vm2, %v7582_v35, 0 }
 0x2c9   : > { %v1079_v42 = vadd.f32 %v1078_v24, %v7528_v45  ;;  %v1202_v17 = vadd.f32 %v6153_v43, %v7540_v44  ;;  %v1080_v56 = vpop.f32.mrb[13].mxu0  ;;  %v1193_v27 = vpop.f32.mrb[9].mxu1  ;;  %6172 = vmatpush3.bf16.xpose.msra.mxu1 %v1347_v46  ;;  %6173 = vmatprep.mubr.msk.bf16.mxu1 %vm6980_vm1, %v9397_v7 }
 0x2ca   : > { %v1081_v20 = vadd.f32 %v1080_v56, %v7531_v38  ;;  %v1194_v13 = vadd.f32 %v1193_v27, %v7540_v44  ;;  %v1082_v41 = vpop.f32.mrb[14].mxu0  ;;  %v6154_v63 = vpop.f32.mrb[10].mxu1  ;;  %6177 = vmatprep.subr.bf16.mxu1 %v9397_v7 }
 0x2cb   : > { %v1083_v37 = vadd.f32 %v1082_v41, %v7528_v45  ;;  %v1205_v39 = vadd.f32 %v6154_v63, %v7540_v44  ;;  %v1084_v23 = vpop.f32.mrb[15].mxu0  ;;  %v1196_v40 = vpop.f32.mrb[11].mxu1 }
 0x2cc   : > { %v1085_v8 = vadd.f32 %v1084_v23, %v7531_v38  ;;  %v1197_v50 = vadd.f32 %v1196_v40, %v7540_v44 }
 0x2cd   : > { %v7601_v51 = vpack.c.bf16 %v1083_v37, %v1079_v42  ;;  %v7603_v54 = vpack.c.bf16 %v1205_v39, %v1202_v17 }
 0x2ce   : > { %v7605_v52 = vpack.c.bf16 %v1085_v8, %v1081_v20  ;;  %v7607_v62 = vpack.c.bf16 %v1197_v50, %v1194_v13 }
 0x2d0   : > { %v1088_v61 = vpop.f32.mrb[16].mxu0  ;;  %v6157_v29 = vpop.f32.mrb[12].mxu1  ;;  %6174 = vmatmul.mubr.msk.bf16.vlgmr.msra.gmra.mrb[24].mxu1 %vm1248_vm2, %v7578_v58  ;;  %v1394_v24 = vsel %vm1248_vm2, %v7605_v52, 0 }
 0x2d1   : > { %v1089_v43 = vadd.f32 %v1088_v61, %v7528_v45  ;;  %v1218_v46 = vadd.f32 %v6157_v29, %v7540_v44  ;;  %v1090_v42 = vpop.f32.mrb[17].mxu0  ;;  %v1209_v56 = vpop.f32.mrb[13].mxu1  ;;  %6178 = vmatpush3.bf16.xpose.msra.mxu1 %v1394_v24  ;;  %6179 = vmatprep.mubr.msk.bf16.mxu1 %vm6980_vm1, %v9397_v7 }
 0x2d2   : > { %v1091_v17 = vadd.f32 %v1090_v42, %v7531_v38  ;;  %v1210_v27 = vadd.f32 %v1209_v56, %v7540_v44  ;;  %v1092_v20 = vpop.f32.mrb[18].mxu0  ;;  %v6158_v13 = vpop.f32.mrb[14].mxu1  ;;  %6189 = vmatprep.subr.bf16.mxu1 %v9397_v7 }
 0x2d3   : > { %v1093_v41 = vadd.f32 %v1092_v20, %v7528_v45  ;;  %v1221_v63 = vadd.f32 %v6158_v13, %v7540_v44  ;;  %v1094_v37 = vpop.f32.mrb[19].mxu0  ;;  %v1212_v39 = vpop.f32.mrb[15].mxu1 }
 0x2d4   : > { %v1095_v23 = vadd.f32 %v1094_v37, %v7531_v38  ;;  %v1213_v40 = vadd.f32 %v1212_v39, %v7540_v44 }
 0x2d5   : > { %v7624_v8 = vpack.c.bf16 %v1093_v41, %v1089_v43  ;;  %v7626_v50 = vpack.c.bf16 %v1221_v63, %v1218_v46 }
 0x2d6   : > { %v7628_v61 = vpack.c.bf16 %v1095_v23, %v1091_v17  ;;  %v7630_v29 = vpack.c.bf16 %v1213_v40, %v1210_v27 }
 0x2d8   : > { %v1098_v24 = vpop.f32.mrb[20].mxu0  ;;  %6180 = vmatmul.mubr.msk.bf16.vlgmr.msra.gmra.mrb[28].mxu1 %vm1248_vm2, %v7601_v51  ;;  %v1441_v42 = vsel %vm1248_vm2, %v7628_v61, 0 }
 0x2d9   : > { %v1099_v56 = vadd.f32 %v1098_v24, %v7528_v45  ;;  %v1100_v20 = vpop.f32.mrb[21].mxu0  ;;  %6184 = vmatpush3.bf16.xpose.msra.mxu0 %v1441_v42  ;;  %6191 = vmatprep.mubr.msk.bf16.mxu1 %vm6980_vm1, %v9397_v7 }
 0x2da   : > { %v1101_v44 = vadd.f32 %v1100_v20, %v7531_v38  ;;  %v1102_v43 = vpop.f32.mrb[22].mxu0  ;;  %6195 = vmatprep.subr.bf16.mxu0 %v9397_v7 }
 0x2db   : > { %v1103_v46 = vadd.f32 %v1102_v43, %v7528_v45  ;;  %v1104_v17 = vpop.f32.mrb[23].mxu0 }
 0x2dc   : > { %v1105_v27 = vadd.f32 %v1104_v17, %v7531_v38 }
 0x2dd   : > { %v7643_v13 = vpack.c.bf16 %v1103_v46, %v1099_v56 }
 0x2de   : > { %v7645_v41 = vpack.c.bf16 %v1105_v27, %v1101_v44 }
 0x2e0   : > { %v1108_v63 = vpop.f32.mrb[24].mxu0  ;;  %6186 = vmatmul.mubr.msk.bf16.vlgmr.msra.gmra.mrb[32].mxu0 %vm1248_vm2, %v7624_v8  ;;  %v1488_v37 = vsel %vm1248_vm2, %v7645_v41, 0 }
 0x2e1   : > { %v1109_v39 = vadd.f32 %v1108_v63, %v7528_v45  ;;  %v1110_v23 = vpop.f32.mrb[25].mxu0  ;;  %6190 = vmatpush3.bf16.xpose.msra.mxu1 %v1488_v37  ;;  %6197 = vmatprep.mubr.msk.bf16.mxu0 %vm6980_vm1, %v9397_v7 }
 0x2e2   : > { %v1111_v40 = vadd.f32 %v1110_v23, %v7531_v38  ;;  %v1112_v24 = vpop.f32.mrb[26].mxu0  ;;  %6201 = vmatprep.subr.bf16.mxu1 %v9397_v7 }
 0x2e3   : > { %v1113_v42 = vadd.f32 %v1112_v24, %v7528_v45  ;;  %v1114_v56 = vpop.f32.mrb[27].mxu0 }
 0x2e4   : > { %v1115_v20 = vadd.f32 %v1114_v56, %v7531_v38 }
 0x2e5   : > { %v7658_v44 = vpack.c.bf16 %v1113_v42, %v1109_v39 }
 0x2e6   : > { %v7660_v43 = vpack.c.bf16 %v1115_v20, %v1111_v40 }
 0x2e8   : > { %v1118_v46 = vpop.f32.mrb[28].mxu0  ;;  %6192 = vmatmul.mubr.msk.bf16.vlgmr.msra.gmra.mrb[32].mxu1 %vm1248_vm2, %v7643_v13  ;;  %v1535_v17 = vsel %vm1248_vm2, %v7660_v43, 0 }
 0x2e9   : > { %v1119_v27 = vadd.f32 %v1118_v46, %v7528_v45  ;;  %v1120_v63 = vpop.f32.mrb[29].mxu0  ;;  %6196 = vmatpush3.bf16.xpose.msra.mxu0 %v1535_v17  ;;  %6203 = vmatprep.mubr.msk.bf16.mxu1 %vm6980_vm1, %v9397_v7  ;;  %v7700_v46 = vld [vmem:[%s9383_s2 + $0x8] sm:$0xff] }
 0x2ea   : > { %v1121_v37 = vadd.f32 %v1120_v63, %v7531_v38  ;;  %v1122_v39 = vpop.f32.mrb[30].mxu0  ;;  %6207 = vmatprep.subr.bf16.mxu0 %v9397_v7 }
 0x2eb   : > { %v1123_v23 = vadd.f32 %v1122_v39, %v7528_v45  ;;  %v1124_v40 = vpop.f32.mrb[31].mxu0  ;;  %v7695_v45 = vld [vmem:[%s9383_s2] sm:$0xff] }
 0x2ec   : > { %v1125_v24 = vadd.f32 %v1124_v40, %v7531_v38 }
 0x2ed   : > { %v7673_v42 = vpack.c.bf16 %v1123_v23, %v1119_v27 }
 0x2ee   : > { %v7675_v56 = vpack.c.bf16 %v1125_v24, %v1121_v37 }
 0x2f0   : > { %6198 = vmatmul.mubr.msk.bf16.vlgmr.msra.gmra.mrb[36].mxu0 %vm1248_vm2, %v7658_v44  ;;  %v1582_v20 = vsel %vm1248_vm2, %v7675_v56, 0 }
 0x2f1   : > { %6202 = vmatpush3.bf16.xpose.msra.mxu1 %v1582_v20  ;;  %6208 = vmatpush3.bf16.msra.mxu0 %v7561_v30 }
 0x2f2   : > { %6213 = vmatprep.subr.bf16.mxu1 %v9397_v7  ;;  %6209 = vmatprep.mubr.msk.bf16.mxu0 %vm6980_vm1, %v9397_v7 }
 0x2f3   : > { %6219 = vmatprep.subr.bf16.mxu0 %v9397_v7 }
 0x2f8   : > { %6204 = vmatmul.mubr.msk.bf16.vlgmr.msra.gmra.mrb[36].mxu1 %vm1248_vm2, %v7673_v42 }
 0x2f9   : > { %6214 = vmatpush3.bf16.msra.mxu1 %v7557_v22  ;;  %6215 = vmatprep.mubr.msk.bf16.mxu1 %vm6980_vm1, %v9397_v7 }
 0x2fa   : > { %6225 = vmatprep.subr.bf16.mxu1 %v9397_v7 }
 0x392   : > { %v1289_v38 = vpop.f32.mrb[16].mxu1 }
 0x393   : > { %v7703_v17 = vadd.f32 %v1289_v38, %v7695_v45  ;;  %v6163_v27 = vpop.f32.mrb[17].mxu1 }
 0x394   : > { %v1292_v63 = vpop.f32.mrb[18].mxu1 }
 0x395   : > { %v7706_v37 = vadd.f32 %v1292_v63, %v7700_v46  ;;  %v6164_v39 = vpop.f32.mrb[19].mxu1  ;;  %v1626_v23 = vsel %vm1625_vm3, %v7703_v17, -inf }
 0x396   : > { %1627 = vmax.xlane.f32.xlu1 %v1626_v23 }
 0x397   : > { %v1629_v40 = vsel %vm1625_vm3, %v7706_v37, -inf }
 0x398   : > { %1630 = vmax.xlane.f32.xlu0 %v1629_v40 }
 0x39b   : > { %v1336_v24 = vpop.f32.mrb[20].mxu1 }
 0x39c   : > { %v7713_v20 = vadd.f32 %v1336_v24, %v7695_v45  ;;  %v6169_v38 = vpop.f32.mrb[21].mxu1 }
 0x39d   : > { %v1339_v21 = vpop.f32.mrb[22].mxu1 }
 0x39e   : > { %v7716_v27 = vadd.f32 %v1339_v21, %v7700_v46  ;;  %v6170_v63 = vpop.f32.mrb[23].mxu1  ;;  %v1632_v39 = vsel %vm1625_vm3, %v7713_v20, -inf }
 0x39f   : > { %1633 = vmax.xlane.f32.xlu1 %v1632_v39 }
 0x3a0   : > { %v1635_v23 = vsel %vm1625_vm3, %v7716_v27, -inf }
 0x3a1   : > { %1636 = vmax.xlane.f32.xlu0 %v1635_v23 }
 0x3a3   : > { %v1383_v19 = vpop.f32.mrb[24].mxu1 }
 0x3a4   : > { %v7723_v40 = vadd.f32 %v1383_v19, %v7695_v45  ;;  %v6175_v24 = vpop.f32.mrb[25].mxu1 }
 0x3a5   : > { %v1386_v16 = vpop.f32.mrb[26].mxu1 }
 0x3a6   : > { %v7726_v38 = vadd.f32 %v1386_v16, %v7700_v46  ;;  %v6176_v21 = vpop.f32.mrb[27].mxu1  ;;  %v1638_v63 = vsel %vm1625_vm3, %v7723_v40, -inf }
 0x3a7   : > { %1639 = vmax.xlane.f32.xlu1 %v1638_v63 }
 0x3a8   : > { %v1641_v39 = vsel %vm1625_vm3, %v7726_v38, -inf }
 0x3a9   : > { %1642 = vmax.xlane.f32.xlu0 %v1641_v39 }
 0x3ab   : > { %v1430_v15 = vpop.f32.mrb[28].mxu1 }
 0x3ac   : > { %v7733_v23 = vadd.f32 %v1430_v15, %v7695_v45  ;;  %v6181_v19 = vpop.f32.mrb[29].mxu1 }
 0x3ad   : > { %v1433_v12 = vpop.f32.mrb[30].mxu1 }
 0x3ae   : > { %v7736_v24 = vadd.f32 %v1433_v12, %v7700_v46  ;;  %v6182_v16 = vpop.f32.mrb[31].mxu1  ;;  %v1644_v21 = vsel %vm1625_vm3, %v7733_v23, -inf }
 0x3af   : > { %1645 = vmax.xlane.f32.xlu1 %v1644_v21 }
 0x3b0   : > { %v1647_v63 = vsel %vm1625_vm3, %v7736_v24, -inf }
 0x3b1   : > { %1648 = vmax.xlane.f32.xlu0 %v1647_v63 }
 0x3b3   : > { %v1477_v7 = vpop.f32.mrb[32].mxu0 }
 0x3b4   : > { %v7743_v39 = vadd.f32 %v1477_v7, %v7695_v45  ;;  %v6187_v15 = vpop.f32.mrb[33].mxu0 }
 0x3b5   : > { %v1480_v2 = vpop.f32.mrb[34].mxu0 }
 0x3b6   : > { %v7746_v19 = vadd.f32 %v1480_v2, %v7700_v46  ;;  %v6188_v12 = vpop.f32.mrb[35].mxu0  ;;  %v1650_v16 = vsel %vm1625_vm3, %v7743_v39, -inf }
 0x3b7   : > { %1651 = vmax.xlane.f32.xlu1 %v1650_v16 }
 0x3b8   : > { %v1653_v21 = vsel %vm1625_vm3, %v7746_v19, -inf }
 0x3b9   : > { %1654 = vmax.xlane.f32.xlu0 %v1653_v21 }
 0x3bb   : > { %v1524_v11 = vpop.f32.mrb[32].mxu1 }
 0x3bc   : > { %v7753_v63 = vadd.f32 %v1524_v11, %v7695_v45  ;;  %v6193_v7 = vpop.f32.mrb[33].mxu1 }
 0x3bd   : > { %v1527_v6 = vpop.f32.mrb[34].mxu1 }
 0x3be   : > { %v7756_v15 = vadd.f32 %v1527_v6, %v7700_v46  ;;  %v6194_v2 = vpop.f32.mrb[35].mxu1  ;;  %v1656_v12 = vsel %vm1625_vm3, %v7753_v63, -inf }
 0x3bf   : > { %1657 = vmax.xlane.f32.xlu1 %v1656_v12 }
 0x3c0   : > { %v1659_v16 = vsel %vm1625_vm3, %v7756_v15, -inf }
 0x3c1   : > { %1660 = vmax.xlane.f32.xlu0 %v1659_v16 }
 0x3c3   : > { %v1571_v5 = vpop.f32.mrb[36].mxu0 }
 0x3c4   : > { %v7763_v21 = vadd.f32 %v1571_v5, %v7695_v45  ;;  %v6199_v11 = vpop.f32.mrb[37].mxu0 }
 0x3c5   : > { %v1574_v4 = vpop.f32.mrb[38].mxu0 }
 0x3c6   : > { %v7766_v7 = vadd.f32 %v1574_v4, %v7700_v46  ;;  %v6200_v6 = vpop.f32.mrb[39].mxu0  ;;  %v1662_v2 = vsel %vm1625_vm3, %v7763_v21, -inf }
 0x3c7   : > { %1663 = vmax.xlane.f32.xlu1 %v1662_v2 }
 0x3c8   : > { %v1665_v12 = vsel %vm1625_vm3, %v7766_v7, -inf }
 0x3c9   : > { %1666 = vmax.xlane.f32.xlu0 %v1665_v12 }
 0x3cb   : > { %v1618_v3 = vpop.f32.mrb[36].mxu1 }
 0x3cc   : > { %v7773_v16 = vadd.f32 %v1618_v3, %v7695_v45  ;;  %v6205_v5 = vpop.f32.mrb[37].mxu1 }
 0x3cd   : > { %v1621_v33 = vpop.f32.mrb[38].mxu1 }
 0x3ce   : > { %v7776_v11 = vadd.f32 %v1621_v33, %v7700_v46  ;;  %v6206_v4 = vpop.f32.mrb[39].mxu1  ;;  %v1668_v6 = vsel %vm1625_vm3, %v7773_v16, -inf }
 0x3cf   : > { %1669 = vmax.xlane.f32.xlu1 %v1668_v6 }
 0x3d0   : > { %v1671_v2 = vsel %vm1625_vm3, %v7776_v11, -inf }
 0x3d1   : > { %1672 = vmax.xlane.f32.xlu0 %v1671_v2 }
 0x3e0   : > { %2182 = vrot.lane.b32.xlu1 %v7542_v9, %s6981_s18 }
 0x423   : > { %v1628_v3 = vpop.xlane.xlu1 %1627 }
 0x424   : > { %v1674_v12 = vsub.f32 %v7703_v17, %v1628_v3 }
 0x425   : > { %v1631_v5 = vpop.xlane.xlu0 %1630 }
 0x426   : > { %v1690_v26 = vmul.f32 1.442695, %v1674_v12  ;;  %v1675_v33 = vsub.f32 %v7706_v37, %v1631_v5 }
 0x428   : > { %6678 = vpow2.f32 %v1690_v26  ;;  %v1692_v4 = vmul.f32 1.442695, %v1675_v33 }
 0x42a   : > { %6680 = vpow2.f32 %v1692_v4 }
 0x42c   : > { %v1634_v36 = vpop.xlane.xlu1 %1633 }
 0x42d   : > { %v1676_v6 = vsub.f32 %v7713_v20, %v1634_v36 }
 0x42e   : > { %v1637_v18 = vpop.xlane.xlu0 %1636 }
 0x42f   : > { %v1694_v60 = vmul.f32 1.442695, %v1676_v6  ;;  %v1677_v2 = vsub.f32 %v7716_v27, %v1637_v18 }
 0x431   : > { %6682 = vpow2.f32 %v1694_v60  ;;  %v1696_v49 = vmul.f32 1.442695, %v1677_v2 }
 0x432   : > { %v7788_v55 = vpop.eup %6678 }
 0x433   : > { %6684 = vpow2.f32 %v1696_v49  ;;  %v1722_v17 = vsel %vm1625_vm3, %v7788_v55, 0.0 }
 0x434   : > { %v7792_v3 = vpop.eup %6680  ;;  %v1640_v26 = vpop.xlane.xlu1 %1639  ;;  %1723 = vadd.xlane.f32.xlu1 %v1722_v17 }
 0x435   : > { %v1678_v37 = vsub.f32 %v7723_v40, %v1640_v26  ;;  %v1725_v36 = vsel %vm1625_vm3, %v7792_v3, 0.0 }
 0x436   : > { %v1643_v20 = vpop.xlane.xlu0 %1642  ;;  %1726 = vadd.xlane.f32.xlu0 %v1725_v36 }
 0x437   : > { %v1698_v18 = vmul.f32 1.442695, %v1678_v37  ;;  %v1679_v60 = vsub.f32 %v7726_v38, %v1643_v20 }
 0x439   : > { %6686 = vpow2.f32 %v1698_v18  ;;  %v1700_v27 = vmul.f32 1.442695, %v1679_v60 }
 0x43b   : > { %v7798_v49 = vpop.eup %6682  ;;  %6688 = vpow2.f32 %v1700_v27 }
 0x43c   : > { %v1646_v12 = vpop.xlane.xlu1 %1645  ;;  %v1728_v5 = vsel %vm1625_vm3, %v7798_v49, 0.0 }
 0x43d   : > { %v7802_v33 = vpop.eup %6684  ;;  %v1680_v40 = vsub.f32 %v7733_v23, %v1646_v12  ;;  %1729 = vadd.xlane.f32.xlu1 %v1728_v5 }
 0x43e   : > { %v1649_v4 = vpop.xlane.xlu0 %1648  ;;  %v1731_v6 = vsel %vm1625_vm3, %v7802_v33, 0.0 }
 0x43f   : > { %v1702_v2 = vmul.f32 1.442695, %v1680_v40  ;;  %v1681_v38 = vsub.f32 %v7736_v24, %v1649_v4  ;;  %1732 = vadd.xlane.f32.xlu0 %v1731_v6 }
 0x441   : > { %6690 = vpow2.f32 %v1702_v2  ;;  %v1704_v17 = vmul.f32 1.442695, %v1681_v38 }
 0x443   : > { %v7808_v26 = vpop.eup %6686  ;;  %6692 = vpow2.f32 %v1704_v17 }
 0x444   : > { %v1652_v37 = vpop.xlane.xlu1 %1651  ;;  %v1734_v36 = vsel %vm1625_vm3, %v7808_v26, 0.0 }
 0x445   : > { %v7812_v20 = vpop.eup %6688  ;;  %v1682_v23 = vsub.f32 %v7743_v39, %v1652_v37  ;;  %1735 = vadd.xlane.f32.xlu1 %v1734_v36 }
 0x446   : > { %v1655_v18 = vpop.xlane.xlu0 %1654  ;;  %v1737_v60 = vsel %vm1625_vm3, %v7812_v20, 0.0 }
 0x447   : > { %v1706_v24 = vmul.f32 1.442695, %v1682_v23  ;;  %v1683_v27 = vsub.f32 %v7746_v19, %v1655_v18  ;;  %1738 = vadd.xlane.f32.xlu0 %v1737_v60 }
 0x449   : > { %6694 = vpow2.f32 %v1706_v24  ;;  %v1708_v12 = vmul.f32 1.442695, %v1683_v27 }
 0x44b   : > { %v7818_v5 = vpop.eup %6690  ;;  %6696 = vpow2.f32 %v1708_v12 }
 0x44c   : > { %v1658_v40 = vpop.xlane.xlu1 %1657  ;;  %v1740_v4 = vsel %vm1625_vm3, %v7818_v5, 0.0 }
 0x44d   : > { %v7822_v6 = vpop.eup %6692  ;;  %v1684_v39 = vsub.f32 %v7753_v63, %v1658_v40  ;;  %1741 = vadd.xlane.f32.xlu1 %v1740_v4 }
 0x44e   : > { %v1661_v2 = vpop.xlane.xlu0 %1660  ;;  %v1743_v38 = vsel %vm1625_vm3, %v7822_v6, 0.0 }
 0x44f   : > { %v1710_v19 = vmul.f32 1.442695, %v1684_v39  ;;  %v1685_v17 = vsub.f32 %v7756_v15, %v1661_v2  ;;  %1744 = vadd.xlane.f32.xlu0 %v1743_v38 }
 0x451   : > { %6698 = vpow2.f32 %v1710_v19  ;;  %v1712_v37 = vmul.f32 1.442695, %v1685_v17 }
 0x453   : > { %v7828_v36 = vpop.eup %6694  ;;  %6700 = vpow2.f32 %v1712_v37 }
 0x454   : > { %v1664_v23 = vpop.xlane.xlu1 %1663  ;;  %v1746_v18 = vsel %vm1625_vm3, %v7828_v36, 0.0 }
 0x455   : > { %v7832_v60 = vpop.eup %6696  ;;  %v1686_v63 = vsub.f32 %v7763_v21, %v1664_v23  ;;  %1747 = vadd.xlane.f32.xlu1 %v1746_v18 }
 0x456   : > { %v1667_v24 = vpop.xlane.xlu0 %1666  ;;  %v1749_v27 = vsel %vm1625_vm3, %v7832_v60, 0.0 }
 0x457   : > { %v1714_v15 = vmul.f32 1.442695, %v1686_v63  ;;  %v1687_v12 = vsub.f32 %v7766_v7, %v1667_v24  ;;  %1750 = vadd.xlane.f32.xlu0 %v1749_v27 }
 0x459   : > { %6702 = vpow2.f32 %v1714_v15  ;;  %v1716_v40 = vmul.f32 1.442695, %v1687_v12 }
 0x45b   : > { %v7838_v4 = vpop.eup %6698  ;;  %6704 = vpow2.f32 %v1716_v40 }
 0x45c   : > { %v1670_v39 = vpop.xlane.xlu1 %1669  ;;  %v1752_v2 = vsel %vm1625_vm3, %v7838_v4, 0.0 }
 0x45d   : > { %v7842_v38 = vpop.eup %6700  ;;  %v1688_v21 = vsub.f32 %v7773_v16, %v1670_v39  ;;  %1753 = vadd.xlane.f32.xlu1 %v1752_v2 }
 0x45e   : > { %v1673_v19 = vpop.xlane.xlu0 %1672  ;;  %v1755_v17 = vsel %vm1625_vm3, %v7842_v38, 0.0 }
 0x45f   : > { %v1718_v7 = vmul.f32 1.442695, %v1688_v21  ;;  %v1689_v37 = vsub.f32 %v7776_v11, %v1673_v19  ;;  %1756 = vadd.xlane.f32.xlu0 %v1755_v17 }
 0x460   : > { %v7902_v40 = vpop.permute.xlu1 %2182 }
 0x461   : > { %6706 = vpow2.f32 %v1718_v7  ;;  %v1720_v23 = vmul.f32 1.442695, %v1689_v37 }
 0x463   : > { %v7848_v18 = vpop.eup %6702  ;;  %6708 = vpow2.f32 %v1720_v23 }
 0x464   : > { %v1758_v63 = vsel %vm1625_vm3, %v7848_v18, 0.0 }
 0x465   : > { %v7852_v24 = vpop.eup %6704  ;;  %1759 = vadd.xlane.f32.xlu1 %v1758_v63 }
 0x466   : > { %v1761_v16 = vsel %vm1625_vm3, %v7852_v24, 0.0 }
 0x467   : > { %1762 = vadd.xlane.f32.xlu0 %v1761_v16 }
 0x46b   : > { %v7856_v27 = vpop.eup %6706 }
 0x46c   : > { %v1764_v11 = vsel %vm1625_vm3, %v7856_v27, 0.0 }
 0x46d   : > { %v7860_v15 = vpop.eup %6708  ;;  %1765 = vadd.xlane.f32.xlu1 %v1764_v11 }
 0x46e   : > { %v1767_v12 = vsel %vm1625_vm3, %v7860_v15, 0.0 }
 0x46f   : > { %1768 = vadd.xlane.f32.xlu0 %v1767_v12  ;;  %v9455_v12 = vmov 0.0  }
 0x47e   : > { %2179 = vrot.lane.b32.xlu1 %v7537_v25, %s6981_s18 }
 0x482   : > { %2288 = vrot.lane.b32.xlu1 %v7582_v35, %s6981_s18 }
 0x485   : > { %2235 = vrot.lane.b32.xlu0 %v7559_v59, %s6981_s18 }
 0x486   : > { %2341 = vrot.lane.b32.xlu1 %v7605_v52, %s6981_s18 }
 0x489   : > { %2232 = vrot.lane.b32.xlu0 %v7555_v14, %s6981_s18 }
 0x48a   : > { %2394 = vrot.lane.b32.xlu1 %v7628_v61, %s6981_s18 }
 0x48d   : > { %2285 = vrot.lane.b32.xlu0 %v7578_v58, %s6981_s18 }
 0x48e   : > { %2447 = vrot.lane.b32.xlu1 %v7645_v41, %s6981_s18 }
 0x491   : > { %2338 = vrot.lane.b32.xlu0 %v7601_v51, %s6981_s18 }
 0x492   : > { %2500 = vrot.lane.b32.xlu1 %v7660_v43, %s6981_s18 }
 0x495   : > { %2391 = vrot.lane.b32.xlu0 %v7624_v8, %s6981_s18 }
 0x496   : > { %2553 = vrot.lane.b32.xlu1 %v7675_v56, %s6981_s18 }
 0x499   : > { %2444 = vrot.lane.b32.xlu0 %v7643_v13, %s6981_s18 }
 0x49a   : > { %2550 = vrot.lane.b32.xlu1 %v7673_v42, %s6981_s18 }
 0x49d   : > { %2497 = vrot.lane.b32.xlu0 %v7658_v44, %s6981_s18 }
 0x49e   : > { %2787 = vrot.lane.b32.xlu1 %v7561_v30, %s6981_s18 }
 0x4a1   : > { %2835 = vrot.lane.b32.xlu0 %v7557_v22, %s6981_s18 }
 0x4a2   : > { %2883 = vrot.lane.b32.xlu1 %v7584_v1, %s6981_s18 }
 0x4a6   : > { %2931 = vrot.lane.b32.xlu1 %v7580_v0, %s6981_s18 }
 0x4c1   : > { %v1724_v39 = vpop.xlane.xlu1 %1723 }
 0x4c2   : > { %6710 = vrcp.f32 %v1724_v39 }
 0x4c3   : > { %v1727_v2 = vpop.xlane.xlu0 %1726 }
 0x4c4   : > { %6712 = vrcp.f32 %v1727_v2 }
 0x4ca   : > { %v1730_v21 = vpop.xlane.xlu1 %1729 }
 0x4cb   : > { %6714 = vrcp.f32 %v1730_v21 }
 0x4cc   : > { %v6711_v19 = vpop.eup %6710  ;;  %v1733_v17 = vpop.xlane.xlu0 %1732 }
 0x4cd   : > { %6716 = vrcp.f32 %v1733_v17  ;;  %v1786_v37 = vmul.f32 %v6711_v19, %v7788_v55 }
 0x4ce   : > { %v6713_v7 = vpop.eup %6712 }
 0x4cf   : > { %v1787_v23 = vmul.f32 %v6713_v7, %v7792_v3 }
 0x4d1   : > { %v1802_v63 = vpack.c.bf16 %v1787_v23, %v1786_v37 }
 0x4d2   : > { %v1736_v16 = vpop.xlane.xlu1 %1735 }
 0x4d3   : > { %6718 = vrcp.f32 %v1736_v16  ;;  %6210 = vmatmul.mubr.msk.bf16.vlgmr.msra.gmra.mrb[40].mxu0 %vm1625_vm3, %v1802_v63 }
 0x4d4   : > { %6220 = vmatpush3.bf16.msra.mxu0 %v7584_v1  ;;  %v1739_v11 = vpop.xlane.xlu0 %1738  ;;  %6221 = vmatprep.mubr.msk.bf16.mxu0 %vm6980_vm1, %v9455_v12 }
 0x4d5   : > { %v6715_v39 = vpop.eup %6714  ;;  %6720 = vrcp.f32 %v1739_v11  ;;  %6231 = vmatprep.subr.bf16.mxu0 %v9455_v12 }
 0x4d6   : > { %v1788_v55 = vmul.f32 %v6715_v39, %v7798_v49 }
 0x4d7   : > { %v6717_v2 = vpop.eup %6716 }
 0x4d8   : > { %v1789_v3 = vmul.f32 %v6717_v2, %v7802_v33 }
 0x4da   : > { %v1742_v21 = vpop.xlane.xlu1 %1741  ;;  %v1803_v19 = vpack.c.bf16 %v1789_v3, %v1788_v55 }
 0x4db   : > { %6722 = vrcp.f32 %v1742_v21 }
 0x4dc   : > { %6216 = vmatmul.mubr.msk.bf16.vlgmr.msra.gmra.mrb[40].mxu1 %vm1625_vm3, %v1803_v19  ;;  %v1745_v17 = vpop.xlane.xlu0 %1744 }
 0x4dd   : > { %v6719_v7 = vpop.eup %6718  ;;  %6226 = vmatpush3.bf16.msra.mxu1 %v7580_v0  ;;  %6724 = vrcp.f32 %v1745_v17  ;;  %6227 = vmatprep.mubr.msk.bf16.mxu1 %vm6980_vm1, %v9455_v12 }
 0x4de   : > { %6237 = vmatprep.subr.bf16.mxu1 %v9455_v12  ;;  %v1790_v49 = vmul.f32 %v6719_v7, %v7808_v26 }
 0x4df   : > { %v6721_v37 = vpop.eup %6720 }
 0x4e0   : > { %v1791_v33 = vmul.f32 %v6721_v37, %v7812_v20 }
 0x4e2   : > { %v1748_v23 = vpop.xlane.xlu1 %1747  ;;  %v1804_v63 = vpack.c.bf16 %v1791_v33, %v1790_v49 }
 0x4e3   : > { %6726 = vrcp.f32 %v1748_v23 }
 0x4e4   : > { %6222 = vmatmul.mubr.msk.bf16.vlgmr.msra.gmra.mrb[44].mxu0 %vm1625_vm3, %v1804_v63  ;;  %v1751_v16 = vpop.xlane.xlu0 %1750 }
 0x4e5   : > { %v6723_v11 = vpop.eup %6722  ;;  %6232 = vmatpush3.bf16.msra.mxu0 %v7607_v62  ;;  %6728 = vrcp.f32 %v1751_v16  ;;  %6233 = vmatprep.mubr.msk.bf16.mxu0 %vm6980_vm1, %v9455_v12 }
 0x4e6   : > { %6243 = vmatprep.subr.bf16.mxu0 %v9455_v12  ;;  %v1792_v26 = vmul.f32 %v6723_v11, %v7818_v5 }
 0x4e7   : > { %v6725_v39 = vpop.eup %6724 }
 0x4e8   : > { %v1793_v20 = vmul.f32 %v6725_v39, %v7822_v6 }
 0x4ea   : > { %v1754_v2 = vpop.xlane.xlu1 %1753  ;;  %v1805_v55 = vpack.c.bf16 %v1793_v20, %v1792_v26 }
 0x4eb   : > { %6730 = vrcp.f32 %v1754_v2 }
 0x4ec   : > { %6228 = vmatmul.mubr.msk.bf16.vlgmr.msra.gmra.mrb[44].mxu1 %vm1625_vm3, %v1805_v55  ;;  %v1757_v3 = vpop.xlane.xlu0 %1756 }
 0x4ed   : > { %v6727_v21 = vpop.eup %6726  ;;  %6238 = vmatpush3.bf16.msra.mxu1 %v7603_v54  ;;  %6732 = vrcp.f32 %v1757_v3  ;;  %6239 = vmatprep.mubr.msk.bf16.mxu1 %vm6980_vm1, %v9455_v12  ;;  %v2188_v3 = vsel %vm1248_vm2, %v7902_v40, 0 }
 0x4ee   : > { %6249 = vmatprep.subr.bf16.mxu1 %v9455_v12  ;;  %v1794_v5 = vmul.f32 %v6727_v21, %v7828_v36 }
 0x4ef   : > { %v6729_v19 = vpop.eup %6728 }
 0x4f0   : > { %v1795_v6 = vmul.f32 %v6729_v19, %v7832_v60 }
 0x4f2   : > { %v1760_v17 = vpop.xlane.xlu1 %1759  ;;  %v1806_v7 = vpack.c.bf16 %v1795_v6, %v1794_v5 }
 0x4f3   : > { %6734 = vrcp.f32 %v1760_v17 }
 0x4f4   : > { %6234 = vmatmul.mubr.msk.bf16.vlgmr.msra.gmra.mrb[48].mxu0 %vm1625_vm3, %v1806_v7  ;;  %v1763_v37 = vpop.xlane.xlu0 %1762 }
 0x4f5   : > { %v6731_v49 = vpop.eup %6730  ;;  %6244 = vmatpush3.bf16.msra.mxu0 %v7630_v29  ;;  %6736 = vrcp.f32 %v1763_v37  ;;  %6245 = vmatprep.mubr.msk.bf16.mxu0 %vm6980_vm1, %v9455_v12 }
 0x4f6   : > { %6255 = vmatprep.subr.bf16.mxu0 %v9455_v12  ;;  %v1796_v36 = vmul.f32 %v6731_v49, %v7838_v4 }
 0x4f7   : > { %v6733_v33 = vpop.eup %6732 }
 0x4f8   : > { %v1797_v60 = vmul.f32 %v6733_v33, %v7842_v38 }
 0x4fa   : > { %v1766_v23 = vpop.xlane.xlu1 %1765  ;;  %v1807_v63 = vpack.c.bf16 %v1797_v60, %v1796_v36 }
 0x4fb   : > { %6738 = vrcp.f32 %v1766_v23 }
 0x4fc   : > { %6240 = vmatmul.mubr.msk.bf16.vlgmr.msra.gmra.mrb[48].mxu1 %vm1625_vm3, %v1807_v63  ;;  %v1769_v16 = vpop.xlane.xlu0 %1768 }
 0x4fd   : > { %v6735_v11 = vpop.eup %6734  ;;  %6250 = vmatpush3.bf16.msra.mxu1 %v7626_v50  ;;  %6740 = vrcp.f32 %v1769_v16  ;;  %6251 = vmatprep.mubr.msk.bf16.mxu1 %vm6980_vm1, %v9455_v12 }
 0x4fe   : > { %v2180_v39 = vpop.permute.xlu1 %2179  ;;  %6261 = vmatprep.subr.bf16.mxu1 %v9455_v12  ;;  %v1798_v4 = vmul.f32 %v6735_v11, %v7848_v18 }
 0x4ff   : > { %v6737_v26 = vpop.eup %6736 }
 0x500   : > { %v1799_v38 = vmul.f32 %v6737_v26, %v7852_v24  ;;  %v2236_v20 = vpop.permute.xlu0 %2235 }
 0x501   : > { %v2241_v40 = vsel %vm1248_vm2, %v2236_v20, 0 }
 0x502   : > { %v2289_v2 = vpop.permute.xlu1 %2288  ;;  %v1808_v55 = vpack.c.bf16 %v1799_v38, %v1798_v4 }
 0x503   : > { %v2294_v49 = vsel %vm1248_vm2, %v2289_v2, 0 }
 0x504   : > { %6246 = vmatmul.mubr.msk.bf16.vlgmr.msra.gmra.mrb[52].mxu0 %vm1625_vm3, %v1808_v55  ;;  %v2233_v19 = vpop.permute.xlu0 %2232 }
 0x505   : > { %v6739_v21 = vpop.eup %6738  ;;  %6256 = vmatpush3.bf16.xpose.msra.mxu0 %v2188_v3  ;;  %6257 = vmatprep.mubr.msk.bf16.mxu0 %vm6980_vm1, %v9455_v12 }
 0x506   : > { %v2342_v5 = vpop.permute.xlu1 %2341  ;;  %6267 = vmatprep.subr.bf16.mxu0 %v9455_v12  ;;  %v1800_v24 = vmul.f32 %v6739_v21, %v7856_v27 }
 0x507   : > { %v6741_v18 = vpop.eup %6740  ;;  %v2347_v36 = vsel %vm1248_vm2, %v2342_v5, 0 }
 0x508   : > { %v1801_v6 = vmul.f32 %v6741_v18, %v7860_v15  ;;  %v2286_v37 = vpop.permute.xlu0 %2285 }
 0x50a   : > { %v2395_v17 = vpop.permute.xlu1 %2394  ;;  %v1809_v7 = vpack.c.bf16 %v1801_v6, %v1800_v24 }
 0x50b   : > { %v2400_v60 = vsel %vm1248_vm2, %v2395_v17, 0 }
 0x50c   : > { %6252 = vmatmul.mubr.msk.bf16.vlgmr.msra.gmra.mrb[52].mxu1 %vm1625_vm3, %v1809_v7  ;;  %6258 = vmatmul.mubr.msk.bf16.vlgmr.msra.gmra.mrb[56].mxu0 %vm1248_vm2, %v2180_v39  ;;  %v2339_v27 = vpop.permute.xlu0 %2338 }
 0x50d   : > { %6262 = vmatpush3.bf16.xpose.msra.mxu1 %v2241_v40  ;;  %6268 = vmatpush3.bf16.xpose.msra.mxu0 %v2294_v49 }
 0x50e   : > { %v2448_v33 = vpop.permute.xlu1 %2447  ;;  %6263 = vmatprep.mubr.msk.bf16.mxu1 %vm6980_vm1, %v9455_v12  ;;  %6269 = vmatprep.mubr.msk.bf16.mxu0 %vm6980_vm1, %v9455_v12 }
 0x50f   : > { %6273 = vmatprep.subr.bf16.mxu1 %v9455_v12  ;;  %6279 = vmatprep.subr.bf16.mxu0 %v9455_v12  ;;  %v2453_v16 = vsel %vm1248_vm2, %v2448_v33, 0 }
 0x510   : > { %v2392_v23 = vpop.permute.xlu0 %2391 }
 0x512   : > { %v2501_v15 = vpop.permute.xlu1 %2500 }
 0x513   : > { %v2506_v11 = vsel %vm1248_vm2, %v2501_v15, 0 }
 0x514   : > { %6264 = vmatmul.mubr.msk.bf16.vlgmr.msra.gmra.mrb[56].mxu1 %vm1248_vm2, %v2233_v19  ;;  %6270 = vmatmul.mubr.msk.bf16.vlgmr.msra.gmra.mrb[60].mxu0 %vm1248_vm2, %v2286_v37  ;;  %v2445_v39 = vpop.permute.xlu0 %2444 }
 0x515   : > { %6274 = vmatpush3.bf16.xpose.msra.mxu1 %v2347_v36  ;;  %6280 = vmatpush3.bf16.xpose.msra.mxu0 %v2400_v60 }
 0x516   : > { %6275 = vmatprep.mubr.msk.bf16.mxu1 %vm6980_vm1, %v9455_v12  ;;  %6281 = vmatprep.mubr.msk.bf16.mxu0 %vm6980_vm1, %v9455_v12  ;;  %v2554_v63 = vpop.permute.xlu1 %2553 }
 0x517   : > { %6285 = vmatprep.subr.bf16.mxu1 %v9455_v12  ;;  %6291 = vmatprep.subr.bf16.mxu0 %v9455_v12  ;;  %v2559_v38 = vsel %vm1248_vm2, %v2554_v63, 0 }
 0x518   : > { %v2498_v4 = vpop.permute.xlu0 %2497 }
 0x51a   : > { %v2551_v26 = vpop.permute.xlu1 %2550 }
 0x51c   : > { %6276 = vmatmul.mubr.msk.bf16.vlgmr.msra.gmra.mrb[60].mxu1 %vm1248_vm2, %v2339_v27  ;;  %6282 = vmatmul.mubr.msk.bf16.vlgmr.msra.gmra.mrb[64].mxu0 %vm1248_vm2, %v2392_v23  ;;  %v2836_v2 = vpop.permute.xlu0 %2835 }
 0x51d   : > { %6286 = vmatpush3.bf16.xpose.msra.mxu1 %v2453_v16  ;;  %6292 = vmatpush3.bf16.xpose.msra.mxu0 %v2506_v11 }
 0x51e   : > { %6287 = vmatprep.mubr.msk.bf16.mxu1 %vm6980_vm1, %v9455_v12  ;;  %6293 = vmatprep.mubr.msk.bf16.mxu0 %vm6980_vm1, %v9455_v12  ;;  %v2788_v20 = vpop.permute.xlu1 %2787 }
 0x51f   : > { %6297 = vmatprep.subr.bf16.mxu1 %v9455_v12  ;;  %6303 = vmatprep.subr.bf16.mxu0 %v9455_v12 }
 0x524   : > { %6288 = vmatmul.mubr.msk.bf16.vlgmr.msra.gmra.mrb[64].mxu1 %vm1248_vm2, %v2445_v39  ;;  %6294 = vmatmul.mubr.msk.bf16.vlgmr.msra.gmra.mrb[68].mxu0 %vm1248_vm2, %v2498_v4 }
 0x525   : > { %6298 = vmatpush3.bf16.xpose.msra.mxu1 %v2559_v38  ;;  %6304 = vmatpush3.bf16.msra.mxu0 %v2788_v20 }
 0x526   : > { %6299 = vmatprep.mubr.msk.bf16.mxu1 %vm6980_vm1, %v9455_v12  ;;  %6309 = vmatprep.subr.bf16.mxu1 %v9455_v12 }
 0x527   : > { %6305 = vmatprep.mubr.msk.bf16.mxu0 %vm6980_vm1, %v9455_v12  ;;  %6315 = vmatprep.subr.bf16.mxu0 %v9455_v12 }
 0x52c   : > { %6300 = vmatmul.mubr.msk.bf16.vlgmr.msra.gmra.mrb[68].mxu1 %vm1248_vm2, %v2551_v26 }
 0x52d   : > { %6310 = vmatpush3.bf16.msra.mxu1 %v2836_v2  ;;  %6311 = vmatprep.mubr.msk.bf16.mxu1 %vm6980_vm1, %v9455_v12 }
 0x52e   : > { %6321 = vmatprep.subr.bf16.mxu1 %v9455_v12 }
 0x5a6   : > { %v1847_v55 = vpop.f32.mrb[40].mxu0 }
 0x5a7   : > { %v6211_v3 = vpop.f32.mrb[41].mxu0 }
 0x5a8   : > { %v1850_v21 = vpop.f32.mrb[42].mxu0 }
 0x5a9   : > { %v2162_v19 = vpack.c.bf16 %v1850_v21, %v1847_v55  ;;  %v6212_v5 = vpop.f32.mrb[43].mxu0 }
 0x5ab   : > { %2170 = vst.msk [vmem:[#allocation2] sm:$0xff] %vm1248_vm2, %v2162_v19 }
 0x5af   : > { %v1891_v18 = vpop.f32.mrb[40].mxu1 }
 0x5b0   : > { %v6217_v24 = vpop.f32.mrb[41].mxu1 }
 0x5b1   : > { %v1894_v6 = vpop.f32.mrb[42].mxu1 }
 0x5b2   : > { %v2163_v17 = vpack.c.bf16 %v1894_v6, %v1891_v18  ;;  %v6218_v7 = vpop.f32.mrb[43].mxu1 }
 0x5b4   : > { %2171 = vst.msk [vmem:[#allocation2 + $0x8] sm:$0xff] %vm1248_vm2, %v2163_v17 }
 0x5b7   : > { %v1935_v37 = vpop.f32.mrb[44].mxu0 }
 0x5b8   : > { %v6223_v40 = vpop.f32.mrb[45].mxu0 }
 0x5b9   : > { %v1938_v49 = vpop.f32.mrb[46].mxu0 }
 0x5ba   : > { %v2164_v33 = vpack.c.bf16 %v1938_v49, %v1935_v37  ;;  %v6224_v27 = vpop.f32.mrb[47].mxu0 }
 0x5bc   : > { %2172 = vst.msk [vmem:[#allocation2 + $0x10] sm:$0xff] %vm1248_vm2, %v2164_v33 }
 0x5bf   : > { %v1979_v15 = vpop.f32.mrb[44].mxu1 }
 0x5c0   : > { %v6229_v36 = vpop.f32.mrb[45].mxu1 }
 0x5c1   : > { %v1982_v60 = vpop.f32.mrb[46].mxu1 }
 0x5c2   : > { %v2165_v23 = vpack.c.bf16 %v1982_v60, %v1979_v15  ;;  %v6230_v63 = vpop.f32.mrb[47].mxu1 }
 0x5c4   : > { %2173 = vst.msk [vmem:[#allocation2 + $0x18] sm:$0xff] %vm1248_vm2, %v2165_v23 }
 0x5c7   : > { %v2023_v16 = vpop.f32.mrb[48].mxu0 }
 0x5c8   : > { %v6235_v11 = vpop.f32.mrb[49].mxu0 }
 0x5c9   : > { %v2026_v39 = vpop.f32.mrb[50].mxu0 }
 0x5ca   : > { %v2166_v26 = vpack.c.bf16 %v2026_v39, %v2023_v16  ;;  %v6236_v4 = vpop.f32.mrb[51].mxu0 }
 0x5cc   : > { %2174 = vst.msk [vmem:[#allocation2 + $0x20] sm:$0xff] %vm1248_vm2, %v2166_v26 }
 0x5cf   : > { %v2067_v38 = vpop.f32.mrb[48].mxu1 }
 0x5d0   : > { %v6241_v20 = vpop.f32.mrb[49].mxu1 }
 0x5d1   : > { %v2070_v2 = vpop.f32.mrb[50].mxu1 }
 0x5d2   : > { %v2167_v55 = vpack.c.bf16 %v2070_v2, %v2067_v38  ;;  %v6242_v3 = vpop.f32.mrb[51].mxu1 }
 0x5d4   : > { %2175 = vst.msk [vmem:[#allocation2 + $0x28] sm:$0xff] %vm1248_vm2, %v2167_v55 }
 0x5d7   : > { %v2111_v21 = vpop.f32.mrb[52].mxu0 }
 0x5d8   : > { %v6247_v19 = vpop.f32.mrb[53].mxu0 }
 0x5d9   : > { %v2114_v5 = vpop.f32.mrb[54].mxu0 }
 0x5da   : > { %v2168_v18 = vpack.c.bf16 %v2114_v5, %v2111_v21  ;;  %v6248_v24 = vpop.f32.mrb[55].mxu0 }
 0x5dc   : > { %2176 = vst.msk [vmem:[#allocation2 + $0x30] sm:$0xff] %vm1248_vm2, %v2168_v18 }
 0x5df   : > { %v2155_v6 = vpop.f32.mrb[52].mxu1  ;;  %v2224_v17 = vpop.f32.mrb[56].mxu0 }
 0x5e0   : > { %v8007_v7 = vadd.f32 %v2224_v17, %v7695_v45  ;;  %v6253_v37 = vpop.f32.mrb[53].mxu1  ;;  %v6259_v40 = vpop.f32.mrb[57].mxu0 }
 0x5e1   : > { %v2158_v49 = vpop.f32.mrb[54].mxu1  ;;  %v2227_v33 = vpop.f32.mrb[58].mxu0 }
 0x5e2   : > { %v2169_v27 = vpack.c.bf16 %v2158_v49, %v2155_v6  ;;  %v8010_v15 = vadd.f32 %v2227_v33, %v7700_v46  ;;  %v6254_v36 = vpop.f32.mrb[55].mxu1  ;;  %v6260_v60 = vpop.f32.mrb[59].mxu0  ;;  %v2602_v23 = vsel %vm1625_vm3, %v8007_v7, -inf }
 0x5e3   : > { %2603 = vmax.xlane.f32.xlu0 %v2602_v23 }
 0x5e4   : > { %2177 = vst.msk [vmem:[#allocation2 + $0x38] sm:$0xff] %vm1248_vm2, %v2169_v27  ;;  %v2605_v63 = vsel %vm1625_vm3, %v8010_v15, -inf }
 0x5e5   : > { %2606 = vmax.xlane.f32.xlu1 %v2605_v63 }
 0x5e7   : > { %v2277_v16 = vpop.f32.mrb[56].mxu1  ;;  %v2330_v11 = vpop.f32.mrb[60].mxu0 }
 0x5e8   : > { %v8018_v39 = vadd.f32 %v2277_v16, %v7695_v45  ;;  %v8021_v26 = vadd.f32 %v2330_v11, %v7695_v45  ;;  %v6265_v4 = vpop.f32.mrb[57].mxu1  ;;  %v6271_v38 = vpop.f32.mrb[61].mxu0 }
 0x5e9   : > { %v2280_v20 = vpop.f32.mrb[58].mxu1  ;;  %v2333_v2 = vpop.f32.mrb[62].mxu0 }
 0x5ea   : > { %v8024_v55 = vadd.f32 %v2280_v20, %v7700_v46  ;;  %v6266_v3 = vpop.f32.mrb[59].mxu1  ;;  %v6272_v21 = vpop.f32.mrb[63].mxu0  ;;  %v2614_v19 = vsel %vm1625_vm3, %v8021_v26, -inf  ;;  %v2608_v5 = vsel %vm1625_vm3, %v8018_v39, -inf  ;;  %v8031_v18 = vadd.f32 %v2333_v2, %v7700_v46 }
 0x5eb   : > { %2615 = vmax.xlane.f32.xlu1 %v2614_v19  ;;  %2609 = vmax.xlane.f32.xlu0 %v2608_v5 }
 0x5ec   : > { %v2611_v24 = vsel %vm1625_vm3, %v8024_v55, -inf  ;;  %v2617_v16 = vsel %vm1625_vm3, %v8031_v18, -inf }
 0x5ef   : > { %v2436_v6 = vpop.f32.mrb[64].mxu0  ;;  %2612 = vmax.xlane.f32.xlu0 %v2611_v24  ;;  %v2383_v17 = vpop.f32.mrb[60].mxu1 }
 0x5f0   : > { %v8036_v37 = vadd.f32 %v2383_v17, %v7695_v45  ;;  %v6277_v40 = vpop.f32.mrb[61].mxu1  ;;  %v6283_v49 = vpop.f32.mrb[65].mxu0  ;;  %v8039_v36 = vadd.f32 %v2436_v6, %v7695_v45 }
 0x5f1   : > { %v2386_v33 = vpop.f32.mrb[62].mxu1  ;;  %v2439_v27 = vpop.f32.mrb[66].mxu0 }
 0x5f2   : > { %v8042_v60 = vadd.f32 %v2386_v33, %v7700_v46  ;;  %v6278_v23 = vpop.f32.mrb[63].mxu1  ;;  %v6284_v63 = vpop.f32.mrb[67].mxu0  ;;  %v2620_v11 = vsel %vm1625_vm3, %v8036_v37, -inf  ;;  %v8049_v4 = vadd.f32 %v2439_v27, %v7700_v46  ;;  %v2626_v38 = vsel %vm1625_vm3, %v8039_v36, -inf }
 0x5f3   : > { %2618 = vmax.xlane.f32.xlu0 %v2617_v16  ;;  %2621 = vmax.xlane.f32.xlu1 %v2620_v11 }
 0x5f4   : > { %v2623_v20 = vsel %vm1625_vm3, %v8042_v60, -inf  ;;  %v2629_v27 = vsel %vm1625_vm3, %v8049_v4, -inf }
 0x5f7   : > { %v2542_v2 = vpop.f32.mrb[68].mxu0  ;;  %2627 = vmax.xlane.f32.xlu1 %v2626_v38  ;;  %2624 = vmax.xlane.f32.xlu0 %v2623_v20  ;;  %v2489_v3 = vpop.f32.mrb[64].mxu1 }
 0x5f8   : > { %v8056_v21 = vadd.f32 %v2489_v3, %v7695_v45  ;;  %v6289_v19 = vpop.f32.mrb[65].mxu1  ;;  %v6295_v5 = vpop.f32.mrb[69].mxu0  ;;  %v8059_v17 = vadd.f32 %v2542_v2, %v7695_v45 }
 0x5f9   : > { %v2492_v24 = vpop.f32.mrb[66].mxu1  ;;  %v2545_v6 = vpop.f32.mrb[70].mxu0 }
 0x5fa   : > { %v8062_v40 = vadd.f32 %v2492_v24, %v7700_v46  ;;  %v6290_v49 = vpop.f32.mrb[67].mxu1  ;;  %v6296_v33 = vpop.f32.mrb[71].mxu0  ;;  %v2632_v23 = vsel %vm1625_vm3, %v8056_v21, -inf  ;;  %v8069_v63 = vadd.f32 %v2545_v6, %v7700_v46  ;;  %v2638_v16 = vsel %vm1625_vm3, %v8059_v17, -inf }
 0x5fb   : > { %2630 = vmax.xlane.f32.xlu0 %v2629_v27  ;;  %2633 = vmax.xlane.f32.xlu1 %v2632_v23 }
 0x5fc   : > { %v2635_v11 = vsel %vm1625_vm3, %v8062_v40, -inf  ;;  %v2641_v24 = vsel %vm1625_vm3, %v8069_v63, -inf }
 0x5ff   : > { %2639 = vmax.xlane.f32.xlu1 %v2638_v16  ;;  %2636 = vmax.xlane.f32.xlu0 %v2635_v11  ;;  %v2595_v38 = vpop.f32.mrb[68].mxu1 }
 0x600   : > { %v8076_v20 = vadd.f32 %v2595_v38, %v7695_v45  ;;  %v6301_v2 = vpop.f32.mrb[69].mxu1  ;;  %v8095_v45 = vpop.permute.xlu1 %2883 }
 0x601   : > { %v2598_v3 = vpop.f32.mrb[70].mxu1 }
 0x602   : > { %v8079_v19 = vadd.f32 %v2598_v3, %v7700_v46  ;;  %v6302_v5 = vpop.f32.mrb[71].mxu1  ;;  %v2644_v6 = vsel %vm1625_vm3, %v8076_v20, -inf }
 0x603   : > { %2642 = vmax.xlane.f32.xlu0 %v2641_v24  ;;  %2645 = vmax.xlane.f32.xlu1 %v2644_v6 }
 0x604   : > { %v2647_v49 = vsel %vm1625_vm3, %v8079_v19, -inf  ;;  %v8097_v46 = vpop.permute.xlu1 %2931 }
 0x607   : > { %2648 = vmax.xlane.f32.xlu0 %v2647_v49 }
 0x614   : > { %3027 = vrot.lane.b32.xlu1 %v7603_v54, %s6981_s18 }
 0x618   : > { %3123 = vrot.lane.b32.xlu1 %v7626_v50, %s6981_s18 }
 0x61d   : > { %2979 = vrot.lane.b32.xlu0 %v7607_v62, %s6981_s18 }
 0x621   : > { %3075 = vrot.lane.b32.xlu0 %v7630_v29, %s6981_s18 }
 0x670   : > { %v2604_v33 = vpop.xlane.xlu0 %2603 }
 0x671   : > { %v2650_v27 = vsub.f32 %v8007_v7, %v2604_v33 }
 0x672   : > { %v2607_v23 = vpop.xlane.xlu1 %2606 }
 0x673   : > { %v2666_v16 = vmul.f32 1.442695, %v2650_v27  ;;  %v2651_v11 = vsub.f32 %v8010_v15, %v2607_v23 }
 0x675   : > { %6742 = vpow2.f32 %v2666_v16  ;;  %v2668_v38 = vmul.f32 1.442695, %v2651_v11 }
 0x677   : > { %6744 = vpow2.f32 %v2668_v38 }
 0x678   : > { %v2616_v2 = vpop.xlane.xlu1 %2615  ;;  %v2610_v3 = vpop.xlane.xlu0 %2609 }
 0x679   : > { %v2654_v5 = vsub.f32 %v8021_v26, %v2616_v2  ;;  %v2652_v24 = vsub.f32 %v8018_v39, %v2610_v3 }
 0x67b   : > { %v2670_v6 = vmul.f32 1.442695, %v2652_v24  ;;  %v2674_v49 = vmul.f32 1.442695, %v2654_v5 }
 0x67c   : > { %v2613_v10 = vpop.xlane.xlu0 %2612 }
 0x67d   : > { %v2653_v34 = vsub.f32 %v8024_v55, %v2613_v10  ;;  %6746 = vpow2.f32 %v2670_v6 }
 0x67e   : > { %6748 = vpow2.f32 %v2674_v49 }
 0x67f   : > { %v8104_v7 = vpop.eup %6742  ;;  %v2672_v33 = vmul.f32 1.442695, %v2653_v34 }
 0x680   : > { %v2619_v15 = vpop.xlane.xlu0 %2618  ;;  %v2622_v27 = vpop.xlane.xlu1 %2621  ;;  %v2698_v23 = vsel %vm1625_vm3, %v8104_v7, 0.0 }
 0x681   : > { %v8108_v16 = vpop.eup %6744  ;;  %6750 = vpow2.f32 %v2672_v33  ;;  %v2655_v39 = vsub.f32 %v8031_v18, %v2619_v15  ;;  %v2656_v26 = vsub.f32 %v8036_v37, %v2622_v27  ;;  %2699 = vadd.xlane.f32.xlu1 %v2698_v23 }
 0x682   : > { %v2701_v10 = vsel %vm1625_vm3, %v8108_v16, 0.0 }
 0x683   : > { %v2676_v55 = vmul.f32 1.442695, %v2655_v39  ;;  %v2678_v11 = vmul.f32 1.442695, %v2656_v26  ;;  %2702 = vadd.xlane.f32.xlu0 %v2701_v10 }
 0x684   : > { %v2628_v34 = vpop.xlane.xlu1 %2627  ;;  %v2625_v38 = vpop.xlane.xlu0 %2624 }
 0x685   : > { %6752 = vpow2.f32 %v2676_v55  ;;  %v2658_v2 = vsub.f32 %v8039_v36, %v2628_v34  ;;  %v2657_v3 = vsub.f32 %v8042_v60, %v2625_v38 }
 0x686   : > { %6754 = vpow2.f32 %v2678_v11 }
 0x687   : > { %v2682_v5 = vmul.f32 1.442695, %v2658_v2  ;;  %v2680_v24 = vmul.f32 1.442695, %v2657_v3  ;;  %v8116_v18 = vpop.eup %6746 }
 0x688   : > { %v2631_v37 = vpop.xlane.xlu0 %2630  ;;  %v2634_v6 = vpop.xlane.xlu1 %2633  ;;  %v2704_v15 = vsel %vm1625_vm3, %v8116_v18, 0.0 }
 0x689   : > { %6756 = vpow2.f32 %v2682_v5  ;;  %v2659_v49 = vsub.f32 %v8049_v4, %v2631_v37  ;;  %v2660_v33 = vsub.f32 %v8056_v21, %v2634_v6  ;;  %v8122_v27 = vpop.eup %6748  ;;  %2705 = vadd.xlane.f32.xlu1 %v2704_v15 }
 0x68a   : > { %6758 = vpow2.f32 %v2680_v24  ;;  %v2710_v55 = vsel %vm1625_vm3, %v8122_v27, 0.0 }
 0x68b   : > { %v8124_v36 = vpop.eup %6750  ;;  %v2684_v60 = vmul.f32 1.442695, %v2659_v49  ;;  %v2686_v23 = vmul.f32 1.442695, %v2660_v33 }
 0x68c   : > { %v2640_v39 = vpop.xlane.xlu1 %2639  ;;  %v2637_v26 = vpop.xlane.xlu0 %2636  ;;  %v2707_v10 = vsel %vm1625_vm3, %v8124_v36, 0.0 }
 0x68d   : > { %6760 = vpow2.f32 %v2684_v60  ;;  %v2662_v4 = vsub.f32 %v8059_v17, %v2640_v39  ;;  %v2661_v21 = vsub.f32 %v8062_v40, %v2637_v26  ;;  %2708 = vadd.xlane.f32.xlu0 %v2707_v10  ;;  %2711 = vadd.xlane.f32.xlu1 %v2710_v55 }
 0x68e   : > { %6762 = vpow2.f32 %v2686_v23 }
 0x68f   : > { %v8132_v11 = vpop.eup %6752  ;;  %v2690_v34 = vmul.f32 1.442695, %v2662_v4  ;;  %v2688_v38 = vmul.f32 1.442695, %v2661_v21 }
 0x690   : > { %v8134_v2 = vpop.eup %6754  ;;  %v2643_v3 = vpop.xlane.xlu0 %2642  ;;  %v2713_v24 = vsel %vm1625_vm3, %v8132_v11, 0.0 }
 0x691   : > { %v2646_v5 = vpop.xlane.xlu1 %2645  ;;  %6764 = vpow2.f32 %v2690_v34  ;;  %v2663_v17 = vsub.f32 %v8069_v63, %v2643_v3  ;;  %v2716_v37 = vsel %vm1625_vm3, %v8134_v2, 0.0  ;;  %2714 = vadd.xlane.f32.xlu0 %v2713_v24 }
 0x692   : > { %v2664_v40 = vsub.f32 %v8076_v20, %v2646_v5  ;;  %6766 = vpow2.f32 %v2688_v38  ;;  %2717 = vadd.xlane.f32.xlu1 %v2716_v37 }
 0x693   : > { %v8142_v6 = vpop.eup %6756  ;;  %v2692_v49 = vmul.f32 1.442695, %v2663_v17 }
 0x694   : > { %v2694_v33 = vmul.f32 1.442695, %v2664_v40  ;;  %v8144_v15 = vpop.eup %6758  ;;  %v2649_v60 = vpop.xlane.xlu0 %2648  ;;  %v2722_v23 = vsel %vm1625_vm3, %v8142_v6, 0.0 }
 0x695   : > { %6768 = vpow2.f32 %v2692_v49  ;;  %v2665_v63 = vsub.f32 %v8079_v19, %v2649_v60  ;;  %v2719_v20 = vsel %vm1625_vm3, %v8144_v15, 0.0  ;;  %v8219_v49 = vpop.permute.xlu1 %3027 }
 0x696   : > { %6770 = vpow2.f32 %v2694_v33  ;;  %2723 = vadd.xlane.f32.xlu1 %v2722_v23  ;;  %2720 = vadd.xlane.f32.xlu0 %v2719_v20 }
 0x697   : > { %v8151_v39 = vpop.eup %6760  ;;  %v2696_v26 = vmul.f32 1.442695, %v2665_v63 }
 0x698   : > { %v8153_v10 = vpop.eup %6762  ;;  %v2725_v4 = vsel %vm1625_vm3, %v8151_v39, 0.0  ;;  %v2980_v33 = vpop.permute.xlu0 %2979 }
 0x699   : > { %6772 = vpow2.f32 %v2696_v26  ;;  %v2728_v21 = vsel %vm1625_vm3, %v8153_v10, 0.0  ;;  %v8221_v60 = vpop.permute.xlu1 %3123 }
 0x69a   : > { %2729 = vadd.xlane.f32.xlu1 %v2728_v21  ;;  %2726 = vadd.xlane.f32.xlu0 %v2725_v4 }
 0x69b   : > { %v8159_v19 = vpop.eup %6764 }
 0x69c   : > { %v8161_v55 = vpop.eup %6766  ;;  %v2734_v34 = vsel %vm1625_vm3, %v8159_v19, 0.0  ;;  %v8223_v23 = vpop.permute.xlu0 %3075 }
 0x69d   : > { %v2731_v38 = vsel %vm1625_vm3, %v8161_v55, 0.0 }
 0x69e   : > { %2735 = vadd.xlane.f32.xlu1 %v2734_v34  ;;  %2732 = vadd.xlane.f32.xlu0 %v2731_v38 }
 0x69f   : > { %v8167_v3 = vpop.eup %6768 }
 0x6a0   : > { %v8169_v5 = vpop.eup %6770  ;;  %v2737_v24 = vsel %vm1625_vm3, %v8167_v3, 0.0 }
 0x6a1   : > { %v2740_v17 = vsel %vm1625_vm3, %v8169_v5, 0.0 }
 0x6a2   : > { %2741 = vadd.xlane.f32.xlu1 %v2740_v17  ;;  %2738 = vadd.xlane.f32.xlu0 %v2737_v24 }
 0x6a3   : > { %v8175_v40 = vpop.eup %6772 }
 0x6a4   : > { %v2743_v37 = vsel %vm1625_vm3, %v8175_v40, 0.0 }
 0x6a6   : > { %2744 = vadd.xlane.f32.xlu0 %v2743_v37 }
 0x6b3   : > { %3272 = vrot.lane.b32.xlu1 %v7559_v59, %s6982_s19 }
 0x6b7   : > { %3323 = vrot.lane.b32.xlu1 %v7582_v35, %s6982_s19 }
 0x6bb   : > { %3374 = vrot.lane.b32.xlu1 %v7605_v52, %s6982_s19 }
 0x6bc   : > { %3221 = vrot.lane.b32.xlu0 %v7542_v9, %s6982_s19 }
 0x6bf   : > { %3425 = vrot.lane.b32.xlu1 %v7628_v61, %s6982_s19 }
 0x6c0   : > { %3219 = vrot.lane.b32.xlu0 %v7537_v25, %s6982_s19 }
 0x6c3   : > { %3476 = vrot.lane.b32.xlu1 %v7645_v41, %s6982_s19 }
 0x6c4   : > { %3270 = vrot.lane.b32.xlu0 %v7555_v14, %s6982_s19 }
 0x6c7   : > { %3527 = vrot.lane.b32.xlu1 %v7660_v43, %s6982_s19 }
 0x6c8   : > { %3321 = vrot.lane.b32.xlu0 %v7578_v58, %s6982_s19 }
 0x6cb   : > { %3578 = vrot.lane.b32.xlu1 %v7675_v56, %s6982_s19 }
 0x6cc   : > { %3372 = vrot.lane.b32.xlu0 %v7601_v51, %s6982_s19 }
 0x6cf   : > { %3576 = vrot.lane.b32.xlu1 %v7673_v42, %s6982_s19 }
 0x6d0   : > { %3423 = vrot.lane.b32.xlu0 %v7624_v8, %s6982_s19 }
 0x6d3   : > { %3811 = vrot.lane.b32.xlu1 %v7561_v30, %s6982_s19 }
 0x6d4   : > { %3474 = vrot.lane.b32.xlu0 %v7643_v13, %s6982_s19 }
 0x6d7   : > { %3905 = vrot.lane.b32.xlu1 %v7584_v1, %s6982_s19 }
 0x6d8   : > { %3525 = vrot.lane.b32.xlu0 %v7658_v44, %s6982_s19 }
 0x6db   : > { %3952 = vrot.lane.b32.xlu1 %v7580_v0, %s6982_s19 }
 0x6dc   : > { %3858 = vrot.lane.b32.xlu0 %v7557_v22, %s6982_s19 }
 0x70e   : > { %v2700_v63 = vpop.xlane.xlu1 %2699 }
 0x70f   : > { %6774 = vrcp.f32 %v2700_v63 }
 0x710   : > { %v2703_v20 = vpop.xlane.xlu0 %2702 }
 0x711   : > { %6776 = vrcp.f32 %v2703_v20 }
 0x716   : > { %v2706_v26 = vpop.xlane.xlu1 %2705 }
 0x717   : > { %6778 = vrcp.f32 %v2706_v26 }
 0x719   : > { %v6775_v4 = vpop.eup %6774 }
 0x71a   : > { %v2709_v21 = vpop.xlane.xlu0 %2708  ;;  %v2712_v38 = vpop.xlane.xlu1 %2711  ;;  %v2762_v24 = vmul.f32 %v6775_v4, %v8104_v7 }
 0x71b   : > { %v6777_v34 = vpop.eup %6776  ;;  %6780 = vrcp.f32 %v2709_v21 }
 0x71c   : > { %v2763_v17 = vmul.f32 %v6777_v34, %v8108_v16  ;;  %6782 = vrcp.f32 %v2712_v38 }
 0x71e   : > { %v2715_v37 = vpop.xlane.xlu0 %2714  ;;  %v2778_v32 = vpack.c.bf16 %v2763_v17, %v2762_v24 }
 0x71f   : > { %v2718_v48 = vpop.xlane.xlu1 %2717  ;;  %6784 = vrcp.f32 %v2715_v37 }
 0x720   : > { %6306 = vmatmul.mubr.msk.bf16.vlgmr.msra.gmra.mrb[72].mxu0 %vm1625_vm3, %v2778_v32  ;;  %6786 = vrcp.f32 %v2718_v48 }
 0x721   : > { %6316 = vmatpush3.bf16.msra.mxu0 %v8095_v45  ;;  %6317 = vmatprep.mubr.msk.bf16.mxu0 %vm6980_vm1, %v9455_v12  ;;  %v6779_v63 = vpop.eup %6778 }
 0x722   : > { %6327 = vmatprep.subr.bf16.mxu0 %v9455_v12  ;;  %v2764_v16 = vmul.f32 %v6779_v63, %v8116_v18 }
 0x723   : > { %v2724_v20 = vpop.xlane.xlu1 %2723  ;;  %v2721_v7 = vpop.xlane.xlu0 %2720 }
 0x724   : > { %6788 = vrcp.f32 %v2721_v7 }
 0x725   : > { %v6781_v26 = vpop.eup %6780  ;;  %6790 = vrcp.f32 %v2724_v20 }
 0x726   : > { %v2765_v4 = vmul.f32 %v6781_v26, %v8124_v36  ;;  %v6783_v21 = vpop.eup %6782 }
 0x727   : > { %v2730_v32 = vpop.xlane.xlu1 %2729  ;;  %v2727_v34 = vpop.xlane.xlu0 %2726  ;;  %v2766_v24 = vmul.f32 %v6783_v21, %v8122_v27 }
 0x728   : > { %v2779_v45 = vpack.c.bf16 %v2765_v4, %v2764_v16  ;;  %6792 = vrcp.f32 %v2727_v34 }
 0x729   : > { %v6785_v38 = vpop.eup %6784  ;;  %6794 = vrcp.f32 %v2730_v32 }
 0x72a   : > { %v2767_v17 = vmul.f32 %v6785_v38, %v8132_v11  ;;  %6312 = vmatmul.mubr.msk.bf16.vlgmr.msra.gmra.mrb[72].mxu1 %vm1625_vm3, %v2779_v45  ;;  %v6787_v37 = vpop.eup %6786 }
 0x72b   : > { %v2736_v48 = vpop.xlane.xlu1 %2735  ;;  %6322 = vmatpush3.bf16.msra.mxu1 %v8097_v46  ;;  %v2733_v18 = vpop.xlane.xlu0 %2732  ;;  %6323 = vmatprep.mubr.msk.bf16.mxu1 %vm6980_vm1, %v9455_v12  ;;  %v2768_v46 = vmul.f32 %v6787_v37, %v8134_v2 }
 0x72c   : > { %v2780_v36 = vpack.c.bf16 %v2767_v17, %v2766_v24  ;;  %6333 = vmatprep.subr.bf16.mxu1 %v9455_v12  ;;  %6796 = vrcp.f32 %v2733_v18 }
 0x72d   : > { %6798 = vrcp.f32 %v2736_v48 }
 0x72e   : > { %6318 = vmatmul.mubr.msk.bf16.vlgmr.msra.gmra.mrb[76].mxu0 %vm1625_vm3, %v2780_v36  ;;  %v6789_v27 = vpop.eup %6788 }
 0x72f   : > { %v2742_v11 = vpop.xlane.xlu1 %2741  ;;  %6328 = vmatpush3.bf16.msra.mxu0 %v2980_v33  ;;  %v2739_v63 = vpop.xlane.xlu0 %2738  ;;  %6329 = vmatprep.mubr.msk.bf16.mxu0 %vm6980_vm1, %v9455_v12  ;;  %v2769_v20 = vmul.f32 %v6789_v27, %v8144_v15 }
 0x730   : > { %6339 = vmatprep.subr.bf16.mxu0 %v9455_v12  ;;  %v6791_v7 = vpop.eup %6790  ;;  %6800 = vrcp.f32 %v2739_v63 }
 0x731   : > { %6802 = vrcp.f32 %v2742_v11  ;;  %v2781_v26 = vpack.c.bf16 %v2769_v20, %v2768_v46  ;;  %v2770_v32 = vmul.f32 %v6791_v7, %v8142_v6 }
 0x732   : > { %v6793_v16 = vpop.eup %6792 }
 0x733   : > { %v3273_v4 = vpop.permute.xlu1 %3272  ;;  %v2745_v21 = vpop.xlane.xlu0 %2744  ;;  %v2771_v33 = vmul.f32 %v6793_v16, %v8151_v39  ;;  %6324 = vmatmul.mubr.msk.bf16.vlgmr.msra.gmra.mrb[76].mxu1 %vm1625_vm3, %v2781_v26 }
 0x734   : > { %6804 = vrcp.f32 %v2745_v21  ;;  %v6795_v34 = vpop.eup %6794  ;;  %6334 = vmatpush3.bf16.msra.mxu1 %v8219_v49  ;;  %6335 = vmatprep.mubr.msk.bf16.mxu1 %vm6980_vm1, %v9455_v12  ;;  %v3278_v46 = vsel %vm1248_vm2, %v3273_v4, 0 }
 0x735   : > { %v2782_v2 = vpack.c.bf16 %v2771_v33, %v2770_v32  ;;  %6345 = vmatprep.subr.bf16.mxu1 %v9455_v12  ;;  %v2772_v24 = vmul.f32 %v6795_v34, %v8153_v10 }
 0x736   : > { %v6797_v15 = vpop.eup %6796 }
 0x737   : > { %v3324_v45 = vpop.permute.xlu1 %3323  ;;  %v3222_v38 = vpop.permute.xlu0 %3221  ;;  %v2773_v6 = vmul.f32 %v6797_v15, %v8161_v55  ;;  %6330 = vmatmul.mubr.msk.bf16.vlgmr.msra.gmra.mrb[80].mxu0 %vm1625_vm3, %v2782_v2 }
 0x738   : > { %v6799_v39 = vpop.eup %6798  ;;  %6340 = vmatpush3.bf16.msra.mxu0 %v8223_v23  ;;  %6341 = vmatprep.mubr.msk.bf16.mxu0 %vm6980_vm1, %v9455_v12 }
 0x739   : > { %v2783_v49 = vpack.c.bf16 %v2773_v6, %v2772_v24  ;;  %6351 = vmatprep.subr.bf16.mxu0 %v9455_v12  ;;  %v2774_v36 = vmul.f32 %v6799_v39, %v8159_v19  ;;  %v3227_v19 = vsel %vm1248_vm2, %v3222_v38, 0 }
 0x73a   : > { %v6801_v17 = vpop.eup %6800 }
 0x73b   : > { %v3220_v48 = vpop.permute.xlu0 %3219  ;;  %v6803_v18 = vpop.eup %6802  ;;  %v2775_v10 = vmul.f32 %v6801_v17, %v8167_v3  ;;  %6336 = vmatmul.mubr.msk.bf16.vlgmr.msra.gmra.mrb[80].mxu1 %vm1625_vm3, %v2783_v49 }
 0x73c   : > { %v3375_v55 = vpop.permute.xlu1 %3374  ;;  %6346 = vmatpush3.bf16.msra.mxu1 %v8221_v60  ;;  %6347 = vmatprep.mubr.msk.bf16.mxu1 %vm6980_vm1, %v9455_v12  ;;  %v2776_v27 = vmul.f32 %v6803_v18, %v8169_v5 }
 0x73d   : > { %v2784_v37 = vpack.c.bf16 %v2775_v10, %v2774_v36  ;;  %6357 = vmatprep.subr.bf16.mxu1 %v9455_v12  ;;  %v3380_v7 = vsel %vm1248_vm2, %v3375_v55, 0 }
 0x73e   : > { %v6805_v23 = vpop.eup %6804 }
 0x73f   : > { %v2777_v11 = vmul.f32 %v6805_v23, %v8175_v40  ;;  %6342 = vmatmul.mubr.msk.bf16.vlgmr.msra.gmra.mrb[84].mxu0 %vm1625_vm3, %v2784_v37  ;;  %v3271_v3 = vpop.permute.xlu0 %3270  ;;  %v3329_v40 = vsel %vm1248_vm2, %v3324_v45, 0 }
 0x740   : > { %6353 = vmatprep.mubr.msk.bf16.mxu0 %vm6980_vm1, %v9455_v12  ;;  %v3426_v60 = vpop.permute.xlu1 %3425 }
 0x741   : > { %v2785_v63 = vpack.c.bf16 %v2777_v11, %v2776_v27  ;;  %6352 = vmatpush3.bf16.xpose.msra.mxu0 %v3227_v19  ;;  %v3431_v4 = vsel %vm1248_vm2, %v3426_v60, 0 }
 0x742   : > { %6363 = vmatprep.subr.bf16.mxu0 %v9455_v12 }
 0x743   : > { %6348 = vmatmul.mubr.msk.bf16.vlgmr.msra.gmra.mrb[84].mxu1 %vm1625_vm3, %v2785_v63  ;;  %v3322_v5 = vpop.permute.xlu0 %3321 }
 0x744   : > { %6359 = vmatprep.mubr.msk.bf16.mxu1 %vm6980_vm1, %v9455_v12  ;;  %v3477_v20 = vpop.permute.xlu1 %3476 }
 0x745   : > { %6358 = vmatpush3.bf16.xpose.msra.mxu1 %v3278_v46  ;;  %v3482_v32 = vsel %vm1248_vm2, %v3477_v20, 0 }
 0x746   : > { %6369 = vmatprep.subr.bf16.mxu1 %v9455_v12 }
 0x747   : > { %v3373_v26 = vpop.permute.xlu0 %3372 }
 0x748   : > { %6354 = vmatmul.mubr.msk.bf16.vlgmr.msra.gmra.mrb[88].mxu0 %vm1248_vm2, %v3220_v48  ;;  %v3528_v16 = vpop.permute.xlu1 %3527 }
 0x749   : > { %6364 = vmatpush3.bf16.xpose.msra.mxu0 %v3329_v40  ;;  %6365 = vmatprep.mubr.msk.bf16.mxu0 %vm6980_vm1, %v9455_v12  ;;  %v3533_v34 = vsel %vm1248_vm2, %v3528_v16, 0 }
 0x74a   : > { %6375 = vmatprep.subr.bf16.mxu0 %v9455_v12 }
 0x74b   : > { %v3424_v21 = vpop.permute.xlu0 %3423 }
 0x74c   : > { %6360 = vmatmul.mubr.msk.bf16.vlgmr.msra.gmra.mrb[88].mxu1 %vm1248_vm2, %v3271_v3  ;;  %v3579_v33 = vpop.permute.xlu1 %3578 }
 0x74d   : > { %6370 = vmatpush3.bf16.xpose.msra.mxu1 %v3380_v7  ;;  %6371 = vmatprep.mubr.msk.bf16.mxu1 %vm6980_vm1, %v9455_v12  ;;  %v3584_v45 = vsel %vm1248_vm2, %v3579_v33, 0 }
 0x74e   : > { %6381 = vmatprep.subr.bf16.mxu1 %v9455_v12 }
 0x74f   : > { %v3475_v2 = vpop.permute.xlu0 %3474 }
 0x750   : > { %6366 = vmatmul.mubr.msk.bf16.vlgmr.msra.gmra.mrb[92].mxu0 %vm1248_vm2, %v3322_v5  ;;  %v3577_v15 = vpop.permute.xlu1 %3576 }
 0x751   : > { %6376 = vmatpush3.bf16.xpose.msra.mxu0 %v3431_v4  ;;  %6377 = vmatprep.mubr.msk.bf16.mxu0 %vm6980_vm1, %v9455_v12 }
 0x752   : > { %6387 = vmatprep.subr.bf16.mxu0 %v9455_v12 }
 0x753   : > { %v3526_v38 = vpop.permute.xlu0 %3525 }
 0x754   : > { %6372 = vmatmul.mubr.msk.bf16.vlgmr.msra.gmra.mrb[92].mxu1 %vm1248_vm2, %v3373_v26  ;;  %v3812_v24 = vpop.permute.xlu1 %3811 }
 0x755   : > { %6382 = vmatpush3.bf16.xpose.msra.mxu1 %v3482_v32  ;;  %6383 = vmatprep.mubr.msk.bf16.mxu1 %vm6980_vm1, %v9455_v12 }
 0x756   : > { %6393 = vmatprep.subr.bf16.mxu1 %v9455_v12 }
 0x757   : > { %v3859_v6 = vpop.permute.xlu0 %3858 }
 0x758   : > { %6378 = vmatmul.mubr.msk.bf16.vlgmr.msra.gmra.mrb[96].mxu0 %vm1248_vm2, %v3424_v21 }
 0x759   : > { %6388 = vmatpush3.bf16.xpose.msra.mxu0 %v3533_v34  ;;  %6389 = vmatprep.mubr.msk.bf16.mxu0 %vm6980_vm1, %v9455_v12 }
 0x75a   : > { %6399 = vmatprep.subr.bf16.mxu0 %v9455_v12 }
 0x75c   : > { %6384 = vmatmul.mubr.msk.bf16.vlgmr.msra.gmra.mrb[96].mxu1 %vm1248_vm2, %v3475_v2 }
 0x75d   : > { %6394 = vmatpush3.bf16.xpose.msra.mxu1 %v3584_v45  ;;  %6395 = vmatprep.mubr.msk.bf16.mxu1 %vm6980_vm1, %v9455_v12 }
 0x75e   : > { %6405 = vmatprep.subr.bf16.mxu1 %v9455_v12 }
 0x760   : > { %6390 = vmatmul.mubr.msk.bf16.vlgmr.msra.gmra.mrb[100].mxu0 %vm1248_vm2, %v3526_v38 }
 0x761   : > { %6400 = vmatpush3.bf16.msra.mxu0 %v3812_v24  ;;  %6401 = vmatprep.mubr.msk.bf16.mxu0 %vm6980_vm1, %v9455_v12 }
 0x762   : > { %6411 = vmatprep.subr.bf16.mxu0 %v9455_v12 }
 0x764   : > { %6396 = vmatmul.mubr.msk.bf16.vlgmr.msra.gmra.mrb[100].mxu1 %vm1248_vm2, %v3577_v15 }
 0x765   : > { %6406 = vmatpush3.bf16.msra.mxu1 %v3859_v6  ;;  %6407 = vmatprep.mubr.msk.bf16.mxu1 %vm6980_vm1, %v9455_v12 }
 0x766   : > { %6417 = vmatprep.subr.bf16.mxu1 %v9455_v12 }
 0x7f3   : > { %v8318_v39 = vpop.f32.mrb[72].mxu0 }
 0x7f4   : > { %9456 = vst [vmem:[#allocation25_spill] sm:$0xff] %v8318_v39  ;;  %v6307_v49 = vpop.f32.mrb[73].mxu0 }
 0x7f5   : > { %v8320_v17 = vpop.f32.mrb[74].mxu0 }
 0x7f6   : > { %v6308_v18 = vpop.f32.mrb[75].mxu0 }
 0x7fd   : > { %v8324_v36 = vpop.f32.mrb[72].mxu1 }
 0x7fe   : > { %9457 = vst [vmem:[#allocation26_spill] sm:$0xff] %v8324_v36  ;;  %v6313_v10 = vpop.f32.mrb[73].mxu1 }
 0x7ff   : > { %v8326_v55 = vpop.f32.mrb[74].mxu1 }
 0x800   : > { %9458 = vst [vmem:[#allocation27_spill] sm:$0xff] %v8326_v55  ;;  %v6314_v37 = vpop.f32.mrb[75].mxu1 }
 0x801   : > { %v8330_v27 = vpop.f32.mrb[76].mxu0 }
 0x802   : > { %9459 = vst [vmem:[#allocation28_spill] sm:$0xff] %v8330_v27  ;;  %v6319_v11 = vpop.f32.mrb[77].mxu0 }
 0x803   : > { %v8332_v19 = vpop.f32.mrb[78].mxu0 }
 0x804   : > { %9460 = vst [vmem:[#allocation29_spill] sm:$0xff] %v8332_v19  ;;  %v6320_v63 = vpop.f32.mrb[79].mxu0 }
 0x806   : > { %v8336_v60 = vpop.f32.mrb[76].mxu1 }
 0x807   : > { %9461 = vst [vmem:[#allocation30_spill] sm:$0xff] %v8336_v60  ;;  %v6325_v46 = vpop.f32.mrb[77].mxu1 }
 0x808   : > { %v8338_v5 = vpop.f32.mrb[78].mxu1 }
 0x809   : > { %9462 = vst [vmem:[#allocation31_spill] sm:$0xff] %v8338_v5  ;;  %v6326_v20 = vpop.f32.mrb[79].mxu1 }
 0x80a   : > { %v8342_v7 = vpop.f32.mrb[80].mxu0  ;;  %v8369_v20 = vld [vmem:[%s9383_s2] sm:$0xff] }
 0x80b   : > { %v6331_v26 = vpop.f32.mrb[81].mxu0 }
 0x80c   : > { %v8344_v16 = vpop.f32.mrb[82].mxu0 }
 0x80d   : > { %v6332_v21 = vpop.f32.mrb[83].mxu0 }
 0x80e   : > { %v8348_v32 = vpop.f32.mrb[80].mxu1 }
 0x80f   : > { %v6337_v33 = vpop.f32.mrb[81].mxu1 }
 0x810   : > { %v8350_v34 = vpop.f32.mrb[82].mxu1 }
 0x811   : > { %v6338_v15 = vpop.f32.mrb[83].mxu1 }
 0x812   : > { %v8354_v45 = vpop.f32.mrb[84].mxu0  ;;  %v8377_v15 = vld [vmem:[%s9383_s2 + $0x8] sm:$0xff] }
 0x813   : > { %9463 = vst [vmem:[#allocation32_spill] sm:$0xff] %v8354_v45  ;;  %v6343_v38 = vpop.f32.mrb[85].mxu0 }
 0x814   : > { %v8356_v24 = vpop.f32.mrb[86].mxu0 }
 0x815   : > { %9464 = vst [vmem:[#allocation33_spill] sm:$0xff] %v8356_v24  ;;  %v6344_v49 = vpop.f32.mrb[87].mxu0 }
 0x816   : > { %v8360_v18 = vpop.f32.mrb[84].mxu1 }
 0x817   : > { %9465 = vst [vmem:[#allocation34_spill] sm:$0xff] %v8360_v18  ;;  %v6349_v10 = vpop.f32.mrb[85].mxu1 }
 0x818   : > { %v8362_v37 = vpop.f32.mrb[86].mxu1 }
 0x819   : > { %9466 = vst [vmem:[#allocation35_spill] sm:$0xff] %v8362_v37  ;;  %v6350_v63 = vpop.f32.mrb[87].mxu1 }
 0x81b   : > { %v3263_v46 = vpop.f32.mrb[88].mxu0 }
 0x81c   : > { %v8372_v26 = vadd.f32 %v8369_v20, %v3263_v46  ;;  %v6355_v21 = vpop.f32.mrb[89].mxu0 }
 0x81d   : > { %v3266_v33 = vpop.f32.mrb[90].mxu0 }
 0x81e   : > { %v8380_v38 = vadd.f32 %v8377_v15, %v3266_v33  ;;  %v6356_v49 = vpop.f32.mrb[91].mxu0  ;;  %v3627_v10 = vsel %vm1625_vm3, %v8372_v26, -inf }
 0x81f   : > { %3628 = vmax.xlane.f32.xlu0 %v3627_v10  ;;  %v3314_v63 = vpop.f32.mrb[88].mxu1 }
 0x820   : > { %v8385_v40 = vadd.f32 %v8369_v20, %v3314_v63  ;;  %v6361_v46 = vpop.f32.mrb[89].mxu1  ;;  %v3630_v21 = vsel %vm1625_vm3, %v8380_v38, -inf }
 0x821   : > { %3631 = vmax.xlane.f32.xlu1 %v3630_v21  ;;  %v3317_v3 = vpop.f32.mrb[90].mxu1 }
 0x822   : > { %v8390_v11 = vadd.f32 %v8377_v15, %v3317_v3  ;;  %v6362_v33 = vpop.f32.mrb[91].mxu1  ;;  %v3633_v49 = vsel %vm1625_vm3, %v8385_v40, -inf }
 0x823   : > { %v3365_v6 = vpop.f32.mrb[92].mxu0  ;;  %3634 = vmax.xlane.f32.xlu0 %v3633_v49 }
 0x824   : > { %v8395_v10 = vadd.f32 %v8369_v20, %v3365_v6  ;;  %v6367_v63 = vpop.f32.mrb[93].mxu0  ;;  %v3636_v3 = vsel %vm1625_vm3, %v8390_v11, -inf }
 0x825   : > { %v3368_v23 = vpop.f32.mrb[94].mxu0 }
 0x826   : > { %v8398_v46 = vadd.f32 %v8377_v15, %v3368_v23  ;;  %v6368_v48 = vpop.f32.mrb[95].mxu0  ;;  %v3639_v21 = vsel %vm1625_vm3, %v8395_v10, -inf }
 0x827   : > { %3640 = vmax.xlane.f32.xlu1 %v3639_v21  ;;  %3637 = vmax.xlane.f32.xlu0 %v3636_v3  ;;  %v3416_v33 = vpop.f32.mrb[92].mxu1 }
 0x828   : > { %v8405_v49 = vadd.f32 %v8369_v20, %v3416_v33  ;;  %v6373_v6 = vpop.f32.mrb[93].mxu1  ;;  %v3642_v48 = vsel %vm1625_vm3, %v8398_v46, -inf }
 0x829   : > { %v3419_v2 = vpop.f32.mrb[94].mxu1 }
 0x82a   : > { %v8408_v63 = vadd.f32 %v8377_v15, %v3419_v2  ;;  %v6374_v23 = vpop.f32.mrb[95].mxu1  ;;  %v3645_v4 = vsel %vm1625_vm3, %v8405_v49, -inf }
 0x82b   : > { %v3467_v47 = vpop.f32.mrb[96].mxu0  ;;  %3643 = vmax.xlane.f32.xlu0 %v3642_v48  ;;  %3646 = vmax.xlane.f32.xlu1 %v3645_v4 }
 0x82c   : > { %v8415_v21 = vadd.f32 %v8369_v20, %v3467_v47  ;;  %v6379_v3 = vpop.f32.mrb[97].mxu0  ;;  %v3648_v53 = vsel %vm1625_vm3, %v8408_v63, -inf }
 0x82d   : > { %v3470_v33 = vpop.f32.mrb[98].mxu0 }
 0x82e   : > { %v8418_v6 = vadd.f32 %v8377_v15, %v3470_v33  ;;  %v6380_v2 = vpop.f32.mrb[99].mxu0  ;;  %v3651_v23 = vsel %vm1625_vm3, %v8415_v21, -inf }
 0x82f   : > { %3652 = vmax.xlane.f32.xlu1 %v3651_v23  ;;  %3649 = vmax.xlane.f32.xlu0 %v3648_v53  ;;  %v3518_v31 = vpop.f32.mrb[96].mxu1 }
 0x830   : > { %v8425_v4 = vadd.f32 %v8369_v20, %v3518_v31  ;;  %v6385_v47 = vpop.f32.mrb[97].mxu1  ;;  %v3654_v2 = vsel %vm1625_vm3, %v8418_v6, -inf }
 0x831   : > { %v3521_v48 = vpop.f32.mrb[98].mxu1 }
 0x832   : > { %v8428_v3 = vadd.f32 %v8377_v15, %v3521_v48  ;;  %v6386_v33 = vpop.f32.mrb[99].mxu1  ;;  %v3657_v28 = vsel %vm1625_vm3, %v8425_v4, -inf }
 0x833   : > { %v3569_v57 = vpop.f32.mrb[100].mxu0  ;;  %3655 = vmax.xlane.f32.xlu0 %v3654_v2  ;;  %3658 = vmax.xlane.f32.xlu1 %v3657_v28 }
 0x834   : > { %v8435_v53 = vadd.f32 %v8369_v20, %v3569_v57  ;;  %v6391_v31 = vpop.f32.mrb[101].mxu0  ;;  %v3660_v60 = vsel %vm1625_vm3, %v8428_v3, -inf }
 0x835   : > { %v3572_v23 = vpop.f32.mrb[102].mxu0 }
 0x836   : > { %v8438_v47 = vadd.f32 %v8377_v15, %v3572_v23  ;;  %v6392_v48 = vpop.f32.mrb[103].mxu0  ;;  %v3663_v33 = vsel %vm1625_vm3, %v8435_v53, -inf }
 0x837   : > { %3664 = vmax.xlane.f32.xlu1 %v3663_v33  ;;  %3661 = vmax.xlane.f32.xlu0 %v3660_v60  ;;  %v3620_v5 = vpop.f32.mrb[100].mxu1 }
 0x838   : > { %v8445_v28 = vadd.f32 %v8369_v20, %v3620_v5  ;;  %v6397_v57 = vpop.f32.mrb[101].mxu1  ;;  %v3666_v48 = vsel %vm1625_vm3, %v8438_v47, -inf  ;;  %v8464_v5 = vpop.permute.xlu1 %3905 }
 0x839   : > { %v3623_v2 = vpop.f32.mrb[102].mxu1 }
 0x83a   : > { %v8448_v31 = vadd.f32 %v8377_v15, %v3623_v2  ;;  %v6398_v23 = vpop.f32.mrb[103].mxu1  ;;  %v3669_v27 = vsel %vm1625_vm3, %v8445_v28, -inf }
 0x83b   : > { %3667 = vmax.xlane.f32.xlu0 %v3666_v48  ;;  %3670 = vmax.xlane.f32.xlu1 %v3669_v27 }
 0x83c   : > { %v3672_v60 = vsel %vm1625_vm3, %v8448_v31, -inf  ;;  %v8466_v33 = vpop.permute.xlu1 %3952 }
 0x83f   : > { %3673 = vmax.xlane.f32.xlu0 %v3672_v60 }
 0x84c   : > { %4046 = vrot.lane.b32.xlu1 %v7603_v54, %s6982_s19 }
 0x850   : > { %4140 = vrot.lane.b32.xlu1 %v7626_v50, %s6982_s19 }
 0x855   : > { %3999 = vrot.lane.b32.xlu0 %v7607_v62, %s6982_s19 }
 0x859   : > { %4093 = vrot.lane.b32.xlu0 %v7630_v29, %s6982_s19 }
 0x8ac   : > { %v3629_v27 = vpop.xlane.xlu0 %3628 }
 0x8ad   : > { %v3675_v57 = vsub.f32 %v8372_v26, %v3629_v27 }
 0x8ae   : > { %v3632_v2 = vpop.xlane.xlu1 %3631 }
 0x8af   : > { %v3691_v23 = vmul.f32 1.442695, %v3675_v57  ;;  %v3676_v48 = vsub.f32 %v8380_v38, %v3632_v2 }
 0x8b0   : > { %v3635_v60 = vpop.xlane.xlu0 %3634 }
 0x8b1   : > { %6806 = vpow2.f32 %v3691_v23  ;;  %v3693_v19 = vmul.f32 1.442695, %v3676_v48  ;;  %v3677_v18 = vsub.f32 %v8385_v40, %v3635_v60 }
 0x8b3   : > { %6808 = vpow2.f32 %v3693_v19  ;;  %v3695_v37 = vmul.f32 1.442695, %v3677_v18 }
 0x8b4   : > { %v3641_v45 = vpop.xlane.xlu1 %3640  ;;  %v3638_v24 = vpop.xlane.xlu0 %3637 }
 0x8b5   : > { %6810 = vpow2.f32 %v3695_v37  ;;  %v3679_v36 = vsub.f32 %v8395_v10, %v3641_v45  ;;  %v3678_v55 = vsub.f32 %v8390_v11, %v3638_v24 }
 0x8b7   : > { %v3699_v39 = vmul.f32 1.442695, %v3679_v36  ;;  %v3697_v26 = vmul.f32 1.442695, %v3678_v55 }
 0x8b8   : > { %v3644_v27 = vpop.xlane.xlu0 %3643  ;;  %v3647_v57 = vpop.xlane.xlu1 %3646 }
 0x8b9   : > { %6812 = vpow2.f32 %v3699_v39  ;;  %v3680_v38 = vsub.f32 %v8398_v46, %v3644_v27  ;;  %v3681_v2 = vsub.f32 %v8405_v49, %v3647_v57 }
 0x8ba   : > { %6814 = vpow2.f32 %v3697_v26 }
 0x8bb   : > { %v8475_v40 = vpop.eup %6806  ;;  %v3701_v19 = vmul.f32 1.442695, %v3680_v38  ;;  %v3703_v18 = vmul.f32 1.442695, %v3681_v2 }
 0x8bc   : > { %v3653_v23 = vpop.xlane.xlu1 %3652  ;;  %v3650_v37 = vpop.xlane.xlu0 %3649  ;;  %v3723_v45 = vsel %vm1625_vm3, %v8475_v40, 0.0 }
 0x8bd   : > { %v8479_v24 = vpop.eup %6808  ;;  %6816 = vpow2.f32 %v3701_v19  ;;  %v3683_v36 = vsub.f32 %v8415_v21, %v3653_v23  ;;  %v3682_v39 = vsub.f32 %v8408_v63, %v3650_v37  ;;  %3724 = vadd.xlane.f32.xlu1 %v3723_v45 }
 0x8be   : > { %6818 = vpow2.f32 %v3703_v18  ;;  %v3726_v55 = vsel %vm1625_vm3, %v8479_v24, 0.0 }
 0x8bf   : > { %v8485_v11 = vpop.eup %6810  ;;  %v3707_v10 = vmul.f32 1.442695, %v3683_v36  ;;  %v3705_v46 = vmul.f32 1.442695, %v3682_v39  ;;  %3727 = vadd.xlane.f32.xlu0 %v3726_v55 }
 0x8c0   : > { %v3656_v49 = vpop.xlane.xlu0 %3655  ;;  %v3659_v48 = vpop.xlane.xlu1 %3658  ;;  %v3729_v60 = vsel %vm1625_vm3, %v8485_v11, 0.0 }
 0x8c1   : > { %6820 = vpow2.f32 %v3707_v10  ;;  %v3684_v21 = vsub.f32 %v8418_v6, %v3656_v49  ;;  %v3685_v63 = vsub.f32 %v8425_v4, %v3659_v48  ;;  %3730 = vadd.xlane.f32.xlu1 %v3729_v60 }
 0x8c2   : > { %6822 = vpow2.f32 %v3705_v46 }
 0x8c3   : > { %v8491_v26 = vpop.eup %6812  ;;  %v3709_v27 = vmul.f32 1.442695, %v3684_v21  ;;  %v3711_v57 = vmul.f32 1.442695, %v3685_v63 }
 0x8c4   : > { %v8493_v38 = vpop.eup %6814  ;;  %v3665_v2 = vpop.xlane.xlu1 %3664  ;;  %v3735_v18 = vsel %vm1625_vm3, %v8491_v26, 0.0 }
 0x8c5   : > { %v3662_v19 = vpop.xlane.xlu0 %3661  ;;  %6824 = vpow2.f32 %v3709_v27  ;;  %v3687_v23 = vsub.f32 %v8435_v53, %v3665_v2  ;;  %3736 = vadd.xlane.f32.xlu1 %v3735_v18  ;;  %v3732_v4 = vsel %vm1625_vm3, %v8493_v38, 0.0 }
 0x8c6   : > { %v3686_v6 = vsub.f32 %v8428_v3, %v3662_v19  ;;  %6826 = vpow2.f32 %v3711_v57  ;;  %3733 = vadd.xlane.f32.xlu0 %v3732_v4 }
 0x8c7   : > { %v8501_v37 = vpop.eup %6816  ;;  %v3715_v45 = vmul.f32 1.442695, %v3687_v23 }
 0x8c8   : > { %v3713_v36 = vmul.f32 1.442695, %v3686_v6  ;;  %v8503_v39 = vpop.eup %6818  ;;  %v3671_v10 = vpop.xlane.xlu1 %3670  ;;  %v3738_v46 = vsel %vm1625_vm3, %v8501_v37, 0.0 }
 0x8c9   : > { %v3668_v55 = vpop.xlane.xlu0 %3667  ;;  %6828 = vpow2.f32 %v3715_v45  ;;  %v3689_v53 = vsub.f32 %v8445_v28, %v3671_v10  ;;  %v3741_v49 = vsel %vm1625_vm3, %v8503_v39, 0.0 }
 0x8ca   : > { %v3688_v3 = vsub.f32 %v8438_v47, %v3668_v55  ;;  %6830 = vpow2.f32 %v3713_v36  ;;  %3742 = vadd.xlane.f32.xlu1 %v3741_v49  ;;  %3739 = vadd.xlane.f32.xlu0 %v3738_v46 }
 0x8cb   : > { %v8511_v48 = vpop.eup %6820  ;;  %v3719_v21 = vmul.f32 1.442695, %v3689_v53 }
 0x8cc   : > { %v3717_v60 = vmul.f32 1.442695, %v3688_v3  ;;  %v8513_v63 = vpop.eup %6822  ;;  %v3747_v57 = vsel %vm1625_vm3, %v8511_v48, 0.0 }
 0x8cd   : > { %v3674_v27 = vpop.xlane.xlu0 %3673  ;;  %v3744_v28 = vsel %vm1625_vm3, %v8513_v63, 0.0 }
 0x8ce   : > { %6832 = vpow2.f32 %v3717_v60  ;;  %v3690_v47 = vsub.f32 %v8448_v31, %v3674_v27  ;;  %3748 = vadd.xlane.f32.xlu1 %v3747_v57  ;;  %3745 = vadd.xlane.f32.xlu0 %v3744_v28 }
 0x8cf   : > { %6834 = vpow2.f32 %v3719_v21  ;;  %v8520_v2 = vpop.eup %6824 }
 0x8d0   : > { %v3721_v19 = vmul.f32 1.442695, %v3690_v47  ;;  %v8522_v18 = vpop.eup %6826  ;;  %v3750_v23 = vsel %vm1625_vm3, %v8520_v2, 0.0 }
 0x8d1   : > { %v3753_v6 = vsel %vm1625_vm3, %v8522_v18, 0.0 }
 0x8d2   : > { %6836 = vpow2.f32 %v3721_v19  ;;  %3754 = vadd.xlane.f32.xlu1 %v3753_v6  ;;  %3751 = vadd.xlane.f32.xlu0 %v3750_v23 }
 0x8d3   : > { %v8528_v31 = vpop.eup %6828 }
 0x8d4   : > { %v8530_v4 = vpop.eup %6830  ;;  %v3759_v45 = vsel %vm1625_vm3, %v8528_v31, 0.0 }
 0x8d5   : > { %v3756_v36 = vsel %vm1625_vm3, %v8530_v4, 0.0 }
 0x8d6   : > { %3760 = vadd.xlane.f32.xlu1 %v3759_v45  ;;  %3757 = vadd.xlane.f32.xlu0 %v3756_v36 }
 0x8d8   : > { %v8536_v55 = vpop.eup %6832 }
 0x8d9   : > { %v8538_v10 = vpop.eup %6834  ;;  %v3762_v46 = vsel %vm1625_vm3, %v8536_v55, 0.0 }
 0x8da   : > { %v3765_v3 = vsel %vm1625_vm3, %v8538_v10, 0.0  ;;  %3763 = vadd.xlane.f32.xlu0 %v3762_v46 }
 0x8db   : > { %3766 = vadd.xlane.f32.xlu1 %v3765_v3 }
 0x8dc   : > { %v8544_v53 = vpop.eup %6836 }
 0x8dd   : > { %v3768_v49 = vsel %vm1625_vm3, %v8544_v53, 0.0 }
 0x8de   : > { %3769 = vadd.xlane.f32.xlu0 %v3768_v49 }
 0x8ec   : > { %4289 = vrot.lane.b32.xlu1 %v7559_v59, %s6983_s24 }
 0x8f0   : > { %4340 = vrot.lane.b32.xlu1 %v7582_v35, %s6983_s24 }
 0x8f4   : > { %4391 = vrot.lane.b32.xlu1 %v7605_v52, %s6983_s24  ;;  %4238 = vrot.lane.b32.xlu0 %v7542_v9, %s6983_s24  ;;  %v4000_v9 = vpop.permute.xlu0 %3999 }
 0x8f8   : > { %4442 = vrot.lane.b32.xlu1 %v7628_v61, %s6983_s24  ;;  %4236 = vrot.lane.b32.xlu0 %v7537_v25, %s6983_s24  ;;  %v8582_v25 = vpop.permute.xlu1 %4046  ;;  %v8586_v59 = vpop.permute.xlu0 %4093 }
 0x8fc   : > { %4493 = vrot.lane.b32.xlu1 %v7645_v41, %s6983_s24  ;;  %4287 = vrot.lane.b32.xlu0 %v7555_v14, %s6983_s24  ;;  %v8584_v14 = vpop.permute.xlu1 %4140 }
 0x900   : > { %4544 = vrot.lane.b32.xlu1 %v7660_v43, %s6983_s24  ;;  %4338 = vrot.lane.b32.xlu0 %v7578_v58, %s6983_s24 }
 0x904   : > { %4595 = vrot.lane.b32.xlu1 %v7675_v56, %s6983_s24  ;;  %4389 = vrot.lane.b32.xlu0 %v7601_v51, %s6983_s24 }
 0x908   : > { %4593 = vrot.lane.b32.xlu1 %v7673_v42, %s6983_s24  ;;  %4440 = vrot.lane.b32.xlu0 %v7624_v8, %s6983_s24 }
 0x90c   : > { %4828 = vrot.lane.b32.xlu1 %v7561_v30, %s6983_s24  ;;  %4491 = vrot.lane.b32.xlu0 %v7643_v13, %s6983_s24 }
 0x910   : > { %4542 = vrot.lane.b32.xlu0 %v7658_v44, %s6983_s24 }
 0x94a   : > { %v3725_v58 = vpop.xlane.xlu1 %3724 }
 0x94b   : > { %6838 = vrcp.f32 %v3725_v58 }
 0x94c   : > { %v3728_v35 = vpop.xlane.xlu0 %3727 }
 0x94d   : > { %6840 = vrcp.f32 %v3728_v35 }
 0x94e   : > { %v3731_v51 = vpop.xlane.xlu1 %3730 }
 0x94f   : > { %6842 = vrcp.f32 %v3731_v51 }
 0x952   : > { %v3737_v30 = vpop.xlane.xlu1 %3736 }
 0x953   : > { %v3734_v52 = vpop.xlane.xlu0 %3733 }
 0x954   : > { %6844 = vrcp.f32 %v3734_v52 }
 0x955   : > { %v6839_v8 = vpop.eup %6838  ;;  %6846 = vrcp.f32 %v3737_v30 }
 0x956   : > { %v3787_v44 = vmul.f32 %v6839_v8, %v8475_v40 }
 0x957   : > { %v6841_v61 = vpop.eup %6840  ;;  %v3743_v13 = vpop.xlane.xlu1 %3742 }
 0x958   : > { %v3740_v41 = vpop.xlane.xlu0 %3739  ;;  %v3788_v43 = vmul.f32 %v6841_v61, %v8479_v24 }
 0x959   : > { %6848 = vrcp.f32 %v3740_v41  ;;  %v6843_v21 = vpop.eup %6842 }
 0x95a   : > { %v3803_v42 = vpack.c.bf16 %v3788_v43, %v3787_v44  ;;  %6850 = vrcp.f32 %v3743_v13  ;;  %v3789_v40 = vmul.f32 %v6843_v21, %v8485_v11 }
 0x95b   : > { %v3749_v56 = vpop.xlane.xlu1 %3748 }
 0x95c   : > { %v3746_v60 = vpop.xlane.xlu0 %3745  ;;  %6402 = vmatmul.mubr.msk.bf16.vlgmr.msra.gmra.mrb[104].mxu0 %vm1625_vm3, %v3803_v42 }
 0x95d   : > { %6852 = vrcp.f32 %v3746_v60  ;;  %6412 = vmatpush3.bf16.msra.mxu0 %v8464_v5  ;;  %6413 = vmatprep.mubr.msk.bf16.mxu0 %vm6980_vm1, %v9455_v12 }
 0x95e   : > { %v6845_v27 = vpop.eup %6844  ;;  %6423 = vmatprep.subr.bf16.mxu0 %v9455_v12  ;;  %6854 = vrcp.f32 %v3749_v56 }
 0x95f   : > { %v3790_v24 = vmul.f32 %v6845_v27, %v8493_v38  ;;  %v3755_v57 = vpop.xlane.xlu1 %3754  ;;  %v6847_v28 = vpop.eup %6846 }
 0x960   : > { %v3752_v47 = vpop.xlane.xlu0 %3751  ;;  %v3791_v45 = vmul.f32 %v6847_v28, %v8491_v26 }
 0x961   : > { %6856 = vrcp.f32 %v3752_v47  ;;  %v3804_v19 = vpack.c.bf16 %v3790_v24, %v3789_v40 }
 0x962   : > { %6858 = vrcp.f32 %v3755_v57 }
 0x963   : > { %v6849_v23 = vpop.eup %6848  ;;  %v3761_v6 = vpop.xlane.xlu1 %3760  ;;  %6408 = vmatmul.mubr.msk.bf16.vlgmr.msra.gmra.mrb[104].mxu1 %vm1625_vm3, %v3804_v19 }
 0x964   : > { %v3758_v5 = vpop.xlane.xlu0 %3757  ;;  %v3792_v36 = vmul.f32 %v6849_v23, %v8501_v37  ;;  %6418 = vmatpush3.bf16.msra.mxu1 %v8466_v33  ;;  %6419 = vmatprep.mubr.msk.bf16.mxu1 %vm6980_vm1, %v9455_v12  ;;  %v6851_v11 = vpop.eup %6850 }
 0x965   : > { %6860 = vrcp.f32 %v3758_v5  ;;  %6429 = vmatprep.subr.bf16.mxu1 %v9455_v12  ;;  %v3793_v58 = vmul.f32 %v6851_v11, %v8503_v39 }
 0x966   : > { %v3805_v38 = vpack.c.bf16 %v3792_v36, %v3791_v45  ;;  %6862 = vrcp.f32 %v3761_v6 }
 0x967   : > { %v6853_v46 = vpop.eup %6852 }
 0x968   : > { %v3767_v3 = vpop.xlane.xlu1 %3766  ;;  %v3764_v49 = vpop.xlane.xlu0 %3763  ;;  %v3794_v26 = vmul.f32 %v6853_v46, %v8513_v63  ;;  %6414 = vmatmul.mubr.msk.bf16.vlgmr.msra.gmra.mrb[108].mxu0 %vm1625_vm3, %v3805_v38 }
 0x969   : > { %v6855_v37 = vpop.eup %6854  ;;  %6424 = vmatpush3.bf16.msra.mxu0 %v4000_v9  ;;  %6864 = vrcp.f32 %v3764_v49  ;;  %6425 = vmatprep.mubr.msk.bf16.mxu0 %vm6980_vm1, %v9455_v12 }
 0x96a   : > { %6866 = vrcp.f32 %v3767_v3  ;;  %v3806_v33 = vpack.c.bf16 %v3794_v26, %v3793_v58  ;;  %6435 = vmatprep.subr.bf16.mxu0 %v9455_v12  ;;  %v3795_v52 = vmul.f32 %v6855_v37, %v8511_v48 }
 0x96b   : > { %v6857_v35 = vpop.eup %6856 }
 0x96c   : > { %v4290_v51 = vpop.permute.xlu1 %4289  ;;  %v3770_v30 = vpop.xlane.xlu0 %3769  ;;  %v3796_v39 = vmul.f32 %v6857_v35, %v8520_v2  ;;  %6420 = vmatmul.mubr.msk.bf16.vlgmr.msra.gmra.mrb[108].mxu1 %vm1625_vm3, %v3806_v33 }
 0x96d   : > { %6868 = vrcp.f32 %v3770_v30  ;;  %v6859_v63 = vpop.eup %6858  ;;  %6430 = vmatpush3.bf16.msra.mxu1 %v8582_v25  ;;  %6431 = vmatprep.mubr.msk.bf16.mxu1 %vm6980_vm1, %v9455_v12  ;;  %v4295_v24 = vsel %vm1248_vm2, %v4290_v51, 0 }
 0x96e   : > { %v3807_v9 = vpack.c.bf16 %v3796_v39, %v3795_v52  ;;  %6441 = vmatprep.subr.bf16.mxu1 %v9455_v12  ;;  %v3797_v41 = vmul.f32 %v6859_v63, %v8522_v18 }
 0x96f   : > { %v6861_v8 = vpop.eup %6860 }
 0x970   : > { %v4341_v61 = vpop.permute.xlu1 %4340  ;;  %v4239_v13 = vpop.permute.xlu0 %4238  ;;  %v3798_v48 = vmul.f32 %v6861_v8, %v8530_v4  ;;  %6426 = vmatmul.mubr.msk.bf16.vlgmr.msra.gmra.mrb[112].mxu0 %vm1625_vm3, %v3807_v9 }
 0x971   : > { %v6863_v2 = vpop.eup %6862  ;;  %6436 = vmatpush3.bf16.msra.mxu0 %v8586_v59  ;;  %6437 = vmatprep.mubr.msk.bf16.mxu0 %vm6980_vm1, %v9455_v12 }
 0x972   : > { %v3808_v25 = vpack.c.bf16 %v3798_v48, %v3797_v41  ;;  %6447 = vmatprep.subr.bf16.mxu0 %v9455_v12  ;;  %v3799_v42 = vmul.f32 %v6863_v2, %v8528_v31  ;;  %v4244_v31 = vsel %vm1248_vm2, %v4239_v13, 0 }
 0x973   : > { %v6865_v44 = vpop.eup %6864 }
 0x974   : > { %v6867_v43 = vpop.eup %6866  ;;  %v3800_v56 = vmul.f32 %v6865_v44, %v8536_v55  ;;  %6432 = vmatmul.mubr.msk.bf16.vlgmr.msra.gmra.mrb[112].mxu1 %vm1625_vm3, %v3808_v25  ;;  %v4237_v18 = vpop.permute.xlu0 %4236 }
 0x975   : > { %v4392_v4 = vpop.permute.xlu1 %4391  ;;  %6442 = vmatpush3.bf16.msra.mxu1 %v8584_v14  ;;  %6443 = vmatprep.mubr.msk.bf16.mxu1 %vm6980_vm1, %v9455_v12  ;;  %v3801_v21 = vmul.f32 %v6867_v43, %v8538_v10 }
 0x976   : > { %v3809_v60 = vpack.c.bf16 %v3800_v56, %v3799_v42  ;;  %6453 = vmatprep.subr.bf16.mxu1 %v9455_v12  ;;  %v4397_v47 = vsel %vm1248_vm2, %v4392_v4, 0 }
 0x977   : > { %v6869_v59 = vpop.eup %6868 }
 0x978   : > { %v3802_v27 = vmul.f32 %v6869_v59, %v8544_v53  ;;  %6438 = vmatmul.mubr.msk.bf16.vlgmr.msra.gmra.mrb[116].mxu0 %vm1625_vm3, %v3809_v60  ;;  %v4288_v14 = vpop.permute.xlu0 %4287  ;;  %v4346_v53 = vsel %vm1248_vm2, %v4341_v61, 0 }
 0x979   : > { %6449 = vmatprep.mubr.msk.bf16.mxu0 %vm6980_vm1, %v9455_v12  ;;  %v4443_v40 = vpop.permute.xlu1 %4442 }
 0x97a   : > { %v3810_v55 = vpack.c.bf16 %v3802_v27, %v3801_v21  ;;  %6448 = vmatpush3.bf16.xpose.msra.mxu0 %v4244_v31  ;;  %v4448_v23 = vsel %vm1248_vm2, %v4443_v40, 0 }
 0x97b   : > { %6459 = vmatprep.subr.bf16.mxu0 %v9455_v12 }
 0x97c   : > { %6444 = vmatmul.mubr.msk.bf16.vlgmr.msra.gmra.mrb[116].mxu1 %vm1625_vm3, %v3810_v55  ;;  %v4339_v10 = vpop.permute.xlu0 %4338 }
 0x97d   : > { %6455 = vmatprep.mubr.msk.bf16.mxu1 %vm6980_vm1, %v9455_v12  ;;  %v4494_v57 = vpop.permute.xlu1 %4493 }
 0x97e   : > { %6454 = vmatpush3.bf16.xpose.msra.mxu1 %v4295_v24  ;;  %v4499_v5 = vsel %vm1248_vm2, %v4494_v57, 0 }
 0x97f   : > { %6465 = vmatprep.subr.bf16.mxu1 %v9455_v12 }
 0x980   : > { %v4390_v28 = vpop.permute.xlu0 %4389 }
 0x981   : > { %6450 = vmatmul.mubr.msk.bf16.vlgmr.msra.gmra.mrb[120].mxu0 %vm1248_vm2, %v4237_v18  ;;  %v4545_v19 = vpop.permute.xlu1 %4544 }
 0x982   : > { %6460 = vmatpush3.bf16.xpose.msra.mxu0 %v4346_v53  ;;  %6461 = vmatprep.mubr.msk.bf16.mxu0 %vm6980_vm1, %v9455_v12  ;;  %v4550_v36 = vsel %vm1248_vm2, %v4545_v19, 0 }
 0x983   : > { %6471 = vmatprep.subr.bf16.mxu0 %v9455_v12 }
 0x984   : > { %v4441_v6 = vpop.permute.xlu0 %4440 }
 0x985   : > { %6456 = vmatmul.mubr.msk.bf16.vlgmr.msra.gmra.mrb[120].mxu1 %vm1248_vm2, %v4288_v14  ;;  %v4596_v45 = vpop.permute.xlu1 %4595 }
 0x986   : > { %6466 = vmatpush3.bf16.xpose.msra.mxu1 %v4397_v47  ;;  %6467 = vmatprep.mubr.msk.bf16.mxu1 %vm6980_vm1, %v9455_v12  ;;  %v4601_v46 = vsel %vm1248_vm2, %v4596_v45, 0 }
 0x987   : > { %6477 = vmatprep.subr.bf16.mxu1 %v9455_v12 }
 0x988   : > { %v4492_v11 = vpop.permute.xlu0 %4491 }
 0x989   : > { %6462 = vmatmul.mubr.msk.bf16.vlgmr.msra.gmra.mrb[124].mxu0 %vm1248_vm2, %v4339_v10  ;;  %v4594_v38 = vpop.permute.xlu1 %4593 }
 0x98a   : > { %6472 = vmatpush3.bf16.xpose.msra.mxu0 %v4448_v23  ;;  %6473 = vmatprep.mubr.msk.bf16.mxu0 %vm6980_vm1, %v9455_v12 }
 0x98b   : > { %6483 = vmatprep.subr.bf16.mxu0 %v9455_v12 }
 0x98c   : > { %v4543_v3 = vpop.permute.xlu0 %4542 }
 0x98d   : > { %6468 = vmatmul.mubr.msk.bf16.vlgmr.msra.gmra.mrb[124].mxu1 %vm1248_vm2, %v4390_v28  ;;  %v4829_v49 = vpop.permute.xlu1 %4828 }
 0x98e   : > { %6478 = vmatpush3.bf16.xpose.msra.mxu1 %v4499_v5  ;;  %6479 = vmatprep.mubr.msk.bf16.mxu1 %vm6980_vm1, %v9455_v12 }
 0x98f   : > { %6489 = vmatprep.subr.bf16.mxu1 %v9455_v12 }
 0x991   : > { %6474 = vmatmul.mubr.msk.bf16.vlgmr.msra.gmra.mrb[128].mxu0 %vm1248_vm2, %v4441_v6 }
 0x992   : > { %6484 = vmatpush3.bf16.xpose.msra.mxu0 %v4550_v36  ;;  %6485 = vmatprep.mubr.msk.bf16.mxu0 %vm6980_vm1, %v9455_v12 }
 0x993   : > { %6495 = vmatprep.subr.bf16.mxu0 %v9455_v12 }
 0x995   : > { %6480 = vmatmul.mubr.msk.bf16.vlgmr.msra.gmra.mrb[128].mxu1 %vm1248_vm2, %v4492_v11 }
 0x996   : > { %6490 = vmatpush3.bf16.xpose.msra.mxu1 %v4601_v46  ;;  %6491 = vmatprep.mubr.msk.bf16.mxu1 %vm6980_vm1, %v9455_v12 }
 0x997   : > { %6501 = vmatprep.subr.bf16.mxu1 %v9455_v12 }
 0x999   : > { %6486 = vmatmul.mubr.msk.bf16.vlgmr.msra.gmra.mrb[132].mxu0 %vm1248_vm2, %v4543_v3 }
 0x99a   : > { %6496 = vmatpush3.bf16.msra.mxu0 %v4829_v49  ;;  %6497 = vmatprep.mubr.msk.bf16.mxu0 %vm6980_vm1, %v9455_v12 }
 0x99b   : > { %6507 = vmatprep.subr.bf16.mxu0 %v9455_v12 }
 0x99d   : > { %6492 = vmatmul.mubr.msk.bf16.vlgmr.msra.gmra.mrb[132].mxu1 %vm1248_vm2, %v4594_v38 }
 0x99e   : > { %6503 = vmatprep.mubr.msk.bf16.mxu1 %vm6980_vm1, %v9455_v12 }
 0xa2f   : > { %v8680_v58 = vpop.f32.mrb[104].mxu0 }
 0xa30   : > { %v6403_v26 = vpop.f32.mrb[105].mxu0 }
 0xa31   : > { %v8682_v37 = vpop.f32.mrb[106].mxu0 }
 0xa32   : > { %v4187_v33 = vpack.c.bf16 %v8682_v37, %v8680_v58  ;;  %v6404_v35 = vpop.f32.mrb[107].mxu0  ;;  %v9483_v37 = vld [vmem:[#allocation31_spill] sm:$0xff] }
 0xa36   : > { %v8686_v51 = vpop.f32.mrb[104].mxu1 }
 0xa37   : > { %v6409_v30 = vpop.f32.mrb[105].mxu1 }
 0xa38   : > { %v8688_v52 = vpop.f32.mrb[106].mxu1 }
 0xa39   : > { %v4188_v39 = vpack.c.bf16 %v8688_v52, %v8686_v51  ;;  %v6410_v63 = vpop.f32.mrb[107].mxu1 }
 0xa3b   : > { %v8692_v9 = vpop.f32.mrb[108].mxu0 }
 0xa3c   : > { %v6415_v8 = vpop.f32.mrb[109].mxu0 }
 0xa3d   : > { %v8694_v61 = vpop.f32.mrb[110].mxu0 }
 0xa3e   : > { %v4189_v13 = vpack.c.bf16 %v8694_v61, %v8692_v9  ;;  %v6416_v41 = vpop.f32.mrb[111].mxu0 }
 0xa3f   : > { %v8698_v48 = vpop.f32.mrb[108].mxu1 }
 0xa40   : > { %v6421_v2 = vpop.f32.mrb[109].mxu1 }
 0xa41   : > { %v8700_v25 = vpop.f32.mrb[110].mxu1 }
 0xa42   : > { %v4190_v44 = vpack.c.bf16 %v8700_v25, %v8698_v48  ;;  %v6422_v43 = vpop.f32.mrb[111].mxu1 }
 0xa43   : > { %v8704_v42 = vpop.f32.mrb[112].mxu0 }
 0xa44   : > { %v6427_v56 = vpop.f32.mrb[113].mxu0 }
 0xa45   : > { %v8706_v18 = vpop.f32.mrb[114].mxu0 }
 0xa46   : > { %v4191_v4 = vpack.c.bf16 %v8706_v18, %v8704_v42  ;;  %v6428_v59 = vpop.f32.mrb[115].mxu0  ;;  %v9478_v18 = vld [vmem:[#allocation34_spill] sm:$0xff] }
 0xa47   : > { %v8710_v60 = vpop.f32.mrb[112].mxu1 }
 0xa48   : > { %v6433_v21 = vpop.f32.mrb[113].mxu1 }
 0xa49   : > { %v8712_v27 = vpop.f32.mrb[114].mxu1 }
 0xa4a   : > { %v4192_v31 = vpack.c.bf16 %v8712_v27, %v8710_v60  ;;  %v6434_v55 = vpop.f32.mrb[115].mxu1  ;;  %v9480_v60 = vld [vmem:[#allocation29_spill] sm:$0xff]  ;;  %v9481_v27 = vld [vmem:[#allocation28_spill] sm:$0xff] }
 0xa4b   : > { %v8716_v14 = vpop.f32.mrb[116].mxu0  ;;  %v9482_v58 = vpack.c.bf16 %v9480_v60, %v9481_v27 }
 0xa4c   : > { %v6439_v40 = vpop.f32.mrb[117].mxu0 }
 0xa4d   : > { %v8718_v24 = vpop.f32.mrb[118].mxu0 }
 0xa4e   : > { %v4193_v10 = vpack.c.bf16 %v8718_v24, %v8716_v14  ;;  %v6440_v53 = vpop.f32.mrb[119].mxu0 }
 0xa4f   : > { %v8722_v57 = vpop.f32.mrb[116].mxu1 }
 0xa50   : > { %v6445_v47 = vpop.f32.mrb[117].mxu1 }
 0xa51   : > { %v8724_v28 = vpop.f32.mrb[118].mxu1 }
 0xa52   : > { %v4194_v19 = vpack.c.bf16 %v8724_v28, %v8722_v57  ;;  %v6446_v23 = vpop.f32.mrb[119].mxu1 }
 0xa54   : > { %v4280_v6 = vpop.f32.mrb[120].mxu0 }
 0xa55   : > { %v8729_v5 = vadd.f32 %v8369_v20, %v4280_v6  ;;  %v6451_v45 = vpop.f32.mrb[121].mxu0 }
 0xa56   : > { %v4283_v36 = vpop.f32.mrb[122].mxu0 }
 0xa57   : > { %v8732_v11 = vadd.f32 %v8377_v15, %v4283_v36  ;;  %v6452_v38 = vpop.f32.mrb[123].mxu0  ;;  %v4644_v46 = vsel %vm1625_vm3, %v8729_v5, -inf }
 0xa58   : > { %4645 = vmax.xlane.f32.xlu0 %v4644_v46  ;;  %v4331_v3 = vpop.f32.mrb[120].mxu1 }
 0xa59   : > { %v8737_v49 = vadd.f32 %v8369_v20, %v4331_v3  ;;  %v6457_v26 = vpop.f32.mrb[121].mxu1  ;;  %v4647_v35 = vsel %vm1625_vm3, %v8732_v11, -inf }
 0xa5a   : > { %4648 = vmax.xlane.f32.xlu1 %v4647_v35  ;;  %v4334_v30 = vpop.f32.mrb[122].mxu1 }
 0xa5b   : > { %v8742_v63 = vadd.f32 %v8377_v15, %v4334_v30  ;;  %v6458_v8 = vpop.f32.mrb[123].mxu1  ;;  %v4650_v41 = vsel %vm1625_vm3, %v8737_v49, -inf }
 0xa5c   : > { %v4382_v2 = vpop.f32.mrb[124].mxu0  ;;  %4651 = vmax.xlane.f32.xlu0 %v4650_v41 }
 0xa5d   : > { %v8747_v43 = vadd.f32 %v8369_v20, %v4382_v2  ;;  %v6463_v56 = vpop.f32.mrb[125].mxu0  ;;  %v4653_v53 = vsel %vm1625_vm3, %v8742_v63, -inf }
 0xa5e   : > { %v4385_v59 = vpop.f32.mrb[126].mxu0 }
 0xa5f   : > { %v8750_v21 = vadd.f32 %v8377_v15, %v4385_v59  ;;  %v6464_v55 = vpop.f32.mrb[127].mxu0  ;;  %v4656_v40 = vsel %vm1625_vm3, %v8747_v43, -inf }
 0xa60   : > { %4657 = vmax.xlane.f32.xlu1 %v4656_v40  ;;  %4654 = vmax.xlane.f32.xlu0 %v4653_v53  ;;  %v4433_v47 = vpop.f32.mrb[124].mxu1 }
 0xa61   : > { %v8757_v23 = vadd.f32 %v8369_v20, %v4433_v47  ;;  %v6469_v6 = vpop.f32.mrb[125].mxu1  ;;  %v4659_v46 = vsel %vm1625_vm3, %v8750_v21, -inf }
 0xa62   : > { %v4436_v45 = vpop.f32.mrb[126].mxu1 }
 0xa63   : > { %v8760_v36 = vadd.f32 %v8377_v15, %v4436_v45  ;;  %v6470_v38 = vpop.f32.mrb[127].mxu1  ;;  %v4662_v3 = vsel %vm1625_vm3, %v8757_v23, -inf }
 0xa64   : > { %v4484_v26 = vpop.f32.mrb[128].mxu0  ;;  %4660 = vmax.xlane.f32.xlu0 %v4659_v46  ;;  %4663 = vmax.xlane.f32.xlu1 %v4662_v3 }
 0xa65   : > { %v8767_v35 = vadd.f32 %v8369_v20, %v4484_v26  ;;  %v6475_v30 = vpop.f32.mrb[129].mxu0  ;;  %v4665_v59 = vsel %vm1625_vm3, %v8760_v36, -inf }
 0xa66   : > { %v4487_v8 = vpop.f32.mrb[130].mxu0 }
 0xa67   : > { %v8770_v41 = vadd.f32 %v8377_v15, %v4487_v8  ;;  %v6476_v2 = vpop.f32.mrb[131].mxu0  ;;  %v4668_v56 = vsel %vm1625_vm3, %v8767_v35, -inf }
 0xa68   : > { %4669 = vmax.xlane.f32.xlu1 %v4668_v56  ;;  %4666 = vmax.xlane.f32.xlu0 %v4665_v59  ;;  %v4535_v55 = vpop.f32.mrb[128].mxu1 }
 0xa69   : > { %v8777_v40 = vadd.f32 %v8369_v20, %v4535_v55  ;;  %v6481_v53 = vpop.f32.mrb[129].mxu1  ;;  %v4671_v38 = vsel %vm1625_vm3, %v8770_v41, -inf }
 0xa6a   : > { %v4538_v47 = vpop.f32.mrb[130].mxu1 }
 0xa6b   : > { %v8780_v6 = vadd.f32 %v8377_v15, %v4538_v47  ;;  %v6482_v45 = vpop.f32.mrb[131].mxu1  ;;  %v4674_v46 = vsel %vm1625_vm3, %v8777_v40, -inf }
 0xa6c   : > { %v4586_v3 = vpop.f32.mrb[132].mxu0  ;;  %4672 = vmax.xlane.f32.xlu0 %v4671_v38  ;;  %4675 = vmax.xlane.f32.xlu1 %v4674_v46 }
 0xa6d   : > { %v8787_v26 = vadd.f32 %v8369_v20, %v4586_v3  ;;  %v6487_v30 = vpop.f32.mrb[133].mxu0  ;;  %v4677_v55 = vsel %vm1625_vm3, %v8780_v6, -inf }
 0xa6e   : > { %v4589_v8 = vpop.f32.mrb[134].mxu0 }
 0xa6f   : > { %v8790_v2 = vadd.f32 %v8377_v15, %v4589_v8  ;;  %v6488_v56 = vpop.f32.mrb[135].mxu0  ;;  %v4680_v59 = vsel %vm1625_vm3, %v8787_v26, -inf }
 0xa70   : > { %4681 = vmax.xlane.f32.xlu1 %v4680_v59  ;;  %4678 = vmax.xlane.f32.xlu0 %v4677_v55  ;;  %v4637_v53 = vpop.f32.mrb[132].mxu1 }
 0xa71   : > { %v8797_v47 = vadd.f32 %v8369_v20, %v4637_v53  ;;  %v6493_v45 = vpop.f32.mrb[133].mxu1  ;;  %v4683_v30 = vsel %vm1625_vm3, %v8790_v2, -inf }
 0xa72   : > { %v4640_v38 = vpop.f32.mrb[134].mxu1 }
 0xa73   : > { %v8800_v46 = vadd.f32 %v8377_v15, %v4640_v38  ;;  %v6494_v3 = vpop.f32.mrb[135].mxu1  ;;  %v4686_v8 = vsel %vm1625_vm3, %v8797_v47, -inf }
 0xa74   : > { %4684 = vmax.xlane.f32.xlu0 %v4683_v30  ;;  %4687 = vmax.xlane.f32.xlu1 %v4686_v8 }
 0xa75   : > { %v4689_v56 = vsel %vm1625_vm3, %v8800_v46, -inf }
 0xa78   : > { %4690 = vmax.xlane.f32.xlu0 %v4689_v56 }
 0xa85   : > { %4922 = vrot.lane.b32.xlu1 %v7584_v1, %s6983_s24 }
 0xa89   : > { %4969 = vrot.lane.b32.xlu1 %v7580_v0, %s6983_s24 }
 0xa8d   : > { %5063 = vrot.lane.b32.xlu1 %v7603_v54, %s6983_s24 }
 0xa8e   : > { %4875 = vrot.lane.b32.xlu0 %v7557_v22, %s6983_s24 }
 0xa92   : > { %5016 = vrot.lane.b32.xlu0 %v7607_v62, %s6983_s24 }
 0xae5   : > { %v4646_v20 = vpop.xlane.xlu0 %4645 }
 0xae6   : > { %v4692_v15 = vsub.f32 %v8729_v5, %v4646_v20 }
 0xae7   : > { %v4649_v59 = vpop.xlane.xlu1 %4648 }
 0xae8   : > { %v4708_v55 = vmul.f32 1.442695, %v4692_v15  ;;  %v4693_v53 = vsub.f32 %v8732_v11, %v4649_v59 }
 0xae9   : > { %v4652_v1 = vpop.xlane.xlu0 %4651 }
 0xaea   : > { %6870 = vpow2.f32 %v4708_v55  ;;  %v4710_v45 = vmul.f32 1.442695, %v4693_v53  ;;  %v4694_v0 = vsub.f32 %v8737_v49, %v4652_v1 }
 0xaec   : > { %6872 = vpow2.f32 %v4710_v45  ;;  %v4712_v54 = vmul.f32 1.442695, %v4694_v0 }
 0xaed   : > { %v4658_v38 = vpop.xlane.xlu1 %4657  ;;  %v4655_v3 = vpop.xlane.xlu0 %4654 }
 0xaee   : > { %6874 = vpow2.f32 %v4712_v54  ;;  %v4696_v22 = vsub.f32 %v8747_v43, %v4658_v38  ;;  %v4695_v62 = vsub.f32 %v8742_v63, %v4655_v3 }
 0xaf0   : > { %v4716_v30 = vmul.f32 1.442695, %v4696_v22  ;;  %v4714_v5 = vmul.f32 1.442695, %v4695_v62 }
 0xaf1   : > { %v4661_v8 = vpop.xlane.xlu0 %4660  ;;  %v4664_v56 = vpop.xlane.xlu1 %4663 }
 0xaf2   : > { %6876 = vpow2.f32 %v4716_v30  ;;  %v4697_v11 = vsub.f32 %v8750_v21, %v4661_v8  ;;  %v4698_v20 = vsub.f32 %v8757_v23, %v4664_v56 }
 0xaf3   : > { %6878 = vpow2.f32 %v4714_v5 }
 0xaf4   : > { %v8825_v49 = vpop.eup %6870  ;;  %v4718_v15 = vmul.f32 1.442695, %v4697_v11  ;;  %v4720_v59 = vmul.f32 1.442695, %v4698_v20 }
 0xaf5   : > { %v4670_v55 = vpop.xlane.xlu1 %4669  ;;  %v4667_v53 = vpop.xlane.xlu0 %4666  ;;  %v4740_v43 = vsel %vm1625_vm3, %v8825_v49, 0.0 }
 0xaf6   : > { %v8829_v63 = vpop.eup %6872  ;;  %6880 = vpow2.f32 %v4718_v15  ;;  %v4700_v1 = vsub.f32 %v8767_v35, %v4670_v55  ;;  %v4699_v45 = vsub.f32 %v8760_v36, %v4667_v53  ;;  %4741 = vadd.xlane.f32.xlu1 %v4740_v43 }
 0xaf7   : > { %6882 = vpow2.f32 %v4720_v59  ;;  %v4743_v21 = vsel %vm1625_vm3, %v8829_v63, 0.0 }
 0xaf8   : > { %v8835_v23 = vpop.eup %6874  ;;  %v4724_v0 = vmul.f32 1.442695, %v4700_v1  ;;  %v4722_v54 = vmul.f32 1.442695, %v4699_v45  ;;  %4744 = vadd.xlane.f32.xlu0 %v4743_v21 }
 0xaf9   : > { %v4673_v38 = vpop.xlane.xlu0 %4672  ;;  %v4676_v3 = vpop.xlane.xlu1 %4675  ;;  %v4746_v22 = vsel %vm1625_vm3, %v8835_v23, 0.0 }
 0xafa   : > { %6884 = vpow2.f32 %v4724_v0  ;;  %v4701_v35 = vsub.f32 %v8770_v41, %v4673_v38  ;;  %v4702_v36 = vsub.f32 %v8777_v40, %v4676_v3  ;;  %4747 = vadd.xlane.f32.xlu1 %v4746_v22 }
 0xafb   : > { %6886 = vpow2.f32 %v4722_v54 }
 0xafc   : > { %v8841_v62 = vpop.eup %6876  ;;  %v4726_v30 = vmul.f32 1.442695, %v4701_v35  ;;  %v4728_v5 = vmul.f32 1.442695, %v4702_v36 }
 0xafd   : > { %v8843_v8 = vpop.eup %6878  ;;  %v4682_v56 = vpop.xlane.xlu1 %4681  ;;  %v4752_v20 = vsel %vm1625_vm3, %v8841_v62, 0.0 }
 0xafe   : > { %v4679_v11 = vpop.xlane.xlu0 %4678  ;;  %6888 = vpow2.f32 %v4726_v30  ;;  %v4704_v15 = vsub.f32 %v8787_v26, %v4682_v56  ;;  %4753 = vadd.xlane.f32.xlu1 %v4752_v20  ;;  %v4749_v40 = vsel %vm1625_vm3, %v8843_v8, 0.0 }
 0xaff   : > { %v4703_v41 = vsub.f32 %v8780_v6, %v4679_v11  ;;  %6890 = vpow2.f32 %v4728_v5  ;;  %4750 = vadd.xlane.f32.xlu0 %v4749_v40 }
 0xb00   : > { %v8851_v59 = vpop.eup %6880  ;;  %v4732_v55 = vmul.f32 1.442695, %v4704_v15 }
 0xb01   : > { %v4730_v53 = vmul.f32 1.442695, %v4703_v41  ;;  %v8853_v43 = vpop.eup %6882  ;;  %v4688_v45 = vpop.xlane.xlu1 %4687  ;;  %v4755_v21 = vsel %vm1625_vm3, %v8851_v59, 0.0 }
 0xb02   : > { %v4685_v1 = vpop.xlane.xlu0 %4684  ;;  %6892 = vpow2.f32 %v4732_v55  ;;  %v4706_v26 = vsub.f32 %v8797_v47, %v4688_v45  ;;  %v4758_v0 = vsel %vm1625_vm3, %v8853_v43, 0.0 }
 0xb03   : > { %v4705_v6 = vsub.f32 %v8790_v2, %v4685_v1  ;;  %6894 = vpow2.f32 %v4730_v53  ;;  %4759 = vadd.xlane.f32.xlu1 %v4758_v0  ;;  %4756 = vadd.xlane.f32.xlu0 %v4755_v21  ;;  %v9467_v0 = vpack.c.bf16 %v8344_v16, %v8342_v7  ;;  %v9471_v7 = vld [vmem:[#allocation27_spill] sm:$0xff]  ;;  %v9472_v16 = vld [vmem:[#allocation26_spill] sm:$0xff] }
 0xb04   : > { %v8861_v54 = vpop.eup %6884  ;;  %v4736_v3 = vmul.f32 1.442695, %v4706_v26 }
 0xb05   : > { %v4734_v38 = vmul.f32 1.442695, %v4705_v6  ;;  %v8863_v22 = vpop.eup %6886  ;;  %v4764_v36 = vsel %vm1625_vm3, %v8861_v54, 0.0  ;;  %v4923_v52 = vpop.permute.xlu1 %4922 }
 0xb06   : > { %v4691_v35 = vpop.xlane.xlu0 %4690  ;;  %v4761_v47 = vsel %vm1625_vm3, %v8863_v22, 0.0 }
 0xb07   : > { %6896 = vpow2.f32 %v4734_v38  ;;  %v4707_v2 = vsub.f32 %v8800_v46, %v4691_v35  ;;  %4765 = vadd.xlane.f32.xlu1 %v4764_v36  ;;  %4762 = vadd.xlane.f32.xlu0 %v4761_v47  ;;  %v9468_v38 = vpack.c.bf16 %v8350_v34, %v8348_v32  ;;  %v9473_v32 = vpack.c.bf16 %v9471_v7, %v9472_v16  ;;  %v9475_v34 = vld [vmem:[#allocation32_spill] sm:$0xff] }
 0xb08   : > { %6898 = vpow2.f32 %v4736_v3  ;;  %v8870_v30 = vpop.eup %6888 }
 0xb09   : > { %v4738_v5 = vmul.f32 1.442695, %v4707_v2  ;;  %v8872_v56 = vpop.eup %6890  ;;  %v4767_v20 = vsel %vm1625_vm3, %v8870_v30, 0.0 }
 0xb0a   : > { %v4876_v11 = vpop.permute.xlu0 %4875  ;;  %v4770_v15 = vsel %vm1625_vm3, %v8872_v56, 0.0 }
 0xb0b   : > { %6900 = vpow2.f32 %v4738_v5  ;;  %6502 = vmatpush3.bf16.msra.mxu1 %v4876_v11  ;;  %4771 = vadd.xlane.f32.xlu1 %v4770_v15 }
 0xb0c   : > { %4768 = vadd.xlane.f32.xlu0 %v4767_v20  ;;  %v8878_v46 = vpop.eup %6892  ;;  %6513 = vmatprep.subr.bf16.mxu1 %v9455_v12 }
 0xb0d   : > { %v8881_v41 = vpop.eup %6894  ;;  %v4776_v40 = vsel %vm1625_vm3, %v8878_v46, 0.0 }
 0xb0e   : > { %v4773_v55 = vsel %vm1625_vm3, %v8881_v41, 0.0  ;;  %v5017_v14 = vpop.permute.xlu0 %5016 }
 0xb0f   : > { %4777 = vadd.xlane.f32.xlu1 %v4776_v40 }
 0xb10   : > { %4774 = vadd.xlane.f32.xlu0 %v4773_v55 }
 0xb11   : > { %v8887_v53 = vpop.eup %6896 }
 0xb12   : > { %v8889_v1 = vpop.eup %6898  ;;  %v4779_v45 = vsel %vm1625_vm3, %v8887_v53, 0.0 }
 0xb13   : > { %v4782_v21 = vsel %vm1625_vm3, %v8889_v1, 0.0 }
 0xb14   : > { %4783 = vadd.xlane.f32.xlu1 %v4782_v21  ;;  %4780 = vadd.xlane.f32.xlu0 %v4779_v45 }
 0xb15   : > { %v8895_v6 = vpop.eup %6900 }
 0xb16   : > { %v4785_v26 = vsel %vm1625_vm3, %v8895_v6, 0.0 }
 0xb18   : > { %4786 = vadd.xlane.f32.xlu0 %v4785_v26 }
 0xb25   : > { %5157 = vrot.lane.b32.xlu1 %v7626_v50, %s6983_s24  ;;  %v9469_v50 = vld [vmem:[#allocation25_spill] sm:$0xff] }
 0xb26   : > { %v9470_v3 = vpack.c.bf16 %v8320_v17, %v9469_v50  ;;  %v9477_v17 = vld [vmem:[#allocation35_spill] sm:$0xff] }
 0xb29   : > { %3194 = vrot.lane.b32.xlu1 %v9467_v0, %s6983_s24 }
 0xb2d   : > { %3196 = vrot.lane.b32.xlu1 %v9468_v38, %s6983_s24 }
 0xb2e   : > { %5110 = vrot.lane.b32.xlu0 %v7630_v29, %s6983_s24  ;;  %v9474_v29 = vld [vmem:[#allocation33_spill] sm:$0xff] }
 0xb2f   : > { %v9476_v42 = vpack.c.bf16 %v9474_v29, %v9475_v34 }
 0xb31   : > { %4211 = vrot.lane.b32.xlu1 %v4191_v4, %s6982_s19  ;;  %v9479_v4 = vpack.c.bf16 %v9477_v17, %v9478_v18 }
 0xb32   : > { %3186 = vrot.lane.b32.xlu0 %v9470_v3, %s6983_s24 }
 0xb35   : > { %4213 = vrot.lane.b32.xlu1 %v4192_v31, %s6982_s19 }
 0xb36   : > { %3188 = vrot.lane.b32.xlu0 %v9473_v32, %s6983_s24 }
 0xb39   : > { %3198 = vrot.lane.b32.xlu1 %v9476_v42, %s6983_s24 }
 0xb3a   : > { %4203 = vrot.lane.b32.xlu0 %v4187_v33, %s6982_s19  ;;  %v9484_v33 = vld [vmem:[#allocation30_spill] sm:$0xff] }
 0xb3b   : > { %v9485_v51 = vpack.c.bf16 %v9483_v37, %v9484_v33 }
 0xb3d   : > { %3200 = vrot.lane.b32.xlu1 %v9479_v4, %s6983_s24 }
 0xb3e   : > { %4205 = vrot.lane.b32.xlu0 %v4188_v39, %s6982_s19  ;;  %v4970_v39 = vpop.permute.xlu1 %4969 }
 0xb41   : > { %4215 = vrot.lane.b32.xlu1 %v4193_v10, %s6982_s19 }
 0xb42   : > { %3190 = vrot.lane.b32.xlu0 %v9482_v58, %s6983_s24  ;;  %v8967_v31 = vpop.permute.xlu1 %5063 }
 0xb45   : > { %4217 = vrot.lane.b32.xlu1 %v4194_v19, %s6982_s19 }
 0xb46   : > { %3192 = vrot.lane.b32.xlu0 %v9485_v51, %s6983_s24 }
 0xb4a   : > { %4207 = vrot.lane.b32.xlu0 %v4189_v13, %s6982_s19 }
 0xb4e   : > { %4209 = vrot.lane.b32.xlu0 %v4190_v44, %s6982_s19 }
 0xb83   : > { %v4742_v24 = vpop.xlane.xlu1 %4741 }
 0xb84   : > { %6902 = vrcp.f32 %v4742_v24 }
 0xb85   : > { %v4745_v10 = vpop.xlane.xlu0 %4744 }
 0xb86   : > { %6904 = vrcp.f32 %v4745_v10 }
 0xb87   : > { %v4748_v57 = vpop.xlane.xlu1 %4747 }
 0xb88   : > { %6906 = vrcp.f32 %v4748_v57 }
 0xb8b   : > { %v4754_v28 = vpop.xlane.xlu1 %4753 }
 0xb8c   : > { %v4751_v19 = vpop.xlane.xlu0 %4750 }
 0xb8d   : > { %6908 = vrcp.f32 %v4751_v19 }
 0xb8e   : > { %v6903_v9 = vpop.eup %6902  ;;  %6910 = vrcp.f32 %v4754_v28 }
 0xb8f   : > { %v4804_v25 = vmul.f32 %v6903_v9, %v8825_v49 }
 0xb90   : > { %v6905_v61 = vpop.eup %6904  ;;  %v4760_v13 = vpop.xlane.xlu1 %4759 }
 0xb91   : > { %v4757_v48 = vpop.xlane.xlu0 %4756  ;;  %v4805_v44 = vmul.f32 %v6905_v61, %v8829_v63 }
 0xb92   : > { %6912 = vrcp.f32 %v4757_v48  ;;  %v6907_v47 = vpop.eup %6906 }
 0xb93   : > { %v4820_v35 = vpack.c.bf16 %v4805_v44, %v4804_v25  ;;  %6914 = vrcp.f32 %v4760_v13  ;;  %v4806_v49 = vmul.f32 %v6907_v47, %v8835_v23  ;;  %v6638_v44 = vld [vmem:[%s9386_s5] sm:$0xff]  }
 0xb94   : > { %v4766_v36 = vpop.xlane.xlu1 %4765  ;;  %v6642_v47 = vld [vmem:[%s9386_s5 + $0x20] sm:$0xff]  }
 0xb95   : > { %v4763_v2 = vpop.xlane.xlu0 %4762  ;;  %6498 = vmatmul.mubr.msk.bf16.vlgmr.msra.gmra.mrb[136].mxu0 %vm1625_vm3, %v4820_v35  ;;  %v6639_v35 = vld [vmem:[%s9386_s5 + $0x8] sm:$0xff]  }
 0xb96   : > { %6916 = vrcp.f32 %v4763_v2  ;;  %6508 = vmatpush3.bf16.msra.mxu0 %v4923_v52  ;;  %6509 = vmatprep.mubr.msk.bf16.mxu0 %vm6980_vm1, %v9455_v12  ;;  %v6641_v2 = vld [vmem:[%s9386_s5 + $0x18] sm:$0xff]  }
 0xb97   : > { %v6909_v5 = vpop.eup %6908  ;;  %6519 = vmatprep.subr.bf16.mxu0 %v9455_v12  ;;  %6918 = vrcp.f32 %v4766_v36  ;;  %v6640_v36 = vld [vmem:[%s9386_s5 + $0x10] sm:$0xff]  }
 0xb98   : > { %v4807_v63 = vmul.f32 %v6909_v5, %v8843_v8  ;;  %v4772_v11 = vpop.xlane.xlu1 %4771  ;;  %v6911_v15 = vpop.eup %6910  ;;  %v6643_v5 = vld [vmem:[%s9386_s5 + $0x28] sm:$0xff]  }
 0xb99   : > { %v4769_v20 = vpop.xlane.xlu0 %4768  ;;  %v4808_v26 = vmul.f32 %v6911_v15, %v8841_v62 }
 0xb9a   : > { %6920 = vrcp.f32 %v4769_v20  ;;  %v4821_v40 = vpack.c.bf16 %v4807_v63, %v4806_v49  ;;  %v6644_v49 = vld [vmem:[%s9386_s5 + $0x30] sm:$0xff]  }
 0xb9b   : > { %6922 = vrcp.f32 %v4772_v11 }
 0xb9c   : > { %v6913_v55 = vpop.eup %6912  ;;  %v4778_v45 = vpop.xlane.xlu1 %4777  ;;  %6504 = vmatmul.mubr.msk.bf16.vlgmr.msra.gmra.mrb[136].mxu1 %vm1625_vm3, %v4821_v40 }
 0xb9d   : > { %v4775_v21 = vpop.xlane.xlu0 %4774  ;;  %v4809_v0 = vmul.f32 %v6913_v55, %v8851_v59  ;;  %6514 = vmatpush3.bf16.msra.mxu1 %v4970_v39  ;;  %6515 = vmatprep.mubr.msk.bf16.mxu1 %vm6980_vm1, %v9455_v12  ;;  %v6915_v23 = vpop.eup %6914  ;;  %v6645_v55 = vld [vmem:[%s9386_s5 + $0x38] sm:$0xff]  }
 0xb9e   : > { %6924 = vrcp.f32 %v4775_v21  ;;  %6525 = vmatprep.subr.bf16.mxu1 %v9455_v12  ;;  %v4810_v7 = vmul.f32 %v6915_v23, %v8853_v43 }
 0xb9f   : > { %v4822_v8 = vpack.c.bf16 %v4809_v0, %v4808_v26  ;;  %6926 = vrcp.f32 %v4778_v45 }
 0xba0   : > { %v6917_v38 = vpop.eup %6916 }
 0xba1   : > { %v4784_v50 = vpop.xlane.xlu1 %4783  ;;  %v4781_v3 = vpop.xlane.xlu0 %4780  ;;  %v4811_v16 = vmul.f32 %v6917_v38, %v8863_v22  ;;  %6510 = vmatmul.mubr.msk.bf16.vlgmr.msra.gmra.mrb[140].mxu0 %vm1625_vm3, %v4822_v8 }
 0xba2   : > { %v6919_v62 = vpop.eup %6918  ;;  %6520 = vmatpush3.bf16.msra.mxu0 %v5017_v14  ;;  %6928 = vrcp.f32 %v4781_v3  ;;  %6521 = vmatprep.mubr.msk.bf16.mxu0 %vm6980_vm1, %v9455_v12 }
 0xba3   : > { %6930 = vrcp.f32 %v4784_v50  ;;  %v4823_v59 = vpack.c.bf16 %v4811_v16, %v4810_v7  ;;  %6531 = vmatprep.subr.bf16.mxu0 %v9455_v12  ;;  %v4812_v42 = vmul.f32 %v6919_v62, %v8861_v54 }
 0xba4   : > { %v6921_v32 = vpop.eup %6920 }
 0xba5   : > { %v5158_v29 = vpop.permute.xlu1 %5157  ;;  %v4787_v34 = vpop.xlane.xlu0 %4786  ;;  %v4813_v43 = vmul.f32 %v6921_v32, %v8870_v30  ;;  %6516 = vmatmul.mubr.msk.bf16.vlgmr.msra.gmra.mrb[140].mxu1 %vm1625_vm3, %v4823_v59 }
 0xba6   : > { %6932 = vrcp.f32 %v4787_v34  ;;  %v6923_v22 = vpop.eup %6922  ;;  %6526 = vmatpush3.bf16.msra.mxu1 %v8967_v31  ;;  %6527 = vmatprep.mubr.msk.bf16.mxu1 %vm6980_vm1, %v9455_v12 }
 0xba7   : > { %v4824_v17 = vpack.c.bf16 %v4813_v43, %v4812_v42  ;;  %6537 = vmatprep.subr.bf16.mxu1 %v9455_v12  ;;  %v4814_v54 = vmul.f32 %v6923_v22, %v8872_v56 }
 0xba8   : > { %v6925_v18 = vpop.eup %6924 }
 0xba9   : > { %v3195_v4 = vpop.permute.xlu1 %3194  ;;  %v5111_v60 = vpop.permute.xlu0 %5110  ;;  %v4815_v30 = vmul.f32 %v6925_v18, %v8881_v41  ;;  %6522 = vmatmul.mubr.msk.bf16.vlgmr.msra.gmra.mrb[144].mxu0 %vm1625_vm3, %v4824_v17 }
 0xbaa   : > { %3215 = vst.msk [vmem:[#allocation2 + $0x20] sm:$0xff] %vm3210_vm4, %v3195_v4  ;;  %v6927_v27 = vpop.eup %6926  ;;  %6532 = vmatpush3.bf16.msra.mxu0 %v5111_v60  ;;  %6533 = vmatprep.mubr.msk.bf16.mxu0 %vm6980_vm1, %v9455_v12 }
 0xbab   : > { %v4825_v58 = vpack.c.bf16 %v4815_v30, %v4814_v54  ;;  %v4816_v39 = vmul.f32 %v6927_v27, %v8878_v46  ;;  %6543 = vmatprep.subr.bf16.mxu0 %v6638_v44 }
 0xbac   : > { %v6929_v37 = vpop.eup %6928 }
 0xbad   : > { %v3197_v33 = vpop.permute.xlu1 %3196  ;;  %v3187_v51 = vpop.permute.xlu0 %3186  ;;  %v4817_v56 = vmul.f32 %v6929_v37, %v8887_v53  ;;  %6528 = vmatmul.mubr.msk.bf16.vlgmr.msra.gmra.mrb[144].mxu1 %vm1625_vm3, %v4825_v58 }
 0xbae   : > { %v6931_v52 = vpop.eup %6930  ;;  %3216 = vst.msk [vmem:[#allocation2 + $0x28] sm:$0xff] %vm3210_vm4, %v3197_v33  ;;  %3211 = vst.msk [vmem:[#allocation2] sm:$0xff] %vm3210_vm4, %v3187_v51  ;;  %6538 = vmatpush3.bf16.msra.mxu1 %v5158_v29  ;;  %6539 = vmatprep.mubr.msk.bf16.mxu1 %vm6980_vm1, %v9455_v12 }
 0xbaf   : > { %v4826_v31 = vpack.c.bf16 %v4817_v56, %v4816_v39  ;;  %v4818_v14 = vmul.f32 %v6931_v52, %v8889_v1  ;;  %6575 = vmatprep.subr.bf16.mxu1 %v6638_v44 }
 0xbb0   : > { %v6933_v41 = vpop.eup %6932 }
 0xbb1   : > { %v4819_v24 = vmul.f32 %v6933_v41, %v8895_v6  ;;  %v4212_v46 = vpop.permute.xlu1 %4211  ;;  %v3189_v10 = vpop.permute.xlu0 %3188  ;;  %6534 = vmatmul.mubr.msk.bf16.vlgmr.msra.gmra.mrb[148].mxu0 %vm1625_vm3, %v4826_v31 }
 0xbb2   : > { %4232 = vst.msk [vmem:[#allocation2 + $0x20] sm:$0xff] %vm4227_vm5, %v4212_v46  ;;  %6544 = vmatpush3.bf16.msra.mxu0 %v6638_v44 }
 0xbb3   : > { %3212 = vst.msk [vmem:[#allocation2 + $0x8] sm:$0xff] %vm3210_vm4, %v3189_v10  ;;  %v4827_v53 = vpack.c.bf16 %v4819_v24, %v4818_v14  ;;  %6545 = vmatprep.subr.bf16.mxu0 %v6639_v35 }
 0xbb5   : > { %v4214_v57 = vpop.permute.xlu1 %4213  ;;  %v4204_v28 = vpop.permute.xlu0 %4203  ;;  %6540 = vmatmul.mubr.msk.bf16.vlgmr.msra.gmra.mrb[148].mxu1 %vm1625_vm3, %v4827_v53 }
 0xbb6   : > { %4233 = vst.msk [vmem:[#allocation2 + $0x28] sm:$0xff] %vm4227_vm5, %v4214_v57  ;;  %4228 = vst.msk [vmem:[#allocation2] sm:$0xff] %vm4227_vm5, %v4204_v28  ;;  %6583 = vmatpush3.bf16.msra.mxu1 %v6638_v44  ;;  %6546 = vmatpush3.bf16.msra.mxu0 %v6639_v35  ;;  %v5952_v44 = vld [vmem:[%s9387_s6] ss:$0 sm:$0xff] }
 0xbb7   : > { %6576 = vmatprep.subr.bf16.mxu1 %v6639_v35  ;;  %6547 = vmatprep.subr.bf16.mxu0 %v6640_v36 }
 0xbb9   : > { %v3199_v12 = vpop.permute.xlu1 %3198  ;;  %v4206_v1 = vpop.permute.xlu0 %4205 }
 0xbba   : > { %3217 = vst.msk [vmem:[#allocation2 + $0x30] sm:$0xff] %vm3210_vm4, %v3199_v12  ;;  %6584 = vmatpush3.bf16.msra.mxu1 %v6639_v35  ;;  %6548 = vmatpush3.bf16.msra.mxu0 %v6640_v36 }
 0xbbb   : > { %4229 = vst.msk [vmem:[#allocation2 + $0x8] sm:$0xff] %vm4227_vm5, %v4206_v1  ;;  %6577 = vmatprep.subr.bf16.mxu1 %v6640_v36  ;;  %6549 = vmatprep.subr.bf16.mxu0 %v6641_v2 }
 0xbbd   : > { %v3201_v6 = vpop.permute.xlu1 %3200  ;;  %v3191_v19 = vpop.permute.xlu0 %3190 }
 0xbbe   : > { %3218 = vst.msk [vmem:[#allocation2 + $0x38] sm:$0xff] %vm3210_vm4, %v3201_v6  ;;  %3213 = vst.msk [vmem:[#allocation2 + $0x10] sm:$0xff] %vm3210_vm4, %v3191_v19  ;;  %6585 = vmatpush3.bf16.msra.mxu1 %v6640_v36  ;;  %6550 = vmatpush3.bf16.msra.mxu0 %v6641_v2 }
 0xbbf   : > { %6578 = vmatprep.subr.bf16.mxu1 %v6641_v2  ;;  %6551 = vmatprep.subr.bf16.mxu0 %v6642_v47 }
 0xbc1   : > { %v4216_v9 = vpop.permute.xlu1 %4215  ;;  %v3193_v61 = vpop.permute.xlu0 %3192 }
 0xbc2   : > { %4234 = vst.msk [vmem:[#allocation2 + $0x30] sm:$0xff] %vm4227_vm5, %v4216_v9  ;;  %6586 = vmatpush3.bf16.msra.mxu1 %v6641_v2  ;;  %6552 = vmatpush3.bf16.msra.mxu0 %v6642_v47 }
 0xbc3   : > { %3214 = vst.msk [vmem:[#allocation2 + $0x18] sm:$0xff] %vm3210_vm4, %v3193_v61  ;;  %6579 = vmatprep.subr.bf16.mxu1 %v6642_v47  ;;  %6553 = vmatprep.subr.bf16.mxu0 %v6643_v5 }
 0xbc5   : > { %v4218_v13 = vpop.permute.xlu1 %4217  ;;  %v4208_v48 = vpop.permute.xlu0 %4207 }
 0xbc6   : > { %4235 = vst.msk [vmem:[#allocation2 + $0x38] sm:$0xff] %vm4227_vm5, %v4218_v13  ;;  %4230 = vst.msk [vmem:[#allocation2 + $0x10] sm:$0xff] %vm4227_vm5, %v4208_v48  ;;  %6587 = vmatpush3.bf16.msra.mxu1 %v6642_v47  ;;  %6554 = vmatpush3.bf16.msra.mxu0 %v6643_v5 }
 0xbc7   : > { %6580 = vmatprep.subr.bf16.mxu1 %v6643_v5  ;;  %6555 = vmatprep.subr.bf16.mxu0 %v6644_v49 }
 0xbc9   : > { %v4210_v25 = vpop.permute.xlu0 %4209 }
 0xbca   : > { %4231 = vst.msk [vmem:[#allocation2 + $0x18] sm:$0xff] %vm4227_vm5, %v4210_v25  ;;  %6588 = vmatpush3.bf16.msra.mxu1 %v6643_v5  ;;  %6556 = vmatpush3.bf16.msra.mxu0 %v6644_v49  ;;  %v9486_v5 = vld [vmem:[#allocation11_spill] sm:$0xff] }
 0xbcb   : > { %6581 = vmatprep.subr.bf16.mxu1 %v6644_v49  ;;  %6557 = vmatprep.subr.bf16.mxu0 %v6645_v55 }
 0xbce   : > { %6589 = vmatpush3.bf16.msra.mxu1 %v6644_v49  ;;  %6558 = vmatpush3.bf16.msra.mxu0 %v6645_v55 }
 0xbcf   : > { %6582 = vmatprep.subr.bf16.mxu1 %v6645_v55 }
 0xbd2   : > { %6590 = vmatpush3.bf16.msra.mxu1 %v6645_v55  ;;  %v9488_v55 = vld [vmem:[#allocation10_spill] sm:$0xff] }
 0xc68   : > { %v4868_v63 = vpop.f32.mrb[136].mxu0 }
 0xc69   : > { %v6499_v11 = vpop.f32.mrb[137].mxu0 }
 0xc6a   : > { %v4871_v20 = vpop.f32.mrb[138].mxu0 }
 0xc6b   : > { %v5204_v15 = vpack.c.bf16 %v4871_v20, %v4868_v63  ;;  %v6500_v40 = vpop.f32.mrb[139].mxu0 }
 0xc6d   : > { %5220 = vrot.lane.b32.xlu0 %v5204_v15, %s6981_s18  ;;  %v9487_v15 = vld [vmem:[#allocation9_spill] sm:$0xff] }
 0xc6f   : > { %v4915_v45 = vpop.f32.mrb[136].mxu1 }
 0xc70   : > { %v6505_v21 = vpop.f32.mrb[137].mxu1 }
 0xc71   : > { %v4918_v26 = vpop.f32.mrb[138].mxu1 }
 0xc72   : > { %v5205_v0 = vpack.c.bf16 %v4918_v26, %v4915_v45  ;;  %v6506_v23 = vpop.f32.mrb[139].mxu1 }
 0xc74   : > { %v4962_v8 = vpop.f32.mrb[140].mxu0  ;;  %5222 = vrot.lane.b32.xlu0 %v5205_v0, %s6981_s18 }
 0xc75   : > { %v6511_v38 = vpop.f32.mrb[141].mxu0 }
 0xc76   : > { %v4965_v50 = vpop.f32.mrb[142].mxu0 }
 0xc77   : > { %v5206_v3 = vpack.c.bf16 %v4965_v50, %v4962_v8  ;;  %v6512_v7 = vpop.f32.mrb[143].mxu0  ;;  %v9489_v8 = vld [vmem:[#allocation12_spill] sm:$0xff] }
 0xc78   : > { %v5009_v16 = vpop.f32.mrb[140].mxu1 }
 0xc79   : > { %5224 = vrot.lane.b32.xlu0 %v5206_v3, %s6981_s18  ;;  %v6517_v62 = vpop.f32.mrb[141].mxu1  ;;  %v9490_v3 = vld [vmem:[#allocation15_spill] sm:$0xff] }
 0xc7a   : > { %v5012_v59 = vpop.f32.mrb[142].mxu1 }
 0xc7b   : > { %v5207_v32 = vpack.c.bf16 %v5012_v59, %v5009_v16  ;;  %v6518_v29 = vpop.f32.mrb[143].mxu1 }
 0xc7c   : > { %v5056_v34 = vpop.f32.mrb[144].mxu0 }
 0xc7d   : > { %v6523_v42 = vpop.f32.mrb[145].mxu0  ;;  %5226 = vrot.lane.b32.xlu0 %v5207_v32, %s6981_s18  ;;  %v9491_v32 = vld [vmem:[#allocation16_spill] sm:$0xff] }
 0xc7e   : > { %v5059_v43 = vpop.f32.mrb[146].mxu0  ;;  %v9492_v42 = vld [vmem:[#allocation13_spill] sm:$0xff] }
 0xc7f   : > { %v5208_v22 = vpack.c.bf16 %v5059_v43, %v5056_v34  ;;  %v6524_v17 = vpop.f32.mrb[147].mxu0 }
 0xc80   : > { %v5103_v18 = vpop.f32.mrb[144].mxu1 }
 0xc81   : > { %5228 = vrot.lane.b32.xlu1 %v5208_v22, %s6981_s18  ;;  %v6529_v4 = vpop.f32.mrb[145].mxu1 }
 0xc82   : > { %v5106_v60 = vpop.f32.mrb[146].mxu1  ;;  %v9493_v4 = vld [vmem:[#allocation14_spill] sm:$0xff] }
 0xc83   : > { %v5209_v54 = vpack.c.bf16 %v5106_v60, %v5103_v18  ;;  %v6530_v30 = vpop.f32.mrb[147].mxu1 }
 0xc84   : > { %v5150_v27 = vpop.f32.mrb[148].mxu0  ;;  %v9494_v30 = vld [vmem:[#allocation19_spill] sm:$0xff] }
 0xc85   : > { %v6535_v58 = vpop.f32.mrb[149].mxu0  ;;  %5230 = vrot.lane.b32.xlu1 %v5209_v54, %s6981_s18 }
 0xc86   : > { %v5153_v37 = vpop.f32.mrb[150].mxu0 }
 0xc87   : > { %v5210_v33 = vpack.c.bf16 %v5153_v37, %v5150_v27  ;;  %v6536_v51 = vpop.f32.mrb[151].mxu0 }
 0xc88   : > { %v5197_v52 = vpop.f32.mrb[148].mxu1  ;;  %v9495_v51 = vld [vmem:[#allocation20_spill] sm:$0xff] }
 0xc89   : > { %5232 = vrot.lane.b32.xlu1 %v5210_v33, %s6981_s18  ;;  %v6541_v39 = vpop.f32.mrb[149].mxu1 }
 0xc8a   : > { %v5200_v56 = vpop.f32.mrb[150].mxu1 }
 0xc8b   : > { %v5211_v41 = vpack.c.bf16 %v5200_v56, %v5197_v52  ;;  %v6542_v31 = vpop.f32.mrb[151].mxu1  ;;  %v9496_v56 = vld [vmem:[#allocation17_spill] sm:$0xff] }
 0xc8d   : > { %5234 = vrot.lane.b32.xlu1 %v5211_v41, %s6981_s18 }
 0xcdf   : > { %v5221_v14 = vpop.permute.xlu0 %5220 }
 0xce0   : > { %5245 = vst.msk [vmem:[#allocation2] sm:$0xff] %vm5244_vm6, %v5221_v14 }
 0xce6   : > { %v5223_v24 = vpop.permute.xlu0 %5222 }
 0xce7   : > { %5246 = vst.msk [vmem:[#allocation2 + $0x8] sm:$0xff] %vm5244_vm6, %v5223_v24  ;;  %v5253_v46 = vld [vmem:[#allocation2] sm:$0xff]  ;;  %v9497_v24 = vld [vmem:[#allocation18_spill] sm:$0xff] }
 0xce8   : > { %6559 = vmatprep.mubr.bf16.mxu0 %v5253_v46 }
 0xceb   : > { %v5225_v10 = vpop.permute.xlu0 %5224 }
 0xcec   : > { %5247 = vst.msk [vmem:[#allocation2 + $0x10] sm:$0xff] %vm5244_vm6, %v5225_v10 }
 0xcee   : > { %v5254_v53 = vld [vmem:[#allocation2 + $0x8] sm:$0xff] }
 0xcef   : > { %v5227_v57 = vpop.permute.xlu0 %5226  ;;  %6560 = vmatmul.mubr.bf16.vlgmr.msra.gmra.mrb[152].mxu0 %v5254_v53 }
 0xcf0   : > { %5248 = vst.msk [vmem:[#allocation2 + $0x18] sm:$0xff] %vm5244_vm6, %v5227_v57 }
 0xcf3   : > { %v5229_v28 = vpop.permute.xlu1 %5228  ;;  %v5255_v12 = vld [vmem:[#allocation2 + $0x10] sm:$0xff] }
 0xcf4   : > { %5249 = vst.msk [vmem:[#allocation2 + $0x20] sm:$0xff] %vm5244_vm6, %v5229_v28  ;;  %6563 = vmatprep.mubr.bf16.mxu0 %v5255_v12  ;;  %v9498_v12 = vld [vmem:[#allocation21_spill] sm:$0xff] }
 0xcf7   : > { %v5231_v1 = vpop.permute.xlu1 %5230  ;;  %v5256_v6 = vld [vmem:[#allocation2 + $0x18] sm:$0xff] }
 0xcf8   : > { %5250 = vst.msk [vmem:[#allocation2 + $0x28] sm:$0xff] %vm5244_vm6, %v5231_v1  ;;  %6564 = vmatmul.mubr.bf16.gmra.mrb[156].mxu0 %v5256_v6 }
 0xcfb   : > { %v5233_v19 = vpop.permute.xlu1 %5232  ;;  %v5257_v9 = vld [vmem:[#allocation2 + $0x20] sm:$0xff] }
 0xcfc   : > { %5251 = vst.msk [vmem:[#allocation2 + $0x30] sm:$0xff] %vm5244_vm6, %v5233_v19  ;;  %6567 = vmatprep.mubr.bf16.mxu1 %v5257_v9  ;;  %v9499_v9 = vld [vmem:[#allocation22_spill] sm:$0xff] }
 0xcff   : > { %v5235_v61 = vpop.permute.xlu1 %5234  ;;  %v5258_v13 = vld [vmem:[#allocation2 + $0x28] sm:$0xff] }
 0xd00   : > { %5252 = vst.msk [vmem:[#allocation2 + $0x38] sm:$0xff] %vm5244_vm6, %v5235_v61  ;;  %6568 = vmatmul.mubr.bf16.vlgmr.msra.gmra.mrb[152].mxu1 %v5258_v13  ;;  %v9500_v13 = vld [vmem:[#allocation23_spill] sm:$0xff] }
 0xd03   : > { %v5259_v48 = vld [vmem:[#allocation2 + $0x30] sm:$0xff] }
 0xd04   : > { %6571 = vmatprep.mubr.bf16.mxu1 %v5259_v48 }
 0xd07   : > { %v5260_v25 = vld [vmem:[#allocation2 + $0x38] sm:$0xff] }
 0xd08   : > { %6572 = vmatmul.mubr.bf16.gmra.mrb[156].mxu1 %v5260_v25  ;;  %v9501_v25 = vld [vmem:[#allocation24_spill] sm:$0xff] }
 0xdc2   : > { %v6561_v35 = vpop.f32.mrb[152].mxu0 }
 0xdc3   : > { %v5358_v36 = vadd.f32 %v6561_v35, %v5952_v44  ;;  %v5349_v2 = vpop.f32.mrb[153].mxu0 }
 0xdc4   : > { %v6562_v47 = vpop.f32.mrb[154].mxu0  ;;  %v5350_v63 = vadd.f32 %v5952_v44, %v5349_v2 }
 0xdc5   : > { %v5414_v49 = vadd.f32 %v5358_v36, %v9486_v5  ;;  %v5352_v11 = vpop.f32.mrb[155].mxu0  ;;  %v5361_v21 = vadd.f32 %v6562_v47, %v5952_v44 }
 0xdc6   : > { %v5353_v20 = vadd.f32 %v5952_v44, %v5352_v11  ;;  %v5412_v45 = vadd.f32 %v5350_v63, %v9488_v55 }
 0xdc7   : > { %5432 = vadd.xlane.f32.xlu0 %v5414_v49  ;;  %v5415_v38 = vadd.f32 %v5361_v21, %v9489_v8 }
 0xdc8   : > { %v9071_v40 = vadd.f32 %v5353_v20, %v9487_v15 }
 0xdca   : > { %5430 = vadd.xlane.f32.xlu1 %v9071_v40 }
 0xdcb   : > { %v6565_v26 = vpop.f32.mrb[156].mxu0  ;;  %5428 = vadd.xlane.f32.xlu0 %v5412_v45 }
 0xdcc   : > { %v5374_v0 = vadd.f32 %v6565_v26, %v5952_v44  ;;  %v5365_v23 = vpop.f32.mrb[157].mxu0 }
 0xdcd   : > { %v6566_v50 = vpop.f32.mrb[158].mxu0  ;;  %v5366_v16 = vadd.f32 %v5952_v44, %v5365_v23 }
 0xdce   : > { %v5418_v7 = vadd.f32 %v5374_v0, %v9490_v3  ;;  %v5377_v62 = vadd.f32 %v6566_v50, %v5952_v44  ;;  %v5368_v59 = vpop.f32.mrb[159].mxu0 }
 0xdcf   : > { %5434 = vadd.xlane.f32.xlu0 %v5415_v38  ;;  %v5369_v34 = vadd.f32 %v5952_v44, %v5368_v59  ;;  %v9081_v43 = vadd.f32 %v5366_v16, %v9492_v42 }
 0xdd0   : > { %5440 = vadd.xlane.f32.xlu1 %v5418_v7  ;;  %v9078_v29 = vadd.f32 %v5377_v62, %v9491_v32 }
 0xdd1   : > { %v9086_v60 = vadd.f32 %v5369_v34, %v9493_v4 }
 0xdd3   : > { %v6569_v22 = vpop.f32.mrb[152].mxu1  ;;  %5442 = vadd.xlane.f32.xlu0 %v9078_v29 }
 0xdd4   : > { %v5390_v17 = vadd.f32 %v6569_v22, %v5952_v44  ;;  %5436 = vadd.xlane.f32.xlu1 %v9081_v43  ;;  %v5381_v18 = vpop.f32.mrb[153].mxu1 }
 0xdd5   : > { %v6570_v54 = vpop.f32.mrb[154].mxu1  ;;  %v5382_v58 = vadd.f32 %v5952_v44, %v5381_v18 }
 0xdd6   : > { %v9089_v27 = vadd.f32 %v5390_v17, %v9494_v30  ;;  %v5393_v37 = vadd.f32 %v6570_v54, %v5952_v44  ;;  %v5384_v33 = vpop.f32.mrb[155].mxu1 }
 0xdd7   : > { %5438 = vadd.xlane.f32.xlu0 %v9086_v60  ;;  %v5385_v39 = vadd.f32 %v5952_v44, %v5384_v33  ;;  %v9097_v41 = vadd.f32 %v5382_v58, %v9496_v56 }
 0xdd8   : > { %5448 = vadd.xlane.f32.xlu1 %v9089_v27  ;;  %v9094_v52 = vadd.f32 %v5393_v37, %v9495_v51 }
 0xdd9   : > { %v9102_v46 = vadd.f32 %v5385_v39, %v9497_v24 }
 0xddb   : > { %v6573_v31 = vpop.f32.mrb[156].mxu1  ;;  %5450 = vadd.xlane.f32.xlu0 %v9094_v52 }
 0xddc   : > { %v5397_v14 = vpop.f32.mrb[157].mxu1  ;;  %5444 = vadd.xlane.f32.xlu1 %v9097_v41  ;;  %v5406_v28 = vadd.f32 %v6573_v31, %v5952_v44 }
 0xddd   : > { %v5398_v10 = vadd.f32 %v5952_v44, %v5397_v14  ;;  %v6574_v53 = vpop.f32.mrb[158].mxu1 }
 0xdde   : > { %v5400_v57 = vpop.f32.mrb[159].mxu1  ;;  %v5409_v19 = vadd.f32 %v6574_v53, %v5952_v44  ;;  %v9113_v48 = vadd.f32 %v5406_v28, %v9500_v13 }
 0xddf   : > { %v9105_v1 = vadd.f32 %v5398_v10, %v9498_v12  ;;  %v5401_v6 = vadd.f32 %v5952_v44, %v5400_v57  ;;  %5446 = vadd.xlane.f32.xlu0 %v9102_v46 }
 0xde0   : > { %v9117_v35 = vadd.f32 %v5409_v19, %v9501_v25 }
 0xde1   : > { %v9109_v61 = vadd.f32 %v5401_v6, %v9499_v9  ;;  %5452 = vadd.xlane.f32.xlu1 %v9105_v1 }
 0xde3   : > { %5454 = vadd.xlane.f32.xlu0 %v9109_v61 }
 0xde5   : > { %5456 = vadd.xlane.f32.xlu1 %v9113_v48 }
 0xde7   : > { %5458 = vadd.xlane.f32.xlu0 %v9117_v35 }
 0xe54   : > { %v5433_v36 = vpop.xlane.xlu0 %5432 }
 0xe55   : > { %v5462_v2 = vmul.f32 0.0078125, %v5433_v36 }
 0xe57   : > { %v9121_v44 = vsub.f32 %v5414_v49, %v5462_v2  ;;  %v5431_v47 = vpop.xlane.xlu1 %5430 }
 0xe58   : > { %v5429_v5 = vpop.xlane.xlu0 %5428  ;;  %v5461_v55 = vmul.f32 0.0078125, %v5431_v47 }
 0xe59   : > { %v5460_v63 = vmul.f32 0.0078125, %v5429_v5  ;;  %v5494_v11 = vmul.f32 %v9121_v44, %v9121_v44 }
 0xe5a   : > { %v9134_v3 = vsub.f32 %v9071_v40, %v5461_v55 }
 0xe5b   : > { %v9125_v20 = vsub.f32 %v5412_v45, %v5460_v63  ;;  %5512 = vadd.xlane.f32.xlu1 %v5494_v11 }
 0xe5c   : > { %v5435_v15 = vpop.xlane.xlu0 %5434  ;;  %v5493_v22 = vmul.f32 %v9134_v3, %v9134_v3 }
 0xe5d   : > { %v5463_v21 = vmul.f32 0.0078125, %v5435_v15  ;;  %v5441_v26 = vpop.xlane.xlu1 %5440  ;;  %v5492_v0 = vmul.f32 %v9125_v20, %v9125_v20 }
 0xe5e   : > { %v5466_v23 = vmul.f32 0.0078125, %v5441_v26 }
 0xe5f   : > { %v9129_v8 = vsub.f32 %v5415_v38, %v5463_v21  ;;  %5508 = vadd.xlane.f32.xlu1 %v5492_v0 }
 0xe60   : > { %v9131_v49 = vsub.f32 %v5418_v7, %v5466_v23  ;;  %v5443_v50 = vpop.xlane.xlu0 %5442 }
 0xe61   : > { %v5467_v45 = vmul.f32 0.0078125, %v5443_v50  ;;  %v5437_v16 = vpop.xlane.xlu1 %5436  ;;  %v5495_v62 = vmul.f32 %v9129_v8, %v9129_v8 }
 0xe62   : > { %v5464_v59 = vmul.f32 0.0078125, %v5437_v16  ;;  %v5498_v32 = vmul.f32 %v9131_v49, %v9131_v49 }
 0xe63   : > { %5514 = vadd.xlane.f32.xlu0 %v5495_v62  ;;  %v9144_v34 = vsub.f32 %v9078_v29, %v5467_v45 }
 0xe64   : > { %v9141_v38 = vsub.f32 %v9081_v43, %v5464_v59  ;;  %5520 = vadd.xlane.f32.xlu1 %v5498_v32  ;;  %v5439_v7 = vpop.xlane.xlu0 %5438 }
 0xe65   : > { %v5465_v40 = vmul.f32 0.0078125, %v5439_v7  ;;  %v5449_v42 = vpop.xlane.xlu1 %5448  ;;  %v5499_v58 = vmul.f32 %v9144_v34, %v9144_v34 }
 0xe66   : > { %v5470_v17 = vmul.f32 0.0078125, %v5449_v42  ;;  %v5496_v18 = vmul.f32 %v9141_v38, %v9141_v38 }
 0xe67   : > { %5510 = vadd.xlane.f32.xlu0 %v5493_v22  ;;  %v9154_v54 = vsub.f32 %v9086_v60, %v5465_v40 }
 0xe68   : > { %v9151_v4 = vsub.f32 %v9089_v27, %v5470_v17  ;;  %5516 = vadd.xlane.f32.xlu1 %v5496_v18  ;;  %v5451_v43 = vpop.xlane.xlu0 %5450  ;;  %v9201_v18 = vld [vmem:[%s9388_s7] ss:$0 sm:$0xff] }
 0xe69   : > { %v5471_v29 = vmul.f32 0.0078125, %v5451_v43  ;;  %v5445_v30 = vpop.xlane.xlu1 %5444  ;;  %v5497_v56 = vmul.f32 %v9154_v54, %v9154_v54 }
 0xe6a   : > { %v5468_v37 = vmul.f32 0.0078125, %v5445_v30  ;;  %v5502_v33 = vmul.f32 %v9151_v4, %v9151_v4 }
 0xe6b   : > { %5522 = vadd.xlane.f32.xlu0 %v5499_v58  ;;  %v9164_v39 = vsub.f32 %v9094_v52, %v5471_v29  ;;  %v9214_v58 = vld [vmem:[%s9389_s8] ss:$0 sm:$0xff] }
 0xe6c   : > { %v9161_v51 = vsub.f32 %v9097_v41, %v5468_v37  ;;  %5528 = vadd.xlane.f32.xlu1 %v5502_v33  ;;  %v5447_v27 = vpop.xlane.xlu0 %5446 }
 0xe6d   : > { %v5469_v60 = vmul.f32 0.0078125, %v5447_v27  ;;  %v5503_v57 = vmul.f32 %v9164_v39, %v9164_v39 }
 0xe6e   : > { %v5453_v31 = vpop.xlane.xlu1 %5452  ;;  %v5500_v14 = vmul.f32 %v9161_v51, %v9161_v51 }
 0xe6f   : > { %v5472_v24 = vmul.f32 0.0078125, %v5453_v31  ;;  %5518 = vadd.xlane.f32.xlu0 %v5497_v56  ;;  %v9171_v41 = vsub.f32 %v9102_v46, %v5469_v60 }
 0xe70   : > { %5524 = vadd.xlane.f32.xlu1 %v5500_v14  ;;  %v5455_v10 = vpop.xlane.xlu0 %5454 }
 0xe71   : > { %v9174_v53 = vsub.f32 %v9105_v1, %v5472_v24  ;;  %v5473_v52 = vmul.f32 0.0078125, %v5455_v10  ;;  %v5501_v1 = vmul.f32 %v9171_v41, %v9171_v41 }
 0xe72   : > { %v5457_v28 = vpop.xlane.xlu1 %5456 }
 0xe73   : > { %v5474_v12 = vmul.f32 0.0078125, %v5457_v28  ;;  %5530 = vadd.xlane.f32.xlu0 %v5503_v57  ;;  %v5504_v6 = vmul.f32 %v9174_v53, %v9174_v53  ;;  %v9181_v9 = vsub.f32 %v9109_v61, %v5473_v52 }
 0xe74   : > { %v5459_v19 = vpop.xlane.xlu0 %5458 }
 0xe75   : > { %v9184_v46 = vsub.f32 %v9113_v48, %v5474_v12  ;;  %v5475_v13 = vmul.f32 0.0078125, %v5459_v19  ;;  %5532 = vadd.xlane.f32.xlu1 %v5504_v6  ;;  %v5505_v61 = vmul.f32 %v9181_v9, %v9181_v9 }
 0xe77   : > { %5526 = vadd.xlane.f32.xlu0 %v5501_v1  ;;  %v5506_v25 = vmul.f32 %v9184_v46, %v9184_v46  ;;  %v9191_v36 = vsub.f32 %v9117_v35, %v5475_v13 }
 0xe79   : > { %5536 = vadd.xlane.f32.xlu1 %v5506_v25  ;;  %v5507_v48 = vmul.f32 %v9191_v36, %v9191_v36 }
 0xe7b   : > { %5534 = vadd.xlane.f32.xlu0 %v5505_v61 }
 0xe7f   : > { %5538 = vadd.xlane.f32.xlu0 %v5507_v48 }
 0xee8   : > { %v5513_v2 = vpop.xlane.xlu1 %5512 }
 0xee9   : > { %v5542_v47 = vmul.f32 0.0078125, %v5513_v2 }
 0xeeb   : > { %v5558_v5 = vadd.f32 1e-05, %v5542_v47 }
 0xeec   : > { %v5509_v63 = vpop.xlane.xlu1 %5508 }
 0xeed   : > { %6934 = vrsqrt.f32 %v5558_v5  ;;  %v5540_v11 = vmul.f32 0.0078125, %v5509_v63 }
 0xeef   : > { %v5556_v15 = vadd.f32 1e-05, %v5540_v11 }
 0xef0   : > { %v5515_v55 = vpop.xlane.xlu0 %5514 }
 0xef1   : > { %6936 = vrsqrt.f32 %v5556_v15  ;;  %v5543_v35 = vmul.f32 0.0078125, %v5515_v55  ;;  %v5521_v21 = vpop.xlane.xlu1 %5520 }
 0xef2   : > { %v5546_v26 = vmul.f32 0.0078125, %v5521_v21 }
 0xef3   : > { %v5559_v0 = vadd.f32 1e-05, %v5543_v35 }
 0xef4   : > { %v5562_v23 = vadd.f32 1e-05, %v5546_v26  ;;  %v5511_v50 = vpop.xlane.xlu0 %5510 }
 0xef5   : > { %6938 = vrsqrt.f32 %v5559_v0  ;;  %v5541_v45 = vmul.f32 0.0078125, %v5511_v50  ;;  %v5517_v16 = vpop.xlane.xlu1 %5516 }
 0xef6   : > { %6940 = vrsqrt.f32 %v5562_v23  ;;  %v5544_v62 = vmul.f32 0.0078125, %v5517_v16 }
 0xef7   : > { %v6935_v59 = vpop.eup %6934  ;;  %v5557_v32 = vadd.f32 1e-05, %v5541_v45 }
 0xef8   : > { %v5590_v7 = vmul.f32 %v6935_v59, %v9121_v44  ;;  %v5560_v40 = vadd.f32 1e-05, %v5544_v62  ;;  %v5523_v42 = vpop.xlane.xlu0 %5522 }
 0xef9   : > { %6942 = vrsqrt.f32 %v5557_v32  ;;  %v5547_v22 = vmul.f32 0.0078125, %v5523_v42  ;;  %v5529_v17 = vpop.xlane.xlu1 %5528 }
 0xefa   : > { %v5606_v43 = vmul.f32 %v9201_v18, %v5590_v7  ;;  %6944 = vrsqrt.f32 %v5560_v40  ;;  %v5550_v29 = vmul.f32 0.0078125, %v5529_v17 }
 0xefb   : > { %v6937_v30 = vpop.eup %6936  ;;  %v5563_v44 = vadd.f32 1e-05, %v5547_v22 }
 0xefc   : > { %v9217_v37 = vadd.f32 %v9214_v58, %v5606_v43  ;;  %v5588_v33 = vmul.f32 %v6937_v30, %v9125_v20  ;;  %v5566_v27 = vadd.f32 1e-05, %v5550_v29  ;;  %v5519_v60 = vpop.xlane.xlu0 %5518 }
 0xefd   : > { %6946 = vrsqrt.f32 %v5563_v44  ;;  %v5545_v56 = vmul.f32 0.0078125, %v5519_v60  ;;  %v5525_v31 = vpop.xlane.xlu1 %5524 }
 0xefe   : > { %5638 = vst [vmem:[%s9209_s11 + $0x10] sm:$0xff] %v9217_v37  ;;  %v5604_v14 = vmul.f32 %v9201_v18, %v5588_v33  ;;  %6948 = vrsqrt.f32 %v5566_v27  ;;  %v5548_v24 = vmul.f32 0.0078125, %v5525_v31 }
 0xeff   : > { %v6939_v10 = vpop.eup %6938  ;;  %v5561_v52 = vadd.f32 1e-05, %v5545_v56 }
 0xf00   : > { %v6941_v57 = vpop.eup %6940  ;;  %v9224_v28 = vadd.f32 %v9214_v58, %v5604_v14  ;;  %v5591_v20 = vmul.f32 %v6939_v10, %v9129_v8  ;;  %v5564_v12 = vadd.f32 1e-05, %v5548_v24  ;;  %v5531_v6 = vpop.xlane.xlu0 %5530 }
 0xf01   : > { %v5594_v19 = vmul.f32 %v6941_v57, %v9131_v49  ;;  %6950 = vrsqrt.f32 %v5561_v52  ;;  %v5551_v13 = vmul.f32 0.0078125, %v5531_v6 }
 0xf02   : > { %5636 = vst [vmem:[%s9209_s11] sm:$0xff] %v9224_v28  ;;  %v5607_v1 = vmul.f32 %v9201_v18, %v5591_v20  ;;  %6952 = vrsqrt.f32 %v5564_v12  ;;  %v5533_v25 = vpop.xlane.xlu1 %5532 }
 0xf03   : > { %v6943_v61 = vpop.eup %6942  ;;  %v5610_v48 = vmul.f32 %v9201_v18, %v5594_v19  ;;  %v5567_v2 = vadd.f32 1e-05, %v5551_v13  ;;  %v5552_v47 = vmul.f32 0.0078125, %v5533_v25 }
 0xf04   : > { %v6945_v8 = vpop.eup %6944  ;;  %v9233_v5 = vadd.f32 %v9214_v58, %v5607_v1  ;;  %v5589_v49 = vmul.f32 %v6943_v61, %v9134_v3  ;;  %v5527_v63 = vpop.xlane.xlu0 %5526 }
 0xf05   : > { %v9237_v11 = vadd.f32 %v9214_v58, %v5610_v48  ;;  %v5592_v15 = vmul.f32 %v6945_v8, %v9141_v38  ;;  %6954 = vrsqrt.f32 %v5567_v2  ;;  %v5568_v55 = vadd.f32 1e-05, %v5552_v47 }
 0xf06   : > { %5639 = vst [vmem:[%s9209_s11 + $0x18] sm:$0xff] %v9233_v5  ;;  %v5605_v35 = vmul.f32 %v9201_v18, %v5589_v49  ;;  %v5549_v21 = vmul.f32 0.0078125, %v5527_v63  ;;  %v5537_v26 = vpop.xlane.xlu1 %5536 }
 0xf07   : > { %v6947_v0 = vpop.eup %6946  ;;  %5642 = vst [vmem:[%s9209_s11 + $0x30] sm:$0xff] %v9237_v11  ;;  %v5608_v3 = vmul.f32 %v9201_v18, %v5592_v15  ;;  %6956 = vrsqrt.f32 %v5568_v55  ;;  %v5554_v23 = vmul.f32 0.0078125, %v5537_v26  ;;  %v6984_v15 = vmov (!%p5961_p4), 0.0  }
 0xf08   : > { %v6949_v50 = vpop.eup %6948  ;;  %v9247_v38 = vadd.f32 %v9214_v58, %v5605_v35  ;;  %v5595_v45 = vmul.f32 %v6947_v0, %v9144_v34  ;;  %v5565_v16 = vadd.f32 1e-05, %v5549_v21  ;;  %v5535_v62 = vpop.xlane.xlu0 %5534  ;;  %5656 = vst [vmem:[%s9391_s10] sm:$0xff] (!%p5961_p4), %v6984_v15  ;;  %5657 = vst [vmem:[%s9391_s10 + $0x8] sm:$0xff] (!%p5961_p4), %v6984_v15 }
 0xf09   : > { %v9251_v59 = vadd.f32 %v9214_v58, %v5608_v3  ;;  %v5598_v32 = vmul.f32 %v6949_v50, %v9151_v4  ;;  %v5570_v7 = vadd.f32 1e-05, %v5554_v23  ;;  %v5553_v40 = vmul.f32 0.0078125, %v5535_v62 }
 0xf0a   : > { %5637 = vst [vmem:[%s9209_s11 + $0x8] sm:$0xff] %v9247_v38  ;;  %v5611_v42 = vmul.f32 %v9201_v18, %v5595_v45  ;;  %6958 = vrsqrt.f32 %v5565_v16 }
 0xf0b   : > { %v6951_v22 = vpop.eup %6950  ;;  %5640 = vst [vmem:[%s9209_s11 + $0x20] sm:$0xff] %v9251_v59  ;;  %v5614_v34 = vmul.f32 %v9201_v18, %v5598_v32  ;;  %6960 = vrsqrt.f32 %v5570_v7  ;;  %v5569_v17 = vadd.f32 1e-05, %v5553_v40 }
 0xf0c   : > { %v6953_v43 = vpop.eup %6952  ;;  %v9261_v29 = vadd.f32 %v9214_v58, %v5611_v42  ;;  %v5593_v4 = vmul.f32 %v6951_v22, %v9154_v54  ;;  %v5539_v30 = vpop.xlane.xlu0 %5538 }
 0xf0d   : > { %v9265_v44 = vadd.f32 %v9214_v58, %v5614_v34  ;;  %v5596_v33 = vmul.f32 %v6953_v43, %v9161_v51  ;;  %6962 = vrsqrt.f32 %v5569_v17  ;;  %v5555_v27 = vmul.f32 0.0078125, %v5539_v30 }
 0xf0e   : > { %5643 = vst [vmem:[%s9209_s11 + $0x38] sm:$0xff] %v9261_v29  ;;  %v5609_v60 = vmul.f32 %v9201_v18, %v5593_v4 }
 0xf0f   : > { %v6955_v56 = vpop.eup %6954  ;;  %5646 = vst [vmem:[%s9209_s11 + $0x50] sm:$0xff] %v9265_v44  ;;  %v5612_v31 = vmul.f32 %v9201_v18, %v5596_v33  ;;  %v5571_v54 = vadd.f32 1e-05, %v5555_v27 }
 0xf10   : > { %v9275_v14 = vadd.f32 %v9214_v58, %v5609_v60  ;;  %v5599_v24 = vmul.f32 %v6955_v56, %v9164_v39 }
 0xf11   : > { %v6957_v51 = vpop.eup %6956  ;;  %v9279_v10 = vadd.f32 %v9214_v58, %v5612_v31  ;;  %6964 = vrsqrt.f32 %v5571_v54 }
 0xf12   : > { %5641 = vst [vmem:[%s9209_s11 + $0x28] sm:$0xff] %v9275_v14  ;;  %v5615_v52 = vmul.f32 %v9201_v18, %v5599_v24  ;;  %v5600_v57 = vmul.f32 %v6957_v51, %v9174_v53 }
 0xf13   : > { %5644 = vst [vmem:[%s9209_s11 + $0x40] sm:$0xff] %v9279_v10 }
 0xf14   : > { %v6959_v20 = vpop.eup %6958  ;;  %v9288_v12 = vadd.f32 %v9214_v58, %v5615_v52  ;;  %v5616_v39 = vmul.f32 %v9201_v18, %v5600_v57 }
 0xf15   : > { %v6961_v6 = vpop.eup %6960  ;;  %v5597_v19 = vmul.f32 %v6959_v20, %v9171_v41 }
 0xf16   : > { %5647 = vst [vmem:[%s9209_s11 + $0x58] sm:$0xff] %v9288_v12  ;;  %v9295_v13 = vadd.f32 %v9214_v58, %v5616_v39  ;;  %v5602_v53 = vmul.f32 %v6961_v6, %v9184_v46 }
 0xf17   : > { %v6963_v1 = vpop.eup %6962  ;;  %v5613_v25 = vmul.f32 %v9201_v18, %v5597_v19 }
 0xf18   : > { %5648 = vst [vmem:[%s9209_s11 + $0x60] sm:$0xff] %v9295_v13  ;;  %v5618_v61 = vmul.f32 %v9201_v18, %v5602_v53  ;;  %v5601_v48 = vmul.f32 %v6963_v1, %v9181_v9 }
 0xf19   : > { %v9304_v41 = vadd.f32 %v9214_v58, %v5613_v25 }
 0xf1a   : > { %v9307_v2 = vadd.f32 %v9214_v58, %v5618_v61  ;;  %v5617_v47 = vmul.f32 %v9201_v18, %v5601_v48 }
 0xf1b   : > { %v6965_v8 = vpop.eup %6964  ;;  %5645 = vst [vmem:[%s9209_s11 + $0x48] sm:$0xff] %v9304_v41 }
 0xf1c   : > { %5650 = vst [vmem:[%s9209_s11 + $0x70] sm:$0xff] %v9307_v2  ;;  %v9315_v46 = vadd.f32 %v9214_v58, %v5617_v47  ;;  %v5603_v49 = vmul.f32 %v6965_v8, %v9191_v36  ;;  %5655 = sbr.rel (%p5961_p4) target bundleno = 3875 (0xf23), region = 60 }
 0xf1e   : > { %5649 = vst [vmem:[%s9209_s11 + $0x68] sm:$0xff] %v9315_v46  ;;  %v5619_v9 = vmul.f32 %v9201_v18, %v5603_v49 }
 0xf20   : > { %v9322_v63 = vadd.f32 %v9214_v58, %v5619_v9 }
 0xf22   : > { %5651 = vst [vmem:[%s9209_s11 + $0x78] sm:$0xff] %v9322_v63 }
 0xf23 PF: > { %v9502_v36 = vld [vmem:[#allocation4_spill] sm:$0xff]  ;;  %v9503_v18 = vld [vmem:[#allocation5_spill] sm:$0xff]  ;;  %v9504_v58 = vmov 0.0   ;;  %v9505_v35 = vld [vmem:[#allocation6_spill] sm:$0xff] }
 0xf24   : > { %vm5658_vm7 = vcmp.lt.s32.totalorder %v9503_v18, %v9502_v36  ;;  %v9506_v26 = vld [vmem:[#allocation7_spill] sm:$0xff]  ;;  %v9507_v3 = vld [vmem:[#allocation8_spill] sm:$0xff] }
 0xf25   : > { %v5962_v55 = vsel %vm5658_vm7, 1.0, %v9504_v58  ;;  %v9508_v50 = vld [vmem:[#allocation3_spill] sm:$0xff] }
 0xf26   : > { %v5677_v21 = vrot.slane %v5962_v55, %v9505_v35  ;;  %v5666_v0 = vrot.slane %v5962_v55, %v9506_v26  ;;  %v5688_v23 = vrot.slane %v5962_v55, %v9507_v3  ;;  %v9509_v45 = vsub.s32 3, %v9508_v50 }
 0xf27   : > { %v9510_v62 = vsub.s32 4, %v9508_v50  ;;  %v9511_v7 = vsub.s32 5, %v9508_v50  ;;  %v9512_v42 = vsub.s32 6, %v9508_v50  ;;  %v9513_v34 = vsub.s32 7, %v9508_v50 }
 0xf28   : > { %5679 = vbcast.lane.b32.xlu1 %v5677_v21, 256  ;;  %5668 = vbcast.lane.b32.xlu0 %v5666_v0, 256  ;;  %v5699_v16 = vrot.slane %v5962_v55, %v9509_v45 }
 0xf29   : > { %v5710_v32 = vrot.slane %v5962_v55, %v9510_v62  ;;  %v5721_v40 = vrot.slane %v5962_v55, %v9511_v7  ;;  %v5732_v22 = vrot.slane %v5962_v55, %v9512_v42  ;;  %v5743_v17 = vrot.slane %v5962_v55, %v9513_v34 }
 0xf2c   : > { %5683 = vbcast.lane.b32.xlu1 %v5677_v21, 264  ;;  %5672 = vbcast.lane.b32.xlu0 %v5666_v0, 264 }
 0xf30   : > { %5694 = vbcast.lane.b32.xlu1 %v5688_v23, 264  ;;  %5690 = vbcast.lane.b32.xlu0 %v5688_v23, 256 }
 0xf34   : > { %5705 = vbcast.lane.b32.xlu1 %v5699_v16, 264  ;;  %5701 = vbcast.lane.b32.xlu0 %v5699_v16, 256 }
 0xf38   : > { %5716 = vbcast.lane.b32.xlu1 %v5710_v32, 264  ;;  %5712 = vbcast.lane.b32.xlu0 %v5710_v32, 256 }
 0xf3c   : > { %5727 = vbcast.lane.b32.xlu1 %v5721_v40, 264  ;;  %5723 = vbcast.lane.b32.xlu0 %v5721_v40, 256 }
 0xf40   : > { %5738 = vbcast.lane.b32.xlu1 %v5732_v22, 264  ;;  %5734 = vbcast.lane.b32.xlu0 %v5732_v22, 256 }
 0xf44   : > { %5749 = vbcast.lane.b32.xlu1 %v5743_v17, 264  ;;  %5745 = vbcast.lane.b32.xlu0 %v5743_v17, 256 }
 0xf9a   : > { %v5680_v43 = vpop.permute.xlu1 %5679  ;;  %v5669_v4 = vpop.permute.xlu0 %5668 }
 0xf9b   : > { %v5753_v54 = vmul.f32 %v5680_v43, %v9217_v37  ;;  %v5751_v24 = vmul.f32 %v5669_v4, %v9224_v28 }
 0xf9d   : > { %v5767_v19 = vadd.f32 %v5753_v54, %v5751_v24 }
 0xf9e   : > { %v5684_v30 = vpop.permute.xlu1 %5683  ;;  %v5673_v33 = vpop.permute.xlu0 %5672 }
 0xf9f   : > { %v5754_v51 = vmul.f32 %v5684_v30, %v9233_v5  ;;  %v5752_v52 = vmul.f32 %v5673_v33, %v9247_v38 }
 0xfa1   : > { %v5774_v53 = vadd.f32 %v5754_v51, %v5752_v52 }
 0xfa2   : > { %v5695_v27 = vpop.permute.xlu1 %5694  ;;  %v5691_v60 = vpop.permute.xlu0 %5690 }
 0xfa3   : > { %v5756_v39 = vmul.f32 %v5695_v27, %v9275_v14  ;;  %v5755_v6 = vmul.f32 %v5691_v60, %v9251_v59 }
 0xfa5   : > { %v5775_v48 = vadd.f32 %v5774_v53, %v5756_v39  ;;  %v5768_v28 = vadd.f32 %v5767_v19, %v5755_v6 }
 0xfa6   : > { %v5706_v56 = vpop.permute.xlu1 %5705  ;;  %v5702_v31 = vpop.permute.xlu0 %5701 }
 0xfa7   : > { %v5758_v1 = vmul.f32 %v5706_v56, %v9261_v29  ;;  %v5757_v25 = vmul.f32 %v5702_v31, %v9237_v11 }
 0xfa9   : > { %v5776_v47 = vadd.f32 %v5775_v48, %v5758_v1  ;;  %v5769_v8 = vadd.f32 %v5768_v28, %v5757_v25 }
 0xfaa   : > { %v5717_v57 = vpop.permute.xlu1 %5716  ;;  %v5713_v20 = vpop.permute.xlu0 %5712 }
 0xfab   : > { %v5760_v5 = vmul.f32 %v5717_v57, %v9304_v41  ;;  %v5759_v38 = vmul.f32 %v5713_v20, %v9279_v10 }
 0xfad   : > { %v5777_v15 = vadd.f32 %v5776_v47, %v5760_v5  ;;  %v5770_v29 = vadd.f32 %v5769_v8, %v5759_v38 }
 0xfae   : > { %v5728_v61 = vpop.permute.xlu1 %5727  ;;  %v5724_v37 = vpop.permute.xlu0 %5723 }
 0xfaf   : > { %v5762_v14 = vmul.f32 %v5728_v61, %v9288_v12  ;;  %v5761_v59 = vmul.f32 %v5724_v37, %v9265_v44  ;;  %v5662_v44 = vld [vmem:[%s9391_s10 + $0x8] sm:$0xff] }
 0xfb1   : > { %v5778_v18 = vadd.f32 %v5777_v15, %v5762_v14  ;;  %v5771_v58 = vadd.f32 %v5770_v29, %v5761_v59 }
 0xfb2   : > { %v5739_v49 = vpop.permute.xlu1 %5738  ;;  %v5735_v9 = vpop.permute.xlu0 %5734 }
 0xfb3   : > { %v5764_v11 = vmul.f32 %v5739_v49, %v9315_v46  ;;  %v5763_v36 = vmul.f32 %v5735_v9, %v9295_v13  ;;  %v5661_v46 = vld [vmem:[%s9391_s10] sm:$0xff] }
 0xfb5   : > { %v5779_v35 = vadd.f32 %v5778_v18, %v5764_v11  ;;  %v5772_v10 = vadd.f32 %v5771_v58, %v5763_v36 }
 0xfb6   : > { %v5750_v55 = vpop.permute.xlu1 %5749  ;;  %v5746_v41 = vpop.permute.xlu0 %5745 }
 0xfb7   : > { %v5766_v21 = vmul.f32 %v5750_v55, %v9322_v63  ;;  %v5765_v12 = vmul.f32 %v5746_v41, %v9307_v2 }
 0xfb9   : > { %v5780_v26 = vadd.f32 %v5779_v35, %v5766_v21  ;;  %v5773_v13 = vadd.f32 %v5772_v10, %v5765_v12 }
 0xfbb   : > { %v5782_v0 = vadd.f32 %v5780_v26, %v5662_v44  ;;  %v5781_v3 = vadd.f32 %v5773_v13, %v5661_v46 }
 0xfbd   : > { %5784 = vst [vmem:[%s9391_s10 + $0x8] sm:$0xff] %v5782_v0  ;;  %5783 = vst [vmem:[%s9391_s10] sm:$0xff] %v5781_v3 }
 0xfbe PF: > { %s21_s13 = sadd.s32 1, %s6976_s13  }
 0xfbf   : > { %p18_p5 = scmp.ge.s32.totalorder %s21_s13, 4  }
 0xfc1   :  { %20 = sbr.rel (!%p18_p5) target bundleno = 1 (0x1), region = 98 }

</bundles_post_ra>
